<compile_context>
chip_gen: v7x
topology: tpu7x:2x2x1
jax: 0.10.0
libtpu: 0.0.40
codegen_flags: <defaults>
</compile_context>

<pallas_src>
import functools

import jax
import jax.numpy as jnp
import numpy as np
from jax.experimental import pallas as pl
from jax.experimental.pallas import tpu as pltpu


_VMEM_LIMIT = 64 * 1024 * 1024  # fits v7x (64 MiB physical); ample headroom on v5e/v6e.


# ----------------------------------------------------------------------------
# helpers
# ----------------------------------------------------------------------------
def _round_up(x, m):
    return ((x + m - 1) // m) * m


def _pad_to(x, shape):
    pads = [(0, s - d) for d, s in zip(x.shape, shape)]
    return jnp.pad(x, pads)


def _pick_time_block(T):
    """Time-block length: multiple of 16 (dense bf16 sublane tiles), capped at
    32, chosen to minimize padded timesteps (prefer the larger block on ties).
    T is padded up to a multiple of the block -- never degraded to TT=1."""
    if T <= 16:
        return 16
    return 32 if _round_up(T, 32) <= _round_up(T, 16) else 16


# ----------------------------------------------------------------------------
# Kernel 1: fused multi-layer tanh RNN (layer-0 input projection fused in).
#   grid = (T_pad // TT,)  -- serial over time blocks ("arbitrary").
#   Hidden state for every layer lives in a (L,B,H) f32 VMEM scratch; the
#   layer-0 block projection lives in a (B,TT,H) f32 VMEM scratch.
# ----------------------------------------------------------------------------
def _fused_rnn_kernel(x_ref, h0_ref, wih0_ref, b0_ref, wih_ref, whh_ref, b_ref,
                      out_ref, hn_ref, h_scr, xp_scr, *, last_t):
    tb = pl.program_id(0)
    nb = pl.num_programs(0)

    B, TT, _E = x_ref.shape
    L = whh_ref.shape[0]
    H = whh_ref.shape[-1]

    @pl.when(tb == 0)
    def _():
        h_scr[...] = h0_ref[...]

    # Layer-0 input projection for the whole time block: one batched MXU matmul
    # (rows = B*TT), bias (b_ih + b_hh of layer 0) folded in.
    x2d = x_ref[...].reshape(B * TT, _E)                        # bf16, (b,t) row order
    xp_scr[...] = (jnp.dot(x2d, wih0_ref[...],
                           preferred_element_type=jnp.float32)
                   + b0_ref[...]).reshape(B, TT, H)

    # Layer wavefront: at serial step s, layer l processes timestep t = s - l.
    # Layers are visited in decreasing l so layer l reads layer l-1's hidden
    # from the *previous* step (exactly h_{l-1}(t)); the L matmuls inside one
    # step are mutually independent, hiding the latency-bound 8-row h@W_hh.
    for s in range(TT + L - 1):
        for l in range(L - 1, -1, -1):
            t = s - l
            if t < 0 or t >= TT:
                continue
            h_prev = h_scr[l].astype(jnp.bfloat16)
            if l == 0:
                pre = xp_scr[:, t, :]
            else:
                inp = h_scr[l - 1].astype(jnp.bfloat16)          # y_{l-1}(t)
                pre = (jnp.dot(inp, wih_ref[l - 1],
                               preferred_element_type=jnp.float32)
                       + b_ref[l - 1])
            h_new = jnp.tanh(pre + jnp.dot(h_prev, whh_ref[l],
                                           preferred_element_type=jnp.float32))
            h_scr[l] = h_new
            if l == L - 1:
                out_ref[:, t, :] = h_new.astype(out_ref.dtype)   # bf16 block output
            if t == last_t:
                # Snapshot hidden at the last REAL timestep (padded steps of the
                # final block must not corrupt hn).
                @pl.when(tb == nb - 1)
                def _(h_new=h_new, l=l):
                    hn_ref[l] = h_new


def fused_rnn(x, h0, wih0, b0, wih_r, whh, b_r, tt, last_t):
    B, T_pad, E = x.shape
    L, _, H = h0.shape
    Lm1 = wih_r.shape[0]
    kern = functools.partial(_fused_rnn_kernel, last_t=last_t)
    out, hn = pl.pallas_call(
        kern,
        grid=(T_pad // tt,),
        in_specs=[
            pl.BlockSpec((B, tt, E), lambda t: (0, t, 0)),           # x block
            pl.BlockSpec((L, B, H), lambda t: (0, 0, 0),
                         pipeline_mode=pl.Buffered(1)),              # h0 (invariant)
            pl.BlockSpec((E, H), lambda t: (0, 0),
                         pipeline_mode=pl.Buffered(1)),              # W_ih^T layer 0
            pl.BlockSpec((1, H), lambda t: (0, 0),
                         pipeline_mode=pl.Buffered(1)),              # bias layer 0
            pl.BlockSpec((Lm1, H, H), lambda t: (0, 0, 0),
                         pipeline_mode=pl.Buffered(1)),              # W_ih^T layers>=1
            pl.BlockSpec((L, H, H), lambda t: (0, 0, 0),
                         pipeline_mode=pl.Buffered(1)),              # W_hh^T all layers
            pl.BlockSpec((Lm1, 1, H), lambda t: (0, 0, 0),
                         pipeline_mode=pl.Buffered(1)),              # bias layers>=1
        ],
        out_specs=(
            pl.BlockSpec((B, tt, H), lambda t: (0, t, 0)),           # bf16 block output
            pl.BlockSpec((L, B, H), lambda t: (0, 0, 0)),            # final hidden
        ),
        out_shape=(
            jax.ShapeDtypeStruct((B, T_pad, H), jnp.bfloat16),
            jax.ShapeDtypeStruct((L, B, H), jnp.float32),
        ),
        scratch_shapes=[
            pltpu.VMEM((L, B, H), jnp.float32),                      # hidden carry
            pltpu.VMEM((B, tt, H), jnp.float32),                     # layer-0 block proj
        ],
        input_output_aliases={1: 1},                                 # h0 -> hn in place
        compiler_params=pltpu.CompilerParams(
            dimension_semantics=("arbitrary",),
            vmem_limit_bytes=_VMEM_LIMIT),
    )(x, h0, wih0, b0, wih_r, whh, b_r)
    return out, hn


# ----------------------------------------------------------------------------
# Kernel 2: head, pass 1 -- Linear (H -> V) tiled over (time block, vocab tile)
#   with an online logsumexp (running max / running sum in VMEM scratch).
#   Writes unnormalized logits in (B,T,V) block order and per-row lse.
# ----------------------------------------------------------------------------
def _head_logits_kernel(x_ref, w_ref, b_ref, logit_ref, lse_ref, m_scr, l_scr):
    v = pl.program_id(1)
    nv = pl.num_programs(1)
    B, TT, H = x_ref.shape

    @pl.when(v == 0)
    def _():
        m_scr[...] = jnp.full(m_scr.shape, -jnp.inf, m_scr.dtype)
        l_scr[...] = jnp.zeros(l_scr.shape, l_scr.dtype)

    x2d = x_ref[...].reshape(B * TT, H)                              # bf16, (b,t) rows
    logits = (jnp.dot(x2d, w_ref[...], preferred_element_type=jnp.float32)
              + b_ref[...])                                          # (B*TT, Vt) f32
    logit_ref[...] = logits.reshape(B, TT, -1)

    m_old = m_scr[...]
    m_new = jnp.maximum(m_old, jnp.max(logits, axis=-1, keepdims=True))
    l_scr[...] = (l_scr[...] * jnp.exp(m_old - m_new)
                  + jnp.sum(jnp.exp(logits - m_new), axis=-1, keepdims=True))
    m_scr[...] = m_new

    @pl.when(v == nv - 1)
    def _():
        lse_ref[...] = (m_scr[...] + jnp.log(l_scr[...])).reshape(B, TT, 1)


def head_logits(feats, w, b, tt, vt):
    B, T_pad, H = feats.shape
    V_pad = w.shape[1]
    logits, lse = pl.pallas_call(
        _head_logits_kernel,
        grid=(T_pad // tt, V_pad // vt),
        in_specs=[
            pl.BlockSpec((B, tt, H), lambda t, v: (0, t, 0)),        # feats (bf16)
            pl.BlockSpec((H, vt), lambda t, v: (0, v)),              # W tile
            pl.BlockSpec((1, vt), lambda t, v: (0, v)),              # bias tile (f32)
        ],
        out_specs=(
            pl.BlockSpec((B, tt, vt), lambda t, v: (0, t, v)),       # unnormalized logits
            pl.BlockSpec((B, tt, 1), lambda t, v: (0, t, 0)),        # per-row lse
        ),
        out_shape=(
            jax.ShapeDtypeStruct((B, T_pad, V_pad), jnp.float32),
            jax.ShapeDtypeStruct((B, T_pad, 1), jnp.float32),
        ),
        scratch_shapes=[
            pltpu.VMEM((B * tt, 1), jnp.float32),                    # running max
            pltpu.VMEM((B * tt, 1), jnp.float32),                    # running sum
        ],
        compiler_params=pltpu.CompilerParams(
            dimension_semantics=("parallel", "arbitrary"),
            vmem_limit_bytes=_VMEM_LIMIT),
    )(feats, w, b)
    return logits, lse


# ----------------------------------------------------------------------------
# Kernel 3: head, pass 2 -- normalize (log_softmax = logits - lse), in place.
# ----------------------------------------------------------------------------
def _head_norm_kernel(logit_ref, lse_ref, o_ref):
    o_ref[...] = logit_ref[...] - lse_ref[...]


def head_normalize(logits, lse, tt, vt):
    B, T_pad, V_pad = logits.shape
    return pl.pallas_call(
        _head_norm_kernel,
        grid=(T_pad // tt, V_pad // vt),
        in_specs=[
            pl.BlockSpec((B, tt, vt), lambda t, v: (0, t, v)),
            pl.BlockSpec((B, tt, 1), lambda t, v: (0, t, 0)),
        ],
        out_specs=pl.BlockSpec((B, tt, vt), lambda t, v: (0, t, v)),
        out_shape=jax.ShapeDtypeStruct((B, T_pad, V_pad), jnp.float32),
        input_output_aliases={0: 0},                                 # in-place on logits
        compiler_params=pltpu.CompilerParams(
            dimension_semantics=("parallel", "parallel"),
            vmem_limit_bytes=_VMEM_LIMIT),
    )(logits, lse)


# ----------------------------------------------------------------------------
# Parameter prep (once) + jitted forward (mirrors RNN_LM.forward, eval mode).
# ----------------------------------------------------------------------------
def prepare_params(params, num_layers):
    """Pad / transpose / cast weights once (device-side), outside the jit."""
    V, E = params["embedding"].shape
    H = params["w_hh_l0"].shape[0]
    L = num_layers
    E_pad, H_pad = _round_up(E, 128), _round_up(H, 128)
    Vt = min(2048, _round_up(V, 128))
    V_pad = _round_up(V, Vt)

    prep = {
        "emb": params["embedding"].astype(jnp.bfloat16),                   # (V,E)
        "wih0": _pad_to(params["w_ih_l0"].T, (E_pad, H_pad)).astype(jnp.bfloat16),
        "b0": _pad_to((params["b_ih_l0"] + params["b_hh_l0"]).reshape(1, H),
                      (1, H_pad)).astype(jnp.float32),
        "whh": jnp.stack([_pad_to(params[f"w_hh_l{l}"].T, (H_pad, H_pad))
                          for l in range(L)]).astype(jnp.bfloat16),
        "w_head": _pad_to(params["lin_w"].T, (H_pad, V_pad)).astype(jnp.bfloat16),
        "b_head": jnp.pad(params["lin_b"], (0, V_pad - V),
                          constant_values=-1e30).reshape(1, V_pad).astype(jnp.float32),
    }
    if L > 1:
        prep["wih_r"] = jnp.stack(
            [_pad_to(params[f"w_ih_l{l}"].T, (H_pad, H_pad)) for l in range(1, L)]
        ).astype(jnp.bfloat16)
        prep["b_r"] = jnp.stack(
            [_pad_to((params[f"b_ih_l{l}"] + params[f"b_hh_l{l}"]).reshape(1, H),
                     (1, H_pad)) for l in range(1, L)]).astype(jnp.float32)
    else:
        prep["wih_r"] = jnp.zeros((1, H_pad, H_pad), jnp.bfloat16)         # unused
        prep["b_r"] = jnp.zeros((1, 1, H_pad), jnp.float32)               # unused
    return prep


def make_forward(vocab_size, embedding_dim, hidden_dim, num_layers):
    V, E, H, L = vocab_size, embedding_dim, hidden_dim, num_layers
    Vt = min(2048, _round_up(V, 128))

    @jax.jit
    def forward(prep, inputs, hidden):
        """inputs: (B, T) int32 token ids; hidden: (L, B, H) f32."""
        B, T = inputs.shape
        B_pad = _round_up(B, 8)
        TT = _pick_time_block(T)
        T_pad = _round_up(T, TT)
        last_t = (T - 1) % TT                                   # within the last block
        E_pad, H_pad = prep["wih0"].shape
        V_pad = prep["w_head"].shape[1]

        # Embedding gather from the bf16 table + eval-mode dropout (identity).
        # Batch-major layout is kept everywhere (no activation transposes).
        x = prep["emb"][inputs]                                  # (B, T, E) bf16
        x = _pad_to(x, (B_pad, T_pad, E_pad))

        h0 = _pad_to(hidden, (L, B_pad, H_pad)).astype(jnp.float32)

        out, hn = fused_rnn(x, h0, prep["wih0"], prep["b0"],
                            prep["wih_r"], prep["whh"], prep["b_r"],
                            TT, last_t)                          # out: (B,T_pad,H) bf16

        # TODO(synk): training-mode dropout on the RNN output not implemented.

        logits, lse = head_logits(out, prep["w_head"], prep["b_head"], TT, Vt)
        log_probs = head_normalize(logits, lse, TT, Vt)          # (B_pad,T_pad,V_pad)

        return log_probs[:B, :T, :V], hn[:, :B, :H]

    return forward


# ----------------------------------------------------------------------------
# Pure-JAX f32 reference for verification.
# ----------------------------------------------------------------------------
def reference_forward(params, inputs, hidden):
    emb = params["embedding"][inputs]
    x = emb
    num_layers = hidden.shape[0]
    h_finals = []
    for l in range(num_layers):
        h = hidden[l]
        outs = []
        for t in range(x.shape[1]):
            h = jnp.tanh(x[:, t] @ params[f"w_ih_l{l}"].T
                         + h @ params[f"w_hh_l{l}"].T
                         + params[f"b_ih_l{l}"] + params[f"b_hh_l{l}"])
            outs.append(h)
        x = jnp.stack(outs, axis=1)
        h_finals.append(h)
    logits = x @ params["lin_w"].T + params["lin_b"]
    log_probs = jax.nn.log_softmax(logits, axis=2)
    return log_probs, jnp.stack(h_finals, axis=0)


def init_params(key, vocab_size, embedding_dim, hidden_dim, num_layers):
    keys = jax.random.split(key, 3 + 4 * num_layers)
    k = 1.0 / np.sqrt(hidden_dim)
    params = {
        # "glove" embeddings — synthetic deterministic table (frozen in PyTorch).
        "embedding": jax.random.normal(
            keys[0], (vocab_size, embedding_dim), jnp.float32),
        "lin_w": jax.random.uniform(
            keys[1], (vocab_size, hidden_dim), jnp.float32, -k, k),
        "lin_b": jax.random.uniform(
            keys[2], (vocab_size,), jnp.float32, -k, k),
    }
    for l in range(num_layers):
        in_dim = embedding_dim if l == 0 else hidden_dim
        kk = keys[3 + 4 * l: 3 + 4 * (l + 1)]
        params[f"w_ih_l{l}"] = jax.random.uniform(
            kk[0], (hidden_dim, in_dim), jnp.float32, -k, k)
        params[f"w_hh_l{l}"] = jax.random.uniform(
            kk[1], (hidden_dim, hidden_dim), jnp.float32, -k, k)
        params[f"b_ih_l{l}"] = jax.random.uniform(
            kk[2], (hidden_dim,), jnp.float32, -k, k)
        params[f"b_hh_l{l}"] = jax.random.uniform(
            kk[3], (hidden_dim,), jnp.float32, -k, k)
    return params


if __name__ == "__main__":
    vocab_size = 50
    embedding_dim = 32
    hidden_dim = 32
    num_layers = 2
    batch = 2
    seq = 8

    key = jax.random.PRNGKey(0)
    pkey, ikey = jax.random.split(key)
    params = init_params(pkey, vocab_size, embedding_dim, hidden_dim, num_layers)

    inputs = jax.random.randint(ikey, (batch, seq), 0, vocab_size, jnp.int32)
    hidden0 = jnp.zeros((num_layers, batch, hidden_dim), jnp.float32)  # init_hidden

    prep = prepare_params(params, num_layers)
    forward = make_forward(vocab_size, embedding_dim, hidden_dim, num_layers)

    out, new_hidden = forward(prep, inputs, hidden0)
    out = jax.block_until_ready(out)
    new_hidden = jax.block_until_ready(new_hidden)

    ref_out, ref_hidden = reference_forward(params, inputs, hidden0)
    assert out.shape == (batch, seq, vocab_size)
    assert new_hidden.shape == (num_layers, batch, hidden_dim)
    # Tolerances account for bf16 MXU inputs (f32 accumulation) vs f32 reference.
    np.testing.assert_allclose(np.asarray(out), np.asarray(ref_out),
                               rtol=3e-2, atol=3e-2)
    np.testing.assert_allclose(np.asarray(new_hidden), np.asarray(ref_hidden),
                               rtol=3e-2, atol=3e-2)
    print("KERNEL_OK")
</pallas_src>

<mosaic_0001>
module attributes {stable_mosaic.version = 11 : i64} {
  func.func @_head_norm_kernel(%arg0: i32, %arg1: i32, %arg2: memref<8x16x128xf32, #tpu.memory_space<vmem>>, %arg3: memref<8x16x1xf32, #tpu.memory_space<vmem>>, %arg4: memref<8x16x128xf32, #tpu.memory_space<vmem>>) attributes {dimension_semantics = [#tpu.dimension_semantics<parallel>, #tpu.dimension_semantics<parallel>], iteration_bounds = array<i64: 1, 1>, scalar_prefetch = 0 : i64, scratch_operands = 0 : i64, tpu.core_type = #tpu.core_type<tc>, window_params = [{transform_indices = @transform_0, window_bounds = array<i64: 8, 16, 128>}, {transform_indices = @transform_1, window_bounds = array<i64: 8, 16, 1>}, {transform_indices = @transform_2, window_bounds = array<i64: 8, 16, 128>}]} {
    %c0 = arith.constant 0 : index
    %c0_0 = arith.constant 0 : index
    %c0_1 = arith.constant 0 : index
    %0 = vector.load %arg2[%c0, %c0_0, %c0_1] : memref<8x16x128xf32, #tpu.memory_space<vmem>>, vector<8x16x128xf32>
    %c0_2 = arith.constant 0 : index
    %c0_3 = arith.constant 0 : index
    %c0_4 = arith.constant 0 : index
    %1 = vector.load %arg3[%c0_2, %c0_3, %c0_4] : memref<8x16x1xf32, #tpu.memory_space<vmem>>, vector<8x16x1xf32>
    %2 = vector.broadcast %1 : vector<8x16x1xf32> to vector<8x16x128xf32>
    %3 = arith.subf %0, %2 : vector<8x16x128xf32>
    %c0_5 = arith.constant 0 : index
    %c0_6 = arith.constant 0 : index
    %c0_7 = arith.constant 0 : index
    %4 = vector.load %arg4[%c0_5, %c0_6, %c0_7] : memref<8x16x128xf32, #tpu.memory_space<vmem>>, vector<8x16x128xf32>
    tpu.vector_store %arg4[%c0_5, %c0_6, %c0_7], %3 {strides = array<i32>} : memref<8x16x128xf32, #tpu.memory_space<vmem>>, vector<8x16x128xf32>,
    return
  }
  func.func @transform_0(%arg0: i32, %arg1: i32) -> (i32, i32, i32) {
    %c0_i32 = arith.constant 0 : i32
    %c0_i32_0 = arith.constant 0 : i32
    return %c0_i32, %arg0, %arg1 : i32, i32, i32
  }
  func.func @transform_1(%arg0: i32, %arg1: i32) -> (i32, i32, i32) {
    %c0_i32 = arith.constant 0 : i32
    %c0_i32_0 = arith.constant 0 : i32
    %c0_i32_1 = arith.constant 0 : i32
    return %c0_i32, %arg0, %c0_i32_0 : i32, i32, i32
  }
  func.func @transform_2(%arg0: i32, %arg1: i32) -> (i32, i32, i32) {
    %c0_i32 = arith.constant 0 : i32
    %c0_i32_0 = arith.constant 0 : i32
    return %c0_i32, %arg0, %arg1 : i32, i32, i32
  }
}

module attributes {stable_mosaic.version = 11 : i64} {
  func.func @_head_logits_kernel(%arg0: i32, %arg1: i32, %arg2: memref<8x16x128xbf16, #tpu.memory_space<vmem>>, %arg3: memref<128x128xbf16, #tpu.memory_space<vmem>>, %arg4: memref<1x128xf32, #tpu.memory_space<vmem>>, %arg5: memref<8x16x128xf32, #tpu.memory_space<vmem>>, %arg6: memref<8x16x1xf32, #tpu.memory_space<vmem>>, %arg7: memref<128x1xf32, #tpu.memory_space<vmem>>, %arg8: memref<128x1xf32, #tpu.memory_space<vmem>>) attributes {dimension_semantics = [#tpu.dimension_semantics<parallel>, #tpu.dimension_semantics<arbitrary>], iteration_bounds = array<i64: 1, 1>, scalar_prefetch = 0 : i64, scratch_operands = 2 : i64, tpu.core_type = #tpu.core_type<tc>, window_params = [{transform_indices = @transform_0, window_bounds = array<i64: 8, 16, 128>}, {transform_indices = @transform_1, window_bounds = array<i64: 128, 128>}, {transform_indices = @transform_2, window_bounds = array<i64: 1, 128>}, {transform_indices = @transform_3, window_bounds = array<i64: 8, 16, 128>}, {transform_indices = @transform_4, window_bounds = array<i64: 8, 16, 1>}]} {
    %c0_i32 = arith.constant 0 : i32
    %0 = arith.cmpi eq, %arg1, %c0_i32 : i32
    %1 = arith.extui %0 : i1 to i32
    %c0_i32_0 = arith.constant 0 : i32
    %2 = arith.cmpi ne, %1, %c0_i32_0 : i32
    scf.if %2 {
      %cst_22 = arith.constant 0xFF800000 : f32
      %31 = vector.broadcast %cst_22 : f32 to vector<128x1xf32>
      %c0_23 = arith.constant 0 : index
      %c0_24 = arith.constant 0 : index
      %32 = vector.load %arg7[%c0_23, %c0_24] : memref<128x1xf32, #tpu.memory_space<vmem>>, vector<128x1xf32>
      tpu.vector_store %arg7[%c0_23, %c0_24], %31 {strides = array<i32>} : memref<128x1xf32, #tpu.memory_space<vmem>>, vector<128x1xf32>,
      %cst_25 = arith.constant 0.000000e+00 : f32
      %33 = vector.broadcast %cst_25 : f32 to vector<128x1xf32>
      %c0_26 = arith.constant 0 : index
      %c0_27 = arith.constant 0 : index
      %34 = vector.load %arg8[%c0_26, %c0_27] : memref<128x1xf32, #tpu.memory_space<vmem>>, vector<128x1xf32>
      tpu.vector_store %arg8[%c0_26, %c0_27], %33 {strides = array<i32>} : memref<128x1xf32, #tpu.memory_space<vmem>>, vector<128x1xf32>,
    } else {
    }
    %c0 = arith.constant 0 : index
    %c0_1 = arith.constant 0 : index
    %c0_2 = arith.constant 0 : index
    %3 = vector.load %arg2[%c0, %c0_1, %c0_2] : memref<8x16x128xbf16, #tpu.memory_space<vmem>>, vector<8x16x128xbf16>
    %4 = vector.shape_cast %3 : vector<8x16x128xbf16> to vector<128x128xbf16>
    %c0_3 = arith.constant 0 : index
    %c0_4 = arith.constant 0 : index
    %5 = vector.load %arg3[%c0_3, %c0_4] : memref<128x128xbf16, #tpu.memory_space<vmem>>, vector<128x128xbf16>
    %cst = arith.constant dense<0.000000e+00> : vector<128x128xf32>
    %6 = tpu.matmul %4, %5, %cst {dimension_numbers = #tpu.dot_dimension_numbers<[1], [0], [0], [1], [0, 0, 1, 1], [], []>} : vector<128x128xbf16>, vector<128x128xbf16>, vector<128x128xf32> -> vector<128x128xf32>
    %c0_5 = arith.constant 0 : index
    %c0_6 = arith.constant 0 : index
    %7 = vector.load %arg4[%c0_5, %c0_6] : memref<1x128xf32, #tpu.memory_space<vmem>>, vector<1x128xf32>
    %8 = vector.broadcast %7 : vector<1x128xf32> to vector<128x128xf32>
    %9 = arith.addf %6, %8 : vector<128x128xf32>
    %10 = vector.shape_cast %9 : vector<128x128xf32> to vector<8x16x128xf32>
    %c0_7 = arith.constant 0 : index
    %c0_8 = arith.constant 0 : index
    %c0_9 = arith.constant 0 : index
    %11 = vector.load %arg5[%c0_7, %c0_8, %c0_9] : memref<8x16x128xf32, #tpu.memory_space<vmem>>, vector<8x16x128xf32>
    tpu.vector_store %arg5[%c0_7, %c0_8, %c0_9], %10 {strides = array<i32>} : memref<8x16x128xf32, #tpu.memory_space<vmem>>, vector<8x16x128xf32>,
    %c0_10 = arith.constant 0 : index
    %c0_11 = arith.constant 0 : index
    %12 = vector.load %arg7[%c0_10, %c0_11] : memref<128x1xf32, #tpu.memory_space<vmem>>, vector<128x1xf32>
    %cst_12 = arith.constant dense<0xFF800000> : vector<128xf32>
    %13 = vector.multi_reduction <maximumf>, %9, %cst_12 [1] : vector<128x128xf32> to vector<128xf32>
    %14 = vector.shape_cast %13 : vector<128xf32> to vector<128x1xf32>
    %15 = arith.maximumf %12, %14 : vector<128x1xf32>
    %c0_13 = arith.constant 0 : index
    %c0_14 = arith.constant 0 : index
    %16 = vector.load %arg8[%c0_13, %c0_14] : memref<128x1xf32, #tpu.memory_space<vmem>>, vector<128x1xf32>
    %17 = arith.subf %12, %15 : vector<128x1xf32>
    %18 = math.exp %17 : vector<128x1xf32>
    %19 = arith.mulf %16, %18 : vector<128x1xf32>
    %20 = vector.broadcast %15 : vector<128x1xf32> to vector<128x128xf32>
    %21 = arith.subf %9, %20 : vector<128x128xf32>
    %22 = math.exp %21 : vector<128x128xf32>
    %cst_15 = arith.constant dense<0.000000e+00> : vector<128xf32>
    %23 = vector.multi_reduction <add>, %22, %cst_15 [1] : vector<128x128xf32> to vector<128xf32>
    %24 = vector.shape_cast %23 : vector<128xf32> to vector<128x1xf32>
    %25 = arith.addf %19, %24 : vector<128x1xf32>
    %c0_16 = arith.constant 0 : index
    %c0_17 = arith.constant 0 : index
    %26 = vector.load %arg8[%c0_16, %c0_17] : memref<128x1xf32, #tpu.memory_space<vmem>>, vector<128x1xf32>
    tpu.vector_store %arg8[%c0_16, %c0_17], %25 {strides = array<i32>} : memref<128x1xf32, #tpu.memory_space<vmem>>, vector<128x1xf32>,
    %c0_18 = arith.constant 0 : index
    %c0_19 = arith.constant 0 : index
    %27 = vector.load %arg7[%c0_18, %c0_19] : memref<128x1xf32, #tpu.memory_space<vmem>>, vector<128x1xf32>
    tpu.vector_store %arg7[%c0_18, %c0_19], %15 {strides = array<i32>} : memref<128x1xf32, #tpu.memory_space<vmem>>, vector<128x1xf32>,
    %c0_i32_20 = arith.constant 0 : i32
    %28 = arith.cmpi eq, %arg1, %c0_i32_20 : i32
    %29 = arith.extui %28 : i1 to i32
    %c0_i32_21 = arith.constant 0 : i32
    %30 = arith.cmpi ne, %29, %c0_i32_21 : i32
    scf.if %30 {
      %c0_22 = arith.constant 0 : index
      %c0_23 = arith.constant 0 : index
      %31 = vector.load %arg7[%c0_22, %c0_23] : memref<128x1xf32, #tpu.memory_space<vmem>>, vector<128x1xf32>
      %c0_24 = arith.constant 0 : index
      %c0_25 = arith.constant 0 : index
      %32 = vector.load %arg8[%c0_24, %c0_25] : memref<128x1xf32, #tpu.memory_space<vmem>>, vector<128x1xf32>
      %33 = math.log %32 : vector<128x1xf32>
      %34 = arith.addf %31, %33 : vector<128x1xf32>
      %35 = vector.shape_cast %34 : vector<128x1xf32> to vector<8x16x1xf32>
      %c0_26 = arith.constant 0 : index
      %c0_27 = arith.constant 0 : index
      %c0_28 = arith.constant 0 : index
      %36 = vector.load %arg6[%c0_26, %c0_27, %c0_28] : memref<8x16x1xf32, #tpu.memory_space<vmem>>, vector<8x16x1xf32>
      tpu.vector_store %arg6[%c0_26, %c0_27, %c0_28], %35 {strides = array<i32>} : memref<8x16x1xf32, #tpu.memory_space<vmem>>, vector<8x16x1xf32>,
    } else {
    }
    return
  }
  func.func @transform_0(%arg0: i32, %arg1: i32) -> (i32, i32, i32) {
    %c0_i32 = arith.constant 0 : i32
    %c0_i32_0 = arith.constant 0 : i32
    %c0_i32_1 = arith.constant 0 : i32
    return %c0_i32, %arg0, %c0_i32_0 : i32, i32, i32
  }
  func.func @transform_1(%arg0: i32, %arg1: i32) -> (i32, i32) {
    %c0_i32 = arith.constant 0 : i32
    %c0_i32_0 = arith.constant 0 : i32
    return %c0_i32, %arg1 : i32, i32
  }
  func.func @transform_2(%arg0: i32, %arg1: i32) -> (i32, i32) {
    %c0_i32 = arith.constant 0 : i32
    %c0_i32_0 = arith.constant 0 : i32
    return %c0_i32, %arg1 : i32, i32
  }
  func.func @transform_3(%arg0: i32, %arg1: i32) -> (i32, i32, i32) {
    %c0_i32 = arith.constant 0 : i32
    %c0_i32_0 = arith.constant 0 : i32
    return %c0_i32, %arg0, %arg1 : i32, i32, i32
  }
  func.func @transform_4(%arg0: i32, %arg1: i32) -> (i32, i32, i32) {
    %c0_i32 = arith.constant 0 : i32
    %c0_i32_0 = arith.constant 0 : i32
    %c0_i32_1 = arith.constant 0 : i32
    return %c0_i32, %arg0, %c0_i32_0 : i32, i32, i32
  }
}

module attributes {stable_mosaic.version = 11 : i64} {
  func.func @_fused_rnn_kernel(%arg0: i32, %arg1: memref<8x16x128xbf16, #tpu.memory_space<vmem>>, %arg2: memref<2x8x128xf32, #tpu.memory_space<vmem>>, %arg3: memref<128x128xbf16, #tpu.memory_space<vmem>>, %arg4: memref<1x128xf32, #tpu.memory_space<vmem>>, %arg5: memref<1x128x128xbf16, #tpu.memory_space<vmem>>, %arg6: memref<2x128x128xbf16, #tpu.memory_space<vmem>>, %arg7: memref<1x1x128xf32, #tpu.memory_space<vmem>>, %arg8: memref<8x16x128xbf16, #tpu.memory_space<vmem>>, %arg9: memref<2x8x128xf32, #tpu.memory_space<vmem>>, %arg10: memref<2x8x128xf32, #tpu.memory_space<vmem>>, %arg11: memref<8x16x128xf32, #tpu.memory_space<vmem>>) attributes {dimension_semantics = [#tpu.dimension_semantics<arbitrary>], iteration_bounds = array<i64: 1>, scalar_prefetch = 0 : i64, scratch_operands = 2 : i64, tpu.core_type = #tpu.core_type<tc>, window_params = [{transform_indices = @transform_0, window_bounds = array<i64: 8, 16, 128>}, {pipeline_mode = #tpu.pipeline_mode<synchronous>, transform_indices = @transform_1, window_bounds = array<i64: 2, 8, 128>}, {pipeline_mode = #tpu.pipeline_mode<synchronous>, transform_indices = @transform_2, window_bounds = array<i64: 128, 128>}, {pipeline_mode = #tpu.pipeline_mode<synchronous>, transform_indices = @transform_3, window_bounds = array<i64: 1, 128>}, {pipeline_mode = #tpu.pipeline_mode<synchronous>, transform_indices = @transform_4, window_bounds = array<i64: 1, 128, 128>}, {pipeline_mode = #tpu.pipeline_mode<synchronous>, transform_indices = @transform_5, window_bounds = array<i64: 2, 128, 128>}, {pipeline_mode = #tpu.pipeline_mode<synchronous>, transform_indices = @transform_6, window_bounds = array<i64: 1, 1, 128>}, {transform_indices = @transform_7, window_bounds = array<i64: 8, 16, 128>}, {pipeline_mode = #tpu.pipeline_mode<synchronous>, transform_indices = @transform_8, window_bounds = array<i64: 2, 8, 128>}]} {
    %c0_i32 = arith.constant 0 : i32
    %0 = arith.cmpi eq, %arg0, %c0_i32 : i32
    %1 = arith.extui %0 : i1 to i32
    %c0_i32_0 = arith.constant 0 : i32
    %2 = arith.cmpi ne, %1, %c0_i32_0 : i32
    scf.if %2 {
      %c0_575 = arith.constant 0 : index
      %c0_576 = arith.constant 0 : index
      %c0_577 = arith.constant 0 : index
      %626 = vector.load %arg2[%c0_575, %c0_576, %c0_577] : memref<2x8x128xf32, #tpu.memory_space<vmem>>, vector<2x8x128xf32>
      %c0_578 = arith.constant 0 : index
      %c0_579 = arith.constant 0 : index
      %c0_580 = arith.constant 0 : index
      %627 = vector.load %arg10[%c0_578, %c0_579, %c0_580] : memref<2x8x128xf32, #tpu.memory_space<vmem>>, vector<2x8x128xf32>
      tpu.vector_store %arg10[%c0_578, %c0_579, %c0_580], %626 {strides = array<i32>} : memref<2x8x128xf32, #tpu.memory_space<vmem>>, vector<2x8x128xf32>,
    } else {
    }
    %c0 = arith.constant 0 : index
    %c0_1 = arith.constant 0 : index
    %c0_2 = arith.constant 0 : index
    %3 = vector.load %arg1[%c0, %c0_1, %c0_2] : memref<8x16x128xbf16, #tpu.memory_space<vmem>>, vector<8x16x128xbf16>
    %4 = vector.shape_cast %3 : vector<8x16x128xbf16> to vector<128x128xbf16>
    %c0_3 = arith.constant 0 : index
    %c0_4 = arith.constant 0 : index
    %5 = vector.load %arg3[%c0_3, %c0_4] : memref<128x128xbf16, #tpu.memory_space<vmem>>, vector<128x128xbf16>
    %cst = arith.constant dense<0.000000e+00> : vector<128x128xf32>
    %6 = tpu.matmul %4, %5, %cst {dimension_numbers = #tpu.dot_dimension_numbers<[1], [0], [0], [1], [0, 0, 1, 1], [], []>} : vector<128x128xbf16>, vector<128x128xbf16>, vector<128x128xf32> -> vector<128x128xf32>
    %c0_5 = arith.constant 0 : index
    %c0_6 = arith.constant 0 : index
    %7 = vector.load %arg4[%c0_5, %c0_6] : memref<1x128xf32, #tpu.memory_space<vmem>>, vector<1x128xf32>
    %8 = vector.broadcast %7 : vector<1x128xf32> to vector<128x128xf32>
    %9 = arith.addf %6, %8 : vector<128x128xf32>
    %10 = vector.shape_cast %9 : vector<128x128xf32> to vector<8x16x128xf32>
    %c0_7 = arith.constant 0 : index
    %c0_8 = arith.constant 0 : index
    %c0_9 = arith.constant 0 : index
    %11 = vector.load %arg11[%c0_7, %c0_8, %c0_9] : memref<8x16x128xf32, #tpu.memory_space<vmem>>, vector<8x16x128xf32>
    tpu.vector_store %arg11[%c0_7, %c0_8, %c0_9], %10 {strides = array<i32>} : memref<8x16x128xf32, #tpu.memory_space<vmem>>, vector<8x16x128xf32>,
    %c0_10 = arith.constant 0 : index
    %c0_11 = arith.constant 0 : index
    %c0_12 = arith.constant 0 : index
    %12 = vector.load %arg10[%c0_10, %c0_11, %c0_12] : memref<2x8x128xf32, #tpu.memory_space<vmem>>, vector<1x8x128xf32>
    %13 = vector.shape_cast %12 : vector<1x8x128xf32> to vector<8x128xf32>
    %14 = arith.truncf %13 : vector<8x128xf32> to vector<8x128xbf16>
    %c0_13 = arith.constant 0 : index
    %c0_14 = arith.constant 0 : index
    %c0_15 = arith.constant 0 : index
    %15 = vector.load %arg11[%c0_13, %c0_14, %c0_15] : memref<8x16x128xf32, #tpu.memory_space<vmem>>, vector<8x1x128xf32>
    %16 = vector.shape_cast %15 : vector<8x1x128xf32> to vector<8x128xf32>
    %c0_16 = arith.constant 0 : index
    %c0_17 = arith.constant 0 : index
    %c0_18 = arith.constant 0 : index
    %17 = vector.load %arg6[%c0_16, %c0_17, %c0_18] : memref<2x128x128xbf16, #tpu.memory_space<vmem>>, vector<1x128x128xbf16>
    %18 = vector.shape_cast %17 : vector<1x128x128xbf16> to vector<128x128xbf16>
    %cst_19 = arith.constant dense<0.000000e+00> : vector<8x128xf32>
    %19 = tpu.matmul %14, %18, %cst_19 {dimension_numbers = #tpu.dot_dimension_numbers<[1], [0], [0], [1], [0, 0, 1, 1], [], []>} : vector<8x128xbf16>, vector<128x128xbf16>, vector<8x128xf32> -> vector<8x128xf32>
    %20 = arith.addf %16, %19 : vector<8x128xf32>
    %21 = math.tanh %20 : vector<8x128xf32>
    %c0_20 = arith.constant 0 : index
    %c0_21 = arith.constant 0 : index
    %c0_22 = arith.constant 0 : index
    %22 = vector.load %arg10[%c0_20, %c0_21, %c0_22] : memref<2x8x128xf32, #tpu.memory_space<vmem>>, vector<1x8x128xf32>
    %23 = vector.shape_cast %22 : vector<1x8x128xf32> to vector<8x128xf32>
    %24 = vector.shape_cast %21 : vector<8x128xf32> to vector<1x8x128xf32>
    tpu.vector_store %arg10[%c0_20, %c0_21, %c0_22], %24 {strides = array<i32>} : memref<2x8x128xf32, #tpu.memory_space<vmem>>, vector<1x8x128xf32>,
    %c1 = arith.constant 1 : index
    %c0_23 = arith.constant 0 : index
    %c0_24 = arith.constant 0 : index
    %25 = vector.load %arg10[%c1, %c0_23, %c0_24] : memref<2x8x128xf32, #tpu.memory_space<vmem>>, vector<1x8x128xf32>
    %26 = vector.shape_cast %25 : vector<1x8x128xf32> to vector<8x128xf32>
    %27 = arith.truncf %26 : vector<8x128xf32> to vector<8x128xbf16>
    %c0_25 = arith.constant 0 : index
    %c0_26 = arith.constant 0 : index
    %c0_27 = arith.constant 0 : index
    %28 = vector.load %arg10[%c0_25, %c0_26, %c0_27] : memref<2x8x128xf32, #tpu.memory_space<vmem>>, vector<1x8x128xf32>
    %29 = vector.shape_cast %28 : vector<1x8x128xf32> to vector<8x128xf32>
    %30 = arith.truncf %29 : vector<8x128xf32> to vector<8x128xbf16>
    %c0_28 = arith.constant 0 : index
    %c0_29 = arith.constant 0 : index
    %c0_30 = arith.constant 0 : index
    %31 = vector.load %arg5[%c0_28, %c0_29, %c0_30] : memref<1x128x128xbf16, #tpu.memory_space<vmem>>, vector<1x128x128xbf16>
    %32 = vector.shape_cast %31 : vector<1x128x128xbf16> to vector<128x128xbf16>
    %cst_31 = arith.constant dense<0.000000e+00> : vector<8x128xf32>
    %33 = tpu.matmul %30, %32, %cst_31 {dimension_numbers = #tpu.dot_dimension_numbers<[1], [0], [0], [1], [0, 0, 1, 1], [], []>} : vector<8x128xbf16>, vector<128x128xbf16>, vector<8x128xf32> -> vector<8x128xf32>
    %c0_32 = arith.constant 0 : index
    %c0_33 = arith.constant 0 : index
    %c0_34 = arith.constant 0 : index
    %34 = vector.load %arg7[%c0_32, %c0_33, %c0_34] : memref<1x1x128xf32, #tpu.memory_space<vmem>>, vector<1x1x128xf32>
    %35 = vector.shape_cast %34 : vector<1x1x128xf32> to vector<1x128xf32>
    %36 = vector.broadcast %35 : vector<1x128xf32> to vector<8x128xf32>
    %37 = arith.addf %33, %36 : vector<8x128xf32>
    %c1_35 = arith.constant 1 : index
    %c0_36 = arith.constant 0 : index
    %c0_37 = arith.constant 0 : index
    %38 = vector.load %arg6[%c1_35, %c0_36, %c0_37] : memref<2x128x128xbf16, #tpu.memory_space<vmem>>, vector<1x128x128xbf16>
    %39 = vector.shape_cast %38 : vector<1x128x128xbf16> to vector<128x128xbf16>
    %cst_38 = arith.constant dense<0.000000e+00> : vector<8x128xf32>
    %40 = tpu.matmul %27, %39, %cst_38 {dimension_numbers = #tpu.dot_dimension_numbers<[1], [0], [0], [1], [0, 0, 1, 1], [], []>} : vector<8x128xbf16>, vector<128x128xbf16>, vector<8x128xf32> -> vector<8x128xf32>
    %41 = arith.addf %37, %40 : vector<8x128xf32>
    %42 = math.tanh %41 : vector<8x128xf32>
    %c1_39 = arith.constant 1 : index
    %c0_40 = arith.constant 0 : index
    %c0_41 = arith.constant 0 : index
    %43 = vector.load %arg10[%c1_39, %c0_40, %c0_41] : memref<2x8x128xf32, #tpu.memory_space<vmem>>, vector<1x8x128xf32>
    %44 = vector.shape_cast %43 : vector<1x8x128xf32> to vector<8x128xf32>
    %45 = vector.shape_cast %42 : vector<8x128xf32> to vector<1x8x128xf32>
    tpu.vector_store %arg10[%c1_39, %c0_40, %c0_41], %45 {strides = array<i32>} : memref<2x8x128xf32, #tpu.memory_space<vmem>>, vector<1x8x128xf32>,
    %46 = arith.truncf %42 : vector<8x128xf32> to vector<8x128xbf16>
    %c0_42 = arith.constant 0 : index
    %c0_43 = arith.constant 0 : index
    %c0_44 = arith.constant 0 : index
    %47 = vector.load %arg8[%c0_42, %c0_43, %c0_44] : memref<8x16x128xbf16, #tpu.memory_space<vmem>>, vector<8x1x128xbf16>
    %48 = vector.shape_cast %47 : vector<8x1x128xbf16> to vector<8x128xbf16>
    %49 = vector.shape_cast %46 : vector<8x128xbf16> to vector<8x1x128xbf16>
    tpu.vector_store %arg8[%c0_42, %c0_43, %c0_44], %49 {strides = array<i32>} : memref<8x16x128xbf16, #tpu.memory_space<vmem>>, vector<8x1x128xbf16>,
    %c0_45 = arith.constant 0 : index
    %c0_46 = arith.constant 0 : index
    %c0_47 = arith.constant 0 : index
    %50 = vector.load %arg10[%c0_45, %c0_46, %c0_47] : memref<2x8x128xf32, #tpu.memory_space<vmem>>, vector<1x8x128xf32>
    %51 = vector.shape_cast %50 : vector<1x8x128xf32> to vector<8x128xf32>
    %52 = arith.truncf %51 : vector<8x128xf32> to vector<8x128xbf16>
    %c0_48 = arith.constant 0 : index
    %c1_49 = arith.constant 1 : index
    %c0_50 = arith.constant 0 : index
    %53 = vector.load %arg11[%c0_48, %c1_49, %c0_50] : memref<8x16x128xf32, #tpu.memory_space<vmem>>, vector<8x1x128xf32>
    %54 = vector.shape_cast %53 : vector<8x1x128xf32> to vector<8x128xf32>
    %c0_51 = arith.constant 0 : index
    %c0_52 = arith.constant 0 : index
    %c0_53 = arith.constant 0 : index
    %55 = vector.load %arg6[%c0_51, %c0_52, %c0_53] : memref<2x128x128xbf16, #tpu.memory_space<vmem>>, vector<1x128x128xbf16>
    %56 = vector.shape_cast %55 : vector<1x128x128xbf16> to vector<128x128xbf16>
    %cst_54 = arith.constant dense<0.000000e+00> : vector<8x128xf32>
    %57 = tpu.matmul %52, %56, %cst_54 {dimension_numbers = #tpu.dot_dimension_numbers<[1], [0], [0], [1], [0, 0, 1, 1], [], []>} : vector<8x128xbf16>, vector<128x128xbf16>, vector<8x128xf32> -> vector<8x128xf32>
    %58 = arith.addf %54, %57 : vector<8x128xf32>
    %59 = math.tanh %58 : vector<8x128xf32>
    %c0_55 = arith.constant 0 : index
    %c0_56 = arith.constant 0 : index
    %c0_57 = arith.constant 0 : index
    %60 = vector.load %arg10[%c0_55, %c0_56, %c0_57] : memref<2x8x128xf32, #tpu.memory_space<vmem>>, vector<1x8x128xf32>
    %61 = vector.shape_cast %60 : vector<1x8x128xf32> to vector<8x128xf32>
    %62 = vector.shape_cast %59 : vector<8x128xf32> to vector<1x8x128xf32>
    tpu.vector_store %arg10[%c0_55, %c0_56, %c0_57], %62 {strides = array<i32>} : memref<2x8x128xf32, #tpu.memory_space<vmem>>, vector<1x8x128xf32>,
    %c1_58 = arith.constant 1 : index
    %c0_59 = arith.constant 0 : index
    %c0_60 = arith.constant 0 : index
    %63 = vector.load %arg10[%c1_58, %c0_59, %c0_60] : memref<2x8x128xf32, #tpu.memory_space<vmem>>, vector<1x8x128xf32>
    %64 = vector.shape_cast %63 : vector<1x8x128xf32> to vector<8x128xf32>
    %65 = arith.truncf %64 : vector<8x128xf32> to vector<8x128xbf16>
    %c0_61 = arith.constant 0 : index
    %c0_62 = arith.constant 0 : index
    %c0_63 = arith.constant 0 : index
    %66 = vector.load %arg10[%c0_61, %c0_62, %c0_63] : memref<2x8x128xf32, #tpu.memory_space<vmem>>, vector<1x8x128xf32>
    %67 = vector.shape_cast %66 : vector<1x8x128xf32> to vector<8x128xf32>
    %68 = arith.truncf %67 : vector<8x128xf32> to vector<8x128xbf16>
    %c0_64 = arith.constant 0 : index
    %c0_65 = arith.constant 0 : index
    %c0_66 = arith.constant 0 : index
    %69 = vector.load %arg5[%c0_64, %c0_65, %c0_66] : memref<1x128x128xbf16, #tpu.memory_space<vmem>>, vector<1x128x128xbf16>
    %70 = vector.shape_cast %69 : vector<1x128x128xbf16> to vector<128x128xbf16>
    %cst_67 = arith.constant dense<0.000000e+00> : vector<8x128xf32>
    %71 = tpu.matmul %68, %70, %cst_67 {dimension_numbers = #tpu.dot_dimension_numbers<[1], [0], [0], [1], [0, 0, 1, 1], [], []>} : vector<8x128xbf16>, vector<128x128xbf16>, vector<8x128xf32> -> vector<8x128xf32>
    %c0_68 = arith.constant 0 : index
    %c0_69 = arith.constant 0 : index
    %c0_70 = arith.constant 0 : index
    %72 = vector.load %arg7[%c0_68, %c0_69, %c0_70] : memref<1x1x128xf32, #tpu.memory_space<vmem>>, vector<1x1x128xf32>
    %73 = vector.shape_cast %72 : vector<1x1x128xf32> to vector<1x128xf32>
    %74 = vector.broadcast %73 : vector<1x128xf32> to vector<8x128xf32>
    %75 = arith.addf %71, %74 : vector<8x128xf32>
    %c1_71 = arith.constant 1 : index
    %c0_72 = arith.constant 0 : index
    %c0_73 = arith.constant 0 : index
    %76 = vector.load %arg6[%c1_71, %c0_72, %c0_73] : memref<2x128x128xbf16, #tpu.memory_space<vmem>>, vector<1x128x128xbf16>
    %77 = vector.shape_cast %76 : vector<1x128x128xbf16> to vector<128x128xbf16>
    %cst_74 = arith.constant dense<0.000000e+00> : vector<8x128xf32>
    %78 = tpu.matmul %65, %77, %cst_74 {dimension_numbers = #tpu.dot_dimension_numbers<[1], [0], [0], [1], [0, 0, 1, 1], [], []>} : vector<8x128xbf16>, vector<128x128xbf16>, vector<8x128xf32> -> vector<8x128xf32>
    %79 = arith.addf %75, %78 : vector<8x128xf32>
    %80 = math.tanh %79 : vector<8x128xf32>
    %c1_75 = arith.constant 1 : index
    %c0_76 = arith.constant 0 : index
    %c0_77 = arith.constant 0 : index
    %81 = vector.load %arg10[%c1_75, %c0_76, %c0_77] : memref<2x8x128xf32, #tpu.memory_space<vmem>>, vector<1x8x128xf32>
    %82 = vector.shape_cast %81 : vector<1x8x128xf32> to vector<8x128xf32>
    %83 = vector.shape_cast %80 : vector<8x128xf32> to vector<1x8x128xf32>
    tpu.vector_store %arg10[%c1_75, %c0_76, %c0_77], %83 {strides = array<i32>} : memref<2x8x128xf32, #tpu.memory_space<vmem>>, vector<1x8x128xf32>,
    %84 = arith.truncf %80 : vector<8x128xf32> to vector<8x128xbf16>
    %c0_78 = arith.constant 0 : index
    %c1_79 = arith.constant 1 : index
    %c0_80 = arith.constant 0 : index
    %85 = vector.load %arg8[%c0_78, %c1_79, %c0_80] : memref<8x16x128xbf16, #tpu.memory_space<vmem>>, vector<8x1x128xbf16>
    %86 = vector.shape_cast %85 : vector<8x1x128xbf16> to vector<8x128xbf16>
    %87 = vector.shape_cast %84 : vector<8x128xbf16> to vector<8x1x128xbf16>
    tpu.vector_store %arg8[%c0_78, %c1_79, %c0_80], %87 {strides = array<i32>} : memref<8x16x128xbf16, #tpu.memory_space<vmem>>, vector<8x1x128xbf16>,
    %c0_81 = arith.constant 0 : index
    %c0_82 = arith.constant 0 : index
    %c0_83 = arith.constant 0 : index
    %88 = vector.load %arg10[%c0_81, %c0_82, %c0_83] : memref<2x8x128xf32, #tpu.memory_space<vmem>>, vector<1x8x128xf32>
    %89 = vector.shape_cast %88 : vector<1x8x128xf32> to vector<8x128xf32>
    %90 = arith.truncf %89 : vector<8x128xf32> to vector<8x128xbf16>
    %c0_84 = arith.constant 0 : index
    %c2 = arith.constant 2 : index
    %c0_85 = arith.constant 0 : index
    %91 = vector.load %arg11[%c0_84, %c2, %c0_85] : memref<8x16x128xf32, #tpu.memory_space<vmem>>, vector<8x1x128xf32>
    %92 = vector.shape_cast %91 : vector<8x1x128xf32> to vector<8x128xf32>
    %c0_86 = arith.constant 0 : index
    %c0_87 = arith.constant 0 : index
    %c0_88 = arith.constant 0 : index
    %93 = vector.load %arg6[%c0_86, %c0_87, %c0_88] : memref<2x128x128xbf16, #tpu.memory_space<vmem>>, vector<1x128x128xbf16>
    %94 = vector.shape_cast %93 : vector<1x128x128xbf16> to vector<128x128xbf16>
    %cst_89 = arith.constant dense<0.000000e+00> : vector<8x128xf32>
    %95 = tpu.matmul %90, %94, %cst_89 {dimension_numbers = #tpu.dot_dimension_numbers<[1], [0], [0], [1], [0, 0, 1, 1], [], []>} : vector<8x128xbf16>, vector<128x128xbf16>, vector<8x128xf32> -> vector<8x128xf32>
    %96 = arith.addf %92, %95 : vector<8x128xf32>
    %97 = math.tanh %96 : vector<8x128xf32>
    %c0_90 = arith.constant 0 : index
    %c0_91 = arith.constant 0 : index
    %c0_92 = arith.constant 0 : index
    %98 = vector.load %arg10[%c0_90, %c0_91, %c0_92] : memref<2x8x128xf32, #tpu.memory_space<vmem>>, vector<1x8x128xf32>
    %99 = vector.shape_cast %98 : vector<1x8x128xf32> to vector<8x128xf32>
    %100 = vector.shape_cast %97 : vector<8x128xf32> to vector<1x8x128xf32>
    tpu.vector_store %arg10[%c0_90, %c0_91, %c0_92], %100 {strides = array<i32>} : memref<2x8x128xf32, #tpu.memory_space<vmem>>, vector<1x8x128xf32>,
    %c1_93 = arith.constant 1 : index
    %c0_94 = arith.constant 0 : index
    %c0_95 = arith.constant 0 : index
    %101 = vector.load %arg10[%c1_93, %c0_94, %c0_95] : memref<2x8x128xf32, #tpu.memory_space<vmem>>, vector<1x8x128xf32>
    %102 = vector.shape_cast %101 : vector<1x8x128xf32> to vector<8x128xf32>
    %103 = arith.truncf %102 : vector<8x128xf32> to vector<8x128xbf16>
    %c0_96 = arith.constant 0 : index
    %c0_97 = arith.constant 0 : index
    %c0_98 = arith.constant 0 : index
    %104 = vector.load %arg10[%c0_96, %c0_97, %c0_98] : memref<2x8x128xf32, #tpu.memory_space<vmem>>, vector<1x8x128xf32>
    %105 = vector.shape_cast %104 : vector<1x8x128xf32> to vector<8x128xf32>
    %106 = arith.truncf %105 : vector<8x128xf32> to vector<8x128xbf16>
    %c0_99 = arith.constant 0 : index
    %c0_100 = arith.constant 0 : index
    %c0_101 = arith.constant 0 : index
    %107 = vector.load %arg5[%c0_99, %c0_100, %c0_101] : memref<1x128x128xbf16, #tpu.memory_space<vmem>>, vector<1x128x128xbf16>
    %108 = vector.shape_cast %107 : vector<1x128x128xbf16> to vector<128x128xbf16>
    %cst_102 = arith.constant dense<0.000000e+00> : vector<8x128xf32>
    %109 = tpu.matmul %106, %108, %cst_102 {dimension_numbers = #tpu.dot_dimension_numbers<[1], [0], [0], [1], [0, 0, 1, 1], [], []>} : vector<8x128xbf16>, vector<128x128xbf16>, vector<8x128xf32> -> vector<8x128xf32>
    %c0_103 = arith.constant 0 : index
    %c0_104 = arith.constant 0 : index
    %c0_105 = arith.constant 0 : index
    %110 = vector.load %arg7[%c0_103, %c0_104, %c0_105] : memref<1x1x128xf32, #tpu.memory_space<vmem>>, vector<1x1x128xf32>
    %111 = vector.shape_cast %110 : vector<1x1x128xf32> to vector<1x128xf32>
    %112 = vector.broadcast %111 : vector<1x128xf32> to vector<8x128xf32>
    %113 = arith.addf %109, %112 : vector<8x128xf32>
    %c1_106 = arith.constant 1 : index
    %c0_107 = arith.constant 0 : index
    %c0_108 = arith.constant 0 : index
    %114 = vector.load %arg6[%c1_106, %c0_107, %c0_108] : memref<2x128x128xbf16, #tpu.memory_space<vmem>>, vector<1x128x128xbf16>
    %115 = vector.shape_cast %114 : vector<1x128x128xbf16> to vector<128x128xbf16>
    %cst_109 = arith.constant dense<0.000000e+00> : vector<8x128xf32>
    %116 = tpu.matmul %103, %115, %cst_109 {dimension_numbers = #tpu.dot_dimension_numbers<[1], [0], [0], [1], [0, 0, 1, 1], [], []>} : vector<8x128xbf16>, vector<128x128xbf16>, vector<8x128xf32> -> vector<8x128xf32>
    %117 = arith.addf %113, %116 : vector<8x128xf32>
    %118 = math.tanh %117 : vector<8x128xf32>
    %c1_110 = arith.constant 1 : index
    %c0_111 = arith.constant 0 : index
    %c0_112 = arith.constant 0 : index
    %119 = vector.load %arg10[%c1_110, %c0_111, %c0_112] : memref<2x8x128xf32, #tpu.memory_space<vmem>>, vector<1x8x128xf32>
    %120 = vector.shape_cast %119 : vector<1x8x128xf32> to vector<8x128xf32>
    %121 = vector.shape_cast %118 : vector<8x128xf32> to vector<1x8x128xf32>
    tpu.vector_store %arg10[%c1_110, %c0_111, %c0_112], %121 {strides = array<i32>} : memref<2x8x128xf32, #tpu.memory_space<vmem>>, vector<1x8x128xf32>,
    %122 = arith.truncf %118 : vector<8x128xf32> to vector<8x128xbf16>
    %c0_113 = arith.constant 0 : index
    %c2_114 = arith.constant 2 : index
    %c0_115 = arith.constant 0 : index
    %123 = vector.load %arg8[%c0_113, %c2_114, %c0_115] : memref<8x16x128xbf16, #tpu.memory_space<vmem>>, vector<8x1x128xbf16>
    %124 = vector.shape_cast %123 : vector<8x1x128xbf16> to vector<8x128xbf16>
    %125 = vector.shape_cast %122 : vector<8x128xbf16> to vector<8x1x128xbf16>
    tpu.vector_store %arg8[%c0_113, %c2_114, %c0_115], %125 {strides = array<i32>} : memref<8x16x128xbf16, #tpu.memory_space<vmem>>, vector<8x1x128xbf16>,
    %c0_116 = arith.constant 0 : index
    %c0_117 = arith.constant 0 : index
    %c0_118 = arith.constant 0 : index
    %126 = vector.load %arg10[%c0_116, %c0_117, %c0_118] : memref<2x8x128xf32, #tpu.memory_space<vmem>>, vector<1x8x128xf32>
    %127 = vector.shape_cast %126 : vector<1x8x128xf32> to vector<8x128xf32>
    %128 = arith.truncf %127 : vector<8x128xf32> to vector<8x128xbf16>
    %c0_119 = arith.constant 0 : index
    %c3 = arith.constant 3 : index
    %c0_120 = arith.constant 0 : index
    %129 = vector.load %arg11[%c0_119, %c3, %c0_120] : memref<8x16x128xf32, #tpu.memory_space<vmem>>, vector<8x1x128xf32>
    %130 = vector.shape_cast %129 : vector<8x1x128xf32> to vector<8x128xf32>
    %c0_121 = arith.constant 0 : index
    %c0_122 = arith.constant 0 : index
    %c0_123 = arith.constant 0 : index
    %131 = vector.load %arg6[%c0_121, %c0_122, %c0_123] : memref<2x128x128xbf16, #tpu.memory_space<vmem>>, vector<1x128x128xbf16>
    %132 = vector.shape_cast %131 : vector<1x128x128xbf16> to vector<128x128xbf16>
    %cst_124 = arith.constant dense<0.000000e+00> : vector<8x128xf32>
    %133 = tpu.matmul %128, %132, %cst_124 {dimension_numbers = #tpu.dot_dimension_numbers<[1], [0], [0], [1], [0, 0, 1, 1], [], []>} : vector<8x128xbf16>, vector<128x128xbf16>, vector<8x128xf32> -> vector<8x128xf32>
    %134 = arith.addf %130, %133 : vector<8x128xf32>
    %135 = math.tanh %134 : vector<8x128xf32>
    %c0_125 = arith.constant 0 : index
    %c0_126 = arith.constant 0 : index
    %c0_127 = arith.constant 0 : index
    %136 = vector.load %arg10[%c0_125, %c0_126, %c0_127] : memref<2x8x128xf32, #tpu.memory_space<vmem>>, vector<1x8x128xf32>
    %137 = vector.shape_cast %136 : vector<1x8x128xf32> to vector<8x128xf32>
    %138 = vector.shape_cast %135 : vector<8x128xf32> to vector<1x8x128xf32>
    tpu.vector_store %arg10[%c0_125, %c0_126, %c0_127], %138 {strides = array<i32>} : memref<2x8x128xf32, #tpu.memory_space<vmem>>, vector<1x8x128xf32>,
    %c1_128 = arith.constant 1 : index
    %c0_129 = arith.constant 0 : index
    %c0_130 = arith.constant 0 : index
    %139 = vector.load %arg10[%c1_128, %c0_129, %c0_130] : memref<2x8x128xf32, #tpu.memory_space<vmem>>, vector<1x8x128xf32>
    %140 = vector.shape_cast %139 : vector<1x8x128xf32> to vector<8x128xf32>
    %141 = arith.truncf %140 : vector<8x128xf32> to vector<8x128xbf16>
    %c0_131 = arith.constant 0 : index
    %c0_132 = arith.constant 0 : index
    %c0_133 = arith.constant 0 : index
    %142 = vector.load %arg10[%c0_131, %c0_132, %c0_133] : memref<2x8x128xf32, #tpu.memory_space<vmem>>, vector<1x8x128xf32>
    %143 = vector.shape_cast %142 : vector<1x8x128xf32> to vector<8x128xf32>
    %144 = arith.truncf %143 : vector<8x128xf32> to vector<8x128xbf16>
    %c0_134 = arith.constant 0 : index
    %c0_135 = arith.constant 0 : index
    %c0_136 = arith.constant 0 : index
    %145 = vector.load %arg5[%c0_134, %c0_135, %c0_136] : memref<1x128x128xbf16, #tpu.memory_space<vmem>>, vector<1x128x128xbf16>
    %146 = vector.shape_cast %145 : vector<1x128x128xbf16> to vector<128x128xbf16>
    %cst_137 = arith.constant dense<0.000000e+00> : vector<8x128xf32>
    %147 = tpu.matmul %144, %146, %cst_137 {dimension_numbers = #tpu.dot_dimension_numbers<[1], [0], [0], [1], [0, 0, 1, 1], [], []>} : vector<8x128xbf16>, vector<128x128xbf16>, vector<8x128xf32> -> vector<8x128xf32>
    %c0_138 = arith.constant 0 : index
    %c0_139 = arith.constant 0 : index
    %c0_140 = arith.constant 0 : index
    %148 = vector.load %arg7[%c0_138, %c0_139, %c0_140] : memref<1x1x128xf32, #tpu.memory_space<vmem>>, vector<1x1x128xf32>
    %149 = vector.shape_cast %148 : vector<1x1x128xf32> to vector<1x128xf32>
    %150 = vector.broadcast %149 : vector<1x128xf32> to vector<8x128xf32>
    %151 = arith.addf %147, %150 : vector<8x128xf32>
    %c1_141 = arith.constant 1 : index
    %c0_142 = arith.constant 0 : index
    %c0_143 = arith.constant 0 : index
    %152 = vector.load %arg6[%c1_141, %c0_142, %c0_143] : memref<2x128x128xbf16, #tpu.memory_space<vmem>>, vector<1x128x128xbf16>
    %153 = vector.shape_cast %152 : vector<1x128x128xbf16> to vector<128x128xbf16>
    %cst_144 = arith.constant dense<0.000000e+00> : vector<8x128xf32>
    %154 = tpu.matmul %141, %153, %cst_144 {dimension_numbers = #tpu.dot_dimension_numbers<[1], [0], [0], [1], [0, 0, 1, 1], [], []>} : vector<8x128xbf16>, vector<128x128xbf16>, vector<8x128xf32> -> vector<8x128xf32>
    %155 = arith.addf %151, %154 : vector<8x128xf32>
    %156 = math.tanh %155 : vector<8x128xf32>
    %c1_145 = arith.constant 1 : index
    %c0_146 = arith.constant 0 : index
    %c0_147 = arith.constant 0 : index
    %157 = vector.load %arg10[%c1_145, %c0_146, %c0_147] : memref<2x8x128xf32, #tpu.memory_space<vmem>>, vector<1x8x128xf32>
    %158 = vector.shape_cast %157 : vector<1x8x128xf32> to vector<8x128xf32>
    %159 = vector.shape_cast %156 : vector<8x128xf32> to vector<1x8x128xf32>
    tpu.vector_store %arg10[%c1_145, %c0_146, %c0_147], %159 {strides = array<i32>} : memref<2x8x128xf32, #tpu.memory_space<vmem>>, vector<1x8x128xf32>,
    %160 = arith.truncf %156 : vector<8x128xf32> to vector<8x128xbf16>
    %c0_148 = arith.constant 0 : index
    %c3_149 = arith.constant 3 : index
    %c0_150 = arith.constant 0 : index
    %161 = vector.load %arg8[%c0_148, %c3_149, %c0_150] : memref<8x16x128xbf16, #tpu.memory_space<vmem>>, vector<8x1x128xbf16>
    %162 = vector.shape_cast %161 : vector<8x1x128xbf16> to vector<8x128xbf16>
    %163 = vector.shape_cast %160 : vector<8x128xbf16> to vector<8x1x128xbf16>
    tpu.vector_store %arg8[%c0_148, %c3_149, %c0_150], %163 {strides = array<i32>} : memref<8x16x128xbf16, #tpu.memory_space<vmem>>, vector<8x1x128xbf16>,
    %c0_151 = arith.constant 0 : index
    %c0_152 = arith.constant 0 : index
    %c0_153 = arith.constant 0 : index
    %164 = vector.load %arg10[%c0_151, %c0_152, %c0_153] : memref<2x8x128xf32, #tpu.memory_space<vmem>>, vector<1x8x128xf32>
    %165 = vector.shape_cast %164 : vector<1x8x128xf32> to vector<8x128xf32>
    %166 = arith.truncf %165 : vector<8x128xf32> to vector<8x128xbf16>
    %c0_154 = arith.constant 0 : index
    %c4 = arith.constant 4 : index
    %c0_155 = arith.constant 0 : index
    %167 = vector.load %arg11[%c0_154, %c4, %c0_155] : memref<8x16x128xf32, #tpu.memory_space<vmem>>, vector<8x1x128xf32>
    %168 = vector.shape_cast %167 : vector<8x1x128xf32> to vector<8x128xf32>
    %c0_156 = arith.constant 0 : index
    %c0_157 = arith.constant 0 : index
    %c0_158 = arith.constant 0 : index
    %169 = vector.load %arg6[%c0_156, %c0_157, %c0_158] : memref<2x128x128xbf16, #tpu.memory_space<vmem>>, vector<1x128x128xbf16>
    %170 = vector.shape_cast %169 : vector<1x128x128xbf16> to vector<128x128xbf16>
    %cst_159 = arith.constant dense<0.000000e+00> : vector<8x128xf32>
    %171 = tpu.matmul %166, %170, %cst_159 {dimension_numbers = #tpu.dot_dimension_numbers<[1], [0], [0], [1], [0, 0, 1, 1], [], []>} : vector<8x128xbf16>, vector<128x128xbf16>, vector<8x128xf32> -> vector<8x128xf32>
    %172 = arith.addf %168, %171 : vector<8x128xf32>
    %173 = math.tanh %172 : vector<8x128xf32>
    %c0_160 = arith.constant 0 : index
    %c0_161 = arith.constant 0 : index
    %c0_162 = arith.constant 0 : index
    %174 = vector.load %arg10[%c0_160, %c0_161, %c0_162] : memref<2x8x128xf32, #tpu.memory_space<vmem>>, vector<1x8x128xf32>
    %175 = vector.shape_cast %174 : vector<1x8x128xf32> to vector<8x128xf32>
    %176 = vector.shape_cast %173 : vector<8x128xf32> to vector<1x8x128xf32>
    tpu.vector_store %arg10[%c0_160, %c0_161, %c0_162], %176 {strides = array<i32>} : memref<2x8x128xf32, #tpu.memory_space<vmem>>, vector<1x8x128xf32>,
    %c1_163 = arith.constant 1 : index
    %c0_164 = arith.constant 0 : index
    %c0_165 = arith.constant 0 : index
    %177 = vector.load %arg10[%c1_163, %c0_164, %c0_165] : memref<2x8x128xf32, #tpu.memory_space<vmem>>, vector<1x8x128xf32>
    %178 = vector.shape_cast %177 : vector<1x8x128xf32> to vector<8x128xf32>
    %179 = arith.truncf %178 : vector<8x128xf32> to vector<8x128xbf16>
    %c0_166 = arith.constant 0 : index
    %c0_167 = arith.constant 0 : index
    %c0_168 = arith.constant 0 : index
    %180 = vector.load %arg10[%c0_166, %c0_167, %c0_168] : memref<2x8x128xf32, #tpu.memory_space<vmem>>, vector<1x8x128xf32>
    %181 = vector.shape_cast %180 : vector<1x8x128xf32> to vector<8x128xf32>
    %182 = arith.truncf %181 : vector<8x128xf32> to vector<8x128xbf16>
    %c0_169 = arith.constant 0 : index
    %c0_170 = arith.constant 0 : index
    %c0_171 = arith.constant 0 : index
    %183 = vector.load %arg5[%c0_169, %c0_170, %c0_171] : memref<1x128x128xbf16, #tpu.memory_space<vmem>>, vector<1x128x128xbf16>
    %184 = vector.shape_cast %183 : vector<1x128x128xbf16> to vector<128x128xbf16>
    %cst_172 = arith.constant dense<0.000000e+00> : vector<8x128xf32>
    %185 = tpu.matmul %182, %184, %cst_172 {dimension_numbers = #tpu.dot_dimension_numbers<[1], [0], [0], [1], [0, 0, 1, 1], [], []>} : vector<8x128xbf16>, vector<128x128xbf16>, vector<8x128xf32> -> vector<8x128xf32>
    %c0_173 = arith.constant 0 : index
    %c0_174 = arith.constant 0 : index
    %c0_175 = arith.constant 0 : index
    %186 = vector.load %arg7[%c0_173, %c0_174, %c0_175] : memref<1x1x128xf32, #tpu.memory_space<vmem>>, vector<1x1x128xf32>
    %187 = vector.shape_cast %186 : vector<1x1x128xf32> to vector<1x128xf32>
    %188 = vector.broadcast %187 : vector<1x128xf32> to vector<8x128xf32>
    %189 = arith.addf %185, %188 : vector<8x128xf32>
    %c1_176 = arith.constant 1 : index
    %c0_177 = arith.constant 0 : index
    %c0_178 = arith.constant 0 : index
    %190 = vector.load %arg6[%c1_176, %c0_177, %c0_178] : memref<2x128x128xbf16, #tpu.memory_space<vmem>>, vector<1x128x128xbf16>
    %191 = vector.shape_cast %190 : vector<1x128x128xbf16> to vector<128x128xbf16>
    %cst_179 = arith.constant dense<0.000000e+00> : vector<8x128xf32>
    %192 = tpu.matmul %179, %191, %cst_179 {dimension_numbers = #tpu.dot_dimension_numbers<[1], [0], [0], [1], [0, 0, 1, 1], [], []>} : vector<8x128xbf16>, vector<128x128xbf16>, vector<8x128xf32> -> vector<8x128xf32>
    %193 = arith.addf %189, %192 : vector<8x128xf32>
    %194 = math.tanh %193 : vector<8x128xf32>
    %c1_180 = arith.constant 1 : index
    %c0_181 = arith.constant 0 : index
    %c0_182 = arith.constant 0 : index
    %195 = vector.load %arg10[%c1_180, %c0_181, %c0_182] : memref<2x8x128xf32, #tpu.memory_space<vmem>>, vector<1x8x128xf32>
    %196 = vector.shape_cast %195 : vector<1x8x128xf32> to vector<8x128xf32>
    %197 = vector.shape_cast %194 : vector<8x128xf32> to vector<1x8x128xf32>
    tpu.vector_store %arg10[%c1_180, %c0_181, %c0_182], %197 {strides = array<i32>} : memref<2x8x128xf32, #tpu.memory_space<vmem>>, vector<1x8x128xf32>,
    %198 = arith.truncf %194 : vector<8x128xf32> to vector<8x128xbf16>
    %c0_183 = arith.constant 0 : index
    %c4_184 = arith.constant 4 : index
    %c0_185 = arith.constant 0 : index
    %199 = vector.load %arg8[%c0_183, %c4_184, %c0_185] : memref<8x16x128xbf16, #tpu.memory_space<vmem>>, vector<8x1x128xbf16>
    %200 = vector.shape_cast %199 : vector<8x1x128xbf16> to vector<8x128xbf16>
    %201 = vector.shape_cast %198 : vector<8x128xbf16> to vector<8x1x128xbf16>
    tpu.vector_store %arg8[%c0_183, %c4_184, %c0_185], %201 {strides = array<i32>} : memref<8x16x128xbf16, #tpu.memory_space<vmem>>, vector<8x1x128xbf16>,
    %c0_186 = arith.constant 0 : index
    %c0_187 = arith.constant 0 : index
    %c0_188 = arith.constant 0 : index
    %202 = vector.load %arg10[%c0_186, %c0_187, %c0_188] : memref<2x8x128xf32, #tpu.memory_space<vmem>>, vector<1x8x128xf32>
    %203 = vector.shape_cast %202 : vector<1x8x128xf32> to vector<8x128xf32>
    %204 = arith.truncf %203 : vector<8x128xf32> to vector<8x128xbf16>
    %c0_189 = arith.constant 0 : index
    %c5 = arith.constant 5 : index
    %c0_190 = arith.constant 0 : index
    %205 = vector.load %arg11[%c0_189, %c5, %c0_190] : memref<8x16x128xf32, #tpu.memory_space<vmem>>, vector<8x1x128xf32>
    %206 = vector.shape_cast %205 : vector<8x1x128xf32> to vector<8x128xf32>
    %c0_191 = arith.constant 0 : index
    %c0_192 = arith.constant 0 : index
    %c0_193 = arith.constant 0 : index
    %207 = vector.load %arg6[%c0_191, %c0_192, %c0_193] : memref<2x128x128xbf16, #tpu.memory_space<vmem>>, vector<1x128x128xbf16>
    %208 = vector.shape_cast %207 : vector<1x128x128xbf16> to vector<128x128xbf16>
    %cst_194 = arith.constant dense<0.000000e+00> : vector<8x128xf32>
    %209 = tpu.matmul %204, %208, %cst_194 {dimension_numbers = #tpu.dot_dimension_numbers<[1], [0], [0], [1], [0, 0, 1, 1], [], []>} : vector<8x128xbf16>, vector<128x128xbf16>, vector<8x128xf32> -> vector<8x128xf32>
    %210 = arith.addf %206, %209 : vector<8x128xf32>
    %211 = math.tanh %210 : vector<8x128xf32>
    %c0_195 = arith.constant 0 : index
    %c0_196 = arith.constant 0 : index
    %c0_197 = arith.constant 0 : index
    %212 = vector.load %arg10[%c0_195, %c0_196, %c0_197] : memref<2x8x128xf32, #tpu.memory_space<vmem>>, vector<1x8x128xf32>
    %213 = vector.shape_cast %212 : vector<1x8x128xf32> to vector<8x128xf32>
    %214 = vector.shape_cast %211 : vector<8x128xf32> to vector<1x8x128xf32>
    tpu.vector_store %arg10[%c0_195, %c0_196, %c0_197], %214 {strides = array<i32>} : memref<2x8x128xf32, #tpu.memory_space<vmem>>, vector<1x8x128xf32>,
    %c1_198 = arith.constant 1 : index
    %c0_199 = arith.constant 0 : index
    %c0_200 = arith.constant 0 : index
    %215 = vector.load %arg10[%c1_198, %c0_199, %c0_200] : memref<2x8x128xf32, #tpu.memory_space<vmem>>, vector<1x8x128xf32>
    %216 = vector.shape_cast %215 : vector<1x8x128xf32> to vector<8x128xf32>
    %217 = arith.truncf %216 : vector<8x128xf32> to vector<8x128xbf16>
    %c0_201 = arith.constant 0 : index
    %c0_202 = arith.constant 0 : index
    %c0_203 = arith.constant 0 : index
    %218 = vector.load %arg10[%c0_201, %c0_202, %c0_203] : memref<2x8x128xf32, #tpu.memory_space<vmem>>, vector<1x8x128xf32>
    %219 = vector.shape_cast %218 : vector<1x8x128xf32> to vector<8x128xf32>
    %220 = arith.truncf %219 : vector<8x128xf32> to vector<8x128xbf16>
    %c0_204 = arith.constant 0 : index
    %c0_205 = arith.constant 0 : index
    %c0_206 = arith.constant 0 : index
    %221 = vector.load %arg5[%c0_204, %c0_205, %c0_206] : memref<1x128x128xbf16, #tpu.memory_space<vmem>>, vector<1x128x128xbf16>
    %222 = vector.shape_cast %221 : vector<1x128x128xbf16> to vector<128x128xbf16>
    %cst_207 = arith.constant dense<0.000000e+00> : vector<8x128xf32>
    %223 = tpu.matmul %220, %222, %cst_207 {dimension_numbers = #tpu.dot_dimension_numbers<[1], [0], [0], [1], [0, 0, 1, 1], [], []>} : vector<8x128xbf16>, vector<128x128xbf16>, vector<8x128xf32> -> vector<8x128xf32>
    %c0_208 = arith.constant 0 : index
    %c0_209 = arith.constant 0 : index
    %c0_210 = arith.constant 0 : index
    %224 = vector.load %arg7[%c0_208, %c0_209, %c0_210] : memref<1x1x128xf32, #tpu.memory_space<vmem>>, vector<1x1x128xf32>
    %225 = vector.shape_cast %224 : vector<1x1x128xf32> to vector<1x128xf32>
    %226 = vector.broadcast %225 : vector<1x128xf32> to vector<8x128xf32>
    %227 = arith.addf %223, %226 : vector<8x128xf32>
    %c1_211 = arith.constant 1 : index
    %c0_212 = arith.constant 0 : index
    %c0_213 = arith.constant 0 : index
    %228 = vector.load %arg6[%c1_211, %c0_212, %c0_213] : memref<2x128x128xbf16, #tpu.memory_space<vmem>>, vector<1x128x128xbf16>
    %229 = vector.shape_cast %228 : vector<1x128x128xbf16> to vector<128x128xbf16>
    %cst_214 = arith.constant dense<0.000000e+00> : vector<8x128xf32>
    %230 = tpu.matmul %217, %229, %cst_214 {dimension_numbers = #tpu.dot_dimension_numbers<[1], [0], [0], [1], [0, 0, 1, 1], [], []>} : vector<8x128xbf16>, vector<128x128xbf16>, vector<8x128xf32> -> vector<8x128xf32>
    %231 = arith.addf %227, %230 : vector<8x128xf32>
    %232 = math.tanh %231 : vector<8x128xf32>
    %c1_215 = arith.constant 1 : index
    %c0_216 = arith.constant 0 : index
    %c0_217 = arith.constant 0 : index
    %233 = vector.load %arg10[%c1_215, %c0_216, %c0_217] : memref<2x8x128xf32, #tpu.memory_space<vmem>>, vector<1x8x128xf32>
    %234 = vector.shape_cast %233 : vector<1x8x128xf32> to vector<8x128xf32>
    %235 = vector.shape_cast %232 : vector<8x128xf32> to vector<1x8x128xf32>
    tpu.vector_store %arg10[%c1_215, %c0_216, %c0_217], %235 {strides = array<i32>} : memref<2x8x128xf32, #tpu.memory_space<vmem>>, vector<1x8x128xf32>,
    %236 = arith.truncf %232 : vector<8x128xf32> to vector<8x128xbf16>
    %c0_218 = arith.constant 0 : index
    %c5_219 = arith.constant 5 : index
    %c0_220 = arith.constant 0 : index
    %237 = vector.load %arg8[%c0_218, %c5_219, %c0_220] : memref<8x16x128xbf16, #tpu.memory_space<vmem>>, vector<8x1x128xbf16>
    %238 = vector.shape_cast %237 : vector<8x1x128xbf16> to vector<8x128xbf16>
    %239 = vector.shape_cast %236 : vector<8x128xbf16> to vector<8x1x128xbf16>
    tpu.vector_store %arg8[%c0_218, %c5_219, %c0_220], %239 {strides = array<i32>} : memref<8x16x128xbf16, #tpu.memory_space<vmem>>, vector<8x1x128xbf16>,
    %c0_221 = arith.constant 0 : index
    %c0_222 = arith.constant 0 : index
    %c0_223 = arith.constant 0 : index
    %240 = vector.load %arg10[%c0_221, %c0_222, %c0_223] : memref<2x8x128xf32, #tpu.memory_space<vmem>>, vector<1x8x128xf32>
    %241 = vector.shape_cast %240 : vector<1x8x128xf32> to vector<8x128xf32>
    %242 = arith.truncf %241 : vector<8x128xf32> to vector<8x128xbf16>
    %c0_224 = arith.constant 0 : index
    %c6 = arith.constant 6 : index
    %c0_225 = arith.constant 0 : index
    %243 = vector.load %arg11[%c0_224, %c6, %c0_225] : memref<8x16x128xf32, #tpu.memory_space<vmem>>, vector<8x1x128xf32>
    %244 = vector.shape_cast %243 : vector<8x1x128xf32> to vector<8x128xf32>
    %c0_226 = arith.constant 0 : index
    %c0_227 = arith.constant 0 : index
    %c0_228 = arith.constant 0 : index
    %245 = vector.load %arg6[%c0_226, %c0_227, %c0_228] : memref<2x128x128xbf16, #tpu.memory_space<vmem>>, vector<1x128x128xbf16>
    %246 = vector.shape_cast %245 : vector<1x128x128xbf16> to vector<128x128xbf16>
    %cst_229 = arith.constant dense<0.000000e+00> : vector<8x128xf32>
    %247 = tpu.matmul %242, %246, %cst_229 {dimension_numbers = #tpu.dot_dimension_numbers<[1], [0], [0], [1], [0, 0, 1, 1], [], []>} : vector<8x128xbf16>, vector<128x128xbf16>, vector<8x128xf32> -> vector<8x128xf32>
    %248 = arith.addf %244, %247 : vector<8x128xf32>
    %249 = math.tanh %248 : vector<8x128xf32>
    %c0_230 = arith.constant 0 : index
    %c0_231 = arith.constant 0 : index
    %c0_232 = arith.constant 0 : index
    %250 = vector.load %arg10[%c0_230, %c0_231, %c0_232] : memref<2x8x128xf32, #tpu.memory_space<vmem>>, vector<1x8x128xf32>
    %251 = vector.shape_cast %250 : vector<1x8x128xf32> to vector<8x128xf32>
    %252 = vector.shape_cast %249 : vector<8x128xf32> to vector<1x8x128xf32>
    tpu.vector_store %arg10[%c0_230, %c0_231, %c0_232], %252 {strides = array<i32>} : memref<2x8x128xf32, #tpu.memory_space<vmem>>, vector<1x8x128xf32>,
    %c1_233 = arith.constant 1 : index
    %c0_234 = arith.constant 0 : index
    %c0_235 = arith.constant 0 : index
    %253 = vector.load %arg10[%c1_233, %c0_234, %c0_235] : memref<2x8x128xf32, #tpu.memory_space<vmem>>, vector<1x8x128xf32>
    %254 = vector.shape_cast %253 : vector<1x8x128xf32> to vector<8x128xf32>
    %255 = arith.truncf %254 : vector<8x128xf32> to vector<8x128xbf16>
    %c0_236 = arith.constant 0 : index
    %c0_237 = arith.constant 0 : index
    %c0_238 = arith.constant 0 : index
    %256 = vector.load %arg10[%c0_236, %c0_237, %c0_238] : memref<2x8x128xf32, #tpu.memory_space<vmem>>, vector<1x8x128xf32>
    %257 = vector.shape_cast %256 : vector<1x8x128xf32> to vector<8x128xf32>
    %258 = arith.truncf %257 : vector<8x128xf32> to vector<8x128xbf16>
    %c0_239 = arith.constant 0 : index
    %c0_240 = arith.constant 0 : index
    %c0_241 = arith.constant 0 : index
    %259 = vector.load %arg5[%c0_239, %c0_240, %c0_241] : memref<1x128x128xbf16, #tpu.memory_space<vmem>>, vector<1x128x128xbf16>
    %260 = vector.shape_cast %259 : vector<1x128x128xbf16> to vector<128x128xbf16>
    %cst_242 = arith.constant dense<0.000000e+00> : vector<8x128xf32>
    %261 = tpu.matmul %258, %260, %cst_242 {dimension_numbers = #tpu.dot_dimension_numbers<[1], [0], [0], [1], [0, 0, 1, 1], [], []>} : vector<8x128xbf16>, vector<128x128xbf16>, vector<8x128xf32> -> vector<8x128xf32>
    %c0_243 = arith.constant 0 : index
    %c0_244 = arith.constant 0 : index
    %c0_245 = arith.constant 0 : index
    %262 = vector.load %arg7[%c0_243, %c0_244, %c0_245] : memref<1x1x128xf32, #tpu.memory_space<vmem>>, vector<1x1x128xf32>
    %263 = vector.shape_cast %262 : vector<1x1x128xf32> to vector<1x128xf32>
    %264 = vector.broadcast %263 : vector<1x128xf32> to vector<8x128xf32>
    %265 = arith.addf %261, %264 : vector<8x128xf32>
    %c1_246 = arith.constant 1 : index
    %c0_247 = arith.constant 0 : index
    %c0_248 = arith.constant 0 : index
    %266 = vector.load %arg6[%c1_246, %c0_247, %c0_248] : memref<2x128x128xbf16, #tpu.memory_space<vmem>>, vector<1x128x128xbf16>
    %267 = vector.shape_cast %266 : vector<1x128x128xbf16> to vector<128x128xbf16>
    %cst_249 = arith.constant dense<0.000000e+00> : vector<8x128xf32>
    %268 = tpu.matmul %255, %267, %cst_249 {dimension_numbers = #tpu.dot_dimension_numbers<[1], [0], [0], [1], [0, 0, 1, 1], [], []>} : vector<8x128xbf16>, vector<128x128xbf16>, vector<8x128xf32> -> vector<8x128xf32>
    %269 = arith.addf %265, %268 : vector<8x128xf32>
    %270 = math.tanh %269 : vector<8x128xf32>
    %c1_250 = arith.constant 1 : index
    %c0_251 = arith.constant 0 : index
    %c0_252 = arith.constant 0 : index
    %271 = vector.load %arg10[%c1_250, %c0_251, %c0_252] : memref<2x8x128xf32, #tpu.memory_space<vmem>>, vector<1x8x128xf32>
    %272 = vector.shape_cast %271 : vector<1x8x128xf32> to vector<8x128xf32>
    %273 = vector.shape_cast %270 : vector<8x128xf32> to vector<1x8x128xf32>
    tpu.vector_store %arg10[%c1_250, %c0_251, %c0_252], %273 {strides = array<i32>} : memref<2x8x128xf32, #tpu.memory_space<vmem>>, vector<1x8x128xf32>,
    %274 = arith.truncf %270 : vector<8x128xf32> to vector<8x128xbf16>
    %c0_253 = arith.constant 0 : index
    %c6_254 = arith.constant 6 : index
    %c0_255 = arith.constant 0 : index
    %275 = vector.load %arg8[%c0_253, %c6_254, %c0_255] : memref<8x16x128xbf16, #tpu.memory_space<vmem>>, vector<8x1x128xbf16>
    %276 = vector.shape_cast %275 : vector<8x1x128xbf16> to vector<8x128xbf16>
    %277 = vector.shape_cast %274 : vector<8x128xbf16> to vector<8x1x128xbf16>
    tpu.vector_store %arg8[%c0_253, %c6_254, %c0_255], %277 {strides = array<i32>} : memref<8x16x128xbf16, #tpu.memory_space<vmem>>, vector<8x1x128xbf16>,
    %c0_256 = arith.constant 0 : index
    %c0_257 = arith.constant 0 : index
    %c0_258 = arith.constant 0 : index
    %278 = vector.load %arg10[%c0_256, %c0_257, %c0_258] : memref<2x8x128xf32, #tpu.memory_space<vmem>>, vector<1x8x128xf32>
    %279 = vector.shape_cast %278 : vector<1x8x128xf32> to vector<8x128xf32>
    %280 = arith.truncf %279 : vector<8x128xf32> to vector<8x128xbf16>
    %c0_259 = arith.constant 0 : index
    %c7 = arith.constant 7 : index
    %c0_260 = arith.constant 0 : index
    %281 = vector.load %arg11[%c0_259, %c7, %c0_260] : memref<8x16x128xf32, #tpu.memory_space<vmem>>, vector<8x1x128xf32>
    %282 = vector.shape_cast %281 : vector<8x1x128xf32> to vector<8x128xf32>
    %c0_261 = arith.constant 0 : index
    %c0_262 = arith.constant 0 : index
    %c0_263 = arith.constant 0 : index
    %283 = vector.load %arg6[%c0_261, %c0_262, %c0_263] : memref<2x128x128xbf16, #tpu.memory_space<vmem>>, vector<1x128x128xbf16>
    %284 = vector.shape_cast %283 : vector<1x128x128xbf16> to vector<128x128xbf16>
    %cst_264 = arith.constant dense<0.000000e+00> : vector<8x128xf32>
    %285 = tpu.matmul %280, %284, %cst_264 {dimension_numbers = #tpu.dot_dimension_numbers<[1], [0], [0], [1], [0, 0, 1, 1], [], []>} : vector<8x128xbf16>, vector<128x128xbf16>, vector<8x128xf32> -> vector<8x128xf32>
    %286 = arith.addf %282, %285 : vector<8x128xf32>
    %287 = math.tanh %286 : vector<8x128xf32>
    %c0_265 = arith.constant 0 : index
    %c0_266 = arith.constant 0 : index
    %c0_267 = arith.constant 0 : index
    %288 = vector.load %arg10[%c0_265, %c0_266, %c0_267] : memref<2x8x128xf32, #tpu.memory_space<vmem>>, vector<1x8x128xf32>
    %289 = vector.shape_cast %288 : vector<1x8x128xf32> to vector<8x128xf32>
    %290 = vector.shape_cast %287 : vector<8x128xf32> to vector<1x8x128xf32>
    tpu.vector_store %arg10[%c0_265, %c0_266, %c0_267], %290 {strides = array<i32>} : memref<2x8x128xf32, #tpu.memory_space<vmem>>, vector<1x8x128xf32>,
    %c0_i32_268 = arith.constant 0 : i32
    %291 = arith.cmpi eq, %arg0, %c0_i32_268 : i32
    %292 = arith.extui %291 : i1 to i32
    %c0_i32_269 = arith.constant 0 : i32
    %293 = arith.cmpi ne, %292, %c0_i32_269 : i32
    scf.if %293 {
      %c0_575 = arith.constant 0 : index
      %c0_576 = arith.constant 0 : index
      %c0_577 = arith.constant 0 : index
      %626 = vector.load %arg9[%c0_575, %c0_576, %c0_577] : memref<2x8x128xf32, #tpu.memory_space<vmem>>, vector<1x8x128xf32>
      %627 = vector.shape_cast %626 : vector<1x8x128xf32> to vector<8x128xf32>
      %628 = vector.shape_cast %287 : vector<8x128xf32> to vector<1x8x128xf32>
      tpu.vector_store %arg9[%c0_575, %c0_576, %c0_577], %628 {strides = array<i32>} : memref<2x8x128xf32, #tpu.memory_space<vmem>>, vector<1x8x128xf32>,
    } else {
    }
    %c1_270 = arith.constant 1 : index
    %c0_271 = arith.constant 0 : index
    %c0_272 = arith.constant 0 : index
    %294 = vector.load %arg10[%c1_270, %c0_271, %c0_272] : memref<2x8x128xf32, #tpu.memory_space<vmem>>, vector<1x8x128xf32>
    %295 = vector.shape_cast %294 : vector<1x8x128xf32> to vector<8x128xf32>
    %296 = arith.truncf %295 : vector<8x128xf32> to vector<8x128xbf16>
    %c0_273 = arith.constant 0 : index
    %c0_274 = arith.constant 0 : index
    %c0_275 = arith.constant 0 : index
    %297 = vector.load %arg10[%c0_273, %c0_274, %c0_275] : memref<2x8x128xf32, #tpu.memory_space<vmem>>, vector<1x8x128xf32>
    %298 = vector.shape_cast %297 : vector<1x8x128xf32> to vector<8x128xf32>
    %299 = arith.truncf %298 : vector<8x128xf32> to vector<8x128xbf16>
    %c0_276 = arith.constant 0 : index
    %c0_277 = arith.constant 0 : index
    %c0_278 = arith.constant 0 : index
    %300 = vector.load %arg5[%c0_276, %c0_277, %c0_278] : memref<1x128x128xbf16, #tpu.memory_space<vmem>>, vector<1x128x128xbf16>
    %301 = vector.shape_cast %300 : vector<1x128x128xbf16> to vector<128x128xbf16>
    %cst_279 = arith.constant dense<0.000000e+00> : vector<8x128xf32>
    %302 = tpu.matmul %299, %301, %cst_279 {dimension_numbers = #tpu.dot_dimension_numbers<[1], [0], [0], [1], [0, 0, 1, 1], [], []>} : vector<8x128xbf16>, vector<128x128xbf16>, vector<8x128xf32> -> vector<8x128xf32>
    %c0_280 = arith.constant 0 : index
    %c0_281 = arith.constant 0 : index
    %c0_282 = arith.constant 0 : index
    %303 = vector.load %arg7[%c0_280, %c0_281, %c0_282] : memref<1x1x128xf32, #tpu.memory_space<vmem>>, vector<1x1x128xf32>
    %304 = vector.shape_cast %303 : vector<1x1x128xf32> to vector<1x128xf32>
    %305 = vector.broadcast %304 : vector<1x128xf32> to vector<8x128xf32>
    %306 = arith.addf %302, %305 : vector<8x128xf32>
    %c1_283 = arith.constant 1 : index
    %c0_284 = arith.constant 0 : index
    %c0_285 = arith.constant 0 : index
    %307 = vector.load %arg6[%c1_283, %c0_284, %c0_285] : memref<2x128x128xbf16, #tpu.memory_space<vmem>>, vector<1x128x128xbf16>
    %308 = vector.shape_cast %307 : vector<1x128x128xbf16> to vector<128x128xbf16>
    %cst_286 = arith.constant dense<0.000000e+00> : vector<8x128xf32>
    %309 = tpu.matmul %296, %308, %cst_286 {dimension_numbers = #tpu.dot_dimension_numbers<[1], [0], [0], [1], [0, 0, 1, 1], [], []>} : vector<8x128xbf16>, vector<128x128xbf16>, vector<8x128xf32> -> vector<8x128xf32>
    %310 = arith.addf %306, %309 : vector<8x128xf32>
    %311 = math.tanh %310 : vector<8x128xf32>
    %c1_287 = arith.constant 1 : index
    %c0_288 = arith.constant 0 : index
    %c0_289 = arith.constant 0 : index
    %312 = vector.load %arg10[%c1_287, %c0_288, %c0_289] : memref<2x8x128xf32, #tpu.memory_space<vmem>>, vector<1x8x128xf32>
    %313 = vector.shape_cast %312 : vector<1x8x128xf32> to vector<8x128xf32>
    %314 = vector.shape_cast %311 : vector<8x128xf32> to vector<1x8x128xf32>
    tpu.vector_store %arg10[%c1_287, %c0_288, %c0_289], %314 {strides = array<i32>} : memref<2x8x128xf32, #tpu.memory_space<vmem>>, vector<1x8x128xf32>,
    %315 = arith.truncf %311 : vector<8x128xf32> to vector<8x128xbf16>
    %c0_290 = arith.constant 0 : index
    %c7_291 = arith.constant 7 : index
    %c0_292 = arith.constant 0 : index
    %316 = vector.load %arg8[%c0_290, %c7_291, %c0_292] : memref<8x16x128xbf16, #tpu.memory_space<vmem>>, vector<8x1x128xbf16>
    %317 = vector.shape_cast %316 : vector<8x1x128xbf16> to vector<8x128xbf16>
    %318 = vector.shape_cast %315 : vector<8x128xbf16> to vector<8x1x128xbf16>
    tpu.vector_store %arg8[%c0_290, %c7_291, %c0_292], %318 {strides = array<i32>} : memref<8x16x128xbf16, #tpu.memory_space<vmem>>, vector<8x1x128xbf16>,
    %c0_i32_293 = arith.constant 0 : i32
    %319 = arith.cmpi eq, %arg0, %c0_i32_293 : i32
    %320 = arith.extui %319 : i1 to i32
    %c0_i32_294 = arith.constant 0 : i32
    %321 = arith.cmpi ne, %320, %c0_i32_294 : i32
    scf.if %321 {
      %c1_575 = arith.constant 1 : index
      %c0_576 = arith.constant 0 : index
      %c0_577 = arith.constant 0 : index
      %626 = vector.load %arg9[%c1_575, %c0_576, %c0_577] : memref<2x8x128xf32, #tpu.memory_space<vmem>>, vector<1x8x128xf32>
      %627 = vector.shape_cast %626 : vector<1x8x128xf32> to vector<8x128xf32>
      %628 = vector.shape_cast %311 : vector<8x128xf32> to vector<1x8x128xf32>
      tpu.vector_store %arg9[%c1_575, %c0_576, %c0_577], %628 {strides = array<i32>} : memref<2x8x128xf32, #tpu.memory_space<vmem>>, vector<1x8x128xf32>,
    } else {
    }
    %c0_295 = arith.constant 0 : index
    %c0_296 = arith.constant 0 : index
    %c0_297 = arith.constant 0 : index
    %322 = vector.load %arg10[%c0_295, %c0_296, %c0_297] : memref<2x8x128xf32, #tpu.memory_space<vmem>>, vector<1x8x128xf32>
    %323 = vector.shape_cast %322 : vector<1x8x128xf32> to vector<8x128xf32>
    %324 = arith.truncf %323 : vector<8x128xf32> to vector<8x128xbf16>
    %c0_298 = arith.constant 0 : index
    %c8 = arith.constant 8 : index
    %c0_299 = arith.constant 0 : index
    %325 = vector.load %arg11[%c0_298, %c8, %c0_299] : memref<8x16x128xf32, #tpu.memory_space<vmem>>, vector<8x1x128xf32>
    %326 = vector.shape_cast %325 : vector<8x1x128xf32> to vector<8x128xf32>
    %c0_300 = arith.constant 0 : index
    %c0_301 = arith.constant 0 : index
    %c0_302 = arith.constant 0 : index
    %327 = vector.load %arg6[%c0_300, %c0_301, %c0_302] : memref<2x128x128xbf16, #tpu.memory_space<vmem>>, vector<1x128x128xbf16>
    %328 = vector.shape_cast %327 : vector<1x128x128xbf16> to vector<128x128xbf16>
    %cst_303 = arith.constant dense<0.000000e+00> : vector<8x128xf32>
    %329 = tpu.matmul %324, %328, %cst_303 {dimension_numbers = #tpu.dot_dimension_numbers<[1], [0], [0], [1], [0, 0, 1, 1], [], []>} : vector<8x128xbf16>, vector<128x128xbf16>, vector<8x128xf32> -> vector<8x128xf32>
    %330 = arith.addf %326, %329 : vector<8x128xf32>
    %331 = math.tanh %330 : vector<8x128xf32>
    %c0_304 = arith.constant 0 : index
    %c0_305 = arith.constant 0 : index
    %c0_306 = arith.constant 0 : index
    %332 = vector.load %arg10[%c0_304, %c0_305, %c0_306] : memref<2x8x128xf32, #tpu.memory_space<vmem>>, vector<1x8x128xf32>
    %333 = vector.shape_cast %332 : vector<1x8x128xf32> to vector<8x128xf32>
    %334 = vector.shape_cast %331 : vector<8x128xf32> to vector<1x8x128xf32>
    tpu.vector_store %arg10[%c0_304, %c0_305, %c0_306], %334 {strides = array<i32>} : memref<2x8x128xf32, #tpu.memory_space<vmem>>, vector<1x8x128xf32>,
    %c1_307 = arith.constant 1 : index
    %c0_308 = arith.constant 0 : index
    %c0_309 = arith.constant 0 : index
    %335 = vector.load %arg10[%c1_307, %c0_308, %c0_309] : memref<2x8x128xf32, #tpu.memory_space<vmem>>, vector<1x8x128xf32>
    %336 = vector.shape_cast %335 : vector<1x8x128xf32> to vector<8x128xf32>
    %337 = arith.truncf %336 : vector<8x128xf32> to vector<8x128xbf16>
    %c0_310 = arith.constant 0 : index
    %c0_311 = arith.constant 0 : index
    %c0_312 = arith.constant 0 : index
    %338 = vector.load %arg10[%c0_310, %c0_311, %c0_312] : memref<2x8x128xf32, #tpu.memory_space<vmem>>, vector<1x8x128xf32>
    %339 = vector.shape_cast %338 : vector<1x8x128xf32> to vector<8x128xf32>
    %340 = arith.truncf %339 : vector<8x128xf32> to vector<8x128xbf16>
    %c0_313 = arith.constant 0 : index
    %c0_314 = arith.constant 0 : index
    %c0_315 = arith.constant 0 : index
    %341 = vector.load %arg5[%c0_313, %c0_314, %c0_315] : memref<1x128x128xbf16, #tpu.memory_space<vmem>>, vector<1x128x128xbf16>
    %342 = vector.shape_cast %341 : vector<1x128x128xbf16> to vector<128x128xbf16>
    %cst_316 = arith.constant dense<0.000000e+00> : vector<8x128xf32>
    %343 = tpu.matmul %340, %342, %cst_316 {dimension_numbers = #tpu.dot_dimension_numbers<[1], [0], [0], [1], [0, 0, 1, 1], [], []>} : vector<8x128xbf16>, vector<128x128xbf16>, vector<8x128xf32> -> vector<8x128xf32>
    %c0_317 = arith.constant 0 : index
    %c0_318 = arith.constant 0 : index
    %c0_319 = arith.constant 0 : index
    %344 = vector.load %arg7[%c0_317, %c0_318, %c0_319] : memref<1x1x128xf32, #tpu.memory_space<vmem>>, vector<1x1x128xf32>
    %345 = vector.shape_cast %344 : vector<1x1x128xf32> to vector<1x128xf32>
    %346 = vector.broadcast %345 : vector<1x128xf32> to vector<8x128xf32>
    %347 = arith.addf %343, %346 : vector<8x128xf32>
    %c1_320 = arith.constant 1 : index
    %c0_321 = arith.constant 0 : index
    %c0_322 = arith.constant 0 : index
    %348 = vector.load %arg6[%c1_320, %c0_321, %c0_322] : memref<2x128x128xbf16, #tpu.memory_space<vmem>>, vector<1x128x128xbf16>
    %349 = vector.shape_cast %348 : vector<1x128x128xbf16> to vector<128x128xbf16>
    %cst_323 = arith.constant dense<0.000000e+00> : vector<8x128xf32>
    %350 = tpu.matmul %337, %349, %cst_323 {dimension_numbers = #tpu.dot_dimension_numbers<[1], [0], [0], [1], [0, 0, 1, 1], [], []>} : vector<8x128xbf16>, vector<128x128xbf16>, vector<8x128xf32> -> vector<8x128xf32>
    %351 = arith.addf %347, %350 : vector<8x128xf32>
    %352 = math.tanh %351 : vector<8x128xf32>
    %c1_324 = arith.constant 1 : index
    %c0_325 = arith.constant 0 : index
    %c0_326 = arith.constant 0 : index
    %353 = vector.load %arg10[%c1_324, %c0_325, %c0_326] : memref<2x8x128xf32, #tpu.memory_space<vmem>>, vector<1x8x128xf32>
    %354 = vector.shape_cast %353 : vector<1x8x128xf32> to vector<8x128xf32>
    %355 = vector.shape_cast %352 : vector<8x128xf32> to vector<1x8x128xf32>
    tpu.vector_store %arg10[%c1_324, %c0_325, %c0_326], %355 {strides = array<i32>} : memref<2x8x128xf32, #tpu.memory_space<vmem>>, vector<1x8x128xf32>,
    %356 = arith.truncf %352 : vector<8x128xf32> to vector<8x128xbf16>
    %c0_327 = arith.constant 0 : index
    %c8_328 = arith.constant 8 : index
    %c0_329 = arith.constant 0 : index
    %357 = vector.load %arg8[%c0_327, %c8_328, %c0_329] : memref<8x16x128xbf16, #tpu.memory_space<vmem>>, vector<8x1x128xbf16>
    %358 = vector.shape_cast %357 : vector<8x1x128xbf16> to vector<8x128xbf16>
    %359 = vector.shape_cast %356 : vector<8x128xbf16> to vector<8x1x128xbf16>
    tpu.vector_store %arg8[%c0_327, %c8_328, %c0_329], %359 {strides = array<i32>} : memref<8x16x128xbf16, #tpu.memory_space<vmem>>, vector<8x1x128xbf16>,
    %c0_330 = arith.constant 0 : index
    %c0_331 = arith.constant 0 : index
    %c0_332 = arith.constant 0 : index
    %360 = vector.load %arg10[%c0_330, %c0_331, %c0_332] : memref<2x8x128xf32, #tpu.memory_space<vmem>>, vector<1x8x128xf32>
    %361 = vector.shape_cast %360 : vector<1x8x128xf32> to vector<8x128xf32>
    %362 = arith.truncf %361 : vector<8x128xf32> to vector<8x128xbf16>
    %c0_333 = arith.constant 0 : index
    %c9 = arith.constant 9 : index
    %c0_334 = arith.constant 0 : index
    %363 = vector.load %arg11[%c0_333, %c9, %c0_334] : memref<8x16x128xf32, #tpu.memory_space<vmem>>, vector<8x1x128xf32>
    %364 = vector.shape_cast %363 : vector<8x1x128xf32> to vector<8x128xf32>
    %c0_335 = arith.constant 0 : index
    %c0_336 = arith.constant 0 : index
    %c0_337 = arith.constant 0 : index
    %365 = vector.load %arg6[%c0_335, %c0_336, %c0_337] : memref<2x128x128xbf16, #tpu.memory_space<vmem>>, vector<1x128x128xbf16>
    %366 = vector.shape_cast %365 : vector<1x128x128xbf16> to vector<128x128xbf16>
    %cst_338 = arith.constant dense<0.000000e+00> : vector<8x128xf32>
    %367 = tpu.matmul %362, %366, %cst_338 {dimension_numbers = #tpu.dot_dimension_numbers<[1], [0], [0], [1], [0, 0, 1, 1], [], []>} : vector<8x128xbf16>, vector<128x128xbf16>, vector<8x128xf32> -> vector<8x128xf32>
    %368 = arith.addf %364, %367 : vector<8x128xf32>
    %369 = math.tanh %368 : vector<8x128xf32>
    %c0_339 = arith.constant 0 : index
    %c0_340 = arith.constant 0 : index
    %c0_341 = arith.constant 0 : index
    %370 = vector.load %arg10[%c0_339, %c0_340, %c0_341] : memref<2x8x128xf32, #tpu.memory_space<vmem>>, vector<1x8x128xf32>
    %371 = vector.shape_cast %370 : vector<1x8x128xf32> to vector<8x128xf32>
    %372 = vector.shape_cast %369 : vector<8x128xf32> to vector<1x8x128xf32>
    tpu.vector_store %arg10[%c0_339, %c0_340, %c0_341], %372 {strides = array<i32>} : memref<2x8x128xf32, #tpu.memory_space<vmem>>, vector<1x8x128xf32>,
    %c1_342 = arith.constant 1 : index
    %c0_343 = arith.constant 0 : index
    %c0_344 = arith.constant 0 : index
    %373 = vector.load %arg10[%c1_342, %c0_343, %c0_344] : memref<2x8x128xf32, #tpu.memory_space<vmem>>, vector<1x8x128xf32>
    %374 = vector.shape_cast %373 : vector<1x8x128xf32> to vector<8x128xf32>
    %375 = arith.truncf %374 : vector<8x128xf32> to vector<8x128xbf16>
    %c0_345 = arith.constant 0 : index
    %c0_346 = arith.constant 0 : index
    %c0_347 = arith.constant 0 : index
    %376 = vector.load %arg10[%c0_345, %c0_346, %c0_347] : memref<2x8x128xf32, #tpu.memory_space<vmem>>, vector<1x8x128xf32>
    %377 = vector.shape_cast %376 : vector<1x8x128xf32> to vector<8x128xf32>
    %378 = arith.truncf %377 : vector<8x128xf32> to vector<8x128xbf16>
    %c0_348 = arith.constant 0 : index
    %c0_349 = arith.constant 0 : index
    %c0_350 = arith.constant 0 : index
    %379 = vector.load %arg5[%c0_348, %c0_349, %c0_350] : memref<1x128x128xbf16, #tpu.memory_space<vmem>>, vector<1x128x128xbf16>
    %380 = vector.shape_cast %379 : vector<1x128x128xbf16> to vector<128x128xbf16>
    %cst_351 = arith.constant dense<0.000000e+00> : vector<8x128xf32>
    %381 = tpu.matmul %378, %380, %cst_351 {dimension_numbers = #tpu.dot_dimension_numbers<[1], [0], [0], [1], [0, 0, 1, 1], [], []>} : vector<8x128xbf16>, vector<128x128xbf16>, vector<8x128xf32> -> vector<8x128xf32>
    %c0_352 = arith.constant 0 : index
    %c0_353 = arith.constant 0 : index
    %c0_354 = arith.constant 0 : index
    %382 = vector.load %arg7[%c0_352, %c0_353, %c0_354] : memref<1x1x128xf32, #tpu.memory_space<vmem>>, vector<1x1x128xf32>
    %383 = vector.shape_cast %382 : vector<1x1x128xf32> to vector<1x128xf32>
    %384 = vector.broadcast %383 : vector<1x128xf32> to vector<8x128xf32>
    %385 = arith.addf %381, %384 : vector<8x128xf32>
    %c1_355 = arith.constant 1 : index
    %c0_356 = arith.constant 0 : index
    %c0_357 = arith.constant 0 : index
    %386 = vector.load %arg6[%c1_355, %c0_356, %c0_357] : memref<2x128x128xbf16, #tpu.memory_space<vmem>>, vector<1x128x128xbf16>
    %387 = vector.shape_cast %386 : vector<1x128x128xbf16> to vector<128x128xbf16>
    %cst_358 = arith.constant dense<0.000000e+00> : vector<8x128xf32>
    %388 = tpu.matmul %375, %387, %cst_358 {dimension_numbers = #tpu.dot_dimension_numbers<[1], [0], [0], [1], [0, 0, 1, 1], [], []>} : vector<8x128xbf16>, vector<128x128xbf16>, vector<8x128xf32> -> vector<8x128xf32>
    %389 = arith.addf %385, %388 : vector<8x128xf32>
    %390 = math.tanh %389 : vector<8x128xf32>
    %c1_359 = arith.constant 1 : index
    %c0_360 = arith.constant 0 : index
    %c0_361 = arith.constant 0 : index
    %391 = vector.load %arg10[%c1_359, %c0_360, %c0_361] : memref<2x8x128xf32, #tpu.memory_space<vmem>>, vector<1x8x128xf32>
    %392 = vector.shape_cast %391 : vector<1x8x128xf32> to vector<8x128xf32>
    %393 = vector.shape_cast %390 : vector<8x128xf32> to vector<1x8x128xf32>
    tpu.vector_store %arg10[%c1_359, %c0_360, %c0_361], %393 {strides = array<i32>} : memref<2x8x128xf32, #tpu.memory_space<vmem>>, vector<1x8x128xf32>,
    %394 = arith.truncf %390 : vector<8x128xf32> to vector<8x128xbf16>
    %c0_362 = arith.constant 0 : index
    %c9_363 = arith.constant 9 : index
    %c0_364 = arith.constant 0 : index
    %395 = vector.load %arg8[%c0_362, %c9_363, %c0_364] : memref<8x16x128xbf16, #tpu.memory_space<vmem>>, vector<8x1x128xbf16>
    %396 = vector.shape_cast %395 : vector<8x1x128xbf16> to vector<8x128xbf16>
    %397 = vector.shape_cast %394 : vector<8x128xbf16> to vector<8x1x128xbf16>
    tpu.vector_store %arg8[%c0_362, %c9_363, %c0_364], %397 {strides = array<i32>} : memref<8x16x128xbf16, #tpu.memory_space<vmem>>, vector<8x1x128xbf16>,
    %c0_365 = arith.constant 0 : index
    %c0_366 = arith.constant 0 : index
    %c0_367 = arith.constant 0 : index
    %398 = vector.load %arg10[%c0_365, %c0_366, %c0_367] : memref<2x8x128xf32, #tpu.memory_space<vmem>>, vector<1x8x128xf32>
    %399 = vector.shape_cast %398 : vector<1x8x128xf32> to vector<8x128xf32>
    %400 = arith.truncf %399 : vector<8x128xf32> to vector<8x128xbf16>
    %c0_368 = arith.constant 0 : index
    %c10 = arith.constant 10 : index
    %c0_369 = arith.constant 0 : index
    %401 = vector.load %arg11[%c0_368, %c10, %c0_369] : memref<8x16x128xf32, #tpu.memory_space<vmem>>, vector<8x1x128xf32>
    %402 = vector.shape_cast %401 : vector<8x1x128xf32> to vector<8x128xf32>
    %c0_370 = arith.constant 0 : index
    %c0_371 = arith.constant 0 : index
    %c0_372 = arith.constant 0 : index
    %403 = vector.load %arg6[%c0_370, %c0_371, %c0_372] : memref<2x128x128xbf16, #tpu.memory_space<vmem>>, vector<1x128x128xbf16>
    %404 = vector.shape_cast %403 : vector<1x128x128xbf16> to vector<128x128xbf16>
    %cst_373 = arith.constant dense<0.000000e+00> : vector<8x128xf32>
    %405 = tpu.matmul %400, %404, %cst_373 {dimension_numbers = #tpu.dot_dimension_numbers<[1], [0], [0], [1], [0, 0, 1, 1], [], []>} : vector<8x128xbf16>, vector<128x128xbf16>, vector<8x128xf32> -> vector<8x128xf32>
    %406 = arith.addf %402, %405 : vector<8x128xf32>
    %407 = math.tanh %406 : vector<8x128xf32>
    %c0_374 = arith.constant 0 : index
    %c0_375 = arith.constant 0 : index
    %c0_376 = arith.constant 0 : index
    %408 = vector.load %arg10[%c0_374, %c0_375, %c0_376] : memref<2x8x128xf32, #tpu.memory_space<vmem>>, vector<1x8x128xf32>
    %409 = vector.shape_cast %408 : vector<1x8x128xf32> to vector<8x128xf32>
    %410 = vector.shape_cast %407 : vector<8x128xf32> to vector<1x8x128xf32>
    tpu.vector_store %arg10[%c0_374, %c0_375, %c0_376], %410 {strides = array<i32>} : memref<2x8x128xf32, #tpu.memory_space<vmem>>, vector<1x8x128xf32>,
    %c1_377 = arith.constant 1 : index
    %c0_378 = arith.constant 0 : index
    %c0_379 = arith.constant 0 : index
    %411 = vector.load %arg10[%c1_377, %c0_378, %c0_379] : memref<2x8x128xf32, #tpu.memory_space<vmem>>, vector<1x8x128xf32>
    %412 = vector.shape_cast %411 : vector<1x8x128xf32> to vector<8x128xf32>
    %413 = arith.truncf %412 : vector<8x128xf32> to vector<8x128xbf16>
    %c0_380 = arith.constant 0 : index
    %c0_381 = arith.constant 0 : index
    %c0_382 = arith.constant 0 : index
    %414 = vector.load %arg10[%c0_380, %c0_381, %c0_382] : memref<2x8x128xf32, #tpu.memory_space<vmem>>, vector<1x8x128xf32>
    %415 = vector.shape_cast %414 : vector<1x8x128xf32> to vector<8x128xf32>
    %416 = arith.truncf %415 : vector<8x128xf32> to vector<8x128xbf16>
    %c0_383 = arith.constant 0 : index
    %c0_384 = arith.constant 0 : index
    %c0_385 = arith.constant 0 : index
    %417 = vector.load %arg5[%c0_383, %c0_384, %c0_385] : memref<1x128x128xbf16, #tpu.memory_space<vmem>>, vector<1x128x128xbf16>
    %418 = vector.shape_cast %417 : vector<1x128x128xbf16> to vector<128x128xbf16>
    %cst_386 = arith.constant dense<0.000000e+00> : vector<8x128xf32>
    %419 = tpu.matmul %416, %418, %cst_386 {dimension_numbers = #tpu.dot_dimension_numbers<[1], [0], [0], [1], [0, 0, 1, 1], [], []>} : vector<8x128xbf16>, vector<128x128xbf16>, vector<8x128xf32> -> vector<8x128xf32>
    %c0_387 = arith.constant 0 : index
    %c0_388 = arith.constant 0 : index
    %c0_389 = arith.constant 0 : index
    %420 = vector.load %arg7[%c0_387, %c0_388, %c0_389] : memref<1x1x128xf32, #tpu.memory_space<vmem>>, vector<1x1x128xf32>
    %421 = vector.shape_cast %420 : vector<1x1x128xf32> to vector<1x128xf32>
    %422 = vector.broadcast %421 : vector<1x128xf32> to vector<8x128xf32>
    %423 = arith.addf %419, %422 : vector<8x128xf32>
    %c1_390 = arith.constant 1 : index
    %c0_391 = arith.constant 0 : index
    %c0_392 = arith.constant 0 : index
    %424 = vector.load %arg6[%c1_390, %c0_391, %c0_392] : memref<2x128x128xbf16, #tpu.memory_space<vmem>>, vector<1x128x128xbf16>
    %425 = vector.shape_cast %424 : vector<1x128x128xbf16> to vector<128x128xbf16>
    %cst_393 = arith.constant dense<0.000000e+00> : vector<8x128xf32>
    %426 = tpu.matmul %413, %425, %cst_393 {dimension_numbers = #tpu.dot_dimension_numbers<[1], [0], [0], [1], [0, 0, 1, 1], [], []>} : vector<8x128xbf16>, vector<128x128xbf16>, vector<8x128xf32> -> vector<8x128xf32>
    %427 = arith.addf %423, %426 : vector<8x128xf32>
    %428 = math.tanh %427 : vector<8x128xf32>
    %c1_394 = arith.constant 1 : index
    %c0_395 = arith.constant 0 : index
    %c0_396 = arith.constant 0 : index
    %429 = vector.load %arg10[%c1_394, %c0_395, %c0_396] : memref<2x8x128xf32, #tpu.memory_space<vmem>>, vector<1x8x128xf32>
    %430 = vector.shape_cast %429 : vector<1x8x128xf32> to vector<8x128xf32>
    %431 = vector.shape_cast %428 : vector<8x128xf32> to vector<1x8x128xf32>
    tpu.vector_store %arg10[%c1_394, %c0_395, %c0_396], %431 {strides = array<i32>} : memref<2x8x128xf32, #tpu.memory_space<vmem>>, vector<1x8x128xf32>,
    %432 = arith.truncf %428 : vector<8x128xf32> to vector<8x128xbf16>
    %c0_397 = arith.constant 0 : index
    %c10_398 = arith.constant 10 : index
    %c0_399 = arith.constant 0 : index
    %433 = vector.load %arg8[%c0_397, %c10_398, %c0_399] : memref<8x16x128xbf16, #tpu.memory_space<vmem>>, vector<8x1x128xbf16>
    %434 = vector.shape_cast %433 : vector<8x1x128xbf16> to vector<8x128xbf16>
    %435 = vector.shape_cast %432 : vector<8x128xbf16> to vector<8x1x128xbf16>
    tpu.vector_store %arg8[%c0_397, %c10_398, %c0_399], %435 {strides = array<i32>} : memref<8x16x128xbf16, #tpu.memory_space<vmem>>, vector<8x1x128xbf16>,
    %c0_400 = arith.constant 0 : index
    %c0_401 = arith.constant 0 : index
    %c0_402 = arith.constant 0 : index
    %436 = vector.load %arg10[%c0_400, %c0_401, %c0_402] : memref<2x8x128xf32, #tpu.memory_space<vmem>>, vector<1x8x128xf32>
    %437 = vector.shape_cast %436 : vector<1x8x128xf32> to vector<8x128xf32>
    %438 = arith.truncf %437 : vector<8x128xf32> to vector<8x128xbf16>
    %c0_403 = arith.constant 0 : index
    %c11 = arith.constant 11 : index
    %c0_404 = arith.constant 0 : index
    %439 = vector.load %arg11[%c0_403, %c11, %c0_404] : memref<8x16x128xf32, #tpu.memory_space<vmem>>, vector<8x1x128xf32>
    %440 = vector.shape_cast %439 : vector<8x1x128xf32> to vector<8x128xf32>
    %c0_405 = arith.constant 0 : index
    %c0_406 = arith.constant 0 : index
    %c0_407 = arith.constant 0 : index
    %441 = vector.load %arg6[%c0_405, %c0_406, %c0_407] : memref<2x128x128xbf16, #tpu.memory_space<vmem>>, vector<1x128x128xbf16>
    %442 = vector.shape_cast %441 : vector<1x128x128xbf16> to vector<128x128xbf16>
    %cst_408 = arith.constant dense<0.000000e+00> : vector<8x128xf32>
    %443 = tpu.matmul %438, %442, %cst_408 {dimension_numbers = #tpu.dot_dimension_numbers<[1], [0], [0], [1], [0, 0, 1, 1], [], []>} : vector<8x128xbf16>, vector<128x128xbf16>, vector<8x128xf32> -> vector<8x128xf32>
    %444 = arith.addf %440, %443 : vector<8x128xf32>
    %445 = math.tanh %444 : vector<8x128xf32>
    %c0_409 = arith.constant 0 : index
    %c0_410 = arith.constant 0 : index
    %c0_411 = arith.constant 0 : index
    %446 = vector.load %arg10[%c0_409, %c0_410, %c0_411] : memref<2x8x128xf32, #tpu.memory_space<vmem>>, vector<1x8x128xf32>
    %447 = vector.shape_cast %446 : vector<1x8x128xf32> to vector<8x128xf32>
    %448 = vector.shape_cast %445 : vector<8x128xf32> to vector<1x8x128xf32>
    tpu.vector_store %arg10[%c0_409, %c0_410, %c0_411], %448 {strides = array<i32>} : memref<2x8x128xf32, #tpu.memory_space<vmem>>, vector<1x8x128xf32>,
    %c1_412 = arith.constant 1 : index
    %c0_413 = arith.constant 0 : index
    %c0_414 = arith.constant 0 : index
    %449 = vector.load %arg10[%c1_412, %c0_413, %c0_414] : memref<2x8x128xf32, #tpu.memory_space<vmem>>, vector<1x8x128xf32>
    %450 = vector.shape_cast %449 : vector<1x8x128xf32> to vector<8x128xf32>
    %451 = arith.truncf %450 : vector<8x128xf32> to vector<8x128xbf16>
    %c0_415 = arith.constant 0 : index
    %c0_416 = arith.constant 0 : index
    %c0_417 = arith.constant 0 : index
    %452 = vector.load %arg10[%c0_415, %c0_416, %c0_417] : memref<2x8x128xf32, #tpu.memory_space<vmem>>, vector<1x8x128xf32>
    %453 = vector.shape_cast %452 : vector<1x8x128xf32> to vector<8x128xf32>
    %454 = arith.truncf %453 : vector<8x128xf32> to vector<8x128xbf16>
    %c0_418 = arith.constant 0 : index
    %c0_419 = arith.constant 0 : index
    %c0_420 = arith.constant 0 : index
    %455 = vector.load %arg5[%c0_418, %c0_419, %c0_420] : memref<1x128x128xbf16, #tpu.memory_space<vmem>>, vector<1x128x128xbf16>
    %456 = vector.shape_cast %455 : vector<1x128x128xbf16> to vector<128x128xbf16>
    %cst_421 = arith.constant dense<0.000000e+00> : vector<8x128xf32>
    %457 = tpu.matmul %454, %456, %cst_421 {dimension_numbers = #tpu.dot_dimension_numbers<[1], [0], [0], [1], [0, 0, 1, 1], [], []>} : vector<8x128xbf16>, vector<128x128xbf16>, vector<8x128xf32> -> vector<8x128xf32>
    %c0_422 = arith.constant 0 : index
    %c0_423 = arith.constant 0 : index
    %c0_424 = arith.constant 0 : index
    %458 = vector.load %arg7[%c0_422, %c0_423, %c0_424] : memref<1x1x128xf32, #tpu.memory_space<vmem>>, vector<1x1x128xf32>
    %459 = vector.shape_cast %458 : vector<1x1x128xf32> to vector<1x128xf32>
    %460 = vector.broadcast %459 : vector<1x128xf32> to vector<8x128xf32>
    %461 = arith.addf %457, %460 : vector<8x128xf32>
    %c1_425 = arith.constant 1 : index
    %c0_426 = arith.constant 0 : index
    %c0_427 = arith.constant 0 : index
    %462 = vector.load %arg6[%c1_425, %c0_426, %c0_427] : memref<2x128x128xbf16, #tpu.memory_space<vmem>>, vector<1x128x128xbf16>
    %463 = vector.shape_cast %462 : vector<1x128x128xbf16> to vector<128x128xbf16>
    %cst_428 = arith.constant dense<0.000000e+00> : vector<8x128xf32>
    %464 = tpu.matmul %451, %463, %cst_428 {dimension_numbers = #tpu.dot_dimension_numbers<[1], [0], [0], [1], [0, 0, 1, 1], [], []>} : vector<8x128xbf16>, vector<128x128xbf16>, vector<8x128xf32> -> vector<8x128xf32>
    %465 = arith.addf %461, %464 : vector<8x128xf32>
    %466 = math.tanh %465 : vector<8x128xf32>
    %c1_429 = arith.constant 1 : index
    %c0_430 = arith.constant 0 : index
    %c0_431 = arith.constant 0 : index
    %467 = vector.load %arg10[%c1_429, %c0_430, %c0_431] : memref<2x8x128xf32, #tpu.memory_space<vmem>>, vector<1x8x128xf32>
    %468 = vector.shape_cast %467 : vector<1x8x128xf32> to vector<8x128xf32>
    %469 = vector.shape_cast %466 : vector<8x128xf32> to vector<1x8x128xf32>
    tpu.vector_store %arg10[%c1_429, %c0_430, %c0_431], %469 {strides = array<i32>} : memref<2x8x128xf32, #tpu.memory_space<vmem>>, vector<1x8x128xf32>,
    %470 = arith.truncf %466 : vector<8x128xf32> to vector<8x128xbf16>
    %c0_432 = arith.constant 0 : index
    %c11_433 = arith.constant 11 : index
    %c0_434 = arith.constant 0 : index
    %471 = vector.load %arg8[%c0_432, %c11_433, %c0_434] : memref<8x16x128xbf16, #tpu.memory_space<vmem>>, vector<8x1x128xbf16>
    %472 = vector.shape_cast %471 : vector<8x1x128xbf16> to vector<8x128xbf16>
    %473 = vector.shape_cast %470 : vector<8x128xbf16> to vector<8x1x128xbf16>
    tpu.vector_store %arg8[%c0_432, %c11_433, %c0_434], %473 {strides = array<i32>} : memref<8x16x128xbf16, #tpu.memory_space<vmem>>, vector<8x1x128xbf16>,
    %c0_435 = arith.constant 0 : index
    %c0_436 = arith.constant 0 : index
    %c0_437 = arith.constant 0 : index
    %474 = vector.load %arg10[%c0_435, %c0_436, %c0_437] : memref<2x8x128xf32, #tpu.memory_space<vmem>>, vector<1x8x128xf32>
    %475 = vector.shape_cast %474 : vector<1x8x128xf32> to vector<8x128xf32>
    %476 = arith.truncf %475 : vector<8x128xf32> to vector<8x128xbf16>
    %c0_438 = arith.constant 0 : index
    %c12 = arith.constant 12 : index
    %c0_439 = arith.constant 0 : index
    %477 = vector.load %arg11[%c0_438, %c12, %c0_439] : memref<8x16x128xf32, #tpu.memory_space<vmem>>, vector<8x1x128xf32>
    %478 = vector.shape_cast %477 : vector<8x1x128xf32> to vector<8x128xf32>
    %c0_440 = arith.constant 0 : index
    %c0_441 = arith.constant 0 : index
    %c0_442 = arith.constant 0 : index
    %479 = vector.load %arg6[%c0_440, %c0_441, %c0_442] : memref<2x128x128xbf16, #tpu.memory_space<vmem>>, vector<1x128x128xbf16>
    %480 = vector.shape_cast %479 : vector<1x128x128xbf16> to vector<128x128xbf16>
    %cst_443 = arith.constant dense<0.000000e+00> : vector<8x128xf32>
    %481 = tpu.matmul %476, %480, %cst_443 {dimension_numbers = #tpu.dot_dimension_numbers<[1], [0], [0], [1], [0, 0, 1, 1], [], []>} : vector<8x128xbf16>, vector<128x128xbf16>, vector<8x128xf32> -> vector<8x128xf32>
    %482 = arith.addf %478, %481 : vector<8x128xf32>
    %483 = math.tanh %482 : vector<8x128xf32>
    %c0_444 = arith.constant 0 : index
    %c0_445 = arith.constant 0 : index
    %c0_446 = arith.constant 0 : index
    %484 = vector.load %arg10[%c0_444, %c0_445, %c0_446] : memref<2x8x128xf32, #tpu.memory_space<vmem>>, vector<1x8x128xf32>
    %485 = vector.shape_cast %484 : vector<1x8x128xf32> to vector<8x128xf32>
    %486 = vector.shape_cast %483 : vector<8x128xf32> to vector<1x8x128xf32>
    tpu.vector_store %arg10[%c0_444, %c0_445, %c0_446], %486 {strides = array<i32>} : memref<2x8x128xf32, #tpu.memory_space<vmem>>, vector<1x8x128xf32>,
    %c1_447 = arith.constant 1 : index
    %c0_448 = arith.constant 0 : index
    %c0_449 = arith.constant 0 : index
    %487 = vector.load %arg10[%c1_447, %c0_448, %c0_449] : memref<2x8x128xf32, #tpu.memory_space<vmem>>, vector<1x8x128xf32>
    %488 = vector.shape_cast %487 : vector<1x8x128xf32> to vector<8x128xf32>
    %489 = arith.truncf %488 : vector<8x128xf32> to vector<8x128xbf16>
    %c0_450 = arith.constant 0 : index
    %c0_451 = arith.constant 0 : index
    %c0_452 = arith.constant 0 : index
    %490 = vector.load %arg10[%c0_450, %c0_451, %c0_452] : memref<2x8x128xf32, #tpu.memory_space<vmem>>, vector<1x8x128xf32>
    %491 = vector.shape_cast %490 : vector<1x8x128xf32> to vector<8x128xf32>
    %492 = arith.truncf %491 : vector<8x128xf32> to vector<8x128xbf16>
    %c0_453 = arith.constant 0 : index
    %c0_454 = arith.constant 0 : index
    %c0_455 = arith.constant 0 : index
    %493 = vector.load %arg5[%c0_453, %c0_454, %c0_455] : memref<1x128x128xbf16, #tpu.memory_space<vmem>>, vector<1x128x128xbf16>
    %494 = vector.shape_cast %493 : vector<1x128x128xbf16> to vector<128x128xbf16>
    %cst_456 = arith.constant dense<0.000000e+00> : vector<8x128xf32>
    %495 = tpu.matmul %492, %494, %cst_456 {dimension_numbers = #tpu.dot_dimension_numbers<[1], [0], [0], [1], [0, 0, 1, 1], [], []>} : vector<8x128xbf16>, vector<128x128xbf16>, vector<8x128xf32> -> vector<8x128xf32>
    %c0_457 = arith.constant 0 : index
    %c0_458 = arith.constant 0 : index
    %c0_459 = arith.constant 0 : index
    %496 = vector.load %arg7[%c0_457, %c0_458, %c0_459] : memref<1x1x128xf32, #tpu.memory_space<vmem>>, vector<1x1x128xf32>
    %497 = vector.shape_cast %496 : vector<1x1x128xf32> to vector<1x128xf32>
    %498 = vector.broadcast %497 : vector<1x128xf32> to vector<8x128xf32>
    %499 = arith.addf %495, %498 : vector<8x128xf32>
    %c1_460 = arith.constant 1 : index
    %c0_461 = arith.constant 0 : index
    %c0_462 = arith.constant 0 : index
    %500 = vector.load %arg6[%c1_460, %c0_461, %c0_462] : memref<2x128x128xbf16, #tpu.memory_space<vmem>>, vector<1x128x128xbf16>
    %501 = vector.shape_cast %500 : vector<1x128x128xbf16> to vector<128x128xbf16>
    %cst_463 = arith.constant dense<0.000000e+00> : vector<8x128xf32>
    %502 = tpu.matmul %489, %501, %cst_463 {dimension_numbers = #tpu.dot_dimension_numbers<[1], [0], [0], [1], [0, 0, 1, 1], [], []>} : vector<8x128xbf16>, vector<128x128xbf16>, vector<8x128xf32> -> vector<8x128xf32>
    %503 = arith.addf %499, %502 : vector<8x128xf32>
    %504 = math.tanh %503 : vector<8x128xf32>
    %c1_464 = arith.constant 1 : index
    %c0_465 = arith.constant 0 : index
    %c0_466 = arith.constant 0 : index
    %505 = vector.load %arg10[%c1_464, %c0_465, %c0_466] : memref<2x8x128xf32, #tpu.memory_space<vmem>>, vector<1x8x128xf32>
    %506 = vector.shape_cast %505 : vector<1x8x128xf32> to vector<8x128xf32>
    %507 = vector.shape_cast %504 : vector<8x128xf32> to vector<1x8x128xf32>
    tpu.vector_store %arg10[%c1_464, %c0_465, %c0_466], %507 {strides = array<i32>} : memref<2x8x128xf32, #tpu.memory_space<vmem>>, vector<1x8x128xf32>,
    %508 = arith.truncf %504 : vector<8x128xf32> to vector<8x128xbf16>
    %c0_467 = arith.constant 0 : index
    %c12_468 = arith.constant 12 : index
    %c0_469 = arith.constant 0 : index
    %509 = vector.load %arg8[%c0_467, %c12_468, %c0_469] : memref<8x16x128xbf16, #tpu.memory_space<vmem>>, vector<8x1x128xbf16>
    %510 = vector.shape_cast %509 : vector<8x1x128xbf16> to vector<8x128xbf16>
    %511 = vector.shape_cast %508 : vector<8x128xbf16> to vector<8x1x128xbf16>
    tpu.vector_store %arg8[%c0_467, %c12_468, %c0_469], %511 {strides = array<i32>} : memref<8x16x128xbf16, #tpu.memory_space<vmem>>, vector<8x1x128xbf16>,
    %c0_470 = arith.constant 0 : index
    %c0_471 = arith.constant 0 : index
    %c0_472 = arith.constant 0 : index
    %512 = vector.load %arg10[%c0_470, %c0_471, %c0_472] : memref<2x8x128xf32, #tpu.memory_space<vmem>>, vector<1x8x128xf32>
    %513 = vector.shape_cast %512 : vector<1x8x128xf32> to vector<8x128xf32>
    %514 = arith.truncf %513 : vector<8x128xf32> to vector<8x128xbf16>
    %c0_473 = arith.constant 0 : index
    %c13 = arith.constant 13 : index
    %c0_474 = arith.constant 0 : index
    %515 = vector.load %arg11[%c0_473, %c13, %c0_474] : memref<8x16x128xf32, #tpu.memory_space<vmem>>, vector<8x1x128xf32>
    %516 = vector.shape_cast %515 : vector<8x1x128xf32> to vector<8x128xf32>
    %c0_475 = arith.constant 0 : index
    %c0_476 = arith.constant 0 : index
    %c0_477 = arith.constant 0 : index
    %517 = vector.load %arg6[%c0_475, %c0_476, %c0_477] : memref<2x128x128xbf16, #tpu.memory_space<vmem>>, vector<1x128x128xbf16>
    %518 = vector.shape_cast %517 : vector<1x128x128xbf16> to vector<128x128xbf16>
    %cst_478 = arith.constant dense<0.000000e+00> : vector<8x128xf32>
    %519 = tpu.matmul %514, %518, %cst_478 {dimension_numbers = #tpu.dot_dimension_numbers<[1], [0], [0], [1], [0, 0, 1, 1], [], []>} : vector<8x128xbf16>, vector<128x128xbf16>, vector<8x128xf32> -> vector<8x128xf32>
    %520 = arith.addf %516, %519 : vector<8x128xf32>
    %521 = math.tanh %520 : vector<8x128xf32>
    %c0_479 = arith.constant 0 : index
    %c0_480 = arith.constant 0 : index
    %c0_481 = arith.constant 0 : index
    %522 = vector.load %arg10[%c0_479, %c0_480, %c0_481] : memref<2x8x128xf32, #tpu.memory_space<vmem>>, vector<1x8x128xf32>
    %523 = vector.shape_cast %522 : vector<1x8x128xf32> to vector<8x128xf32>
    %524 = vector.shape_cast %521 : vector<8x128xf32> to vector<1x8x128xf32>
    tpu.vector_store %arg10[%c0_479, %c0_480, %c0_481], %524 {strides = array<i32>} : memref<2x8x128xf32, #tpu.memory_space<vmem>>, vector<1x8x128xf32>,
    %c1_482 = arith.constant 1 : index
    %c0_483 = arith.constant 0 : index
    %c0_484 = arith.constant 0 : index
    %525 = vector.load %arg10[%c1_482, %c0_483, %c0_484] : memref<2x8x128xf32, #tpu.memory_space<vmem>>, vector<1x8x128xf32>
    %526 = vector.shape_cast %525 : vector<1x8x128xf32> to vector<8x128xf32>
    %527 = arith.truncf %526 : vector<8x128xf32> to vector<8x128xbf16>
    %c0_485 = arith.constant 0 : index
    %c0_486 = arith.constant 0 : index
    %c0_487 = arith.constant 0 : index
    %528 = vector.load %arg10[%c0_485, %c0_486, %c0_487] : memref<2x8x128xf32, #tpu.memory_space<vmem>>, vector<1x8x128xf32>
    %529 = vector.shape_cast %528 : vector<1x8x128xf32> to vector<8x128xf32>
    %530 = arith.truncf %529 : vector<8x128xf32> to vector<8x128xbf16>
    %c0_488 = arith.constant 0 : index
    %c0_489 = arith.constant 0 : index
    %c0_490 = arith.constant 0 : index
    %531 = vector.load %arg5[%c0_488, %c0_489, %c0_490] : memref<1x128x128xbf16, #tpu.memory_space<vmem>>, vector<1x128x128xbf16>
    %532 = vector.shape_cast %531 : vector<1x128x128xbf16> to vector<128x128xbf16>
    %cst_491 = arith.constant dense<0.000000e+00> : vector<8x128xf32>
    %533 = tpu.matmul %530, %532, %cst_491 {dimension_numbers = #tpu.dot_dimension_numbers<[1], [0], [0], [1], [0, 0, 1, 1], [], []>} : vector<8x128xbf16>, vector<128x128xbf16>, vector<8x128xf32> -> vector<8x128xf32>
    %c0_492 = arith.constant 0 : index
    %c0_493 = arith.constant 0 : index
    %c0_494 = arith.constant 0 : index
    %534 = vector.load %arg7[%c0_492, %c0_493, %c0_494] : memref<1x1x128xf32, #tpu.memory_space<vmem>>, vector<1x1x128xf32>
    %535 = vector.shape_cast %534 : vector<1x1x128xf32> to vector<1x128xf32>
    %536 = vector.broadcast %535 : vector<1x128xf32> to vector<8x128xf32>
    %537 = arith.addf %533, %536 : vector<8x128xf32>
    %c1_495 = arith.constant 1 : index
    %c0_496 = arith.constant 0 : index
    %c0_497 = arith.constant 0 : index
    %538 = vector.load %arg6[%c1_495, %c0_496, %c0_497] : memref<2x128x128xbf16, #tpu.memory_space<vmem>>, vector<1x128x128xbf16>
    %539 = vector.shape_cast %538 : vector<1x128x128xbf16> to vector<128x128xbf16>
    %cst_498 = arith.constant dense<0.000000e+00> : vector<8x128xf32>
    %540 = tpu.matmul %527, %539, %cst_498 {dimension_numbers = #tpu.dot_dimension_numbers<[1], [0], [0], [1], [0, 0, 1, 1], [], []>} : vector<8x128xbf16>, vector<128x128xbf16>, vector<8x128xf32> -> vector<8x128xf32>
    %541 = arith.addf %537, %540 : vector<8x128xf32>
    %542 = math.tanh %541 : vector<8x128xf32>
    %c1_499 = arith.constant 1 : index
    %c0_500 = arith.constant 0 : index
    %c0_501 = arith.constant 0 : index
    %543 = vector.load %arg10[%c1_499, %c0_500, %c0_501] : memref<2x8x128xf32, #tpu.memory_space<vmem>>, vector<1x8x128xf32>
    %544 = vector.shape_cast %543 : vector<1x8x128xf32> to vector<8x128xf32>
    %545 = vector.shape_cast %542 : vector<8x128xf32> to vector<1x8x128xf32>
    tpu.vector_store %arg10[%c1_499, %c0_500, %c0_501], %545 {strides = array<i32>} : memref<2x8x128xf32, #tpu.memory_space<vmem>>, vector<1x8x128xf32>,
    %546 = arith.truncf %542 : vector<8x128xf32> to vector<8x128xbf16>
    %c0_502 = arith.constant 0 : index
    %c13_503 = arith.constant 13 : index
    %c0_504 = arith.constant 0 : index
    %547 = vector.load %arg8[%c0_502, %c13_503, %c0_504] : memref<8x16x128xbf16, #tpu.memory_space<vmem>>, vector<8x1x128xbf16>
    %548 = vector.shape_cast %547 : vector<8x1x128xbf16> to vector<8x128xbf16>
    %549 = vector.shape_cast %546 : vector<8x128xbf16> to vector<8x1x128xbf16>
    tpu.vector_store %arg8[%c0_502, %c13_503, %c0_504], %549 {strides = array<i32>} : memref<8x16x128xbf16, #tpu.memory_space<vmem>>, vector<8x1x128xbf16>,
    %c0_505 = arith.constant 0 : index
    %c0_506 = arith.constant 0 : index
    %c0_507 = arith.constant 0 : index
    %550 = vector.load %arg10[%c0_505, %c0_506, %c0_507] : memref<2x8x128xf32, #tpu.memory_space<vmem>>, vector<1x8x128xf32>
    %551 = vector.shape_cast %550 : vector<1x8x128xf32> to vector<8x128xf32>
    %552 = arith.truncf %551 : vector<8x128xf32> to vector<8x128xbf16>
    %c0_508 = arith.constant 0 : index
    %c14 = arith.constant 14 : index
    %c0_509 = arith.constant 0 : index
    %553 = vector.load %arg11[%c0_508, %c14, %c0_509] : memref<8x16x128xf32, #tpu.memory_space<vmem>>, vector<8x1x128xf32>
    %554 = vector.shape_cast %553 : vector<8x1x128xf32> to vector<8x128xf32>
    %c0_510 = arith.constant 0 : index
    %c0_511 = arith.constant 0 : index
    %c0_512 = arith.constant 0 : index
    %555 = vector.load %arg6[%c0_510, %c0_511, %c0_512] : memref<2x128x128xbf16, #tpu.memory_space<vmem>>, vector<1x128x128xbf16>
    %556 = vector.shape_cast %555 : vector<1x128x128xbf16> to vector<128x128xbf16>
    %cst_513 = arith.constant dense<0.000000e+00> : vector<8x128xf32>
    %557 = tpu.matmul %552, %556, %cst_513 {dimension_numbers = #tpu.dot_dimension_numbers<[1], [0], [0], [1], [0, 0, 1, 1], [], []>} : vector<8x128xbf16>, vector<128x128xbf16>, vector<8x128xf32> -> vector<8x128xf32>
    %558 = arith.addf %554, %557 : vector<8x128xf32>
    %559 = math.tanh %558 : vector<8x128xf32>
    %c0_514 = arith.constant 0 : index
    %c0_515 = arith.constant 0 : index
    %c0_516 = arith.constant 0 : index
    %560 = vector.load %arg10[%c0_514, %c0_515, %c0_516] : memref<2x8x128xf32, #tpu.memory_space<vmem>>, vector<1x8x128xf32>
    %561 = vector.shape_cast %560 : vector<1x8x128xf32> to vector<8x128xf32>
    %562 = vector.shape_cast %559 : vector<8x128xf32> to vector<1x8x128xf32>
    tpu.vector_store %arg10[%c0_514, %c0_515, %c0_516], %562 {strides = array<i32>} : memref<2x8x128xf32, #tpu.memory_space<vmem>>, vector<1x8x128xf32>,
    %c1_517 = arith.constant 1 : index
    %c0_518 = arith.constant 0 : index
    %c0_519 = arith.constant 0 : index
    %563 = vector.load %arg10[%c1_517, %c0_518, %c0_519] : memref<2x8x128xf32, #tpu.memory_space<vmem>>, vector<1x8x128xf32>
    %564 = vector.shape_cast %563 : vector<1x8x128xf32> to vector<8x128xf32>
    %565 = arith.truncf %564 : vector<8x128xf32> to vector<8x128xbf16>
    %c0_520 = arith.constant 0 : index
    %c0_521 = arith.constant 0 : index
    %c0_522 = arith.constant 0 : index
    %566 = vector.load %arg10[%c0_520, %c0_521, %c0_522] : memref<2x8x128xf32, #tpu.memory_space<vmem>>, vector<1x8x128xf32>
    %567 = vector.shape_cast %566 : vector<1x8x128xf32> to vector<8x128xf32>
    %568 = arith.truncf %567 : vector<8x128xf32> to vector<8x128xbf16>
    %c0_523 = arith.constant 0 : index
    %c0_524 = arith.constant 0 : index
    %c0_525 = arith.constant 0 : index
    %569 = vector.load %arg5[%c0_523, %c0_524, %c0_525] : memref<1x128x128xbf16, #tpu.memory_space<vmem>>, vector<1x128x128xbf16>
    %570 = vector.shape_cast %569 : vector<1x128x128xbf16> to vector<128x128xbf16>
    %cst_526 = arith.constant dense<0.000000e+00> : vector<8x128xf32>
    %571 = tpu.matmul %568, %570, %cst_526 {dimension_numbers = #tpu.dot_dimension_numbers<[1], [0], [0], [1], [0, 0, 1, 1], [], []>} : vector<8x128xbf16>, vector<128x128xbf16>, vector<8x128xf32> -> vector<8x128xf32>
    %c0_527 = arith.constant 0 : index
    %c0_528 = arith.constant 0 : index
    %c0_529 = arith.constant 0 : index
    %572 = vector.load %arg7[%c0_527, %c0_528, %c0_529] : memref<1x1x128xf32, #tpu.memory_space<vmem>>, vector<1x1x128xf32>
    %573 = vector.shape_cast %572 : vector<1x1x128xf32> to vector<1x128xf32>
    %574 = vector.broadcast %573 : vector<1x128xf32> to vector<8x128xf32>
    %575 = arith.addf %571, %574 : vector<8x128xf32>
    %c1_530 = arith.constant 1 : index
    %c0_531 = arith.constant 0 : index
    %c0_532 = arith.constant 0 : index
    %576 = vector.load %arg6[%c1_530, %c0_531, %c0_532] : memref<2x128x128xbf16, #tpu.memory_space<vmem>>, vector<1x128x128xbf16>
    %577 = vector.shape_cast %576 : vector<1x128x128xbf16> to vector<128x128xbf16>
    %cst_533 = arith.constant dense<0.000000e+00> : vector<8x128xf32>
    %578 = tpu.matmul %565, %577, %cst_533 {dimension_numbers = #tpu.dot_dimension_numbers<[1], [0], [0], [1], [0, 0, 1, 1], [], []>} : vector<8x128xbf16>, vector<128x128xbf16>, vector<8x128xf32> -> vector<8x128xf32>
    %579 = arith.addf %575, %578 : vector<8x128xf32>
    %580 = math.tanh %579 : vector<8x128xf32>
    %c1_534 = arith.constant 1 : index
    %c0_535 = arith.constant 0 : index
    %c0_536 = arith.constant 0 : index
    %581 = vector.load %arg10[%c1_534, %c0_535, %c0_536] : memref<2x8x128xf32, #tpu.memory_space<vmem>>, vector<1x8x128xf32>
    %582 = vector.shape_cast %581 : vector<1x8x128xf32> to vector<8x128xf32>
    %583 = vector.shape_cast %580 : vector<8x128xf32> to vector<1x8x128xf32>
    tpu.vector_store %arg10[%c1_534, %c0_535, %c0_536], %583 {strides = array<i32>} : memref<2x8x128xf32, #tpu.memory_space<vmem>>, vector<1x8x128xf32>,
    %584 = arith.truncf %580 : vector<8x128xf32> to vector<8x128xbf16>
    %c0_537 = arith.constant 0 : index
    %c14_538 = arith.constant 14 : index
    %c0_539 = arith.constant 0 : index
    %585 = vector.load %arg8[%c0_537, %c14_538, %c0_539] : memref<8x16x128xbf16, #tpu.memory_space<vmem>>, vector<8x1x128xbf16>
    %586 = vector.shape_cast %585 : vector<8x1x128xbf16> to vector<8x128xbf16>
    %587 = vector.shape_cast %584 : vector<8x128xbf16> to vector<8x1x128xbf16>
    tpu.vector_store %arg8[%c0_537, %c14_538, %c0_539], %587 {strides = array<i32>} : memref<8x16x128xbf16, #tpu.memory_space<vmem>>, vector<8x1x128xbf16>,
    %c0_540 = arith.constant 0 : index
    %c0_541 = arith.constant 0 : index
    %c0_542 = arith.constant 0 : index
    %588 = vector.load %arg10[%c0_540, %c0_541, %c0_542] : memref<2x8x128xf32, #tpu.memory_space<vmem>>, vector<1x8x128xf32>
    %589 = vector.shape_cast %588 : vector<1x8x128xf32> to vector<8x128xf32>
    %590 = arith.truncf %589 : vector<8x128xf32> to vector<8x128xbf16>
    %c0_543 = arith.constant 0 : index
    %c15 = arith.constant 15 : index
    %c0_544 = arith.constant 0 : index
    %591 = vector.load %arg11[%c0_543, %c15, %c0_544] : memref<8x16x128xf32, #tpu.memory_space<vmem>>, vector<8x1x128xf32>
    %592 = vector.shape_cast %591 : vector<8x1x128xf32> to vector<8x128xf32>
    %c0_545 = arith.constant 0 : index
    %c0_546 = arith.constant 0 : index
    %c0_547 = arith.constant 0 : index
    %593 = vector.load %arg6[%c0_545, %c0_546, %c0_547] : memref<2x128x128xbf16, #tpu.memory_space<vmem>>, vector<1x128x128xbf16>
    %594 = vector.shape_cast %593 : vector<1x128x128xbf16> to vector<128x128xbf16>
    %cst_548 = arith.constant dense<0.000000e+00> : vector<8x128xf32>
    %595 = tpu.matmul %590, %594, %cst_548 {dimension_numbers = #tpu.dot_dimension_numbers<[1], [0], [0], [1], [0, 0, 1, 1], [], []>} : vector<8x128xbf16>, vector<128x128xbf16>, vector<8x128xf32> -> vector<8x128xf32>
    %596 = arith.addf %592, %595 : vector<8x128xf32>
    %597 = math.tanh %596 : vector<8x128xf32>
    %c0_549 = arith.constant 0 : index
    %c0_550 = arith.constant 0 : index
    %c0_551 = arith.constant 0 : index
    %598 = vector.load %arg10[%c0_549, %c0_550, %c0_551] : memref<2x8x128xf32, #tpu.memory_space<vmem>>, vector<1x8x128xf32>
    %599 = vector.shape_cast %598 : vector<1x8x128xf32> to vector<8x128xf32>
    %600 = vector.shape_cast %597 : vector<8x128xf32> to vector<1x8x128xf32>
    tpu.vector_store %arg10[%c0_549, %c0_550, %c0_551], %600 {strides = array<i32>} : memref<2x8x128xf32, #tpu.memory_space<vmem>>, vector<1x8x128xf32>,
    %c1_552 = arith.constant 1 : index
    %c0_553 = arith.constant 0 : index
    %c0_554 = arith.constant 0 : index
    %601 = vector.load %arg10[%c1_552, %c0_553, %c0_554] : memref<2x8x128xf32, #tpu.memory_space<vmem>>, vector<1x8x128xf32>
    %602 = vector.shape_cast %601 : vector<1x8x128xf32> to vector<8x128xf32>
    %603 = arith.truncf %602 : vector<8x128xf32> to vector<8x128xbf16>
    %c0_555 = arith.constant 0 : index
    %c0_556 = arith.constant 0 : index
    %c0_557 = arith.constant 0 : index
    %604 = vector.load %arg10[%c0_555, %c0_556, %c0_557] : memref<2x8x128xf32, #tpu.memory_space<vmem>>, vector<1x8x128xf32>
    %605 = vector.shape_cast %604 : vector<1x8x128xf32> to vector<8x128xf32>
    %606 = arith.truncf %605 : vector<8x128xf32> to vector<8x128xbf16>
    %c0_558 = arith.constant 0 : index
    %c0_559 = arith.constant 0 : index
    %c0_560 = arith.constant 0 : index
    %607 = vector.load %arg5[%c0_558, %c0_559, %c0_560] : memref<1x128x128xbf16, #tpu.memory_space<vmem>>, vector<1x128x128xbf16>
    %608 = vector.shape_cast %607 : vector<1x128x128xbf16> to vector<128x128xbf16>
    %cst_561 = arith.constant dense<0.000000e+00> : vector<8x128xf32>
    %609 = tpu.matmul %606, %608, %cst_561 {dimension_numbers = #tpu.dot_dimension_numbers<[1], [0], [0], [1], [0, 0, 1, 1], [], []>} : vector<8x128xbf16>, vector<128x128xbf16>, vector<8x128xf32> -> vector<8x128xf32>
    %c0_562 = arith.constant 0 : index
    %c0_563 = arith.constant 0 : index
    %c0_564 = arith.constant 0 : index
    %610 = vector.load %arg7[%c0_562, %c0_563, %c0_564] : memref<1x1x128xf32, #tpu.memory_space<vmem>>, vector<1x1x128xf32>
    %611 = vector.shape_cast %610 : vector<1x1x128xf32> to vector<1x128xf32>
    %612 = vector.broadcast %611 : vector<1x128xf32> to vector<8x128xf32>
    %613 = arith.addf %609, %612 : vector<8x128xf32>
    %c1_565 = arith.constant 1 : index
    %c0_566 = arith.constant 0 : index
    %c0_567 = arith.constant 0 : index
    %614 = vector.load %arg6[%c1_565, %c0_566, %c0_567] : memref<2x128x128xbf16, #tpu.memory_space<vmem>>, vector<1x128x128xbf16>
    %615 = vector.shape_cast %614 : vector<1x128x128xbf16> to vector<128x128xbf16>
    %cst_568 = arith.constant dense<0.000000e+00> : vector<8x128xf32>
    %616 = tpu.matmul %603, %615, %cst_568 {dimension_numbers = #tpu.dot_dimension_numbers<[1], [0], [0], [1], [0, 0, 1, 1], [], []>} : vector<8x128xbf16>, vector<128x128xbf16>, vector<8x128xf32> -> vector<8x128xf32>
    %617 = arith.addf %613, %616 : vector<8x128xf32>
    %618 = math.tanh %617 : vector<8x128xf32>
    %c1_569 = arith.constant 1 : index
    %c0_570 = arith.constant 0 : index
    %c0_571 = arith.constant 0 : index
    %619 = vector.load %arg10[%c1_569, %c0_570, %c0_571] : memref<2x8x128xf32, #tpu.memory_space<vmem>>, vector<1x8x128xf32>
    %620 = vector.shape_cast %619 : vector<1x8x128xf32> to vector<8x128xf32>
    %621 = vector.shape_cast %618 : vector<8x128xf32> to vector<1x8x128xf32>
    tpu.vector_store %arg10[%c1_569, %c0_570, %c0_571], %621 {strides = array<i32>} : memref<2x8x128xf32, #tpu.memory_space<vmem>>, vector<1x8x128xf32>,
    %622 = arith.truncf %618 : vector<8x128xf32> to vector<8x128xbf16>
    %c0_572 = arith.constant 0 : index
    %c15_573 = arith.constant 15 : index
    %c0_574 = arith.constant 0 : index
    %623 = vector.load %arg8[%c0_572, %c15_573, %c0_574] : memref<8x16x128xbf16, #tpu.memory_space<vmem>>, vector<8x1x128xbf16>
    %624 = vector.shape_cast %623 : vector<8x1x128xbf16> to vector<8x128xbf16>
    %625 = vector.shape_cast %622 : vector<8x128xbf16> to vector<8x1x128xbf16>
    tpu.vector_store %arg8[%c0_572, %c15_573, %c0_574], %625 {strides = array<i32>} : memref<8x16x128xbf16, #tpu.memory_space<vmem>>, vector<8x1x128xbf16>,
    return
  }
  func.func @transform_0(%arg0: i32) -> (i32, i32, i32) {
    %c0_i32 = arith.constant 0 : i32
    %c0_i32_0 = arith.constant 0 : i32
    %c0_i32_1 = arith.constant 0 : i32
    return %c0_i32, %arg0, %c0_i32_0 : i32, i32, i32
  }
  func.func @transform_1(%arg0: i32) -> (i32, i32, i32) {
    %c0_i32 = arith.constant 0 : i32
    %c0_i32_0 = arith.constant 0 : i32
    %c0_i32_1 = arith.constant 0 : i32
    %c0_i32_2 = arith.constant 0 : i32
    return %c0_i32, %c0_i32_0, %c0_i32_1 : i32, i32, i32
  }
  func.func @transform_2(%arg0: i32) -> (i32, i32) {
    %c0_i32 = arith.constant 0 : i32
    %c0_i32_0 = arith.constant 0 : i32
    %c0_i32_1 = arith.constant 0 : i32
    return %c0_i32, %c0_i32_0 : i32, i32
  }
  func.func @transform_3(%arg0: i32) -> (i32, i32) {
    %c0_i32 = arith.constant 0 : i32
    %c0_i32_0 = arith.constant 0 : i32
    %c0_i32_1 = arith.constant 0 : i32
    return %c0_i32, %c0_i32_0 : i32, i32
  }
  func.func @transform_4(%arg0: i32) -> (i32, i32, i32) {
    %c0_i32 = arith.constant 0 : i32
    %c0_i32_0 = arith.constant 0 : i32
    %c0_i32_1 = arith.constant 0 : i32
    %c0_i32_2 = arith.constant 0 : i32
    return %c0_i32, %c0_i32_0, %c0_i32_1 : i32, i32, i32
  }
  func.func @transform_5(%arg0: i32) -> (i32, i32, i32) {
    %c0_i32 = arith.constant 0 : i32
    %c0_i32_0 = arith.constant 0 : i32
    %c0_i32_1 = arith.constant 0 : i32
    %c0_i32_2 = arith.constant 0 : i32
    return %c0_i32, %c0_i32_0, %c0_i32_1 : i32, i32, i32
  }
  func.func @transform_6(%arg0: i32) -> (i32, i32, i32) {
    %c0_i32 = arith.constant 0 : i32
    %c0_i32_0 = arith.constant 0 : i32
    %c0_i32_1 = arith.constant 0 : i32
    %c0_i32_2 = arith.constant 0 : i32
    return %c0_i32, %c0_i32_0, %c0_i32_1 : i32, i32, i32
  }
  func.func @transform_7(%arg0: i32) -> (i32, i32, i32) {
    %c0_i32 = arith.constant 0 : i32
    %c0_i32_0 = arith.constant 0 : i32
    %c0_i32_1 = arith.constant 0 : i32
    return %c0_i32, %arg0, %c0_i32_0 : i32, i32, i32
  }
  func.func @transform_8(%arg0: i32) -> (i32, i32, i32) {
    %c0_i32 = arith.constant 0 : i32
    %c0_i32_0 = arith.constant 0 : i32
    %c0_i32_1 = arith.constant 0 : i32
    %c0_i32_2 = arith.constant 0 : i32
    return %c0_i32, %c0_i32_0, %c0_i32_1 : i32, i32, i32
  }
}

</mosaic_0001>

<bundles_post_ra>
// kernel: forward.5
= control target key start
LH: loop header
LB: loop body
LE: loop exit
PB: predicated region body
PF: predicated region fallthrough
CT: control target
= control target key end

     0   :  { %7 = vsyncpa [#allocation3], 0  ;;  %s348_s0 = inlined_call_operand.hbm [shape: f32[8,16,128], index: 0, kind: input, shape index: {}, may-alias: {0,2}]   ;;  %s349_s1 = inlined_call_operand.hbm [shape: f32[8,16,1], index: 1, kind: input, shape index: {}]   ;;  %s350_s2 = inlined_call_operand.hbm [shape: f32[8,16,128], index: 2, kind: output, shape index: {}, may-alias: {0,2}]  }
   0x1   :  { %8 = vsyncpa [#allocation6], 0 }
   0x2   :  { %9 = vsyncpa [#allocation4], 0  ;;  %s282_s9 = smov [#allocation2]   ;;  %s210_s13 = scalar_lea.hbm %s348_s0, 2048 }
   0x3   :  { %s15_s10 = sshll.u32 %s282_s9, 4  ;;  %p211_p0 = scmp.ne.s32.totalorder %s348_s0, %s210_s13  ;;  %s16_s10 = int_to_ptr.vmem [resolvable:$true] %s15_s10 }
   0x4   :  { %p214_p1 = scmp.lt.u32.totalorder %s210_s13, %s348_s0 }
   0x6   :  { %p216_p2 = pnand %p214_p1, %p211_p0 }
   0x8   :  { %219 = shalt.err (!%p216_p2)
}
   0x9   :  { %s220_s18 = scalar_lea.vmem %s16_s10, 2048  ;;  %p225_p4 = scmp.lt.s32.totalorder %s16_s10, %s16_s10 }
   0xa   :  { %p221_p3 = scmp.ne.s32.totalorder %s16_s10, %s220_s18  ;;  %p226_p5 = scmp.lt.s32.totalorder %s220_s18, %s220_s18 }
   0xc   :  { %p227_p6 = por %p226_p5, %p225_p4 }
   0xe   :  { %p228_p7 = pnand %p227_p6, %p221_p3 }
  0x10   :  { %231 = shalt.err (!%p228_p7)
}
  0x11   :  { %s283_s19 = smov 128   ;;  %s284_s20 = smov 8  }
  0x12   :  { %21 = dma.hbm_to_vmem [thread:$0]  %s348_s0, 2048, %s16_s10, [#allocation3], %s283_s19, %s283_s19, %s284_s20  }
  0x13   :  { %s285_s23 = smov [#allocation5]   ;;  %s232_s27 = scalar_lea.hbm %s349_s1, 2048 }
  0x14   :  { %s27_s24 = sshll.u32 %s285_s23, 4  ;;  %p233_p8 = scmp.ne.s32.totalorder %s349_s1, %s232_s27  ;;  %s28_s24 = int_to_ptr.vmem [resolvable:$true] %s27_s24 }
  0x15   :  { %p236_p9 = scmp.lt.u32.totalorder %s232_s27, %s349_s1 }
  0x17   :  { %p238_p10 = pnand %p236_p9, %p233_p8 }
  0x19   :  { %241 = shalt.err (!%p238_p10)
}
  0x1a   :  { %s242_s4 = scalar_lea.vmem %s28_s24, 2048  ;;  %p247_p12 = scmp.lt.s32.totalorder %s28_s24, %s28_s24 }
  0x1b   :  { %p243_p11 = scmp.ne.s32.totalorder %s28_s24, %s242_s4  ;;  %p248_p13 = scmp.lt.s32.totalorder %s242_s4, %s242_s4 }
  0x1d   :  { %p249_p0 = por %p248_p13, %p247_p12 }
  0x1f   :  { %p250_p1 = pnand %p249_p0, %p243_p11 }
  0x21   :  { %253 = shalt.err (!%p250_p1)
}
  0x22   :  { %33 = dma.hbm_to_vmem [thread:$0]  %s349_s1, 2048, %s28_s24, [#allocation6], %s283_s19, %s283_s19, %s284_s20  }
  0x23   :  { %276 = dma.done.wait [#allocation3], 2048  }
  0x24   :  { %277 = vsyncadd [#allocation3], 4294965248 }
  0x25   :  { %278 = dma.done.wait [#allocation6], 2048  }
  0x26   :  { %279 = vsyncadd [#allocation6], 4294965248  ;;  %v286_v0 = vmov 0   ;;  %v58_v1 = vld [vmem:[#allocation5 + $0x10] sm:$0xff]  ;;  %v56_v2 = vld [vmem:[#allocation5] sm:$0xff]  ;;  %s287_s1 = smov [#allocation7]  }
  0x27   :  { %209 = vset.pattern.permute.xlu1 %v286_v0  ;;  %208 = vset.pattern.permute.xlu0 %v286_v0  ;;  %v59_v3 = vld [vmem:[#allocation5 + $0x18] sm:$0xff]  ;;  %v57_v4 = vld [vmem:[#allocation5 + $0x8] sm:$0xff]  ;;  %v60_v6 = vld [vmem:[#allocation5 + $0x20] sm:$0xff]  ;;  %s189_s6 = sshll.u32 %s287_s1, 4  ;;  %s190_s6 = int_to_ptr.vmem [resolvable:$true] %s189_s6 }
  0x28   :  { %84 = vperm.xlu1 %209, %v58_v1   ;;  %74 = vperm.xlu0 %208, %v56_v2   ;;  %v61_v5 = vld [vmem:[#allocation5 + $0x28] sm:$0xff]  ;;  %v63_v7 = vld [vmem:[#allocation5 + $0x38] sm:$0xff]  ;;  %v62_v8 = vld [vmem:[#allocation5 + $0x30] sm:$0xff]  ;;  %s254_s7 = scalar_lea.vmem %s190_s6, 2048  ;;  %p259_p3 = scmp.lt.s32.totalorder %s190_s6, %s190_s6 }
  0x29   :  { %v65_v9 = vld [vmem:[#allocation5 + $0x48] sm:$0xff]  ;;  %v64_v10 = vld [vmem:[#allocation5 + $0x40] sm:$0xff]  ;;  %v67_v11 = vld [vmem:[#allocation5 + $0x58] sm:$0xff]  ;;  %p255_p2 = scmp.ne.s32.totalorder %s190_s6, %s254_s7  ;;  %p260_p4 = scmp.lt.s32.totalorder %s254_s7, %s254_s7 }
  0x2a   :  { %v66_v12 = vld [vmem:[#allocation5 + $0x50] sm:$0xff]  ;;  %v69_v13 = vld [vmem:[#allocation5 + $0x68] sm:$0xff]  ;;  %v68_v14 = vld [vmem:[#allocation5 + $0x60] sm:$0xff] }
  0x2b   :  { %v71_v15 = vld [vmem:[#allocation5 + $0x78] sm:$0xff]  ;;  %v70_v16 = vld [vmem:[#allocation5 + $0x70] sm:$0xff]  ;;  %v40_v18 = vld [vmem:[#allocation2] sm:$0xff]  ;;  %p261_p5 = por %p260_p4, %p259_p3 }
  0x2c   :  { %89 = vperm.xlu1 %209, %v59_v3   ;;  %79 = vperm.xlu0 %208, %v57_v4   ;;  %v42_v17 = vld [vmem:[#allocation2 + $0x10] sm:$0xff]  ;;  %v43_v23 = vld [vmem:[#allocation2 + $0x18] sm:$0xff]  ;;  %v41_v24 = vld [vmem:[#allocation2 + $0x8] sm:$0xff] }
  0x2d   :  { %v45_v29 = vld [vmem:[#allocation2 + $0x28] sm:$0xff]  ;;  %v44_v30 = vld [vmem:[#allocation2 + $0x20] sm:$0xff]  ;;  %v47_v35 = vld [vmem:[#allocation2 + $0x38] sm:$0xff]  ;;  %p262_p6 = pnand %p261_p5, %p255_p2 }
  0x2e   :  { %v46_v36 = vld [vmem:[#allocation2 + $0x30] sm:$0xff]  ;;  %v49_v41 = vld [vmem:[#allocation2 + $0x48] sm:$0xff]  ;;  %v48_v42 = vld [vmem:[#allocation2 + $0x40] sm:$0xff] }
  0x2f   :  { %v51_v47 = vld [vmem:[#allocation2 + $0x58] sm:$0xff]  ;;  %v50_v48 = vld [vmem:[#allocation2 + $0x50] sm:$0xff]  ;;  %v53_v53 = vld [vmem:[#allocation2 + $0x68] sm:$0xff] }
  0x30   :  { %99 = vperm.xlu1 %209, %v61_v5   ;;  %94 = vperm.xlu0 %208, %v60_v6   ;;  %v52_v54 = vld [vmem:[#allocation2 + $0x60] sm:$0xff]  ;;  %v55_v59 = vld [vmem:[#allocation2 + $0x78] sm:$0xff]  ;;  %v54_v60 = vld [vmem:[#allocation2 + $0x70] sm:$0xff] }
  0x34   :  { %109 = vperm.xlu1 %209, %v63_v7   ;;  %104 = vperm.xlu0 %208, %v62_v8  }
  0x38   :  { %119 = vperm.xlu1 %209, %v65_v9   ;;  %114 = vperm.xlu0 %208, %v64_v10  }
  0x3c   :  { %129 = vperm.xlu1 %209, %v67_v11   ;;  %124 = vperm.xlu0 %208, %v66_v12  }
  0x40   :  { %139 = vperm.xlu1 %209, %v69_v13   ;;  %134 = vperm.xlu0 %208, %v68_v14  }
  0x44   :  { %149 = vperm.xlu1 %209, %v71_v15   ;;  %144 = vperm.xlu0 %208, %v70_v16  }
  0xa7   :  { %v85_v19 = vpop.permute.xlu1 %84  ;;  %v75_v20 = vpop.permute.xlu0 %74 }
  0xa8   :  { %v154_v21 = vsub.f32 %v42_v17, %v85_v19  ;;  %v152_v22 = vsub.f32 %v40_v18, %v75_v20 }
  0xaa   :  { %170 = vst [vmem:[#allocation7 + $0x10] sm:$0xff] %v154_v21  ;;  %168 = vst [vmem:[#allocation7] sm:$0xff] %v152_v22 }
  0xab   :  { %v90_v25 = vpop.permute.xlu1 %89  ;;  %v80_v26 = vpop.permute.xlu0 %79 }
  0xac   :  { %v155_v27 = vsub.f32 %v43_v23, %v90_v25  ;;  %v153_v28 = vsub.f32 %v41_v24, %v80_v26 }
  0xae   :  { %171 = vst [vmem:[#allocation7 + $0x18] sm:$0xff] %v155_v27  ;;  %169 = vst [vmem:[#allocation7 + $0x8] sm:$0xff] %v153_v28 }
  0xaf   :  { %v100_v31 = vpop.permute.xlu1 %99  ;;  %v95_v32 = vpop.permute.xlu0 %94 }
  0xb0   :  { %v157_v33 = vsub.f32 %v45_v29, %v100_v31  ;;  %v156_v34 = vsub.f32 %v44_v30, %v95_v32 }
  0xb2   :  { %173 = vst [vmem:[#allocation7 + $0x28] sm:$0xff] %v157_v33  ;;  %172 = vst [vmem:[#allocation7 + $0x20] sm:$0xff] %v156_v34 }
  0xb3   :  { %v110_v37 = vpop.permute.xlu1 %109  ;;  %v105_v38 = vpop.permute.xlu0 %104 }
  0xb4   :  { %v159_v39 = vsub.f32 %v47_v35, %v110_v37  ;;  %v158_v40 = vsub.f32 %v46_v36, %v105_v38 }
  0xb6   :  { %175 = vst [vmem:[#allocation7 + $0x38] sm:$0xff] %v159_v39  ;;  %174 = vst [vmem:[#allocation7 + $0x30] sm:$0xff] %v158_v40 }
  0xb7   :  { %v120_v43 = vpop.permute.xlu1 %119  ;;  %v115_v44 = vpop.permute.xlu0 %114 }
  0xb8   :  { %v161_v45 = vsub.f32 %v49_v41, %v120_v43  ;;  %v160_v46 = vsub.f32 %v48_v42, %v115_v44 }
  0xba   :  { %177 = vst [vmem:[#allocation7 + $0x48] sm:$0xff] %v161_v45  ;;  %176 = vst [vmem:[#allocation7 + $0x40] sm:$0xff] %v160_v46 }
  0xbb   :  { %v130_v49 = vpop.permute.xlu1 %129  ;;  %v125_v50 = vpop.permute.xlu0 %124 }
  0xbc   :  { %v163_v51 = vsub.f32 %v51_v47, %v130_v49  ;;  %v162_v52 = vsub.f32 %v50_v48, %v125_v50 }
  0xbe   :  { %179 = vst [vmem:[#allocation7 + $0x58] sm:$0xff] %v163_v51  ;;  %178 = vst [vmem:[#allocation7 + $0x50] sm:$0xff] %v162_v52 }
  0xbf   :  { %v140_v55 = vpop.permute.xlu1 %139  ;;  %v135_v56 = vpop.permute.xlu0 %134 }
  0xc0   :  { %v165_v57 = vsub.f32 %v53_v53, %v140_v55  ;;  %v164_v58 = vsub.f32 %v52_v54, %v135_v56 }
  0xc2   :  { %181 = vst [vmem:[#allocation7 + $0x68] sm:$0xff] %v165_v57  ;;  %180 = vst [vmem:[#allocation7 + $0x60] sm:$0xff] %v164_v58 }
  0xc3   :  { %v150_v61 = vpop.permute.xlu1 %149  ;;  %v145_v62 = vpop.permute.xlu0 %144 }
  0xc4   :  { %v167_v63 = vsub.f32 %v55_v59, %v150_v61  ;;  %v166_v0 = vsub.f32 %v54_v60, %v145_v62 }
  0xc6   :  { %183 = vst [vmem:[#allocation7 + $0x78] sm:$0xff] %v167_v63  ;;  %182 = vst [vmem:[#allocation7 + $0x70] sm:$0xff] %v166_v0 }
  0xc7   :  { %265 = shalt.err (!%p262_p6)
}
  0xc8   :  { %s266_s10 = scalar_lea.hbm %s350_s2, 2048 }
  0xc9   :  { %p267_p7 = scmp.ne.s32.totalorder %s350_s2, %s266_s10  ;;  %p270_p8 = scmp.lt.u32.totalorder %s266_s10, %s350_s2 }
  0xcb   :  { %p272_p9 = pnand %p270_p8, %p267_p7 }
  0xcd   :  { %275 = shalt.err (!%p272_p9)
}
  0xce   :  { %195 = dma.vmem_to_hbm [thread:$0]  %s190_s6, 2048, %s350_s2, [#allocation4], %s283_s19, %s283_s19, %s284_s20  }
  0xcf   :  { %280 = dma.done.wait [#allocation4], 2048  }
  0xd0   :  { %281 = vsyncadd [#allocation4], 4294965248 }
  0xd1   :  { %199 = vsyncpa [#allocation3], 1 }
  0xd2   :  { %200 = vsyncpa [#allocation6], 1 }
  0xd3   :  { %201 = vsyncpa [#allocation4], 1 }

// kernel: forward.4
= control target key start
LH: loop header
LB: loop body
LE: loop exit
PB: predicated region body
PF: predicated region fallthrough
CT: control target
= control target key end

     0   :  { %10 = vsyncpa [#allocation5], 0  ;;  %s1616_s0 = inlined_call_operand.hbm [shape: bf16[8,16,128], index: 0, kind: input, shape index: {}]   ;;  %s1617_s1 = inlined_call_operand.hbm [shape: bf16[128,128], index: 1, kind: input, shape index: {}]   ;;  %s1618_s2 = inlined_call_operand.hbm [shape: f32[1,128], index: 2, kind: input, shape index: {}]   ;;  %s1619_s3 = inlined_call_operand.hbm [shape: f32[8,16,128], index: 3, kind: output, shape index: {0}]   ;;  %s1620_s4 = inlined_call_operand.hbm [shape: f32[8,16,1], index: 4, kind: output, shape index: {1}]  }
   0x1   :  { %11 = vsyncpa [#allocation8], 0 }
   0x2   :  { %12 = vsyncpa [#allocation6], 0 }
   0x3   :  { %13 = vsyncpa [#allocation12], 0  ;;  %s1154_s15 = smov [#allocation7]   ;;  %s1155_s17 = smov [#allocation4]  }
   0x4   :  { %s31_s16 = sshll.u32 %s1154_s15, 4  ;;  %s19_s18 = sshll.u32 %s1155_s17, 4  ;;  %s32_s16 = int_to_ptr.vmem [resolvable:$true] %s31_s16  ;;  %s1191_s18 = int_to_ptr.vmem [resolvable:$true] %s19_s18 }
   0x5   :  { %s1036_s21 = scalar_lea.hbm %s1617_s1, 1024 }
   0x6   :  { %p1037_p0 = scmp.ne.s32.totalorder %s1617_s1, %s1036_s21  ;;  %p1040_p1 = scmp.lt.u32.totalorder %s1036_s21, %s1617_s1 }
   0x8   :  { %p1042_p2 = pnand %p1040_p1, %p1037_p0 }
   0xa   :  { %1045 = shalt.err (!%p1042_p2)
}
   0xb   :  { %s1046_s26 = scalar_lea.vmem %s32_s16, 1024  ;;  %p1051_p4 = scmp.lt.s32.totalorder %s32_s16, %s32_s16 }
   0xc   :  { %p1047_p3 = scmp.ne.s32.totalorder %s32_s16, %s1046_s26  ;;  %p1052_p5 = scmp.lt.s32.totalorder %s1046_s26, %s1046_s26 }
   0xe   :  { %p1053_p6 = por %p1052_p5, %p1051_p4 }
  0x10   :  { %p1054_p7 = pnand %p1053_p6, %p1047_p3 }
  0x12   :  { %1057 = shalt.err (!%p1054_p7)
}
  0x13   :  { %s1156_s27 = smov 64   ;;  %s1157_s28 = smov 4  }
  0x14   :  { %37 = dma.hbm_to_vmem [thread:$0]  %s1617_s1, 1024, %s32_s16, [#allocation8], %s1156_s27, %s1156_s27, %s1157_s28  }
  0x15   :  { %s1058_s7 = scalar_lea.hbm %s1616_s0, 1024 }
  0x16   :  { %p1059_p8 = scmp.ne.s32.totalorder %s1616_s0, %s1058_s7  ;;  %p1062_p9 = scmp.lt.u32.totalorder %s1058_s7, %s1616_s0 }
  0x18   :  { %p1064_p10 = pnand %p1062_p9, %p1059_p8 }
  0x1a   :  { %1067 = shalt.err (!%p1064_p10)
}
  0x1b   :  { %s1068_s12 = scalar_lea.vmem %s1191_s18, 1024  ;;  %p1073_p12 = scmp.lt.s32.totalorder %s1191_s18, %s1191_s18 }
  0x1c   :  { %p1069_p11 = scmp.ne.s32.totalorder %s1191_s18, %s1068_s12  ;;  %p1074_p13 = scmp.lt.s32.totalorder %s1068_s12, %s1068_s12 }
  0x1e   :  { %p1075_p0 = por %p1074_p13, %p1073_p12 }
  0x20   :  { %p1076_p1 = pnand %p1075_p0, %p1069_p11 }
  0x22   :  { %1079 = shalt.err (!%p1076_p1)
}
  0x23   :  { %25 = dma.hbm_to_vmem [thread:$0]  %s1616_s0, 1024, %s1191_s18, [#allocation5], %s1156_s27, %s1156_s27, %s1157_s28  }
  0x24   :  { %s1158_s14 = smov [#allocation9]   ;;  %s1080_s19 = scalar_lea.hbm %s1618_s2, 16 }
  0x25   :  { %s44_s15 = sshll.u32 %s1158_s14, 4  ;;  %p1081_p2 = scmp.ne.s32.totalorder %s1618_s2, %s1080_s19  ;;  %s45_s15 = int_to_ptr.vmem [resolvable:$true] %s44_s15 }
  0x26   :  { %p1084_p3 = scmp.lt.u32.totalorder %s1080_s19, %s1618_s2 }
  0x28   :  { %p1086_p4 = pnand %p1084_p3, %p1081_p2 }
  0x2a   :  { %1089 = shalt.err (!%p1086_p4)
}
  0x2b   :  { %s1090_s24 = scalar_lea.vmem %s45_s15, 16  ;;  %s1094_s0 = scalar_lea.vmem %s45_s15, 32 }
  0x2c   :  { %p1091_p5 = scmp.ne.s32.totalorder %s45_s15, %s1090_s24  ;;  %p1095_p6 = scmp.lt.s32.totalorder %s45_s15, %s45_s15 }
  0x2d   :  { %p1096_p7 = scmp.lt.s32.totalorder %s1094_s0, %s1090_s24 }
  0x2f   :  { %p1097_p8 = por %p1096_p7, %p1095_p6 }
  0x31   :  { %p1098_p9 = pnand %p1097_p8, %p1091_p5 }
  0x33   :  { %1101 = shalt.err (!%p1098_p9)
}
  0x34   :  { %47 = dma.hbm_to_vmem [thread:$0]  %s1618_s2, 16, %s45_s15, [#allocation8]  }
  0x35   :  { %1146 = dma.done.wait [#allocation5], 1024  }
  0x36   :  { %1147 = vsyncadd [#allocation5], 4294966272 }
  0x37   :  { %1148 = dma.done.wait [#allocation8], 1040  }
  0x38   :  { %1149 = vsyncadd [#allocation8], 4294966256  ;;  %v924_v0 = vld [vmem:[#allocation7] sm:$0xff]   ;;  %v925_v1 = vld [vmem:[#allocation7 + $0x8] sm:$0xff]   ;;  %vm62_vm0 = vcmask 7168   ;;  %v1159_v16 = vmov -inf  }
  0x39   :  { %862 = vmatprep.subr.bf16.mxu0 %v924_v0  ;;  %894 = vmatprep.subr.bf16.mxu1 %v924_v0  ;;  %v926_v2 = vld [vmem:[#allocation7 + $0x10] sm:$0xff]   ;;  %v927_v3 = vld [vmem:[#allocation7 + $0x18] sm:$0xff]   ;;  %v932_v4 = vld [vmem:[#allocation4] sm:$0xff]   ;;  %73 = vst.msk [vmem:[#allocation2 + $0x50] sm:$0xff] %vm62_vm0, %v1159_v16  ;;  %v1160_v50 = vmov 0   ;;  %v1161_v51 = vmov 0.0  }
  0x3a   :  { %863 = vmatpush3.bf16.msra.mxu0 %v924_v0  ;;  %902 = vmatpush3.bf16.msra.mxu1 %v924_v0  ;;  %v933_v5 = vld [vmem:[#allocation4 + $0x20] sm:$0xff]   ;;  %v929_v7 = vld [vmem:[#allocation7 + $0x28] sm:$0xff]   ;;  %v930_v8 = vld [vmem:[#allocation7 + $0x30] sm:$0xff]   ;;  %63 = vst.msk [vmem:[#allocation2] sm:$0xff] %vm62_vm0, %v1159_v16  ;;  %s1162_s2 = smov [#allocation10]  }
  0x3b   :  { %864 = vmatprep.subr.bf16.mxu0 %v925_v1  ;;  %895 = vmatprep.subr.bf16.mxu1 %v925_v1  ;;  %v928_v6 = vld [vmem:[#allocation7 + $0x20] sm:$0xff]   ;;  %v931_v9 = vld [vmem:[#allocation7 + $0x38] sm:$0xff]   ;;  %v934_v10 = vld [vmem:[#allocation4 + $0x8] sm:$0xff]   ;;  %64 = vst.msk [vmem:[#allocation2 + $0x8] sm:$0xff] %vm62_vm0, %v1159_v16  ;;  %s800_s26 = sshll.u32 %s1162_s2, 4  ;;  %s801_s26 = int_to_ptr.vmem [resolvable:$true] %s800_s26 }
  0x3c   :  { %878 = vmatprep.mubr.bf16.mxu0 %v932_v4  ;;  %886 = vmatprep.mubr.bf16.mxu1 %v933_v5  ;;  %v935_v11 = vld [vmem:[#allocation4 + $0x28] sm:$0xff]   ;;  %v936_v12 = vld [vmem:[#allocation4 + $0x10] sm:$0xff]   ;;  %v937_v14 = vld [vmem:[#allocation4 + $0x18] sm:$0xff]   ;;  %65 = vst.msk [vmem:[#allocation2 + $0x10] sm:$0xff] %vm62_vm0, %v1159_v16  ;;  %s1102_s27 = scalar_lea.vmem %s801_s26, 2048  ;;  %p1107_p11 = scmp.lt.s32.totalorder %s801_s26, %s801_s26 }
  0x3d   :  { %v938_v13 = vld [vmem:[#allocation4 + $0x30] sm:$0xff]   ;;  %v939_v15 = vld [vmem:[#allocation4 + $0x38] sm:$0xff]   ;;  %66 = vst.msk [vmem:[#allocation2 + $0x18] sm:$0xff] %vm62_vm0, %v1159_v16  ;;  %67 = vst.msk [vmem:[#allocation2 + $0x20] sm:$0xff] %vm62_vm0, %v1159_v16  ;;  %922 = vset.pattern.permute.xlu1 %v1160_v50  ;;  %923 = vset.pattern.permute.xlu0 %v1160_v50  ;;  %p1103_p10 = scmp.ne.s32.totalorder %s801_s26, %s1102_s27  ;;  %p1108_p12 = scmp.lt.s32.totalorder %s1102_s27, %s1102_s27 }
  0x3e   :  { %865 = vmatpush3.bf16.msra.mxu0 %v925_v1  ;;  %903 = vmatpush3.bf16.msra.mxu1 %v925_v1  ;;  %68 = vst.msk [vmem:[#allocation2 + $0x28] sm:$0xff] %vm62_vm0, %v1159_v16  ;;  %69 = vst.msk [vmem:[#allocation2 + $0x30] sm:$0xff] %vm62_vm0, %v1159_v16  ;;  %v829_v17 = vld [vmem:[#allocation9] ss:$0 sm:$0xff] }
  0x3f   :  { %866 = vmatprep.subr.bf16.mxu0 %v926_v2  ;;  %896 = vmatprep.subr.bf16.mxu1 %v926_v2  ;;  %70 = vst.msk [vmem:[#allocation2 + $0x38] sm:$0xff] %vm62_vm0, %v1159_v16  ;;  %71 = vst.msk [vmem:[#allocation2 + $0x40] sm:$0xff] %vm62_vm0, %v1159_v16  ;;  %p1109_p13 = por %p1108_p12, %p1107_p11 }
  0x40   :  { %72 = vst.msk [vmem:[#allocation2 + $0x48] sm:$0xff] %vm62_vm0, %v1159_v16  ;;  %74 = vst.msk [vmem:[#allocation2 + $0x58] sm:$0xff] %vm62_vm0, %v1159_v16  ;;  %v1330_v52 = vld [vmem:[#allocation2 + $0x50] sm:$0xff] }
  0x41   :  { %75 = vst.msk [vmem:[#allocation2 + $0x60] sm:$0xff] %vm62_vm0, %v1159_v16  ;;  %76 = vst.msk [vmem:[#allocation2 + $0x68] sm:$0xff] %vm62_vm0, %v1159_v16  ;;  %v1342_v59 = vld [vmem:[#allocation2] sm:$0xff]  ;;  %p1110_p0 = pnand %p1109_p13, %p1103_p10 }
  0x42   :  { %867 = vmatpush3.bf16.msra.mxu0 %v926_v2  ;;  %904 = vmatpush3.bf16.msra.mxu1 %v926_v2  ;;  %77 = vst.msk [vmem:[#allocation2 + $0x70] sm:$0xff] %vm62_vm0, %v1159_v16  ;;  %78 = vst.msk [vmem:[#allocation2 + $0x78] sm:$0xff] %vm62_vm0, %v1159_v16 }
  0x43   :  { %868 = vmatprep.subr.bf16.mxu0 %v927_v3  ;;  %897 = vmatprep.subr.bf16.mxu1 %v927_v3  ;;  %81 = vst.msk [vmem:[#allocation3 + $0x10] sm:$0xff] %vm62_vm0, %v1161_v51  ;;  %79 = vst.msk [vmem:[#allocation3] sm:$0xff] %vm62_vm0, %v1161_v51  ;;  %v1332_v53 = vld [vmem:[#allocation2 + $0x10] sm:$0xff] }
  0x44   :  { %80 = vst.msk [vmem:[#allocation3 + $0x8] sm:$0xff] %vm62_vm0, %v1161_v51  ;;  %82 = vst.msk [vmem:[#allocation3 + $0x18] sm:$0xff] %vm62_vm0, %v1161_v51  ;;  %v1340_v58 = vld [vmem:[#allocation2 + $0x18] sm:$0xff] }
  0x45   :  { %83 = vst.msk [vmem:[#allocation3 + $0x20] sm:$0xff] %vm62_vm0, %v1161_v51  ;;  %84 = vst.msk [vmem:[#allocation3 + $0x28] sm:$0xff] %vm62_vm0, %v1161_v51  ;;  %v1438_v50 = vld [vmem:[#allocation2 + $0x28] sm:$0xff] }
  0x46   :  { %869 = vmatpush3.bf16.msra.mxu0 %v927_v3  ;;  %905 = vmatpush3.bf16.msra.mxu1 %v927_v3  ;;  %85 = vst.msk [vmem:[#allocation3 + $0x30] sm:$0xff] %vm62_vm0, %v1161_v51  ;;  %86 = vst.msk [vmem:[#allocation3 + $0x38] sm:$0xff] %vm62_vm0, %v1161_v51  ;;  %v1361_v3 = vld [vmem:[#allocation2 + $0x40] sm:$0xff] }
  0x47   :  { %870 = vmatprep.subr.bf16.mxu0 %v928_v6  ;;  %898 = vmatprep.subr.bf16.mxu1 %v928_v6  ;;  %87 = vst.msk [vmem:[#allocation3 + $0x40] sm:$0xff] %vm62_vm0, %v1161_v51  ;;  %88 = vst.msk [vmem:[#allocation3 + $0x48] sm:$0xff] %vm62_vm0, %v1161_v51  ;;  %v1359_v2 = vld [vmem:[#allocation2 + $0x58] sm:$0xff] }
  0x48   :  { %89 = vst.msk [vmem:[#allocation3 + $0x50] sm:$0xff] %vm62_vm0, %v1161_v51  ;;  %90 = vst.msk [vmem:[#allocation3 + $0x58] sm:$0xff] %vm62_vm0, %v1161_v51 }
  0x49   :  { %91 = vst.msk [vmem:[#allocation3 + $0x60] sm:$0xff] %vm62_vm0, %v1161_v51  ;;  %92 = vst.msk [vmem:[#allocation3 + $0x68] sm:$0xff] %vm62_vm0, %v1161_v51 }
  0x4a   :  { %871 = vmatpush3.bf16.msra.mxu0 %v928_v6  ;;  %906 = vmatpush3.bf16.msra.mxu1 %v928_v6  ;;  %93 = vst.msk [vmem:[#allocation3 + $0x70] sm:$0xff] %vm62_vm0, %v1161_v51  ;;  %94 = vst.msk [vmem:[#allocation3 + $0x78] sm:$0xff] %vm62_vm0, %v1161_v51  ;;  %v1440_v51 = vld [vmem:[#allocation2 + $0x60] sm:$0xff] }
  0x4b   :  { %872 = vmatprep.subr.bf16.mxu0 %v929_v7  ;;  %899 = vmatprep.subr.bf16.mxu1 %v929_v7 }
  0x4e   :  { %873 = vmatpush3.bf16.msra.mxu0 %v929_v7  ;;  %907 = vmatpush3.bf16.msra.mxu1 %v929_v7 }
  0x4f   :  { %874 = vmatprep.subr.bf16.mxu0 %v930_v8  ;;  %900 = vmatprep.subr.bf16.mxu1 %v930_v8 }
  0x52   :  { %875 = vmatpush3.bf16.msra.mxu0 %v930_v8  ;;  %908 = vmatpush3.bf16.msra.mxu1 %v930_v8 }
  0x53   :  { %876 = vmatprep.subr.bf16.mxu0 %v931_v9  ;;  %901 = vmatprep.subr.bf16.mxu1 %v931_v9 }
  0x56   :  { %877 = vmatpush3.bf16.msra.mxu0 %v931_v9  ;;  %909 = vmatpush3.bf16.msra.mxu1 %v931_v9 }
  0x59   :  { %879 = vmatmul.mubr.bf16.vlgmr.msra.gmra.mrb[0].mxu0 %v934_v10  ;;  %887 = vmatmul.mubr.bf16.vlgmr.msra.gmra.mrb[0].mxu1 %v935_v11  ;;  %v1379_v10 = vld [vmem:[#allocation2 + $0x48] sm:$0xff] }
  0x5a   :  { %882 = vmatprep.mubr.bf16.mxu0 %v936_v12  ;;  %890 = vmatprep.mubr.bf16.mxu1 %v938_v13  ;;  %v1381_v11 = vld [vmem:[#allocation2 + $0x8] sm:$0xff] }
  0x61   :  { %883 = vmatmul.mubr.bf16.gmra.mrb[4].mxu0 %v937_v14  ;;  %891 = vmatmul.mubr.bf16.gmra.mrb[4].mxu1 %v939_v15 }
 0x12c   :  { %v880_v18 = vpop.f32.mrb[0].mxu0  ;;  %v888_v19 = vpop.f32.mrb[0].mxu1 }
 0x12d   :  { %v1250_v20 = vadd.f32 %v880_v18, %v829_v17  ;;  %v1252_v21 = vadd.f32 %v888_v19, %v829_v17  ;;  %v264_v22 = vpop.f32.mrb[1].mxu0  ;;  %v296_v23 = vpop.f32.mrb[1].mxu1  ;;  %v1399_v18 = vld [vmem:[#allocation2 + $0x38] sm:$0xff]  ;;  %v1401_v19 = vld [vmem:[#allocation2 + $0x30] sm:$0xff] }
 0x12e   :  { %v1254_v24 = vadd.f32 %v829_v17, %v264_v22  ;;  %v1256_v25 = vadd.f32 %v829_v17, %v296_v23  ;;  %v881_v26 = vpop.f32.mrb[2].mxu0  ;;  %v889_v27 = vpop.f32.mrb[2].mxu1 }
 0x12f   :  { %329 = vst [vmem:[#allocation10 + $0x10] sm:$0xff] %v1250_v20  ;;  %337 = vst [vmem:[#allocation10 + $0x50] sm:$0xff] %v1252_v21  ;;  %v1260_v28 = vadd.f32 %v881_v26, %v829_v17  ;;  %v1262_v29 = vadd.f32 %v889_v27, %v829_v17  ;;  %379 = vmax.xlane.f32.xlu0 %v1252_v21  ;;  %v299_v30 = vpop.f32.mrb[3].mxu1  ;;  %363 = vmax.xlane.f32.xlu1 %v1250_v20  ;;  %v267_v31 = vpop.f32.mrb[3].mxu0 }
 0x130   :  { %327 = vst [vmem:[#allocation10] sm:$0xff] %v1254_v24  ;;  %335 = vst [vmem:[#allocation10 + $0x40] sm:$0xff] %v1256_v25  ;;  %v1268_v32 = vadd.f32 %v829_v17, %v299_v30  ;;  %v1270_v33 = vadd.f32 %v829_v17, %v267_v31 }
 0x131   :  { %330 = vst [vmem:[#allocation10 + $0x18] sm:$0xff] %v1260_v28  ;;  %338 = vst [vmem:[#allocation10 + $0x58] sm:$0xff] %v1262_v29 }
 0x132   :  { %336 = vst [vmem:[#allocation10 + $0x48] sm:$0xff] %v1268_v32  ;;  %328 = vst [vmem:[#allocation10 + $0x8] sm:$0xff] %v1270_v33 }
 0x133   :  { %365 = vmax.xlane.f32.xlu1 %v1260_v28  ;;  %359 = vmax.xlane.f32.xlu0 %v1254_v24 }
 0x134   :  { %v884_v34 = vpop.f32.mrb[4].mxu0  ;;  %v892_v35 = vpop.f32.mrb[4].mxu1 }
 0x135   :  { %v1278_v36 = vadd.f32 %v884_v34, %v829_v17  ;;  %v280_v37 = vpop.f32.mrb[5].mxu0  ;;  %v1280_v38 = vadd.f32 %v892_v35, %v829_v17  ;;  %v312_v39 = vpop.f32.mrb[5].mxu1  ;;  %v1419_v34 = vld [vmem:[#allocation2 + $0x78] sm:$0xff]  ;;  %v1421_v35 = vld [vmem:[#allocation2 + $0x20] sm:$0xff] }
 0x136   :  { %v1282_v40 = vadd.f32 %v829_v17, %v280_v37  ;;  %v885_v41 = vpop.f32.mrb[6].mxu0  ;;  %v1284_v42 = vadd.f32 %v829_v17, %v312_v39  ;;  %v893_v43 = vpop.f32.mrb[6].mxu1 }
 0x137   :  { %381 = vmax.xlane.f32.xlu1 %v1262_v29  ;;  %375 = vmax.xlane.f32.xlu0 %v1256_v25  ;;  %333 = vst [vmem:[#allocation10 + $0x30] sm:$0xff] %v1278_v36  ;;  %v1289_v44 = vadd.f32 %v885_v41, %v829_v17  ;;  %341 = vst [vmem:[#allocation10 + $0x70] sm:$0xff] %v1280_v38  ;;  %v283_v45 = vpop.f32.mrb[7].mxu0  ;;  %v1292_v46 = vadd.f32 %v893_v43, %v829_v17  ;;  %v315_v47 = vpop.f32.mrb[7].mxu1 }
 0x138   :  { %331 = vst [vmem:[#allocation10 + $0x20] sm:$0xff] %v1282_v40  ;;  %339 = vst [vmem:[#allocation10 + $0x60] sm:$0xff] %v1284_v42  ;;  %v1296_v48 = vadd.f32 %v829_v17, %v283_v45  ;;  %v1298_v49 = vadd.f32 %v829_v17, %v315_v47 }
 0x139   :  { %334 = vst [vmem:[#allocation10 + $0x38] sm:$0xff] %v1289_v44  ;;  %342 = vst [vmem:[#allocation10 + $0x78] sm:$0xff] %v1292_v46 }
 0x13a   :  { %332 = vst [vmem:[#allocation10 + $0x28] sm:$0xff] %v1296_v48  ;;  %340 = vst [vmem:[#allocation10 + $0x68] sm:$0xff] %v1298_v49 }
 0x13b   :  { %377 = vmax.xlane.f32.xlu1 %v1268_v32  ;;  %361 = vmax.xlane.f32.xlu0 %v1270_v33 }
 0x13f   :  { %373 = vmax.xlane.f32.xlu1 %v1289_v44  ;;  %371 = vmax.xlane.f32.xlu0 %v1278_v36 }
 0x143   :  { %389 = vmax.xlane.f32.xlu1 %v1292_v46  ;;  %367 = vmax.xlane.f32.xlu0 %v1282_v40 }
 0x147   :  { %369 = vmax.xlane.f32.xlu1 %v1296_v48  ;;  %383 = vmax.xlane.f32.xlu0 %v1284_v42 }
 0x14b   :  { %385 = vmax.xlane.f32.xlu1 %v1298_v49  ;;  %387 = vmax.xlane.f32.xlu0 %v1280_v38 }
 0x1bc   :  { %v380_v54 = vpop.xlane.xlu0 %379  ;;  %v364_v55 = vpop.xlane.xlu1 %363 }
 0x1bd   :  { %v1335_v56 = vmax.f32 %v1330_v52, %v380_v54  ;;  %v1338_v57 = vmax.f32 %v1332_v53, %v364_v55 }
 0x1bf   :  { %v433_v60 = vsub.f32 %v1330_v52, %v1335_v56  ;;  %690 = vst.msk [vmem:[#allocation2 + $0x50] sm:$0xff] %vm62_vm0, %v1335_v56  ;;  %v425_v61 = vsub.f32 %v1332_v53, %v1338_v57  ;;  %682 = vst.msk [vmem:[#allocation2 + $0x10] sm:$0xff] %vm62_vm0, %v1338_v57  ;;  %499 = vperm.xlu1 %922, %v1338_v57  }
 0x1c0   :  { %v366_v62 = vpop.xlane.xlu1 %365  ;;  %v360_v63 = vpop.xlane.xlu0 %359 }
 0x1c1   :  { %v1354_v0 = vmax.f32 %v1340_v58, %v366_v62  ;;  %v1357_v1 = vmax.f32 %v1342_v59, %v360_v63 }
 0x1c3   :  { %683 = vst.msk [vmem:[#allocation2 + $0x18] sm:$0xff] %vm62_vm0, %v1354_v0  ;;  %680 = vst.msk [vmem:[#allocation2] sm:$0xff] %vm62_vm0, %v1357_v1  ;;  %539 = vperm.xlu1 %922, %v1335_v56   ;;  %489 = vperm.xlu0 %923, %v1357_v1  }
 0x1c4   :  { %v382_v6 = vpop.xlane.xlu1 %381  ;;  %v376_v7 = vpop.xlane.xlu0 %375 }
 0x1c5   :  { %v1374_v8 = vmax.f32 %v1359_v2, %v382_v6  ;;  %v1377_v9 = vmax.f32 %v1361_v3, %v376_v7 }
 0x1c7   :  { %691 = vst.msk [vmem:[#allocation2 + $0x58] sm:$0xff] %vm62_vm0, %v1374_v8  ;;  %688 = vst.msk [vmem:[#allocation2 + $0x40] sm:$0xff] %vm62_vm0, %v1377_v9  ;;  %529 = vperm.xlu1 %922, %v1377_v9   ;;  %544 = vperm.xlu0 %923, %v1374_v8  }
 0x1c8   :  { %v378_v14 = vpop.xlane.xlu1 %377  ;;  %v362_v15 = vpop.xlane.xlu0 %361 }
 0x1c9   :  { %v1394_v16 = vmax.f32 %v1379_v10, %v378_v14  ;;  %v1397_v17 = vmax.f32 %v1381_v11, %v362_v15  ;;  %v1457_v14 = vld [vmem:[#allocation2 + $0x68] sm:$0xff]  ;;  %v1459_v15 = vld [vmem:[#allocation2 + $0x70] sm:$0xff] }
 0x1cb   :  { %689 = vst.msk [vmem:[#allocation2 + $0x48] sm:$0xff] %vm62_vm0, %v1394_v16  ;;  %681 = vst.msk [vmem:[#allocation2 + $0x8] sm:$0xff] %vm62_vm0, %v1397_v17  ;;  %504 = vperm.xlu1 %922, %v1354_v0   ;;  %534 = vperm.xlu0 %923, %v1394_v16  }
 0x1cc   :  { %v374_v26 = vpop.xlane.xlu1 %373  ;;  %v372_v27 = vpop.xlane.xlu0 %371 }
 0x1cd   :  { %v1414_v30 = vmax.f32 %v1399_v18, %v374_v26  ;;  %v1417_v31 = vmax.f32 %v1401_v19, %v372_v27 }
 0x1cf   :  { %687 = vst.msk [vmem:[#allocation2 + $0x38] sm:$0xff] %vm62_vm0, %v1414_v30  ;;  %686 = vst.msk [vmem:[#allocation2 + $0x30] sm:$0xff] %vm62_vm0, %v1417_v31  ;;  %494 = vperm.xlu1 %922, %v1397_v17  }
 0x1d0   :  { %v390_v41 = vpop.xlane.xlu1 %389  ;;  %v368_v43 = vpop.xlane.xlu0 %367 }
 0x1d1   :  { %v1433_v45 = vmax.f32 %v1419_v34, %v390_v41  ;;  %v1436_v47 = vmax.f32 %v1421_v35, %v368_v43 }
 0x1d3   :  { %695 = vst.msk [vmem:[#allocation2 + $0x78] sm:$0xff] %vm62_vm0, %v1433_v45  ;;  %684 = vst.msk [vmem:[#allocation2 + $0x20] sm:$0xff] %vm62_vm0, %v1436_v47  ;;  %519 = vperm.xlu1 %922, %v1417_v31  }
 0x1d4   :  { %v370_v62 = vpop.xlane.xlu1 %369  ;;  %v384_v63 = vpop.xlane.xlu0 %383 }
 0x1d5   :  { %v1452_v6 = vmax.f32 %v1438_v50, %v370_v62  ;;  %v1455_v7 = vmax.f32 %v1440_v51, %v384_v63 }
 0x1d7   :  { %685 = vst.msk [vmem:[#allocation2 + $0x28] sm:$0xff] %vm62_vm0, %v1452_v6  ;;  %692 = vst.msk [vmem:[#allocation2 + $0x60] sm:$0xff] %vm62_vm0, %v1455_v7  ;;  %509 = vperm.xlu1 %922, %v1436_v47  }
 0x1d8   :  { %v386_v41 = vpop.xlane.xlu1 %385  ;;  %v388_v43 = vpop.xlane.xlu0 %387 }
 0x1d9   :  { %v1471_v62 = vmax.f32 %v1457_v14, %v386_v41  ;;  %v1474_v63 = vmax.f32 %v1459_v15, %v388_v43 }
 0x1db   :  { %693 = vst.msk [vmem:[#allocation2 + $0x68] sm:$0xff] %vm62_vm0, %v1471_v62  ;;  %694 = vst.msk [vmem:[#allocation2 + $0x70] sm:$0xff] %vm62_vm0, %v1474_v63  ;;  %549 = vperm.xlu1 %922, %v1455_v7   ;;  %554 = vperm.xlu0 %923, %v1471_v62  }
 0x1df   :  { %524 = vperm.xlu1 %922, %v1414_v30   ;;  %564 = vperm.xlu0 %923, %v1433_v45  }
 0x1e3   :  { %514 = vperm.xlu1 %922, %v1452_v6  }
 0x1e7   :  { %559 = vperm.xlu1 %922, %v1474_v63  }
 0x23e   :  { %v500_v41 = vpop.permute.xlu1 %499 }
 0x23f   :  { %v569_v43 = vsub.f32 %v1250_v20, %v500_v41 }
 0x241   :  { %v587_v54 = vmul.f32 1.442695, %v569_v43 }
 0x242   :  { %v540_v26 = vpop.permute.xlu1 %539  ;;  %v490_v37 = vpop.permute.xlu0 %489 }
 0x243   :  { %940 = vpow2.f32 %v587_v54  ;;  %v577_v27 = vsub.f32 %v1252_v21, %v540_v26  ;;  %v567_v55 = vsub.f32 %v1254_v24, %v490_v37 }
 0x245   :  { %v603_v39 = vmul.f32 1.442695, %v577_v27  ;;  %v583_v22 = vmul.f32 1.442695, %v567_v55 }
 0x246   :  { %v530_v23 = vpop.permute.xlu1 %529  ;;  %v545_v12 = vpop.permute.xlu0 %544 }
 0x247   :  { %942 = vpow2.f32 %v603_v39  ;;  %v575_v4 = vsub.f32 %v1256_v25, %v530_v23  ;;  %v578_v5 = vsub.f32 %v1262_v29, %v545_v12 }
 0x248   :  { %944 = vpow2.f32 %v583_v22 }
 0x249   :  { %v599_v13 = vmul.f32 1.442695, %v575_v4  ;;  %v605_v26 = vmul.f32 1.442695, %v578_v5 }
 0x24a   :  { %v505_v20 = vpop.permute.xlu1 %504  ;;  %v535_v54 = vpop.permute.xlu0 %534 }
 0x24b   :  { %946 = vpow2.f32 %v599_v13  ;;  %v570_v41 = vsub.f32 %v1260_v28, %v505_v20  ;;  %v576_v24 = vsub.f32 %v1268_v32, %v535_v54 }
 0x24d   :  { %v941_v43 = vpop.eup %940  ;;  %v589_v21 = vmul.f32 1.442695, %v570_v41  ;;  %v601_v29 = vmul.f32 1.442695, %v576_v24 }
 0x24e   :  { %v495_v37 = vpop.permute.xlu1 %494  ;;  %619 = vadd.xlane.f32.xlu0 %v941_v43 }
 0x24f   :  { %948 = vpow2.f32 %v589_v21  ;;  %v568_v39 = vsub.f32 %v1270_v33, %v495_v37 }
 0x250   :  { %950 = vpow2.f32 %v605_v26 }
 0x251   :  { %v943_v25 = vpop.eup %942  ;;  %v585_v22 = vmul.f32 1.442695, %v568_v39 }
 0x252   :  { %v945_v4 = vpop.eup %944  ;;  %v520_v12 = vpop.permute.xlu1 %519  ;;  %635 = vadd.xlane.f32.xlu0 %v943_v25 }
 0x253   :  { %952 = vpow2.f32 %v585_v22  ;;  %v573_v28 = vsub.f32 %v1278_v36, %v520_v12  ;;  %615 = vadd.xlane.f32.xlu1 %v945_v4 }
 0x254   :  { %954 = vpow2.f32 %v601_v29 }
 0x255   :  { %v947_v13 = vpop.eup %946  ;;  %v595_v5 = vmul.f32 1.442695, %v573_v28 }
 0x256   :  { %v510_v32 = vpop.permute.xlu1 %509  ;;  %631 = vadd.xlane.f32.xlu0 %v947_v13 }
 0x257   :  { %956 = vpow2.f32 %v595_v5  ;;  %v571_v23 = vsub.f32 %v1282_v40, %v510_v32 }
 0x259   :  { %v949_v33 = vpop.eup %948  ;;  %v591_v55 = vmul.f32 1.442695, %v571_v23 }
 0x25a   :  { %v550_v27 = vpop.permute.xlu1 %549  ;;  %621 = vadd.xlane.f32.xlu1 %v949_v33  ;;  %v951_v41 = vpop.eup %950 }
 0x25b   :  { %958 = vpow2.f32 %v591_v55  ;;  %v579_v20 = vsub.f32 %v1284_v42, %v550_v27  ;;  %v555_v36 = vpop.permute.xlu0 %554 }
 0x25c   :  { %v580_v39 = vsub.f32 %v1298_v49, %v555_v36 }
 0x25d   :  { %v953_v54 = vpop.eup %952  ;;  %v607_v43 = vmul.f32 1.442695, %v579_v20 }
 0x25e   :  { %v525_v21 = vpop.permute.xlu1 %524  ;;  %617 = vadd.xlane.f32.xlu0 %v953_v54  ;;  %637 = vadd.xlane.f32.xlu1 %v951_v41  ;;  %v955_v24 = vpop.eup %954  ;;  %v609_v12 = vmul.f32 1.442695, %v580_v39 }
 0x25f   :  { %960 = vpow2.f32 %v607_v43  ;;  %v574_v26 = vsub.f32 %v1289_v44, %v525_v21  ;;  %v565_v22 = vpop.permute.xlu0 %564 }
 0x260   :  { %v582_v13 = vsub.f32 %v1292_v46, %v565_v22 }
 0x261   :  { %v957_v37 = vpop.eup %956  ;;  %v597_v40 = vmul.f32 1.442695, %v574_v26 }
 0x262   :  { %v515_v25 = vpop.permute.xlu1 %514  ;;  %627 = vadd.xlane.f32.xlu0 %v957_v37  ;;  %633 = vadd.xlane.f32.xlu1 %v955_v24  ;;  %v613_v49 = vmul.f32 1.442695, %v582_v13 }
 0x263   :  { %962 = vpow2.f32 %v597_v40  ;;  %v572_v42 = vsub.f32 %v1296_v48, %v515_v25 }
 0x265   :  { %v959_v4 = vpop.eup %958  ;;  %v593_v29 = vmul.f32 1.442695, %v572_v42 }
 0x266   :  { %v560_v28 = vpop.permute.xlu1 %559  ;;  %623 = vadd.xlane.f32.xlu0 %v959_v4 }
 0x267   :  { %964 = vpow2.f32 %v593_v29  ;;  %v581_v44 = vsub.f32 %v1280_v38, %v560_v28 }
 0x268   :  { %966 = vpow2.f32 %v609_v12 }
 0x269   :  { %v961_v5 = vpop.eup %960  ;;  %v611_v32 = vmul.f32 1.442695, %v581_v44 }
 0x26a   :  { %639 = vadd.xlane.f32.xlu0 %v961_v5 }
 0x26b   :  { %968 = vpow2.f32 %v611_v32 }
 0x26c   :  { %970 = vpow2.f32 %v613_v49 }
 0x26d   :  { %v963_v23 = vpop.eup %962 }
 0x26e   :  { %629 = vadd.xlane.f32.xlu1 %v963_v23 }
 0x271   :  { %v965_v48 = vpop.eup %964 }
 0x272   :  { %625 = vadd.xlane.f32.xlu1 %v965_v48  ;;  %v967_v33 = vpop.eup %966 }
 0x275   :  { %v969_v55 = vpop.eup %968 }
 0x276   :  { %643 = vadd.xlane.f32.xlu0 %v969_v55  ;;  %641 = vadd.xlane.f32.xlu1 %v967_v33  ;;  %v971_v27 = vpop.eup %970 }
 0x27a   :  { %645 = vadd.xlane.f32.xlu1 %v971_v27 }
 0x27b   :  { %1113 = shalt.err (!%p1110_p0)
}
 0x27c   :  { %s1114_s30 = scalar_lea.hbm %s1619_s3, 2048 }
 0x27d   :  { %p1115_p1 = scmp.ne.s32.totalorder %s1619_s3, %s1114_s30  ;;  %p1118_p2 = scmp.lt.u32.totalorder %s1114_s30, %s1619_s3 }
 0x27f   :  { %p1120_p3 = pnand %p1118_p2, %p1115_p1 }
 0x281   :  { %1123 = shalt.err (!%p1120_p3)
}
 0x282   :  { %s1163_s9 = smov 128   ;;  %s1164_s10 = smov 8   ;;  %v443_v38 = vmul.f32 1.442695, %v425_v61  ;;  %v459_v46 = vmul.f32 1.442695, %v433_v60  ;;  %v1621_v20 = vsub.f32 %v1342_v59, %v1357_v1  ;;  %v1622_v54 = vsub.f32 %v1361_v3, %v1377_v9 }
 0x283   :  { %806 = dma.vmem_to_hbm [thread:$0]  %s801_s26, 2048, %s1619_s3, [#allocation6], %s1163_s9, %s1163_s9, %s1164_s10   ;;  %v1623_v36 = vsub.f32 %v1340_v58, %v1354_v0  ;;  %v409_v61 = vld [vmem:[#allocation3 + $0x10] sm:$0xff]  ;;  %v1624_v52 = vsub.f32 %v1359_v2, %v1374_v8  ;;  %v1625_v59 = vsub.f32 %v1381_v11, %v1397_v17  ;;  %v1626_v58 = vsub.f32 %v1379_v10, %v1394_v16  ;;  %v407_v37 = vld [vmem:[#allocation3] sm:$0xff]  ;;  %v410_v12 = vld [vmem:[#allocation3 + $0x18] sm:$0xff] }
 0x284   :  { %972 = vpow2.f32 %v443_v38  ;;  %v439_v41 = vmul.f32 1.442695, %v1621_v20  ;;  %v455_v43 = vmul.f32 1.442695, %v1622_v54  ;;  %v417_v21 = vld [vmem:[#allocation3 + $0x50] sm:$0xff]  ;;  %v1627_v2 = vsub.f32 %v1401_v19, %v1417_v31  ;;  %v415_v25 = vld [vmem:[#allocation3 + $0x40] sm:$0xff] }
 0x285   :  { %974 = vpow2.f32 %v459_v46  ;;  %v445_v53 = vmul.f32 1.442695, %v1623_v36  ;;  %v461_v56 = vmul.f32 1.442695, %v1624_v52  ;;  %v441_v60 = vmul.f32 1.442695, %v1625_v59 }
 0x286   :  { %976 = vpow2.f32 %v439_v41  ;;  %v457_v0 = vmul.f32 1.442695, %v1626_v58  ;;  %v451_v8 = vmul.f32 1.442695, %v1627_v2  ;;  %v1628_v10 = vsub.f32 %v1421_v35, %v1436_v47  ;;  %v418_v23 = vld [vmem:[#allocation3 + $0x58] sm:$0xff]  ;;  %v408_v48 = vld [vmem:[#allocation3 + $0x8] sm:$0xff] }
 0x287   :  { %978 = vpow2.f32 %v455_v43  ;;  %v1629_v13 = vsub.f32 %v1440_v51, %v1455_v7  ;;  %v1630_v55 = vsub.f32 %v1399_v18, %v1414_v30  ;;  %v416_v36 = vld [vmem:[#allocation3 + $0x48] sm:$0xff]  ;;  %v1631_v18 = vsub.f32 %v1438_v50, %v1452_v6  ;;  %s1165_s3 = smov [#allocation11]  }
 0x288   :  { %980 = vpow2.f32 %v445_v53  ;;  %v447_v16 = vmul.f32 1.442695, %v1628_v10  ;;  %v413_v53 = vld [vmem:[#allocation3 + $0x30] sm:$0xff]  ;;  %v1633_v6 = vsub.f32 %v1459_v15, %v1474_v63  ;;  %v1634_v15 = vsub.f32 %v1419_v34, %v1433_v45  ;;  %s812_s1 = sshll.u32 %s1165_s3, 4  ;;  %s813_s1 = int_to_ptr.vmem [resolvable:$true] %s812_s1 }
 0x289   :  { %982 = vpow2.f32 %v461_v56  ;;  %v463_v44 = vmul.f32 1.442695, %v1629_v13  ;;  %v453_v27 = vmul.f32 1.442695, %v1630_v55  ;;  %v449_v30 = vmul.f32 1.442695, %v1631_v18  ;;  %p1129_p5 = scmp.lt.s32.totalorder %s813_s1, %s813_s1 }
 0x28a   :  { %984 = vpow2.f32 %v441_v60  ;;  %v469_v63 = vmul.f32 1.442695, %v1634_v15  ;;  %s1124_s13 = scalar_lea.vmem %s813_s1, 2048 }
 0x28b   :  { %986 = vpow2.f32 %v457_v0  ;;  %p1125_p4 = scmp.ne.s32.totalorder %s813_s1, %s1124_s13  ;;  %p1130_p6 = scmp.lt.s32.totalorder %s1124_s13, %s1124_s13 }
 0x28c   :  { %988 = vpow2.f32 %v451_v8  ;;  %v701_v8 = vld [vmem:[#allocation2 + $0x10] sm:$0xff] }
 0x28d   :  { %990 = vpow2.f32 %v447_v16  ;;  %p1131_p7 = por %p1130_p6, %p1129_p5 }
 0x28e   :  { %v973_v57 = vpop.eup %972 }
 0x28f   :  { %v473_v1 = vmul.f32 %v973_v57, %v409_v61  ;;  %v975_v3 = vpop.eup %974  ;;  %p1132_p8 = pnand %p1131_p7, %p1125_p4 }
 0x290   :  { %v977_v26 = vpop.eup %976  ;;  %v481_v11 = vmul.f32 %v975_v3, %v417_v21 }
 0x291   :  { %v979_v17 = vpop.eup %978  ;;  %v471_v40 = vmul.f32 %v977_v26, %v407_v37  ;;  %v1632_v26 = vsub.f32 %v1457_v14, %v1471_v62  ;;  %v419_v62 = vld [vmem:[#allocation3 + $0x60] sm:$0xff] }
 0x292   :  { %v479_v19 = vmul.f32 %v979_v17, %v415_v25  ;;  %v981_v31 = vpop.eup %980 }
 0x293   :  { %v983_v32 = vpop.eup %982  ;;  %v474_v35 = vmul.f32 %v981_v31, %v410_v12  ;;  %v465_v58 = vmul.f32 1.442695, %v1632_v26  ;;  %v699_v12 = vld [vmem:[#allocation2] sm:$0xff]  ;;  %v700_v26 = vld [vmem:[#allocation2 + $0x8] sm:$0xff] }
 0x294   :  { %v985_v47 = vpop.eup %984  ;;  %v482_v7 = vmul.f32 %v983_v32, %v418_v23 }
 0x295   :  { %v987_v46 = vpop.eup %986  ;;  %v472_v20 = vmul.f32 %v985_v47, %v408_v48 }
 0x296   :  { %v989_v41 = vpop.eup %988  ;;  %v480_v56 = vmul.f32 %v987_v46, %v416_v36 }
 0x297   :  { %v477_v59 = vmul.f32 %v989_v41, %v413_v53  ;;  %v991_v60 = vpop.eup %990  ;;  %v702_v41 = vld [vmem:[#allocation2 + $0x18] sm:$0xff] }
 0x2db   :  { %v620_v9 = vpop.xlane.xlu0 %619 }
 0x2dc   :  { %v649_v24 = vadd.f32 %v620_v9, %v473_v1  ;;  %v411_v9 = vld [vmem:[#allocation3 + $0x20] sm:$0xff] }
 0x2de   :  { %666 = vst.msk [vmem:[#allocation3 + $0x10] sm:$0xff] %vm62_vm0, %v649_v24  ;;  %v467_v24 = vmul.f32 1.442695, %v1633_v6  ;;  %v422_v6 = vld [vmem:[#allocation3 + $0x78] sm:$0xff] }
 0x2df   :  { %v636_v39 = vpop.xlane.xlu0 %635 }
 0x2e0   :  { %v616_v42 = vpop.xlane.xlu1 %615  ;;  %v657_v22 = vadd.f32 %v636_v39, %v481_v11  ;;  %v475_v11 = vmul.f32 %v991_v60, %v411_v9  ;;  %v710_v60 = vld [vmem:[#allocation2 + $0x58] sm:$0xff] }
 0x2e1   :  { %v647_v4 = vadd.f32 %v616_v42, %v471_v40 }
 0x2e2   :  { %674 = vst.msk [vmem:[#allocation3 + $0x50] sm:$0xff] %vm62_vm0, %v657_v22 }
 0x2e3   :  { %664 = vst.msk [vmem:[#allocation3] sm:$0xff] %vm62_vm0, %v647_v4  ;;  %v632_v29 = vpop.xlane.xlu0 %631  ;;  %v709_v4 = vld [vmem:[#allocation2 + $0x50] sm:$0xff] }
 0x2e4   :  { %v655_v28 = vadd.f32 %v632_v29, %v479_v19 }
 0x2e5   :  { %v717_v5 = vld [vmem:[#allocation3 + $0x10] sm:$0xff] }
 0x2e6   :  { %992 = vlog2.f32 %v717_v5  ;;  %672 = vst.msk [vmem:[#allocation3 + $0x40] sm:$0xff] %vm62_vm0, %v655_v28 }
 0x2e7   :  { %v622_v49 = vpop.xlane.xlu1 %621  ;;  %994 = vpow2.f32 %v463_v44  ;;  %v414_v44 = vld [vmem:[#allocation3 + $0x38] sm:$0xff] }
 0x2e8   :  { %v650_v33 = vadd.f32 %v622_v49, %v474_v35  ;;  %v707_v49 = vld [vmem:[#allocation2 + $0x40] sm:$0xff] }
 0x2e9   :  { %v725_v38 = vld [vmem:[#allocation3 + $0x50] sm:$0xff] }
 0x2ea   :  { %v715_v51 = vld [vmem:[#allocation3] sm:$0xff]  ;;  %996 = vlog2.f32 %v725_v38  ;;  %667 = vst.msk [vmem:[#allocation3 + $0x18] sm:$0xff] %vm62_vm0, %v650_v33 }
 0x2eb   :  { %998 = vlog2.f32 %v715_v51  ;;  %v638_v54 = vpop.xlane.xlu1 %637  ;;  %v618_v43 = vpop.xlane.xlu0 %617 }
 0x2ec   :  { %v658_v57 = vadd.f32 %v638_v54, %v482_v7  ;;  %v648_v61 = vadd.f32 %v618_v43, %v472_v20  ;;  %1000 = vpow2.f32 %v453_v27  ;;  %v412_v27 = vld [vmem:[#allocation3 + $0x28] sm:$0xff] }
 0x2ed   :  { %v723_v52 = vld [vmem:[#allocation3 + $0x40] sm:$0xff] }
 0x2ee   :  { %1002 = vlog2.f32 %v723_v52  ;;  %675 = vst.msk [vmem:[#allocation3 + $0x58] sm:$0xff] %vm62_vm0, %v658_v57  ;;  %665 = vst.msk [vmem:[#allocation3 + $0x8] sm:$0xff] %vm62_vm0, %v648_v61  ;;  %v420_v57 = vld [vmem:[#allocation3 + $0x68] sm:$0xff]  ;;  %v421_v61 = vld [vmem:[#allocation3 + $0x70] sm:$0xff] }
 0x2ef   :  { %v634_v1 = vpop.xlane.xlu1 %633  ;;  %v628_v3 = vpop.xlane.xlu0 %627  ;;  %1004 = vpow2.f32 %v449_v30 }
 0x2f0   :  { %v993_v21 = vpop.eup %992  ;;  %v656_v0 = vadd.f32 %v634_v1, %v480_v56  ;;  %v653_v50 = vadd.f32 %v628_v3, %v477_v59 }
 0x2f1   :  { %v736_v37 = vmul.f32 0.6931472, %v993_v21  ;;  %v718_v2 = vld [vmem:[#allocation3 + $0x18] sm:$0xff]  ;;  %v995_v17 = vpop.eup %994 }
 0x2f2   :  { %1006 = vlog2.f32 %v718_v2  ;;  %673 = vst.msk [vmem:[#allocation3 + $0x48] sm:$0xff] %vm62_vm0, %v656_v0  ;;  %670 = vst.msk [vmem:[#allocation3 + $0x30] sm:$0xff] %vm62_vm0, %v653_v50  ;;  %v483_v31 = vmul.f32 %v995_v17, %v419_v62 }
 0x2f3   :  { %v765_v40 = vadd.f32 %v736_v37, %v701_v8  ;;  %v624_v14 = vpop.xlane.xlu0 %623  ;;  %1008 = vpow2.f32 %v465_v58 }
 0x2f4   :  { %v997_v39 = vpop.eup %996  ;;  %v651_v25 = vadd.f32 %v624_v14, %v475_v11  ;;  %1010 = vpow2.f32 %v467_v24  ;;  %v708_v14 = vld [vmem:[#allocation2 + $0x48] sm:$0xff] }
 0x2f5   :  { %v999_v42 = vpop.eup %998  ;;  %781 = vst.msk [vmem:[#allocation11 + $0x10] sm:$0xff] %vm62_vm0, %v765_v40  ;;  %v752_v22 = vmul.f32 0.6931472, %v997_v39  ;;  %v726_v10 = vld [vmem:[#allocation3 + $0x58] sm:$0xff]  ;;  %v716_v16 = vld [vmem:[#allocation3 + $0x8] sm:$0xff] }
 0x2f6   :  { %v732_v19 = vmul.f32 0.6931472, %v999_v42  ;;  %1012 = vlog2.f32 %v726_v10  ;;  %668 = vst.msk [vmem:[#allocation3 + $0x20] sm:$0xff] %vm62_vm0, %v651_v25  ;;  %v1001_v29 = vpop.eup %1000  ;;  %v705_v25 = vld [vmem:[#allocation2 + $0x30] sm:$0xff] }
 0x2f7   :  { %v773_v28 = vadd.f32 %v752_v22, %v709_v4  ;;  %1014 = vlog2.f32 %v716_v16  ;;  %v640_v13 = vpop.xlane.xlu0 %639  ;;  %v478_v23 = vmul.f32 %v1001_v29, %v414_v44  ;;  %v711_v44 = vld [vmem:[#allocation2 + $0x60] sm:$0xff] }
 0x2f8   :  { %v1003_v34 = vpop.eup %1002  ;;  %v763_v45 = vadd.f32 %v732_v19, %v699_v12  ;;  %v659_v5 = vadd.f32 %v640_v13, %v483_v31  ;;  %1016 = vpow2.f32 %v469_v63  ;;  %v703_v19 = vld [vmem:[#allocation2 + $0x20] sm:$0xff] }
 0x2f9   :  { %789 = vst.msk [vmem:[#allocation11 + $0x50] sm:$0xff] %vm62_vm0, %v773_v28  ;;  %v748_v32 = vmul.f32 0.6931472, %v1003_v34  ;;  %v724_v35 = vld [vmem:[#allocation3 + $0x48] sm:$0xff]  ;;  %v721_v47 = vld [vmem:[#allocation3 + $0x30] sm:$0xff]  ;;  %v1005_v48 = vpop.eup %1004 }
 0x2fa   :  { %779 = vst.msk [vmem:[#allocation11] sm:$0xff] %vm62_vm0, %v763_v45  ;;  %1018 = vlog2.f32 %v724_v35  ;;  %676 = vst.msk [vmem:[#allocation3 + $0x60] sm:$0xff] %vm62_vm0, %v659_v5  ;;  %v476_v54 = vmul.f32 %v1005_v48, %v412_v27  ;;  %v706_v35 = vld [vmem:[#allocation2 + $0x38] sm:$0xff]  ;;  %v704_v48 = vld [vmem:[#allocation2 + $0x28] sm:$0xff] }
 0x2fb   :  { %v771_v33 = vadd.f32 %v748_v32, %v707_v49  ;;  %1020 = vlog2.f32 %v721_v47  ;;  %v630_v55 = vpop.xlane.xlu1 %629 }
 0x2fc   :  { %v1007_v38 = vpop.eup %1006  ;;  %v654_v46 = vadd.f32 %v630_v55, %v478_v23 }
 0x2fd   :  { %787 = vst.msk [vmem:[#allocation11 + $0x40] sm:$0xff] %vm62_vm0, %v771_v33  ;;  %v738_v51 = vmul.f32 0.6931472, %v1007_v38  ;;  %v719_v7 = vld [vmem:[#allocation3 + $0x20] sm:$0xff]  ;;  %v1009_v20 = vpop.eup %1008 }
 0x2fe   :  { %1022 = vlog2.f32 %v719_v7  ;;  %671 = vst.msk [vmem:[#allocation3 + $0x38] sm:$0xff] %vm62_vm0, %v654_v46  ;;  %v1011_v43 = vpop.eup %1010  ;;  %v484_v3 = vmul.f32 %v1009_v20, %v420_v57  ;;  %v712_v46 = vld [vmem:[#allocation2 + $0x68] sm:$0xff]  ;;  %v713_v7 = vld [vmem:[#allocation2 + $0x70] sm:$0xff] }
 0x2ff   :  { %v766_v36 = vadd.f32 %v738_v51, %v702_v41  ;;  %v626_v53 = vpop.xlane.xlu1 %625  ;;  %v485_v9 = vmul.f32 %v1011_v43, %v421_v61 }
 0x300   :  { %v1013_v18 = vpop.eup %1012  ;;  %v652_v30 = vadd.f32 %v626_v53, %v476_v54 }
 0x301   :  { %v1015_v52 = vpop.eup %1014  ;;  %782 = vst.msk [vmem:[#allocation11 + $0x18] sm:$0xff] %vm62_vm0, %v766_v36  ;;  %v754_v56 = vmul.f32 0.6931472, %v1013_v18  ;;  %v727_v59 = vld [vmem:[#allocation3 + $0x60] sm:$0xff]  ;;  %v714_v36 = vld [vmem:[#allocation2 + $0x78] sm:$0xff] }
 0x302   :  { %v734_v1 = vmul.f32 0.6931472, %v1015_v52  ;;  %1024 = vlog2.f32 %v727_v59  ;;  %669 = vst.msk [vmem:[#allocation3 + $0x28] sm:$0xff] %vm62_vm0, %v652_v30  ;;  %v1017_v21 = vpop.eup %1016 }
 0x303   :  { %v774_v58 = vadd.f32 %v754_v56, %v710_v60  ;;  %v642_v0 = vpop.xlane.xlu1 %641  ;;  %v644_v50 = vpop.xlane.xlu0 %643  ;;  %v486_v39 = vmul.f32 %v1017_v21, %v422_v6 }
 0x304   :  { %v1019_v24 = vpop.eup %1018  ;;  %v764_v37 = vadd.f32 %v734_v1, %v700_v26  ;;  %v660_v2 = vadd.f32 %v642_v0, %v484_v3  ;;  %v661_v8 = vadd.f32 %v644_v50, %v485_v9 }
 0x305   :  { %v1021_v11 = vpop.eup %1020  ;;  %790 = vst.msk [vmem:[#allocation11 + $0x58] sm:$0xff] %vm62_vm0, %v774_v58  ;;  %v750_v17 = vmul.f32 0.6931472, %v1019_v24  ;;  %v722_v40 = vld [vmem:[#allocation3 + $0x38] sm:$0xff] }
 0x306   :  { %780 = vst.msk [vmem:[#allocation11 + $0x8] sm:$0xff] %vm62_vm0, %v764_v37  ;;  %v744_v62 = vmul.f32 0.6931472, %v1021_v11  ;;  %1026 = vlog2.f32 %v722_v40  ;;  %677 = vst.msk [vmem:[#allocation3 + $0x68] sm:$0xff] %vm62_vm0, %v660_v2 }
 0x307   :  { %678 = vst.msk [vmem:[#allocation3 + $0x70] sm:$0xff] %vm62_vm0, %v661_v8  ;;  %v772_v42 = vadd.f32 %v750_v17, %v708_v14  ;;  %v646_v15 = vpop.xlane.xlu1 %645 }
 0x308   :  { %v1023_v63 = vpop.eup %1022  ;;  %v769_v22 = vadd.f32 %v744_v62, %v705_v25  ;;  %v662_v10 = vadd.f32 %v646_v15, %v486_v39 }
 0x309   :  { %788 = vst.msk [vmem:[#allocation11 + $0x48] sm:$0xff] %vm62_vm0, %v772_v42  ;;  %v740_v16 = vmul.f32 0.6931472, %v1023_v63  ;;  %v720_v4 = vld [vmem:[#allocation3 + $0x28] sm:$0xff] }
 0x30a   :  { %785 = vst.msk [vmem:[#allocation11 + $0x30] sm:$0xff] %vm62_vm0, %v769_v22  ;;  %1028 = vlog2.f32 %v720_v4  ;;  %679 = vst.msk [vmem:[#allocation3 + $0x78] sm:$0xff] %vm62_vm0, %v662_v10 }
 0x30b   :  { %v767_v31 = vadd.f32 %v740_v16, %v703_v19 }
 0x30c   :  { %v1025_v29 = vpop.eup %1024 }
 0x30d   :  { %783 = vst.msk [vmem:[#allocation11 + $0x20] sm:$0xff] %vm62_vm0, %v767_v31  ;;  %v756_v12 = vmul.f32 0.6931472, %v1025_v29  ;;  %v728_v28 = vld [vmem:[#allocation3 + $0x68] sm:$0xff] }
 0x30e   :  { %v729_v13 = vld [vmem:[#allocation3 + $0x70] sm:$0xff]  ;;  %1030 = vlog2.f32 %v728_v28 }
 0x30f   :  { %v775_v34 = vadd.f32 %v756_v12, %v711_v44  ;;  %1032 = vlog2.f32 %v729_v13 }
 0x310   :  { %v1027_v45 = vpop.eup %1026 }
 0x311   :  { %791 = vst.msk [vmem:[#allocation11 + $0x60] sm:$0xff] %vm62_vm0, %v775_v34  ;;  %v746_v5 = vmul.f32 0.6931472, %v1027_v45  ;;  %v730_v32 = vld [vmem:[#allocation3 + $0x78] sm:$0xff] }
 0x312   :  { %1034 = vlog2.f32 %v730_v32 }
 0x313   :  { %v770_v47 = vadd.f32 %v746_v5, %v706_v35 }
 0x314   :  { %v1029_v49 = vpop.eup %1028 }
 0x315   :  { %786 = vst.msk [vmem:[#allocation11 + $0x38] sm:$0xff] %vm62_vm0, %v770_v47  ;;  %v742_v23 = vmul.f32 0.6931472, %v1029_v49 }
 0x317   :  { %v768_v33 = vadd.f32 %v742_v23, %v704_v48 }
 0x318   :  { %v1031_v55 = vpop.eup %1030 }
 0x319   :  { %v1033_v27 = vpop.eup %1032  ;;  %784 = vst.msk [vmem:[#allocation11 + $0x28] sm:$0xff] %vm62_vm0, %v768_v33  ;;  %v758_v38 = vmul.f32 0.6931472, %v1031_v55 }
 0x31a   :  { %v760_v51 = vmul.f32 0.6931472, %v1033_v27 }
 0x31b   :  { %v776_v20 = vadd.f32 %v758_v38, %v712_v46 }
 0x31c   :  { %v1035_v41 = vpop.eup %1034  ;;  %v777_v54 = vadd.f32 %v760_v51, %v713_v7 }
 0x31d   :  { %792 = vst.msk [vmem:[#allocation11 + $0x68] sm:$0xff] %vm62_vm0, %v776_v20  ;;  %v762_v43 = vmul.f32 0.6931472, %v1035_v41 }
 0x31e   :  { %793 = vst.msk [vmem:[#allocation11 + $0x70] sm:$0xff] %vm62_vm0, %v777_v54 }
 0x31f   :  { %v778_v53 = vadd.f32 %v762_v43, %v714_v36 }
 0x321   :  { %794 = vst.msk [vmem:[#allocation11 + $0x78] sm:$0xff] %vm62_vm0, %v778_v53 }
 0x322   :  { %1135 = shalt.err (!%p1132_p8)
}
 0x323   :  { %s1136_s16 = scalar_lea.hbm %s1620_s4, 2048 }
 0x324   :  { %p1137_p9 = scmp.ne.s32.totalorder %s1620_s4, %s1136_s16  ;;  %p1140_p10 = scmp.lt.u32.totalorder %s1136_s16, %s1620_s4 }
 0x326   :  { %p1142_p11 = pnand %p1140_p10, %p1137_p9 }
 0x328   :  { %1145 = shalt.err (!%p1142_p11)
}
 0x329   :  { %818 = dma.vmem_to_hbm [thread:$0]  %s813_s1, 2048, %s1620_s4, [#allocation12], %s1163_s9, %s1163_s9, %s1164_s10  }
 0x32a   :  { %1150 = dma.done.wait [#allocation6], 2048  }
 0x32b   :  { %1151 = vsyncadd [#allocation6], 4294965248 }
 0x32c   :  { %1152 = dma.done.wait [#allocation12], 2048  }
 0x32d   :  { %1153 = vsyncadd [#allocation12], 4294965248 }
 0x32e   :  { %825 = vsyncpa [#allocation5], 1 }
 0x32f   :  { %826 = vsyncpa [#allocation8], 1 }
 0x330   :  { %827 = vsyncpa [#allocation6], 1 }
 0x331   :  { %828 = vsyncpa [#allocation12], 1 }

// kernel: forward.3
= control target key start
LH: loop header
LB: loop body
LE: loop exit
PB: predicated region body
PF: predicated region fallthrough
CT: control target
= control target key end

     0   :  { %14 = vsyncpa [#allocation5], 0  ;;  %s13046_s0 = inlined_call_operand.hbm [shape: bf16[8,16,128], index: 0, kind: input, shape index: {}]   ;;  %s13047_s1 = inlined_call_operand.hbm [shape: f32[2,8,128], index: 1, kind: input, shape index: {}, may-alias: {1,8}]   ;;  %s13048_s2 = inlined_call_operand.hbm [shape: bf16[128,128], index: 2, kind: input, shape index: {}]   ;;  %s13049_s3 = inlined_call_operand.hbm [shape: f32[1,128], index: 3, kind: input, shape index: {}]   ;;  %s13050_s4 = inlined_call_operand.hbm [shape: bf16[1,128,128], index: 4, kind: input, shape index: {}]   ;;  %s13051_s5 = inlined_call_operand.hbm [shape: bf16[2,128,128], index: 5, kind: input, shape index: {}]   ;;  %s13052_s6 = inlined_call_operand.hbm [shape: f32[1,1,128], index: 6, kind: input, shape index: {}]   ;;  %s13053_s7 = inlined_call_operand.hbm [shape: bf16[8,16,128], index: 7, kind: output, shape index: {0}]   ;;  %s13054_s8 = inlined_call_operand.hbm [shape: f32[2,8,128], index: 8, kind: output, shape index: {1}, may-alias: {1,8}]  }
   0x1   :  { %15 = vsyncpa [#allocation8], 0 }
   0x2   :  { %16 = vsyncpa [#allocation11], 0 }
   0x3   :  { %17 = vsyncpa [#allocation14], 0 }
   0x4   :  { %18 = vsyncpa [#allocation6], 0 }
   0x5   :  { %19 = vsyncpa [#allocation18], 0  ;;  %s11720_s27 = smov [#allocation7]   ;;  %s11510_s9 = scalar_lea.hbm %s13047_s1, 256 }
   0x6   :  { %s37_s28 = sshll.u32 %s11720_s27, 4  ;;  %p11511_p0 = scmp.ne.s32.totalorder %s13047_s1, %s11510_s9  ;;  %s38_s28 = int_to_ptr.vmem [resolvable:$true] %s37_s28 }
   0x7   :  { %p11514_p1 = scmp.lt.u32.totalorder %s11510_s9, %s13047_s1 }
   0x9   :  { %p11516_p2 = pnand %p11514_p1, %p11511_p0 }
   0xb   :  { %11519 = shalt.err (!%p11516_p2)
}
   0xc   :  { %s11520_s14 = scalar_lea.vmem %s38_s28, 256  ;;  %p11525_p4 = scmp.lt.s32.totalorder %s38_s28, %s38_s28 }
   0xd   :  { %p11521_p3 = scmp.ne.s32.totalorder %s38_s28, %s11520_s14  ;;  %p11526_p5 = scmp.lt.s32.totalorder %s11520_s14, %s11520_s14 }
   0xf   :  { %p11527_p6 = por %p11526_p5, %p11525_p4 }
  0x11   :  { %p11528_p7 = pnand %p11527_p6, %p11521_p3 }
  0x13   :  { %11531 = shalt.err (!%p11528_p7)
}
  0x14   :  { %s11721_s15 = smov 128   ;;  %s11722_s16 = smov 8  }
  0x15   :  { %43 = dma.hbm_to_vmem [thread:$0]  %s13047_s1, 256, %s38_s28, [#allocation8], %s11721_s15, %s11721_s15, %s11722_s16  }
  0x16   :  { %s11723_s19 = smov [#allocation10]   ;;  %s11532_s23 = scalar_lea.hbm %s13049_s3, 16 }
  0x17   :  { %s62_s20 = sshll.u32 %s11723_s19, 4  ;;  %p11533_p8 = scmp.ne.s32.totalorder %s13049_s3, %s11532_s23  ;;  %s63_s20 = int_to_ptr.vmem [resolvable:$true] %s62_s20 }
  0x18   :  { %p11536_p9 = scmp.lt.u32.totalorder %s11532_s23, %s13049_s3 }
  0x1a   :  { %p11538_p10 = pnand %p11536_p9, %p11533_p8 }
  0x1c   :  { %11541 = shalt.err (!%p11538_p10)
}
  0x1d   :  { %s11542_s29 = scalar_lea.vmem %s63_s20, 16  ;;  %s11546_s1 = scalar_lea.vmem %s63_s20, 32 }
  0x1e   :  { %p11543_p11 = scmp.ne.s32.totalorder %s63_s20, %s11542_s29  ;;  %p11547_p12 = scmp.lt.s32.totalorder %s63_s20, %s63_s20 }
  0x1f   :  { %p11548_p13 = scmp.lt.s32.totalorder %s11546_s1, %s11542_s29 }
  0x21   :  { %p11549_p0 = por %p11548_p13, %p11547_p12 }
  0x23   :  { %p11550_p1 = pnand %p11549_p0, %p11543_p11 }
  0x25   :  { %11553 = shalt.err (!%p11550_p1)
}
  0x26   :  { %65 = dma.hbm_to_vmem [thread:$0]  %s13049_s3, 16, %s63_s20, [#allocation11]  }
  0x27   :  { %s11724_s9 = smov [#allocation13]   ;;  %s11725_s11 = smov [#allocation4]  }
  0x28   :  { %s83_s10 = sshll.u32 %s11724_s9, 4  ;;  %s25_s12 = sshll.u32 %s11725_s11, 4  ;;  %s84_s10 = int_to_ptr.vmem [resolvable:$true] %s83_s10  ;;  %s11809_s12 = int_to_ptr.vmem [resolvable:$true] %s25_s12 }
  0x29   :  { %s11554_s17 = scalar_lea.hbm %s13051_s5, 2048 }
  0x2a   :  { %p11555_p2 = scmp.ne.s32.totalorder %s13051_s5, %s11554_s17  ;;  %p11558_p3 = scmp.lt.u32.totalorder %s11554_s17, %s13051_s5 }
  0x2c   :  { %p11560_p4 = pnand %p11558_p3, %p11555_p2 }
  0x2e   :  { %11563 = shalt.err (!%p11560_p4)
}
  0x2f   :  { %s11564_s3 = scalar_lea.vmem %s84_s10, 2048  ;;  %p11569_p6 = scmp.lt.s32.totalorder %s84_s10, %s84_s10 }
  0x30   :  { %p11565_p5 = scmp.ne.s32.totalorder %s84_s10, %s11564_s3  ;;  %p11570_p7 = scmp.lt.s32.totalorder %s11564_s3, %s11564_s3 }
  0x32   :  { %p11571_p8 = por %p11570_p7, %p11569_p6 }
  0x34   :  { %p11572_p9 = pnand %p11571_p8, %p11565_p5 }
  0x36   :  { %11575 = shalt.err (!%p11572_p9)
}
  0x37   :  { %s11726_s20 = smov 64   ;;  %s11727_s23 = smov 4  }
  0x38   :  { %89 = dma.hbm_to_vmem [thread:$0]  %s13051_s5, 2048, %s84_s10, [#allocation14], %s11726_s20, %s11726_s20, %s11727_s23  }
  0x39   :  { %s11576_s29 = scalar_lea.hbm %s13046_s0, 1024 }
  0x3a   :  { %p11577_p10 = scmp.ne.s32.totalorder %s13046_s0, %s11576_s29  ;;  %p11580_p11 = scmp.lt.u32.totalorder %s11576_s29, %s13046_s0 }
  0x3c   :  { %p11582_p12 = pnand %p11580_p11, %p11577_p10 }
  0x3e   :  { %11585 = shalt.err (!%p11582_p12)
}
  0x3f   :  { %s11586_s11 = scalar_lea.vmem %s11809_s12, 1024  ;;  %p11591_p0 = scmp.lt.s32.totalorder %s11809_s12, %s11809_s12 }
  0x40   :  { %p11587_p13 = scmp.ne.s32.totalorder %s11809_s12, %s11586_s11  ;;  %p11592_p1 = scmp.lt.s32.totalorder %s11586_s11, %s11586_s11 }
  0x42   :  { %p11593_p2 = por %p11592_p1, %p11591_p0 }
  0x44   :  { %p11594_p3 = pnand %p11593_p2, %p11587_p13 }
  0x46   :  { %11597 = shalt.err (!%p11594_p3)
}
  0x47   :  { %31 = dma.hbm_to_vmem [thread:$0]  %s13046_s0, 1024, %s11809_s12, [#allocation5], %s11726_s20, %s11726_s20, %s11727_s23  }
  0x48   :  { %s11728_s13 = smov [#allocation9]   ;;  %s11729_s17 = smov [#allocation12]  }
  0x49   :  { %s49_s14 = sshll.u32 %s11728_s13, 4  ;;  %s71_s18 = sshll.u32 %s11729_s17, 4  ;;  %s50_s14 = int_to_ptr.vmem [resolvable:$true] %s49_s14  ;;  %s11846_s18 = int_to_ptr.vmem [resolvable:$true] %s71_s18 }
  0x4a   :  { %s11598_s22 = scalar_lea.hbm %s13048_s2, 1024 }
  0x4b   :  { %p11599_p4 = scmp.ne.s32.totalorder %s13048_s2, %s11598_s22  ;;  %p11602_p5 = scmp.lt.u32.totalorder %s11598_s22, %s13048_s2 }
  0x4d   :  { %p11604_p6 = pnand %p11602_p5, %p11599_p4 }
  0x4f   :  { %11607 = shalt.err (!%p11604_p6)
}
  0x50   :  { %s11608_s0 = scalar_lea.vmem %s50_s14, 1024  ;;  %p11613_p8 = scmp.lt.s32.totalorder %s50_s14, %s50_s14 }
  0x51   :  { %p11609_p7 = scmp.ne.s32.totalorder %s50_s14, %s11608_s0  ;;  %p11614_p9 = scmp.lt.s32.totalorder %s11608_s0, %s11608_s0 }
  0x53   :  { %p11615_p10 = por %p11614_p9, %p11613_p8 }
  0x55   :  { %p11616_p11 = pnand %p11615_p10, %p11609_p7 }
  0x57   :  { %11619 = shalt.err (!%p11616_p11)
}
  0x58   :  { %55 = dma.hbm_to_vmem [thread:$0]  %s13048_s2, 1024, %s50_s14, [#allocation8], %s11726_s20, %s11726_s20, %s11727_s23  }
  0x59   :  { %s11620_s28 = scalar_lea.hbm %s13050_s4, 1024 }
  0x5a   :  { %p11621_p12 = scmp.ne.s32.totalorder %s13050_s4, %s11620_s28  ;;  %p11624_p13 = scmp.lt.u32.totalorder %s11620_s28, %s13050_s4 }
  0x5c   :  { %p11626_p0 = pnand %p11624_p13, %p11621_p12 }
  0x5e   :  { %11629 = shalt.err (!%p11626_p0)
}
  0x5f   :  { %s11630_s10 = scalar_lea.vmem %s11846_s18, 1024  ;;  %p11635_p2 = scmp.lt.s32.totalorder %s11846_s18, %s11846_s18 }
  0x60   :  { %p11631_p1 = scmp.ne.s32.totalorder %s11846_s18, %s11630_s10  ;;  %p11636_p3 = scmp.lt.s32.totalorder %s11630_s10, %s11630_s10 }
  0x62   :  { %p11637_p4 = por %p11636_p3, %p11635_p2 }
  0x64   :  { %p11638_p5 = pnand %p11637_p4, %p11631_p1 }
  0x66   :  { %11641 = shalt.err (!%p11638_p5)
}
  0x67   :  { %77 = dma.hbm_to_vmem [thread:$0]  %s13050_s4, 1024, %s11846_s18, [#allocation11], %s11726_s20, %s11726_s20, %s11727_s23  }
  0x68   :  { %s11730_s14 = smov [#allocation15]   ;;  %s11642_s22 = scalar_lea.hbm %s13052_s6, 16 }
  0x69   :  { %s96_s17 = sshll.u32 %s11730_s14, 4  ;;  %p11643_p6 = scmp.ne.s32.totalorder %s13052_s6, %s11642_s22  ;;  %s97_s17 = int_to_ptr.vmem [resolvable:$true] %s96_s17 }
  0x6a   :  { %p11646_p7 = scmp.lt.u32.totalorder %s11642_s22, %s13052_s6 }
  0x6c   :  { %p11648_p8 = pnand %p11646_p7, %p11643_p6 }
  0x6e   :  { %11651 = shalt.err (!%p11648_p8)
}
  0x6f   :  { %s11652_s0 = scalar_lea.vmem %s97_s17, 16  ;;  %s11656_s4 = scalar_lea.vmem %s97_s17, 32 }
  0x70   :  { %p11653_p9 = scmp.ne.s32.totalorder %s97_s17, %s11652_s0  ;;  %p11657_p10 = scmp.lt.s32.totalorder %s97_s17, %s97_s17 }
  0x71   :  { %p11658_p11 = scmp.lt.s32.totalorder %s11656_s4, %s11652_s0 }
  0x73   :  { %p11659_p12 = por %p11658_p11, %p11657_p10 }
  0x75   :  { %p11660_p13 = pnand %p11659_p12, %p11653_p9 }
  0x77   :  { %11663 = shalt.err (!%p11660_p13)
}
  0x78   :  { %99 = dma.hbm_to_vmem [thread:$0]  %s13052_s6, 16, %s97_s17, [#allocation14]  }
  0x79   :  { %11708 = dma.done.wait [#allocation5], 1024  }
  0x7a   :  { %11709 = vsyncadd [#allocation5], 4294966272 }
  0x7b   :  { %11710 = dma.done.wait [#allocation8], 1280  }
  0x7c   :  { %11711 = vsyncadd [#allocation8], 4294966016 }
  0x7d   :  { %11712 = dma.done.wait [#allocation11], 1040  }
  0x7e   :  { %11713 = vsyncadd [#allocation11], 4294966256 }
  0x7f   :  { %11714 = dma.done.wait [#allocation14], 2064  }
  0x80   :  { %11715 = vsyncadd [#allocation14], 4294965232  ;;  %v11731_v0 = vmov 0.0   ;;  %vm11732_vm0 = vmmov 0   ;;  %v10822_v1 = vld [vmem:[#allocation9] sm:$0xff]   ;;  %v10823_v2 = vld [vmem:[#allocation9 + $0x8] sm:$0xff]  }
  0x81   :  { %9765 = vmatprep.subr.bf16.mxu1 %v11731_v0  ;;  %9781 = vmatprep.mubr.msk.bf16.mxu1 %vm11732_vm0, %v11731_v0  ;;  %v10825_v3 = vld [vmem:[#allocation13] sm:$0xff]   ;;  %v10824_v4 = vld [vmem:[#allocation9 + $0x10] sm:$0xff]   ;;  %v10826_v6 = vld [vmem:[#allocation9 + $0x18] sm:$0xff]   ;;  %vm533_vm1 = vcmask 1041409   ;;  %vm536_vm2 = vcmask 1042434   ;;  %vm539_vm3 = vcmask 1043459  }
  0x82   :  { %9733 = vmatprep.subr.bf16.mxu0 %v10822_v1  ;;  %9766 = vmatpush3.bf16.msra.mxu1 %v10825_v3  ;;  %v10827_v5 = vld [vmem:[#allocation13 + $0x8] sm:$0xff]   ;;  %v10829_v7 = vld [vmem:[#allocation13 + $0x10] sm:$0xff]   ;;  %v10828_v8 = vld [vmem:[#allocation9 + $0x20] sm:$0xff]   ;;  %vm542_vm4 = vcmask 1044484   ;;  %vm545_vm5 = vcmask 1045509   ;;  %vm548_vm6 = vcmask 1046534  }
  0x83   :  { %9734 = vmatpush3.bf16.msra.mxu0 %v10822_v1  ;;  %9767 = vmatprep.subr.bf16.mxu1 %v11731_v0  ;;  %v10831_v9 = vld [vmem:[#allocation13 + $0x18] sm:$0xff]   ;;  %v10836_v10 = vld [vmem:[#allocation4] sm:$0xff]   ;;  %v10830_v11 = vld [vmem:[#allocation9 + $0x28] sm:$0xff]   ;;  %vm13055_vm7 = vcmask 1047559   ;;  %vm885_vm8 = vcmask 1040384   ;;  %s11735_s6 = smov [#allocation17]  }
  0x84   :  { %9735 = vmatprep.subr.bf16.mxu0 %v10823_v2  ;;  %9749 = vmatprep.mubr.bf16.mxu0 %v10836_v10  ;;  %v10833_v12 = vld [vmem:[#allocation13 + $0x20] sm:$0xff]   ;;  %v10832_v13 = vld [vmem:[#allocation9 + $0x30] sm:$0xff]   ;;  %v10834_v15 = vld [vmem:[#allocation9 + $0x38] sm:$0xff]   ;;  %vm886_vm9 = vsmask.f32 256  ;;  %s8785_s27 = sshll.u32 %s11735_s6, 4  ;;  %s8786_s27 = int_to_ptr.vmem [resolvable:$true] %s8785_s27 }
  0x85   :  { %v10835_v14 = vld [vmem:[#allocation13 + $0x28] sm:$0xff]   ;;  %v10838_v16 = vld [vmem:[#allocation13 + $0x30] sm:$0xff]   ;;  %v10839_v17 = vld [vmem:[#allocation13 + $0x38] sm:$0xff]   ;;  %vm1410_vm11 = vsmask.f32 7938  ;;  %s11664_s29 = scalar_lea.vmem %s8786_s27, 256  ;;  %p11669_p1 = scmp.lt.s32.totalorder %s8786_s27, %s8786_s27 }
  0x86   :  { %9768 = vmatpush3.bf16.msra.mxu1 %v10827_v5  ;;  %v126_v18 = vld [vmem:[#allocation7] sm:$0xff]  ;;  %v10837_v19 = vld [vmem:[#allocation4 + $0x8] sm:$0xff]   ;;  %v10840_v20 = vld [vmem:[#allocation4 + $0x10] sm:$0xff]   ;;  %vm1935_vm13 = vsmask.f32 1280  ;;  %p11665_p0 = scmp.ne.s32.totalorder %s8786_s27, %s11664_s29  ;;  %p11670_p2 = scmp.lt.s32.totalorder %s11664_s29, %s11664_s29 }
  0x87   :  { %9736 = vmatpush3.bf16.msra.mxu0 %v10823_v2  ;;  %9769 = vmatprep.subr.bf16.mxu1 %v11731_v0  ;;  %v379_v21 = vpack.c.bf16 %v126_v18, %v126_v18  ;;  %v10841_v22 = vld [vmem:[#allocation4 + $0x18] sm:$0xff]   ;;  %v10842_v23 = vld [vmem:[#allocation4 + $0x20] sm:$0xff]   ;;  %v10843_v24 = vld [vmem:[#allocation4 + $0x28] sm:$0xff]   ;;  %vm2459_vm15 = vsmask.f32 7942 }
  0x88   :  { %9737 = vmatprep.subr.bf16.mxu0 %v10824_v4  ;;  %v10844_v25 = vld [vmem:[#allocation4 + $0x30] sm:$0xff]   ;;  %v10845_v26 = vld [vmem:[#allocation4 + $0x38] sm:$0xff]   ;;  %v10850_v31 = vld [vmem:[#allocation12 + $0x10] sm:$0xff]   ;;  %p11671_p3 = por %p11670_p2, %p11669_p1 }
  0x89   :  { %v10846_v27 = vld [vmem:[#allocation12] sm:$0xff]   ;;  %v10848_v29 = vld [vmem:[#allocation12 + $0x8] sm:$0xff]   ;;  %v10851_v32 = vld [vmem:[#allocation13 + $0x10] sm:$0xff]  }
  0x8a   :  { %9770 = vmatpush3.bf16.msra.mxu1 %v10829_v7  ;;  %v10847_v28 = vld [vmem:[#allocation13] sm:$0xff]   ;;  %v10849_v30 = vld [vmem:[#allocation13 + $0x8] sm:$0xff]   ;;  %v10852_v33 = vld [vmem:[#allocation12 + $0x18] sm:$0xff]   ;;  %p11672_p4 = pnand %p11671_p3, %p11665_p0 }
  0x8b   :  { %9738 = vmatpush3.bf16.msra.mxu0 %v10824_v4  ;;  %9771 = vmatprep.subr.bf16.mxu1 %v11731_v0  ;;  %v10853_v34 = vld [vmem:[#allocation13 + $0x18] sm:$0xff]   ;;  %v10854_v35 = vld [vmem:[#allocation12 + $0x20] sm:$0xff]   ;;  %v10856_v37 = vld [vmem:[#allocation12 + $0x28] sm:$0xff]  }
  0x8c   :  { %9739 = vmatprep.subr.bf16.mxu0 %v10826_v6  ;;  %v10855_v36 = vld [vmem:[#allocation13 + $0x20] sm:$0xff]   ;;  %v10857_v38 = vld [vmem:[#allocation13 + $0x28] sm:$0xff]   ;;  %v10858_v39 = vld [vmem:[#allocation12 + $0x30] sm:$0xff]  }
  0x8d   :  { %v10859_v40 = vld [vmem:[#allocation13 + $0x30] sm:$0xff]   ;;  %v10860_v41 = vld [vmem:[#allocation12 + $0x38] sm:$0xff]   ;;  %vm12023_vm10 = vmand %vm885_vm8, %vm886_vm9  ;;  %vm2984_vm9 = vsmask.f32 2304 }
  0x8e   :  { %9772 = vmatpush3.bf16.msra.mxu1 %v10831_v9  ;;  %v10861_v42 = vld [vmem:[#allocation13 + $0x38] sm:$0xff]   ;;  %vm12093_vm12 = vmand %vm885_vm8, %vm1410_vm11 }
  0x8f   :  { %9740 = vmatpush3.bf16.msra.mxu0 %v10826_v6  ;;  %9773 = vmatprep.subr.bf16.mxu1 %v11731_v0  ;;  %v11927_v43 = vld [vmem:[#allocation10] ss:$0 sm:$0xff]  ;;  %vm12163_vm14 = vmand %vm533_vm1, %vm1935_vm13  ;;  %vm3508_vm13 = vsmask.f32 7946 }
  0x90   :  { %9741 = vmatprep.subr.bf16.mxu0 %v10828_v8  ;;  %vm12235_vm8 = vmand %vm533_vm1, %vm2459_vm15 }
  0x91   :  { %vm12305_vm11 = vmand %vm536_vm2, %vm2984_vm9  ;;  %vm4033_vm9 = vsmask.f32 3328 }
  0x92   :  { %9774 = vmatpush3.bf16.msra.mxu1 %v10833_v12  ;;  %vm12375_vm15 = vmand %vm536_vm2, %vm3508_vm13 }
  0x93   :  { %9742 = vmatpush3.bf16.msra.mxu0 %v10828_v8  ;;  %9775 = vmatprep.subr.bf16.mxu1 %v11731_v0  ;;  %vm12447_vm13 = vmand %vm539_vm3, %vm4033_vm9  ;;  %vm4561_vm9 = vsmask.f32 7950 }
  0x94   :  { %9743 = vmatprep.subr.bf16.mxu0 %v10830_v11 }
  0x96   :  { %9776 = vmatpush3.bf16.msra.mxu1 %v10835_v14 }
  0x97   :  { %9744 = vmatpush3.bf16.msra.mxu0 %v10830_v11  ;;  %9777 = vmatprep.subr.bf16.mxu1 %v11731_v0 }
  0x98   :  { %9745 = vmatprep.subr.bf16.mxu0 %v10832_v13 }
  0x9a   :  { %9778 = vmatpush3.bf16.msra.mxu1 %v10838_v16 }
  0x9b   :  { %9746 = vmatpush3.bf16.msra.mxu0 %v10832_v13  ;;  %9779 = vmatprep.subr.bf16.mxu1 %v11731_v0 }
  0x9c   :  { %9747 = vmatprep.subr.bf16.mxu0 %v10834_v15 }
  0x9e   :  { %9780 = vmatpush3.bf16.msra.mxu1 %v10839_v17 }
  0x9f   :  { %9748 = vmatpush3.bf16.msra.mxu0 %v10834_v15  ;;  %9825 = vmatprep.subr.bf16.mxu1 %v11731_v0 }
  0xa0   :  { %9785 = vmatprep.subr.bf16.mxu0 %v11731_v0 }
  0xa1   :  { %9782 = vmatmul.mubr.bf16.vlgmr.msra.gmra.mrb[0].mxu1 %v379_v21 }
  0xa2   :  { %9750 = vmatmul.mubr.bf16.vlgmr.msra.gmra.mrb[0].mxu0 %v10837_v19  ;;  %9841 = vmatprep.mubr.msk.bf16.mxu1 %vm11732_vm0, %v11731_v0 }
  0xa3   :  { %9753 = vmatprep.mubr.bf16.mxu0 %v10840_v20  ;;  %9786 = vmatpush3.bf16.msra.mxu0 %v10846_v27 }
  0xa4   :  { %9826 = vmatpush3.bf16.msra.mxu1 %v10847_v28  ;;  %9787 = vmatprep.subr.bf16.mxu0 %v11731_v0 }
  0xa5   :  { %9827 = vmatprep.subr.bf16.mxu1 %v11731_v0 }
  0xa7   :  { %9788 = vmatpush3.bf16.msra.mxu0 %v10848_v29 }
  0xa8   :  { %9828 = vmatpush3.bf16.msra.mxu1 %v10849_v30  ;;  %9789 = vmatprep.subr.bf16.mxu0 %v11731_v0 }
  0xa9   :  { %9829 = vmatprep.subr.bf16.mxu1 %v11731_v0 }
  0xaa   :  { %9754 = vmatmul.mubr.bf16.gmra.mrb[4].mxu0 %v10841_v22 }
  0xab   :  { %9757 = vmatprep.mubr.bf16.mxu0 %v10842_v23  ;;  %9790 = vmatpush3.bf16.msra.mxu0 %v10850_v31 }
  0xac   :  { %9830 = vmatpush3.bf16.msra.mxu1 %v10851_v32  ;;  %9791 = vmatprep.subr.bf16.mxu0 %v11731_v0 }
  0xad   :  { %9831 = vmatprep.subr.bf16.mxu1 %v11731_v0 }
  0xaf   :  { %9792 = vmatpush3.bf16.msra.mxu0 %v10852_v33 }
  0xb0   :  { %9832 = vmatpush3.bf16.msra.mxu1 %v10853_v34  ;;  %9793 = vmatprep.subr.bf16.mxu0 %v11731_v0 }
  0xb1   :  { %9833 = vmatprep.subr.bf16.mxu1 %v11731_v0 }
  0xb2   :  { %9758 = vmatmul.mubr.bf16.gmra.mrb[8].mxu0 %v10843_v24 }
  0xb3   :  { %9761 = vmatprep.mubr.bf16.mxu0 %v10844_v25  ;;  %9794 = vmatpush3.bf16.msra.mxu0 %v10854_v35 }
  0xb4   :  { %9834 = vmatpush3.bf16.msra.mxu1 %v10855_v36  ;;  %9795 = vmatprep.subr.bf16.mxu0 %v11731_v0 }
  0xb5   :  { %9835 = vmatprep.subr.bf16.mxu1 %v11731_v0 }
  0xb7   :  { %9796 = vmatpush3.bf16.msra.mxu0 %v10856_v37 }
  0xb8   :  { %9836 = vmatpush3.bf16.msra.mxu1 %v10857_v38  ;;  %9797 = vmatprep.subr.bf16.mxu0 %v11731_v0 }
  0xb9   :  { %9837 = vmatprep.subr.bf16.mxu1 %v11731_v0 }
  0xba   :  { %9762 = vmatmul.mubr.bf16.gmra.mrb[12].mxu0 %v10845_v26 }
  0xbb   :  { %9801 = vmatprep.mubr.msk.bf16.mxu0 %vm11732_vm0, %v11731_v0  ;;  %9798 = vmatpush3.bf16.msra.mxu0 %v10858_v39 }
  0xbc   :  { %9838 = vmatpush3.bf16.msra.mxu1 %v10859_v40  ;;  %9799 = vmatprep.subr.bf16.mxu0 %v11731_v0 }
  0xbd   :  { %9839 = vmatprep.subr.bf16.mxu1 %v11731_v0 }
  0xbf   :  { %9800 = vmatpush3.bf16.msra.mxu0 %v10860_v41 }
  0xc0   :  { %9840 = vmatpush3.bf16.msra.mxu1 %v10861_v42  ;;  %9805 = vmatprep.subr.bf16.mxu0 %v11731_v0 }
  0xc1   :  { %9845 = vmatprep.subr.bf16.mxu1 %v11731_v0 }
 0x174   :  { %v11931_v49 = vpop.f32.mrb[0].mxu1 }
 0x175   :  { %v9751_v44 = vpop.f32.mrb[0].mxu0  ;;  %v9783_v52 = vpop.f32.mrb[1].mxu1  ;;  %v493_v2 = vrot.slane %v11931_v49, 1  ;;  %v494_v6 = vrot.slane %v11931_v49, 2  ;;  %v495_v16 = vrot.slane %v11931_v49, 3  ;;  %v496_v18 = vrot.slane %v11931_v49, 4 }
 0x176   :  { %v308_v45 = vadd.f32 %v9751_v44, %v11927_v43  ;;  %v299_v46 = vpop.f32.mrb[1].mxu0  ;;  %v489_v54 = vpop.f32.mrb[2].mxu1  ;;  %v497_v25 = vrot.slane %v11931_v49, 5  ;;  %v499_v34 = vrot.slane %v11931_v49, 7  ;;  %v498_v35 = vrot.slane %v11931_v49, 6 }
 0x177   :  { %v300_v47 = vadd.f32 %v11927_v43, %v299_v46  ;;  %v9752_v48 = vpop.f32.mrb[2].mxu0  ;;  %v9784_v55 = vpop.f32.mrb[3].mxu1 }
 0x178   :  { %364 = vst [vmem:[#allocation3 + $0x10] sm:$0xff] %v308_v45  ;;  %v311_v50 = vadd.f32 %v9752_v48, %v11927_v43  ;;  %v302_v51 = vpop.f32.mrb[3].mxu0 }
 0x179   :  { %362 = vst [vmem:[#allocation3] sm:$0xff] %v300_v47  ;;  %v303_v53 = vadd.f32 %v11927_v43, %v302_v51 }
 0x17a   :  { %365 = vst [vmem:[#allocation3 + $0x18] sm:$0xff] %v311_v50 }
 0x17b   :  { %363 = vst [vmem:[#allocation3 + $0x8] sm:$0xff] %v303_v53 }
 0x17d   :  { %v9755_v56 = vpop.f32.mrb[4].mxu0 }
 0x17e   :  { %v324_v57 = vadd.f32 %v9755_v56, %v11927_v43  ;;  %v315_v58 = vpop.f32.mrb[5].mxu0 }
 0x17f   :  { %v316_v59 = vadd.f32 %v11927_v43, %v315_v58  ;;  %v9756_v60 = vpop.f32.mrb[6].mxu0  ;;  %v381_v5 = vld [vmem:[#allocation3 + $0x10] sm:$0x1] }
 0x180   :  { %368 = vst [vmem:[#allocation3 + $0x30] sm:$0xff] %v324_v57  ;;  %v327_v61 = vadd.f32 %v9756_v60, %v11927_v43  ;;  %v318_v62 = vpop.f32.mrb[7].mxu0  ;;  %v509_v13 = vadd.f32 %v493_v2, %v381_v5  ;;  %v380_v14 = vld [vmem:[#allocation3] sm:$0x1]  ;;  %v10865_v5 = vld [vmem:[#allocation13 + $0x58] sm:$0xff]  }
 0x181   :  { %366 = vst [vmem:[#allocation3 + $0x20] sm:$0xff] %v316_v59  ;;  %v319_v63 = vadd.f32 %v11927_v43, %v318_v62  ;;  %v508_v20 = vadd.f32 %v11931_v49, %v380_v14  ;;  %v10870_v62 = vld [vmem:[#allocation12] sm:$0xff]   ;;  %v10863_v2 = vld [vmem:[#allocation13 + $0x48] sm:$0xff]   ;;  %v10874_v14 = vld [vmem:[#allocation12 + $0x10] sm:$0xff]  }
 0x182   :  { %369 = vst [vmem:[#allocation3 + $0x38] sm:$0xff] %v327_v61  ;;  %11222 = vtanh.f32 %v509_v13  ;;  %v10862_v61 = vld [vmem:[#allocation13 + $0x40] sm:$0xff]   ;;  %v10873_v13 = vld [vmem:[#allocation13 + $0x8] sm:$0xff]  }
 0x183   :  { %367 = vst [vmem:[#allocation3 + $0x28] sm:$0xff] %v319_v63 }
 0x185   :  { %v9759_v1 = vpop.f32.mrb[8].mxu0 }
 0x186   :  { %v340_v3 = vadd.f32 %v9759_v1, %v11927_v43  ;;  %v331_v4 = vpop.f32.mrb[9].mxu0 }
 0x187   :  { %v332_v7 = vadd.f32 %v11927_v43, %v331_v4  ;;  %v9760_v8 = vpop.f32.mrb[10].mxu0  ;;  %v383_v17 = vld [vmem:[#allocation3 + $0x30] sm:$0x1]  ;;  %v10864_v4 = vld [vmem:[#allocation13 + $0x50] sm:$0xff]  }
 0x188   :  { %372 = vst [vmem:[#allocation3 + $0x50] sm:$0xff] %v340_v3  ;;  %v343_v9 = vadd.f32 %v9760_v8, %v11927_v43  ;;  %v334_v10 = vpop.f32.mrb[11].mxu0  ;;  %v382_v11 = vld [vmem:[#allocation3 + $0x20] sm:$0x1]  ;;  %v511_v26 = vadd.f32 %v495_v16, %v383_v17  ;;  %v10868_v8 = vld [vmem:[#allocation13 + $0x70] sm:$0xff]   ;;  %v10876_v16 = vld [vmem:[#allocation12 + $0x18] sm:$0xff]  }
 0x189   :  { %370 = vst [vmem:[#allocation3 + $0x40] sm:$0xff] %v332_v7  ;;  %v335_v12 = vadd.f32 %v11927_v43, %v334_v10  ;;  %v510_v15 = vadd.f32 %v494_v6, %v382_v11  ;;  %v10872_v3 = vld [vmem:[#allocation12 + $0x8] sm:$0xff]   ;;  %v10866_v6 = vld [vmem:[#allocation13 + $0x60] sm:$0xff]   ;;  %v127_v10 = vld [vmem:[#allocation7 + $0x8] sm:$0xff] }
 0x18a   :  { %373 = vst [vmem:[#allocation3 + $0x58] sm:$0xff] %v343_v9  ;;  %v10867_v7 = vld [vmem:[#allocation13 + $0x68] sm:$0xff]   ;;  %v10869_v9 = vld [vmem:[#allocation13 + $0x78] sm:$0xff]   ;;  %v10871_v11 = vld [vmem:[#allocation13] sm:$0xff]  }
 0x18b   :  { %371 = vst [vmem:[#allocation3 + $0x48] sm:$0xff] %v335_v12  ;;  %11224 = vtanh.f32 %v510_v15  ;;  %v557_v12 = vpack.c.bf16 %v127_v10, %v127_v10  ;;  %v10875_v15 = vld [vmem:[#allocation13 + $0x10] sm:$0xff]   ;;  %v10877_v17 = vld [vmem:[#allocation13 + $0x18] sm:$0xff]  }
 0x18c   :  { %11226 = vtanh.f32 %v508_v20  ;;  %v11223_v37 = vpop.eup %11222  ;;  %v10880_v20 = vld [vmem:[#allocation12 + $0x28] sm:$0xff]  }
 0x18d   :  { %v9763_v19 = vpop.f32.mrb[12].mxu0  ;;  %v532_v42 = vrot.slane %v11223_v37, 7 }
 0x18e   :  { %v356_v21 = vadd.f32 %v9763_v19, %v11927_v43  ;;  %v347_v22 = vpop.f32.mrb[13].mxu0  ;;  %v10879_v19 = vld [vmem:[#allocation13 + $0x20] sm:$0xff]  }
 0x18f   :  { %v348_v23 = vadd.f32 %v11927_v43, %v347_v22  ;;  %v9764_v24 = vpop.f32.mrb[14].mxu0  ;;  %v385_v31 = vld [vmem:[#allocation3 + $0x50] sm:$0x1]  ;;  %v10882_v22 = vld [vmem:[#allocation12 + $0x30] sm:$0xff]  }
 0x190   :  { %376 = vst [vmem:[#allocation3 + $0x70] sm:$0xff] %v356_v21  ;;  %v359_v27 = vadd.f32 %v9764_v24, %v11927_v43  ;;  %v350_v28 = vpop.f32.mrb[15].mxu0  ;;  %v384_v29 = vld [vmem:[#allocation3 + $0x40] sm:$0x1]  ;;  %v513_v33 = vadd.f32 %v497_v25, %v385_v31  ;;  %v10884_v24 = vld [vmem:[#allocation12 + $0x38] sm:$0xff]  }
 0x191   :  { %374 = vst [vmem:[#allocation3 + $0x60] sm:$0xff] %v348_v23  ;;  %v351_v30 = vadd.f32 %v11927_v43, %v350_v28  ;;  %v512_v32 = vadd.f32 %v496_v18, %v384_v29  ;;  %v10878_v18 = vld [vmem:[#allocation12 + $0x20] sm:$0xff]   ;;  %v10881_v21 = vld [vmem:[#allocation13 + $0x28] sm:$0xff]   ;;  %v10883_v23 = vld [vmem:[#allocation13 + $0x30] sm:$0xff]  }
 0x192   :  { %377 = vst [vmem:[#allocation3 + $0x78] sm:$0xff] %v359_v27  ;;  %v10885_v25 = vld [vmem:[#allocation13 + $0x38] sm:$0xff]  }
 0x193   :  { %375 = vst [vmem:[#allocation3 + $0x68] sm:$0xff] %v351_v30  ;;  %11228 = vtanh.f32 %v512_v32  ;;  %v915_v27 = vld [vmem:[#allocation3 + $0x11] sm:$0x1] }
 0x194   :  { %11230 = vtanh.f32 %v511_v26  ;;  %v914_v26 = vld [vmem:[#allocation3 + $0x1] sm:$0x1]  ;;  %v917_v28 = vld [vmem:[#allocation3 + $0x31] sm:$0x1] }
 0x195   :  { %11232 = vtanh.f32 %v513_v33  ;;  %v11225_v40 = vpop.eup %11224 }
 0x196   :  { %v11227_v43 = vpop.eup %11226  ;;  %v535_v44 = vrot.slane %v11225_v40, 6  ;;  %v918_v40 = vld [vmem:[#allocation3 + $0x41] sm:$0x1] }
 0x197   :  { %v387_v36 = vld [vmem:[#allocation3 + $0x70] sm:$0x1]  ;;  %v534_v47 = vsel %vm533_vm1, %v532_v42, %v11227_v43 }
 0x198   :  { %v386_v38 = vld [vmem:[#allocation3 + $0x60] sm:$0x1]  ;;  %v515_v39 = vadd.f32 %v499_v34, %v387_v36  ;;  %v537_v48 = vsel %vm536_vm2, %v535_v44, %v534_v47  ;;  %v919_v47 = vld [vmem:[#allocation3 + $0x51] sm:$0x1] }
 0x199   :  { %v514_v41 = vadd.f32 %v498_v35, %v386_v38  ;;  %v916_v35 = vld [vmem:[#allocation3 + $0x21] sm:$0x1] }
 0x19a   :  { %11234 = vtanh.f32 %v515_v39 }
 0x19b   :  { %11236 = vtanh.f32 %v514_v41 }
 0x19d   :  { %v11229_v45 = vpop.eup %11228 }
 0x19e   :  { %v11231_v46 = vpop.eup %11230  ;;  %v541_v49 = vrot.slane %v11229_v45, 4 }
 0x19f   :  { %v538_v50 = vrot.slane %v11231_v46, 5  ;;  %v11233_v51 = vpop.eup %11232 }
 0x1a0   :  { %v544_v56 = vrot.slane %v11233_v51, 3 }
 0x1a1   :  { %v540_v52 = vsel %vm539_vm3, %v538_v50, %v537_v48  ;;  %v920_v48 = vld [vmem:[#allocation3 + $0x61] sm:$0x1]  ;;  %v921_v50 = vld [vmem:[#allocation3 + $0x71] sm:$0x1] }
 0x1a2   :  { %v543_v54 = vsel %vm542_vm4, %v541_v49, %v540_v52 }
 0x1a3   :  { %v546_v58 = vsel %vm545_vm5, %v544_v56, %v543_v54 }
 0x1a4   :  { %v11235_v53 = vpop.eup %11234 }
 0x1a5   :  { %v11237_v55 = vpop.eup %11236  ;;  %v550_v59 = vrot.slane %v11235_v53, 1 }
 0x1a6   :  { %v547_v57 = vrot.slane %v11237_v55, 2 }
 0x1a8   :  { %v549_v60 = vsel %vm548_vm6, %v547_v57, %v546_v58 }
 0x1a9   :  { %v552_v63 = vsel %vm13055_vm7, %v550_v59, %v549_v60 }
 0x1aa   :  { %v559_v1 = vpack.c.bf16 %v552_v63, %v552_v63 }
 0x1ac   :  { %9802 = vmatmul.mubr.bf16.vlgmr.msra.gmra.mrb[16].mxu0 %v559_v1  ;;  %9842 = vmatmul.mubr.bf16.vlgmr.msra.gmra.mrb[4].mxu1 %v559_v1 }
 0x1ad   :  { %9806 = vmatpush3.bf16.msra.mxu0 %v10862_v61  ;;  %9821 = vmatprep.mubr.msk.bf16.mxu0 %vm11732_vm0, %v11731_v0 }
 0x1ae   :  { %9807 = vmatprep.subr.bf16.mxu0 %v11731_v0  ;;  %9846 = vmatpush3.bf16.msra.mxu1 %v10870_v62 }
 0x1af   :  { %9847 = vmatprep.subr.bf16.mxu1 %v11731_v0  ;;  %9861 = vmatprep.mubr.msk.bf16.mxu1 %vm11732_vm0, %v11731_v0 }
 0x1b1   :  { %9808 = vmatpush3.bf16.msra.mxu0 %v10863_v2 }
 0x1b2   :  { %9809 = vmatprep.subr.bf16.mxu0 %v11731_v0  ;;  %9848 = vmatpush3.bf16.msra.mxu1 %v10872_v3 }
 0x1b3   :  { %9849 = vmatprep.subr.bf16.mxu1 %v11731_v0 }
 0x1b5   :  { %9810 = vmatpush3.bf16.msra.mxu0 %v10864_v4 }
 0x1b6   :  { %9811 = vmatprep.subr.bf16.mxu0 %v11731_v0  ;;  %9850 = vmatpush3.bf16.msra.mxu1 %v10874_v14  ;;  %v10894_v14 = vld [vmem:[#allocation12] sm:$0xff]  }
 0x1b7   :  { %9851 = vmatprep.subr.bf16.mxu1 %v11731_v0 }
 0x1b9   :  { %9812 = vmatpush3.bf16.msra.mxu0 %v10865_v5 }
 0x1ba   :  { %9813 = vmatprep.subr.bf16.mxu0 %v11731_v0  ;;  %9852 = vmatpush3.bf16.msra.mxu1 %v10876_v16  ;;  %v10896_v16 = vld [vmem:[#allocation12 + $0x8] sm:$0xff]  }
 0x1bb   :  { %9853 = vmatprep.subr.bf16.mxu1 %v11731_v0 }
 0x1bd   :  { %9814 = vmatpush3.bf16.msra.mxu0 %v10866_v6 }
 0x1be   :  { %9815 = vmatprep.subr.bf16.mxu0 %v11731_v0  ;;  %9854 = vmatpush3.bf16.msra.mxu1 %v10878_v18 }
 0x1bf   :  { %9855 = vmatprep.subr.bf16.mxu1 %v11731_v0 }
 0x1c1   :  { %9816 = vmatpush3.bf16.msra.mxu0 %v10867_v7 }
 0x1c2   :  { %9817 = vmatprep.subr.bf16.mxu0 %v11731_v0  ;;  %9856 = vmatpush3.bf16.msra.mxu1 %v10880_v20 }
 0x1c3   :  { %9857 = vmatprep.subr.bf16.mxu1 %v11731_v0 }
 0x1c5   :  { %9818 = vmatpush3.bf16.msra.mxu0 %v10868_v8 }
 0x1c6   :  { %9819 = vmatprep.subr.bf16.mxu0 %v11731_v0  ;;  %9858 = vmatpush3.bf16.msra.mxu1 %v10882_v22 }
 0x1c7   :  { %9859 = vmatprep.subr.bf16.mxu1 %v11731_v0 }
 0x1c9   :  { %9820 = vmatpush3.bf16.msra.mxu0 %v10869_v9 }
 0x1ca   :  { %9885 = vmatprep.subr.bf16.mxu0 %v11731_v0  ;;  %9860 = vmatpush3.bf16.msra.mxu1 %v10884_v24  ;;  %v11733_v24 = vmov 1966171168  }
 0x1cb   :  { %9865 = vmatprep.subr.bf16.mxu1 %v11731_v0 }
 0x1cc   :  { %9822 = vmatmul.mubr.bf16.vlgmr.msra.gmra.mrb[16].mxu0 %v557_v12  ;;  %v10886_v12 = vld [vmem:[#allocation13 + $0x40] sm:$0xff]  }
 0x1cd   :  { %9886 = vmatpush3.bf16.msra.mxu0 %v10871_v11  ;;  %9901 = vmatprep.mubr.msk.bf16.mxu0 %vm11732_vm0, %v11731_v0 }
 0x1ce   :  { %9887 = vmatprep.subr.bf16.mxu0 %v11731_v0 }
 0x1d1   :  { %9888 = vmatpush3.bf16.msra.mxu0 %v10873_v13 }
 0x1d2   :  { %9889 = vmatprep.subr.bf16.mxu0 %v11731_v0 }
 0x1d5   :  { %9890 = vmatpush3.bf16.msra.mxu0 %v10875_v15  ;;  %v10887_v15 = vld [vmem:[#allocation13 + $0x48] sm:$0xff]  }
 0x1d6   :  { %9891 = vmatprep.subr.bf16.mxu0 %v11731_v0 }
 0x1d9   :  { %9892 = vmatpush3.bf16.msra.mxu0 %v10877_v17  ;;  %v12002_v17 = vld [vmem:[#allocation15] ss:$0 sm:$0xff] }
 0x1da   :  { %9893 = vmatprep.subr.bf16.mxu0 %v11731_v0 }
 0x1dd   :  { %9894 = vmatpush3.bf16.msra.mxu0 %v10879_v19  ;;  %v10888_v19 = vld [vmem:[#allocation13 + $0x50] sm:$0xff]  }
 0x1de   :  { %9895 = vmatprep.subr.bf16.mxu0 %v11731_v0 }
 0x1e1   :  { %9896 = vmatpush3.bf16.msra.mxu0 %v10881_v21 }
 0x1e2   :  { %9897 = vmatprep.subr.bf16.mxu0 %v11731_v0 }
 0x1e5   :  { %9898 = vmatpush3.bf16.msra.mxu0 %v10883_v23 }
 0x1e6   :  { %9899 = vmatprep.subr.bf16.mxu0 %v11731_v0 }
 0x1e9   :  { %9900 = vmatpush3.bf16.msra.mxu0 %v10885_v25  ;;  %v782_v25 = vunpack.c.l.s4 %v11733_v24  ;;  %v10898_v24 = vld [vmem:[#allocation12 + $0x10] sm:$0xff]  }
 0x1ea   :  { %9905 = vmatprep.subr.bf16.mxu0 %v11731_v0 }
 0x27f   :  { %v1020_v29 = vpop.f32.mrb[4].mxu1 }
 0x280   :  { %v1027_v30 = vrot.slane %v1020_v29, 1  ;;  %v1028_v31 = vrot.slane %v1020_v29, 2  ;;  %v1029_v32 = vrot.slane %v1020_v29, 3  ;;  %v1030_v33 = vrot.slane %v1020_v29, 4  ;;  %v9843_v34 = vpop.f32.mrb[5].mxu1 }
 0x281   :  { %v1031_v36 = vrot.slane %v1020_v29, 5  ;;  %v1042_v37 = vadd.f32 %v1020_v29, %v914_v26  ;;  %v1023_v38 = vpop.f32.mrb[6].mxu1  ;;  %v1032_v39 = vrot.slane %v1020_v29, 6  ;;  %v1033_v45 = vrot.slane %v1020_v29, 7  ;;  %v10891_v34 = vld [vmem:[#allocation13 + $0x68] sm:$0xff]  }
 0x282   :  { %v1043_v41 = vadd.f32 %v1027_v30, %v915_v27  ;;  %v1044_v42 = vadd.f32 %v1028_v31, %v916_v35  ;;  %v1045_v43 = vadd.f32 %v1029_v32, %v917_v28  ;;  %v9844_v44 = vpop.f32.mrb[7].mxu1  ;;  %v1046_v46 = vadd.f32 %v1030_v33, %v918_v40  ;;  %v10889_v27 = vld [vmem:[#allocation13 + $0x58] sm:$0xff]   ;;  %v10890_v30 = vld [vmem:[#allocation13 + $0x60] sm:$0xff]  }
 0x283   :  { %11238 = vtanh.f32 %v1042_v37  ;;  %v1047_v49 = vadd.f32 %v1031_v36, %v919_v47  ;;  %v1048_v51 = vadd.f32 %v1032_v39, %v920_v48  ;;  %v1049_v52 = vadd.f32 %v1033_v45, %v921_v50  ;;  %v10892_v39 = vld [vmem:[#allocation13 + $0x70] sm:$0xff]   ;;  %v10893_v47 = vld [vmem:[#allocation13 + $0x78] sm:$0xff]  }
 0x284   :  { %11240 = vtanh.f32 %v1043_v41  ;;  %v784_v26 = vlaneseq  ;;  %v783_v28 = vunpack.c.0.s8 %v782_v25  ;;  %v11734_v31 = vmov 286326784   ;;  %v10899_v25 = vld [vmem:[#allocation13 + $0x10] sm:$0xff]  }
 0x285   :  { %11242 = vtanh.f32 %v1044_v42  ;;  %v822_v32 = vunpack.c.l.s4 %v11734_v31  ;;  %v10905_v31 = vld [vmem:[#allocation13 + $0x28] sm:$0xff]  }
 0x286   :  { %11244 = vtanh.f32 %v1045_v43  ;;  %v785_v29 = vshrl.u32 %v784_v26, 7  ;;  %v10900_v26 = vld [vmem:[#allocation12 + $0x18] sm:$0xff]  }
 0x287   :  { %11246 = vtanh.f32 %v1046_v46  ;;  %v823_v37 = vunpack.c.0.s8 %v822_v32  ;;  %v10906_v32 = vld [vmem:[#allocation12 + $0x30] sm:$0xff]  }
 0x288   :  { %11248 = vtanh.f32 %v1047_v49  ;;  %v12012_v33 = vsub.s32 %v783_v28, %v785_v29  ;;  %v10902_v28 = vld [vmem:[#allocation12 + $0x20] sm:$0xff]  }
 0x289   :  { %11250 = vtanh.f32 %v1048_v51  ;;  %v12018_v42 = vsub.s32 %v823_v37, %v785_v29  ;;  %v10903_v29 = vld [vmem:[#allocation13 + $0x20] sm:$0xff]   ;;  %v1438_v37 = vld [vmem:[#allocation3 + $0x2] sm:$0x1] }
 0x28a   :  { %11252 = vtanh.f32 %v1049_v52  ;;  %v11095_v52 = vld [vmem:[#allocation13 + $0x20] sm:$0xff]  }
 0x28d   :  { %v11239_v53 = vpop.eup %11238 }
 0x28e   :  { %v11241_v54 = vpop.eup %11240 }
 0x28f   :  { %v11243_v55 = vpop.eup %11242  ;;  %v1066_v56 = vrot.slane %v11241_v54, 7 }
 0x290   :  { %v11245_v57 = vpop.eup %11244  ;;  %v1068_v58 = vrot.slane %v11243_v55, 6 }
 0x291   :  { %v11247_v59 = vpop.eup %11246  ;;  %v1067_v60 = vsel %vm533_vm1, %v1066_v56, %v11239_v53  ;;  %v1070_v61 = vrot.slane %v11245_v57, 5  ;;  %v888_v53 = vld [vmem:[#allocation16] sm:$0x1]  ;;  %v891_v57 = vld [vmem:[#allocation16 + $0x8] sm:$0x1] }
 0x292   :  { %v11249_v62 = vpop.eup %11248  ;;  %v1069_v63 = vsel %vm536_vm2, %v1068_v58, %v1067_v60  ;;  %v1072_v1 = vrot.slane %v11247_v59, 4 }
 0x293   :  { %v11251_v2 = vpop.eup %11250  ;;  %v1071_v3 = vsel %vm539_vm3, %v1070_v61, %v1069_v63  ;;  %v1074_v4 = vrot.slane %v11249_v62, 3  ;;  %v894_v62 = vld [vmem:[#allocation16 + $0x10] sm:$0x1]  ;;  %v900_v63 = vld [vmem:[#allocation16 + $0x20] sm:$0x1] }
 0x294   :  { %v11253_v5 = vpop.eup %11252  ;;  %v1073_v6 = vsel %vm542_vm4, %v1072_v1, %v1071_v3  ;;  %v1076_v7 = vrot.slane %v11251_v2, 2  ;;  %v10895_v1 = vld [vmem:[#allocation13] sm:$0xff]  }
 0x295   :  { %v1075_v8 = vsel %vm545_vm5, %v1074_v4, %v1073_v6  ;;  %v1078_v9 = vrot.slane %v11253_v5, 1  ;;  %v897_v6 = vld [vmem:[#allocation16 + $0x18] sm:$0x1] }
 0x296   :  { %v1077_v10 = vsel %vm548_vm6, %v1076_v7, %v1075_v8  ;;  %v903_v7 = vld [vmem:[#allocation16 + $0x28] sm:$0x1]  ;;  %v906_v8 = vld [vmem:[#allocation16 + $0x30] sm:$0x1] }
 0x297   :  { %v1079_v11 = vsel %vm13055_vm7, %v1078_v9, %v1077_v10 }
 0x298   :  { %v1085_v13 = vpack.c.bf16 %v1079_v11, %v1079_v11 }
 0x29a   :  { %9862 = vmatmul.mubr.bf16.vlgmr.msra.gmra.mrb[8].mxu1 %v1085_v13  ;;  %9902 = vmatmul.mubr.bf16.vlgmr.msra.gmra.mrb[20].mxu0 %v1085_v13 }
 0x29b   :  { %9866 = vmatpush3.bf16.msra.mxu1 %v10886_v12  ;;  %9881 = vmatprep.mubr.msk.bf16.mxu1 %vm11732_vm0, %v11731_v0 }
 0x29c   :  { %9867 = vmatprep.subr.bf16.mxu1 %v11731_v0  ;;  %9906 = vmatpush3.bf16.msra.mxu0 %v10894_v14 }
 0x29d   :  { %9907 = vmatprep.subr.bf16.mxu0 %v11731_v0  ;;  %9921 = vmatprep.mubr.msk.bf16.mxu0 %vm11732_vm0, %v11731_v0 }
 0x29f   :  { %v770_v18 = vpop.f32.mrb[16].mxu0  ;;  %9868 = vmatpush3.bf16.msra.mxu1 %v10887_v15 }
 0x2a0   :  { %v10725_v20 = vadd.f32 %v12002_v17, %v770_v18  ;;  %v9823_v21 = vpop.f32.mrb[17].mxu0  ;;  %9869 = vmatprep.subr.bf16.mxu1 %v11731_v0  ;;  %9908 = vmatpush3.bf16.msra.mxu0 %v10896_v16  ;;  %v909_v16 = vld [vmem:[#allocation16 + $0x38] sm:$0x1] }
 0x2a1   :  { %v773_v22 = vpop.f32.mrb[18].mxu0  ;;  %9909 = vmatprep.subr.bf16.mxu0 %v11731_v0 }
 0x2a2   :  { %11254 = vtanh.f32 %v10725_v20  ;;  %v9824_v23 = vpop.f32.mrb[19].mxu0 }
 0x2a3   :  { %9870 = vmatpush3.bf16.msra.mxu1 %v10888_v19  ;;  %v10897_v23 = vld [vmem:[#allocation13 + $0x8] sm:$0xff]  }
 0x2a4   :  { %9871 = vmatprep.subr.bf16.mxu1 %v11731_v0  ;;  %9910 = vmatpush3.bf16.msra.mxu0 %v10898_v24 }
 0x2a5   :  { %9911 = vmatprep.subr.bf16.mxu0 %v11731_v0 }
 0x2a7   :  { %9872 = vmatpush3.bf16.msra.mxu1 %v10889_v27  ;;  %v10901_v27 = vld [vmem:[#allocation13 + $0x18] sm:$0xff]  }
 0x2a8   :  { %9873 = vmatprep.subr.bf16.mxu1 %v11731_v0  ;;  %9912 = vmatpush3.bf16.msra.mxu0 %v10900_v26  ;;  %v10910_v26 = vld [vmem:[#allocation13 + $0x40] sm:$0xff]  }
 0x2a9   :  { %9913 = vmatprep.subr.bf16.mxu0 %v11731_v0 }
 0x2ab   :  { %9874 = vmatpush3.bf16.msra.mxu1 %v10890_v30  ;;  %v10904_v30 = vld [vmem:[#allocation12 + $0x28] sm:$0xff]  }
 0x2ac   :  { %v11255_v35 = vpop.eup %11254  ;;  %9875 = vmatprep.subr.bf16.mxu1 %v11731_v0  ;;  %9914 = vmatpush3.bf16.msra.mxu0 %v10902_v28  ;;  %v10918_v28 = vld [vmem:[#allocation12] sm:$0xff]  }
 0x2ad   :  { %v779_v36 = vpack.c.bf16 %v11255_v35, %v11255_v35  ;;  %9915 = vmatprep.subr.bf16.mxu0 %v11731_v0  ;;  %v10908_v35 = vld [vmem:[#allocation12 + $0x38] sm:$0xff]  }
 0x2af   :  { %v787_v38 = vrot.slane %v779_v36, %v12012_v33  ;;  %9876 = vmatpush3.bf16.msra.mxu1 %v10891_v34  ;;  %v10907_v34 = vld [vmem:[#allocation13 + $0x30] sm:$0xff]  }
 0x2b0   :  { %9877 = vmatprep.subr.bf16.mxu1 %v11731_v0  ;;  %9916 = vmatpush3.bf16.msra.mxu0 %v10904_v30  ;;  %v10920_v30 = vld [vmem:[#allocation12 + $0x8] sm:$0xff]  }
 0x2b1   :  { %v788_v40 = vcombine.high %v787_v38, %v787_v38  ;;  %v795_v41 = vrot.slane %v787_v38, %v12012_v33  ;;  %9917 = vmatprep.subr.bf16.mxu0 %v11731_v0  ;;  %v1439_v38 = vld [vmem:[#allocation3 + $0x12] sm:$0x1] }
 0x2b3   :  { %v802_v43 = vrot.slane %v788_v40, %v12012_v33  ;;  %v803_v44 = vcombine.high %v795_v41, %v795_v41  ;;  %v806_v45 = vunpack.i.h.s16 %v795_v41  ;;  %v8846_v46 = vpack.i.b16 %v795_v41, %v795_v41  ;;  %9878 = vmatpush3.bf16.msra.mxu1 %v10892_v39  ;;  %v1440_v39 = vld [vmem:[#allocation3 + $0x22] sm:$0x1] }
 0x2b4   :  { %9879 = vmatprep.subr.bf16.mxu1 %v11731_v0  ;;  %9918 = vmatpush3.bf16.msra.mxu0 %v10906_v32  ;;  %v10912_v32 = vld [vmem:[#allocation13 + $0x50] sm:$0xff]  }
 0x2b5   :  { %v804_v48 = vcombine.high %v802_v43, %v802_v43  ;;  %v808_v49 = vunpack.i.h.s16 %v802_v43  ;;  %v810_v50 = vunpack.i.h.s16 %v803_v44  ;;  %v814_v51 = vpack.i.b16 %v806_v45, %v806_v45  ;;  %9919 = vmatprep.subr.bf16.mxu0 %v11731_v0 }
 0x2b6   :  { %v8847_v54 = vpack.i.b16 %v802_v43, %v802_v43  ;;  %v8848_v55 = vpack.i.b16 %v803_v44, %v803_v44  ;;  %v827_v56 = vrot.slane %v8846_v46, %v12018_v42 }
 0x2b7   :  { %v812_v58 = vunpack.i.h.s16 %v804_v48  ;;  %v816_v59 = vpack.i.b16 %v808_v49, %v808_v49  ;;  %v818_v60 = vpack.i.b16 %v810_v50, %v810_v50  ;;  %v8849_v61 = vpack.i.b16 %v804_v48, %v804_v48  ;;  %9880 = vmatpush3.bf16.msra.mxu1 %v10893_v47  ;;  %v1441_v47 = vld [vmem:[#allocation3 + $0x32] sm:$0x1] }
 0x2b8   :  { %v834_v2 = vrot.slane %v814_v51, %v12018_v42  ;;  %v841_v3 = vrot.slane %v8847_v54, %v12018_v42  ;;  %v855_v4 = vrot.slane %v8848_v55, %v12018_v42  ;;  %v889_v5 = vsel %vm12023_vm10, %v827_v56, %v888_v53  ;;  %9945 = vmatprep.subr.bf16.mxu1 %v11731_v0  ;;  %v1442_v53 = vld [vmem:[#allocation3 + $0x42] sm:$0x1] }
 0x2b9   :  { %v820_v9 = vpack.i.b16 %v812_v58, %v812_v58  ;;  %v848_v10 = vrot.slane %v816_v59, %v12018_v42  ;;  %v862_v11 = vrot.slane %v818_v60, %v12018_v42  ;;  %v869_v12 = vrot.slane %v8849_v61, %v12018_v42  ;;  %890 = vst [vmem:[#allocation16] sm:$0x1] %v889_v5  ;;  %v1443_v60 = vld [vmem:[#allocation3 + $0x52] sm:$0x1]  ;;  %v1444_v61 = vld [vmem:[#allocation3 + $0x62] sm:$0x1] }
 0x2ba   :  { %v892_v13 = vsel %vm12023_vm10, %v834_v2, %v891_v57  ;;  %v895_v14 = vsel %vm12023_vm10, %v841_v3, %v894_v62  ;;  %v901_v15 = vsel %vm12023_vm10, %v855_v4, %v900_v63  ;;  %9882 = vmatmul.mubr.bf16.vlgmr.msra.gmra.mrb[8].mxu1 %v779_v36  ;;  %v10909_v36 = vld [vmem:[#allocation13 + $0x38] sm:$0xff]   ;;  %9920 = vmatpush3.bf16.msra.mxu0 %v10908_v35  ;;  %v1445_v63 = vld [vmem:[#allocation3 + $0x72] sm:$0x1] }
 0x2bb   :  { %v876_v18 = vrot.slane %v820_v9, %v12018_v42  ;;  %893 = vst [vmem:[#allocation16 + $0x8] sm:$0x1] %v892_v13  ;;  %896 = vst [vmem:[#allocation16 + $0x10] sm:$0x1] %v895_v14  ;;  %v898_v19 = vsel %vm12023_vm10, %v848_v10, %v897_v6  ;;  %v904_v20 = vsel %vm12023_vm10, %v862_v11, %v903_v7  ;;  %9946 = vmatpush3.bf16.msra.mxu1 %v10895_v1 }
 0x2bc   :  { %902 = vst [vmem:[#allocation16 + $0x20] sm:$0x1] %v901_v15  ;;  %v907_v21 = vsel %vm12023_vm10, %v869_v12, %v906_v8  ;;  %899 = vst [vmem:[#allocation16 + $0x18] sm:$0x1] %v898_v19  ;;  %9947 = vmatprep.subr.bf16.mxu1 %v11731_v0  ;;  %9961 = vmatprep.mubr.msk.bf16.mxu1 %vm11732_vm0, %v11731_v0 }
 0x2bd   :  { %905 = vst [vmem:[#allocation16 + $0x28] sm:$0x1] %v904_v20  ;;  %908 = vst [vmem:[#allocation16 + $0x30] sm:$0x1] %v907_v21  ;;  %v910_v22 = vsel %vm12023_vm10, %v876_v18, %v909_v16  ;;  %9925 = vmatprep.subr.bf16.mxu0 %v11731_v0 }
 0x2be   :  { %911 = vst [vmem:[#allocation16 + $0x38] sm:$0x1] %v910_v22 }
 0x2bf   :  { %9948 = vmatpush3.bf16.msra.mxu1 %v10897_v23 }
 0x2c0   :  { %9949 = vmatprep.subr.bf16.mxu1 %v11731_v0 }
 0x2c3   :  { %9950 = vmatpush3.bf16.msra.mxu1 %v10899_v25 }
 0x2c4   :  { %9951 = vmatprep.subr.bf16.mxu1 %v11731_v0 }
 0x2c7   :  { %9952 = vmatpush3.bf16.msra.mxu1 %v10901_v27 }
 0x2c8   :  { %9953 = vmatprep.subr.bf16.mxu1 %v11731_v0 }
 0x2cb   :  { %9954 = vmatpush3.bf16.msra.mxu1 %v10903_v29  ;;  %v10911_v29 = vld [vmem:[#allocation13 + $0x48] sm:$0xff]  }
 0x2cc   :  { %9955 = vmatprep.subr.bf16.mxu1 %v11731_v0 }
 0x2cf   :  { %9956 = vmatpush3.bf16.msra.mxu1 %v10905_v31 }
 0x2d0   :  { %9957 = vmatprep.subr.bf16.mxu1 %v11731_v0 }
 0x2d3   :  { %9958 = vmatpush3.bf16.msra.mxu1 %v10907_v34 }
 0x2d4   :  { %9959 = vmatprep.subr.bf16.mxu1 %v11731_v0 }
 0x2d7   :  { %9960 = vmatpush3.bf16.msra.mxu1 %v10909_v36 }
 0x2d8   :  { %9965 = vmatprep.subr.bf16.mxu1 %v11731_v0 }
 0x36d   :  { %v1544_v40 = vpop.f32.mrb[20].mxu0 }
 0x36e   :  { %v1551_v41 = vrot.slane %v1544_v40, 1  ;;  %v1552_v43 = vrot.slane %v1544_v40, 2  ;;  %v1553_v44 = vrot.slane %v1544_v40, 3  ;;  %v1554_v45 = vrot.slane %v1544_v40, 4  ;;  %v9903_v46 = vpop.f32.mrb[21].mxu0 }
 0x36f   :  { %v1555_v48 = vrot.slane %v1544_v40, 5  ;;  %v1566_v49 = vadd.f32 %v1544_v40, %v1438_v37  ;;  %v1547_v50 = vpop.f32.mrb[22].mxu0  ;;  %v1556_v51 = vrot.slane %v1544_v40, 6  ;;  %v1557_v58 = vrot.slane %v1544_v40, 7  ;;  %v10915_v40 = vld [vmem:[#allocation13 + $0x68] sm:$0xff]  }
 0x370   :  { %v1567_v54 = vadd.f32 %v1551_v41, %v1439_v38  ;;  %v1568_v55 = vadd.f32 %v1552_v43, %v1440_v39  ;;  %v1569_v56 = vadd.f32 %v1553_v44, %v1441_v47  ;;  %v9904_v57 = vpop.f32.mrb[23].mxu0  ;;  %v1570_v59 = vadd.f32 %v1554_v45, %v1442_v53  ;;  %v10913_v38 = vld [vmem:[#allocation13 + $0x58] sm:$0xff]   ;;  %v10914_v39 = vld [vmem:[#allocation13 + $0x60] sm:$0xff]   ;;  %v10916_v45 = vld [vmem:[#allocation13 + $0x70] sm:$0xff]  }
 0x371   :  { %11256 = vtanh.f32 %v1566_v49  ;;  %v1571_v62 = vadd.f32 %v1555_v48, %v1443_v60  ;;  %v1572_v1 = vadd.f32 %v1556_v51, %v1444_v61  ;;  %v1573_v2 = vadd.f32 %v1557_v58, %v1445_v63  ;;  %v10917_v53 = vld [vmem:[#allocation13 + $0x78] sm:$0xff]   ;;  %v11119_v58 = vld [vmem:[#allocation13 + $0x20] sm:$0xff]  }
 0x372   :  { %11258 = vtanh.f32 %v1567_v54 }
 0x373   :  { %11260 = vtanh.f32 %v1568_v55 }
 0x374   :  { %11262 = vtanh.f32 %v1569_v56 }
 0x375   :  { %11264 = vtanh.f32 %v1570_v59 }
 0x376   :  { %11266 = vtanh.f32 %v1571_v62 }
 0x377   :  { %11268 = vtanh.f32 %v1572_v1 }
 0x378   :  { %11270 = vtanh.f32 %v1573_v2 }
 0x37b   :  { %v11257_v3 = vpop.eup %11256 }
 0x37c   :  { %v11259_v4 = vpop.eup %11258 }
 0x37d   :  { %v11261_v5 = vpop.eup %11260  ;;  %v1590_v6 = vrot.slane %v11259_v4, 7  ;;  %v10919_v4 = vld [vmem:[#allocation13] sm:$0xff]  }
 0x37e   :  { %v11263_v7 = vpop.eup %11262  ;;  %v1592_v8 = vrot.slane %v11261_v5, 6 }
 0x37f   :  { %v11265_v9 = vpop.eup %11264  ;;  %v1591_v10 = vsel %vm533_vm1, %v1590_v6, %v11257_v3  ;;  %v1594_v11 = vrot.slane %v11263_v7, 5  ;;  %v1412_v3 = vld [vmem:[#allocation16] sm:$0x1] }
 0x380   :  { %v11267_v12 = vpop.eup %11266  ;;  %v1593_v13 = vsel %vm536_vm2, %v1592_v8, %v1591_v10  ;;  %v1596_v14 = vrot.slane %v11265_v9, 4 }
 0x381   :  { %v11269_v15 = vpop.eup %11268  ;;  %v1595_v16 = vsel %vm539_vm3, %v1594_v11, %v1593_v13  ;;  %v1598_v18 = vrot.slane %v11267_v12, 3  ;;  %v1415_v13 = vld [vmem:[#allocation16 + $0x8] sm:$0x1] }
 0x382   :  { %v11271_v19 = vpop.eup %11270  ;;  %v1597_v20 = vsel %vm542_vm4, %v1596_v14, %v1595_v16  ;;  %v1600_v21 = vrot.slane %v11269_v15, 2  ;;  %v1418_v14 = vld [vmem:[#allocation16 + $0x10] sm:$0x1]  ;;  %v1424_v15 = vld [vmem:[#allocation16 + $0x20] sm:$0x1] }
 0x383   :  { %v1599_v22 = vsel %vm545_vm5, %v1598_v18, %v1597_v20  ;;  %v1602_v23 = vrot.slane %v11271_v19, 1  ;;  %v1421_v19 = vld [vmem:[#allocation16 + $0x18] sm:$0x1] }
 0x384   :  { %v1601_v24 = vsel %vm548_vm6, %v1600_v21, %v1599_v22  ;;  %v1427_v21 = vld [vmem:[#allocation16 + $0x28] sm:$0x1]  ;;  %v1430_v22 = vld [vmem:[#allocation16 + $0x30] sm:$0x1] }
 0x385   :  { %v1603_v25 = vsel %vm13055_vm7, %v1602_v23, %v1601_v24 }
 0x386   :  { %v1609_v27 = vpack.c.bf16 %v1603_v25, %v1603_v25 }
 0x388   :  { %9922 = vmatmul.mubr.bf16.vlgmr.msra.gmra.mrb[24].mxu0 %v1609_v27  ;;  %9962 = vmatmul.mubr.bf16.vlgmr.msra.gmra.mrb[12].mxu1 %v1609_v27  ;;  %v1433_v27 = vld [vmem:[#allocation16 + $0x38] sm:$0x1] }
 0x389   :  { %9926 = vmatpush3.bf16.msra.mxu0 %v10910_v26  ;;  %9941 = vmatprep.mubr.msk.bf16.mxu0 %vm11732_vm0, %v11731_v0 }
 0x38a   :  { %9927 = vmatprep.subr.bf16.mxu0 %v11731_v0  ;;  %9966 = vmatpush3.bf16.msra.mxu1 %v10918_v28 }
 0x38b   :  { %9967 = vmatprep.subr.bf16.mxu1 %v11731_v0  ;;  %9981 = vmatprep.mubr.msk.bf16.mxu1 %vm11732_vm0, %v11731_v0 }
 0x38d   :  { %v1295_v31 = vpop.f32.mrb[8].mxu1  ;;  %9928 = vmatpush3.bf16.msra.mxu0 %v10911_v29  ;;  %v10921_v29 = vld [vmem:[#allocation13 + $0x8] sm:$0xff]  }
 0x38e   :  { %v10726_v34 = vadd.f32 %v12002_v17, %v1295_v31  ;;  %v9883_v35 = vpop.f32.mrb[9].mxu1  ;;  %9929 = vmatprep.subr.bf16.mxu0 %v11731_v0  ;;  %9968 = vmatpush3.bf16.msra.mxu1 %v10920_v30  ;;  %v10922_v30 = vld [vmem:[#allocation12 + $0x10] sm:$0xff]  }
 0x38f   :  { %v1298_v36 = vpop.f32.mrb[10].mxu1  ;;  %9969 = vmatprep.subr.bf16.mxu1 %v11731_v0  ;;  %v10923_v31 = vld [vmem:[#allocation13 + $0x10] sm:$0xff]   ;;  %v10926_v35 = vld [vmem:[#allocation12 + $0x20] sm:$0xff]  }
 0x390   :  { %11272 = vtanh.f32 %v10726_v34  ;;  %v9884_v37 = vpop.f32.mrb[11].mxu1  ;;  %v10925_v34 = vld [vmem:[#allocation13 + $0x18] sm:$0xff]   ;;  %v10927_v36 = vld [vmem:[#allocation13 + $0x20] sm:$0xff]  }
 0x391   :  { %9930 = vmatpush3.bf16.msra.mxu0 %v10912_v32  ;;  %v10924_v32 = vld [vmem:[#allocation12 + $0x18] sm:$0xff]   ;;  %v10928_v37 = vld [vmem:[#allocation12 + $0x28] sm:$0xff]  }
 0x392   :  { %9931 = vmatprep.subr.bf16.mxu0 %v11731_v0  ;;  %9970 = vmatpush3.bf16.msra.mxu1 %v10922_v30 }
 0x393   :  { %9971 = vmatprep.subr.bf16.mxu1 %v11731_v0 }
 0x395   :  { %9932 = vmatpush3.bf16.msra.mxu0 %v10913_v38  ;;  %v10929_v38 = vld [vmem:[#allocation13 + $0x28] sm:$0xff]  }
 0x396   :  { %9933 = vmatprep.subr.bf16.mxu0 %v11731_v0  ;;  %9972 = vmatpush3.bf16.msra.mxu1 %v10924_v32 }
 0x397   :  { %9973 = vmatprep.subr.bf16.mxu1 %v11731_v0 }
 0x399   :  { %9934 = vmatpush3.bf16.msra.mxu0 %v10914_v39  ;;  %v10930_v39 = vld [vmem:[#allocation12 + $0x30] sm:$0xff]  }
 0x39a   :  { %v11273_v41 = vpop.eup %11272  ;;  %9935 = vmatprep.subr.bf16.mxu0 %v11731_v0  ;;  %9974 = vmatpush3.bf16.msra.mxu1 %v10926_v35 }
 0x39b   :  { %v1304_v43 = vpack.c.bf16 %v11273_v41, %v11273_v41  ;;  %9975 = vmatprep.subr.bf16.mxu1 %v11731_v0  ;;  %v10932_v41 = vld [vmem:[#allocation12 + $0x38] sm:$0xff]  }
 0x39d   :  { %v1312_v44 = vrot.slane %v1304_v43, %v12012_v33  ;;  %9936 = vmatpush3.bf16.msra.mxu0 %v10915_v40  ;;  %v10931_v40 = vld [vmem:[#allocation13 + $0x30] sm:$0xff]  }
 0x39e   :  { %9937 = vmatprep.subr.bf16.mxu0 %v11731_v0  ;;  %9976 = vmatpush3.bf16.msra.mxu1 %v10928_v37  ;;  %v10935_v37 = vld [vmem:[#allocation13 + $0x48] sm:$0xff]  }
 0x39f   :  { %v1313_v46 = vcombine.high %v1312_v44, %v1312_v44  ;;  %v1320_v47 = vrot.slane %v1312_v44, %v12012_v33  ;;  %9977 = vmatprep.subr.bf16.mxu1 %v11731_v0  ;;  %v1963_v44 = vld [vmem:[#allocation3 + $0x3] sm:$0x1] }
 0x3a1   :  { %v1327_v48 = vrot.slane %v1313_v46, %v12012_v33  ;;  %v1328_v49 = vcombine.high %v1320_v47, %v1320_v47  ;;  %v1331_v50 = vunpack.i.h.s16 %v1320_v47  ;;  %v8875_v51 = vpack.i.b16 %v1320_v47, %v1320_v47  ;;  %9938 = vmatpush3.bf16.msra.mxu0 %v10916_v45  ;;  %v1964_v45 = vld [vmem:[#allocation3 + $0x13] sm:$0x1]  ;;  %v1965_v46 = vld [vmem:[#allocation3 + $0x23] sm:$0x1] }
 0x3a2   :  { %9939 = vmatprep.subr.bf16.mxu0 %v11731_v0  ;;  %9978 = vmatpush3.bf16.msra.mxu1 %v10930_v39 }
 0x3a3   :  { %v1329_v54 = vcombine.high %v1327_v48, %v1327_v48  ;;  %v1333_v55 = vunpack.i.h.s16 %v1327_v48  ;;  %v1335_v56 = vunpack.i.h.s16 %v1328_v49  ;;  %v1339_v57 = vpack.i.b16 %v1331_v50, %v1331_v50  ;;  %9979 = vmatprep.subr.bf16.mxu1 %v11731_v0 }
 0x3a4   :  { %v8876_v59 = vpack.i.b16 %v1327_v48, %v1327_v48  ;;  %v8877_v60 = vpack.i.b16 %v1328_v49, %v1328_v49  ;;  %v1352_v61 = vrot.slane %v8875_v51, %v12018_v42 }
 0x3a5   :  { %v1337_v62 = vunpack.i.h.s16 %v1329_v54  ;;  %v1341_v63 = vpack.i.b16 %v1333_v55, %v1333_v55  ;;  %v1343_v1 = vpack.i.b16 %v1335_v56, %v1335_v56  ;;  %v8878_v2 = vpack.i.b16 %v1329_v54, %v1329_v54  ;;  %9940 = vmatpush3.bf16.msra.mxu0 %v10917_v53  ;;  %v1966_v54 = vld [vmem:[#allocation3 + $0x33] sm:$0x1] }
 0x3a6   :  { %v1359_v5 = vrot.slane %v1339_v57, %v12018_v42  ;;  %v1366_v6 = vrot.slane %v8876_v59, %v12018_v42  ;;  %v1380_v7 = vrot.slane %v8877_v60, %v12018_v42  ;;  %v1413_v8 = vsel %vm12093_vm12, %v1352_v61, %v1412_v3  ;;  %10005 = vmatprep.subr.bf16.mxu0 %v11731_v0  ;;  %v1967_v60 = vld [vmem:[#allocation3 + $0x43] sm:$0x1] }
 0x3a7   :  { %v1345_v9 = vpack.i.b16 %v1337_v62, %v1337_v62  ;;  %v1373_v10 = vrot.slane %v1341_v63, %v12018_v42  ;;  %v1387_v11 = vrot.slane %v1343_v1, %v12018_v42  ;;  %v1394_v12 = vrot.slane %v8878_v2, %v12018_v42  ;;  %1414 = vst [vmem:[#allocation16] sm:$0x1] %v1413_v8 }
 0x3a8   :  { %v1416_v16 = vsel %vm12093_vm12, %v1359_v5, %v1415_v13  ;;  %v1419_v18 = vsel %vm12093_vm12, %v1366_v6, %v1418_v14  ;;  %v1425_v20 = vsel %vm12093_vm12, %v1380_v7, %v1424_v15  ;;  %9942 = vmatmul.mubr.bf16.vlgmr.msra.gmra.mrb[24].mxu0 %v1304_v43  ;;  %v10933_v43 = vld [vmem:[#allocation13 + $0x38] sm:$0xff]   ;;  %9980 = vmatpush3.bf16.msra.mxu1 %v10932_v41  ;;  %v1969_v5 = vld [vmem:[#allocation3 + $0x63] sm:$0x1]  ;;  %v1970_v7 = vld [vmem:[#allocation3 + $0x73] sm:$0x1] }
 0x3a9   :  { %v1401_v23 = vrot.slane %v1345_v9, %v12018_v42  ;;  %1417 = vst [vmem:[#allocation16 + $0x8] sm:$0x1] %v1416_v16  ;;  %1420 = vst [vmem:[#allocation16 + $0x10] sm:$0x1] %v1419_v18  ;;  %v1422_v24 = vsel %vm12093_vm12, %v1373_v10, %v1421_v19  ;;  %v1428_v25 = vsel %vm12093_vm12, %v1387_v11, %v1427_v21  ;;  %10006 = vmatpush3.bf16.msra.mxu0 %v10919_v4  ;;  %v1968_v4 = vld [vmem:[#allocation3 + $0x53] sm:$0x1] }
 0x3aa   :  { %1426 = vst [vmem:[#allocation16 + $0x20] sm:$0x1] %v1425_v20  ;;  %v1431_v26 = vsel %vm12093_vm12, %v1394_v12, %v1430_v22  ;;  %1423 = vst [vmem:[#allocation16 + $0x18] sm:$0x1] %v1422_v24  ;;  %10007 = vmatprep.subr.bf16.mxu0 %v11731_v0  ;;  %10021 = vmatprep.mubr.msk.bf16.mxu0 %vm11732_vm0, %v11731_v0 }
 0x3ab   :  { %1429 = vst [vmem:[#allocation16 + $0x28] sm:$0x1] %v1428_v25  ;;  %1432 = vst [vmem:[#allocation16 + $0x30] sm:$0x1] %v1431_v26  ;;  %v1434_v28 = vsel %vm12093_vm12, %v1401_v23, %v1433_v27  ;;  %9985 = vmatprep.subr.bf16.mxu1 %v11731_v0 }
 0x3ac   :  { %1435 = vst [vmem:[#allocation16 + $0x38] sm:$0x1] %v1434_v28 }
 0x3ad   :  { %10008 = vmatpush3.bf16.msra.mxu0 %v10921_v29 }
 0x3ae   :  { %10009 = vmatprep.subr.bf16.mxu0 %v11731_v0 }
 0x3b1   :  { %10010 = vmatpush3.bf16.msra.mxu0 %v10923_v31 }
 0x3b2   :  { %10011 = vmatprep.subr.bf16.mxu0 %v11731_v0 }
 0x3b5   :  { %10012 = vmatpush3.bf16.msra.mxu0 %v10925_v34  ;;  %v10934_v34 = vld [vmem:[#allocation13 + $0x40] sm:$0xff]  }
 0x3b6   :  { %10013 = vmatprep.subr.bf16.mxu0 %v11731_v0 }
 0x3b9   :  { %10014 = vmatpush3.bf16.msra.mxu0 %v10927_v36  ;;  %v10942_v36 = vld [vmem:[#allocation12] sm:$0xff]  }
 0x3ba   :  { %10015 = vmatprep.subr.bf16.mxu0 %v11731_v0 }
 0x3bd   :  { %10016 = vmatpush3.bf16.msra.mxu0 %v10929_v38  ;;  %v10944_v38 = vld [vmem:[#allocation12 + $0x8] sm:$0xff]  }
 0x3be   :  { %10017 = vmatprep.subr.bf16.mxu0 %v11731_v0 }
 0x3c1   :  { %10018 = vmatpush3.bf16.msra.mxu0 %v10931_v40  ;;  %v10936_v40 = vld [vmem:[#allocation13 + $0x50] sm:$0xff]  }
 0x3c2   :  { %10019 = vmatprep.subr.bf16.mxu0 %v11731_v0 }
 0x3c5   :  { %10020 = vmatpush3.bf16.msra.mxu0 %v10933_v43 }
 0x3c6   :  { %10025 = vmatprep.subr.bf16.mxu0 %v11731_v0 }
 0x45b   :  { %v2069_v47 = vpop.f32.mrb[12].mxu1 }
 0x45c   :  { %v2076_v48 = vrot.slane %v2069_v47, 1  ;;  %v2077_v49 = vrot.slane %v2069_v47, 2  ;;  %v2078_v50 = vrot.slane %v2069_v47, 3  ;;  %v2079_v51 = vrot.slane %v2069_v47, 4  ;;  %v9963_v53 = vpop.f32.mrb[13].mxu1 }
 0x45d   :  { %v2080_v55 = vrot.slane %v2069_v47, 5  ;;  %v2091_v56 = vadd.f32 %v2069_v47, %v1963_v44  ;;  %v2072_v57 = vpop.f32.mrb[14].mxu1  ;;  %v2081_v59 = vrot.slane %v2069_v47, 6  ;;  %v2082_v2 = vrot.slane %v2069_v47, 7  ;;  %v10938_v47 = vld [vmem:[#allocation13 + $0x60] sm:$0xff]  }
 0x45e   :  { %v2092_v61 = vadd.f32 %v2076_v48, %v1964_v45  ;;  %v2093_v62 = vadd.f32 %v2077_v49, %v1965_v46  ;;  %v2094_v63 = vadd.f32 %v2078_v50, %v1966_v54  ;;  %v9964_v1 = vpop.f32.mrb[15].mxu1  ;;  %v2095_v3 = vadd.f32 %v2079_v51, %v1967_v60  ;;  %v10937_v46 = vld [vmem:[#allocation13 + $0x58] sm:$0xff]   ;;  %v10939_v48 = vld [vmem:[#allocation13 + $0x68] sm:$0xff]   ;;  %v10940_v51 = vld [vmem:[#allocation13 + $0x70] sm:$0xff]  }
 0x45f   :  { %11274 = vtanh.f32 %v2091_v56  ;;  %v2096_v6 = vadd.f32 %v2080_v55, %v1968_v4  ;;  %v2097_v8 = vadd.f32 %v2081_v59, %v1969_v5  ;;  %v2098_v9 = vadd.f32 %v2082_v2, %v1970_v7  ;;  %v10941_v60 = vld [vmem:[#allocation13 + $0x78] sm:$0xff]   ;;  %v1940_v7 = vld [vmem:[#allocation16 + $0x8] sm:$0x2]  ;;  %v11143_v2 = vld [vmem:[#allocation13 + $0x20] sm:$0xff]  }
 0x460   :  { %11276 = vtanh.f32 %v2092_v61 }
 0x461   :  { %11278 = vtanh.f32 %v2093_v62 }
 0x462   :  { %11280 = vtanh.f32 %v2094_v63 }
 0x463   :  { %11282 = vtanh.f32 %v2095_v3  ;;  %v1937_v3 = vld [vmem:[#allocation16] sm:$0x2] }
 0x464   :  { %11284 = vtanh.f32 %v2096_v6 }
 0x465   :  { %11286 = vtanh.f32 %v2097_v8 }
 0x466   :  { %11288 = vtanh.f32 %v2098_v9 }
 0x469   :  { %v11275_v10 = vpop.eup %11274 }
 0x46a   :  { %v11277_v11 = vpop.eup %11276 }
 0x46b   :  { %v11279_v12 = vpop.eup %11278  ;;  %v2115_v13 = vrot.slane %v11277_v11, 7 }
 0x46c   :  { %v11281_v14 = vpop.eup %11280  ;;  %v2117_v15 = vrot.slane %v11279_v12, 6  ;;  %v1943_v12 = vld [vmem:[#allocation16 + $0x10] sm:$0x2] }
 0x46d   :  { %v11283_v16 = vpop.eup %11282  ;;  %v2116_v18 = vsel %vm533_vm1, %v2115_v13, %v11275_v10  ;;  %v2119_v19 = vrot.slane %v11281_v14, 5  ;;  %v1949_v13 = vld [vmem:[#allocation16 + $0x20] sm:$0x2] }
 0x46e   :  { %v11285_v20 = vpop.eup %11284  ;;  %v2118_v21 = vsel %vm536_vm2, %v2117_v15, %v2116_v18  ;;  %v2121_v22 = vrot.slane %v11283_v16, 4  ;;  %v10943_v14 = vld [vmem:[#allocation13] sm:$0xff]  }
 0x46f   :  { %v11287_v23 = vpop.eup %11286  ;;  %v2120_v24 = vsel %vm539_vm3, %v2119_v19, %v2118_v21  ;;  %v2123_v25 = vrot.slane %v11285_v20, 3  ;;  %v1946_v20 = vld [vmem:[#allocation16 + $0x18] sm:$0x2]  ;;  %v1952_v21 = vld [vmem:[#allocation16 + $0x28] sm:$0x2] }
 0x470   :  { %v11289_v26 = vpop.eup %11288  ;;  %v2122_v27 = vsel %vm542_vm4, %v2121_v22, %v2120_v24  ;;  %v2125_v28 = vrot.slane %v11287_v23, 2  ;;  %v1955_v22 = vld [vmem:[#allocation16 + $0x30] sm:$0x2] }
 0x471   :  { %v2124_v29 = vsel %vm545_vm5, %v2123_v25, %v2122_v27  ;;  %v2127_v30 = vrot.slane %v11289_v26, 1 }
 0x472   :  { %v2126_v31 = vsel %vm548_vm6, %v2125_v28, %v2124_v29 }
 0x473   :  { %v2128_v32 = vsel %vm13055_vm7, %v2127_v30, %v2126_v31  ;;  %v1958_v30 = vld [vmem:[#allocation16 + $0x38] sm:$0x2] }
 0x474   :  { %v2134_v35 = vpack.c.bf16 %v2128_v32, %v2128_v32 }
 0x476   :  { %9982 = vmatmul.mubr.bf16.vlgmr.msra.gmra.mrb[16].mxu1 %v2134_v35  ;;  %10022 = vmatmul.mubr.bf16.vlgmr.msra.gmra.mrb[28].mxu0 %v2134_v35 }
 0x477   :  { %9986 = vmatpush3.bf16.msra.mxu1 %v10934_v34  ;;  %10001 = vmatprep.mubr.msk.bf16.mxu1 %vm11732_vm0, %v11731_v0 }
 0x478   :  { %9987 = vmatprep.subr.bf16.mxu1 %v11731_v0  ;;  %10026 = vmatpush3.bf16.msra.mxu0 %v10942_v36 }
 0x479   :  { %10027 = vmatprep.subr.bf16.mxu0 %v11731_v0  ;;  %10041 = vmatprep.mubr.msk.bf16.mxu0 %vm11732_vm0, %v11731_v0 }
 0x47b   :  { %v1819_v39 = vpop.f32.mrb[24].mxu0  ;;  %9988 = vmatpush3.bf16.msra.mxu1 %v10935_v37  ;;  %v10945_v37 = vld [vmem:[#allocation13 + $0x8] sm:$0xff]  }
 0x47c   :  { %v10727_v41 = vadd.f32 %v12002_v17, %v1819_v39  ;;  %v9943_v43 = vpop.f32.mrb[25].mxu0  ;;  %9989 = vmatprep.subr.bf16.mxu1 %v11731_v0  ;;  %10028 = vmatpush3.bf16.msra.mxu0 %v10944_v38  ;;  %v10946_v38 = vld [vmem:[#allocation12 + $0x10] sm:$0xff]  }
 0x47d   :  { %v1822_v44 = vpop.f32.mrb[26].mxu0  ;;  %10029 = vmatprep.subr.bf16.mxu0 %v11731_v0  ;;  %v10947_v39 = vld [vmem:[#allocation13 + $0x10] sm:$0xff]   ;;  %v10950_v43 = vld [vmem:[#allocation12 + $0x20] sm:$0xff]  }
 0x47e   :  { %11290 = vtanh.f32 %v10727_v41  ;;  %v9944_v45 = vpop.f32.mrb[27].mxu0  ;;  %v10949_v41 = vld [vmem:[#allocation13 + $0x18] sm:$0xff]   ;;  %v10951_v44 = vld [vmem:[#allocation13 + $0x20] sm:$0xff]  }
 0x47f   :  { %9990 = vmatpush3.bf16.msra.mxu1 %v10936_v40  ;;  %v10948_v40 = vld [vmem:[#allocation12 + $0x18] sm:$0xff]   ;;  %v10952_v45 = vld [vmem:[#allocation12 + $0x28] sm:$0xff]  }
 0x480   :  { %9991 = vmatprep.subr.bf16.mxu1 %v11731_v0  ;;  %10030 = vmatpush3.bf16.msra.mxu0 %v10946_v38 }
 0x481   :  { %10031 = vmatprep.subr.bf16.mxu0 %v11731_v0 }
 0x483   :  { %9992 = vmatpush3.bf16.msra.mxu1 %v10937_v46  ;;  %v10953_v46 = vld [vmem:[#allocation13 + $0x28] sm:$0xff]  }
 0x484   :  { %9993 = vmatprep.subr.bf16.mxu1 %v11731_v0  ;;  %10032 = vmatpush3.bf16.msra.mxu0 %v10948_v40 }
 0x485   :  { %10033 = vmatprep.subr.bf16.mxu0 %v11731_v0 }
 0x487   :  { %9994 = vmatpush3.bf16.msra.mxu1 %v10938_v47  ;;  %v10954_v47 = vld [vmem:[#allocation12 + $0x30] sm:$0xff]  }
 0x488   :  { %v11291_v17 = vpop.eup %11290  ;;  %9995 = vmatprep.subr.bf16.mxu1 %v11731_v0  ;;  %10034 = vmatpush3.bf16.msra.mxu0 %v10950_v43 }
 0x489   :  { %v1828_v49 = vpack.c.bf16 %v11291_v17, %v11291_v17  ;;  %10035 = vmatprep.subr.bf16.mxu0 %v11731_v0  ;;  %v10956_v17 = vld [vmem:[#allocation12 + $0x38] sm:$0xff]  }
 0x48b   :  { %v1836_v50 = vrot.slane %v1828_v49, %v12012_v33  ;;  %9996 = vmatpush3.bf16.msra.mxu1 %v10939_v48  ;;  %v10955_v48 = vld [vmem:[#allocation13 + $0x30] sm:$0xff]  }
 0x48c   :  { %9997 = vmatprep.subr.bf16.mxu1 %v11731_v0  ;;  %10036 = vmatpush3.bf16.msra.mxu0 %v10952_v45  ;;  %v10959_v45 = vld [vmem:[#allocation13 + $0x48] sm:$0xff]  }
 0x48d   :  { %v1837_v53 = vcombine.high %v1836_v50, %v1836_v50  ;;  %v1844_v54 = vrot.slane %v1836_v50, %v12012_v33  ;;  %10037 = vmatprep.subr.bf16.mxu0 %v11731_v0  ;;  %v2487_v50 = vld [vmem:[#allocation3 + $0x4] sm:$0x1] }
 0x48f   :  { %v1851_v55 = vrot.slane %v1837_v53, %v12012_v33  ;;  %v1852_v56 = vcombine.high %v1844_v54, %v1844_v54  ;;  %v1855_v57 = vunpack.i.h.s16 %v1844_v54  ;;  %v8904_v59 = vpack.i.b16 %v1844_v54, %v1844_v54  ;;  %9998 = vmatpush3.bf16.msra.mxu1 %v10940_v51  ;;  %v2488_v51 = vld [vmem:[#allocation3 + $0x14] sm:$0x1]  ;;  %v2489_v53 = vld [vmem:[#allocation3 + $0x24] sm:$0x1] }
 0x490   :  { %9999 = vmatprep.subr.bf16.mxu1 %v11731_v0  ;;  %10038 = vmatpush3.bf16.msra.mxu0 %v10954_v47  ;;  %v12218_v47 = vld [vmem:[#allocation15] ss:$0 sm:$0xff] }
 0x491   :  { %v1853_v61 = vcombine.high %v1851_v55, %v1851_v55  ;;  %v1857_v62 = vunpack.i.h.s16 %v1851_v55  ;;  %v1859_v63 = vunpack.i.h.s16 %v1852_v56  ;;  %v1863_v1 = vpack.i.b16 %v1855_v57, %v1855_v57  ;;  %10039 = vmatprep.subr.bf16.mxu0 %v11731_v0 }
 0x492   :  { %v8905_v4 = vpack.i.b16 %v1851_v55, %v1851_v55  ;;  %v8906_v5 = vpack.i.b16 %v1852_v56, %v1852_v56  ;;  %v1876_v6 = vrot.slane %v8904_v59, %v12018_v42 }
 0x493   :  { %v1861_v8 = vunpack.i.h.s16 %v1853_v61  ;;  %v1865_v9 = vpack.i.b16 %v1857_v62, %v1857_v62  ;;  %v1867_v10 = vpack.i.b16 %v1859_v63, %v1859_v63  ;;  %v8907_v11 = vpack.i.b16 %v1853_v61, %v1853_v61  ;;  %10000 = vmatpush3.bf16.msra.mxu1 %v10941_v60  ;;  %v2490_v61 = vld [vmem:[#allocation3 + $0x34] sm:$0x1] }
 0x494   :  { %v1883_v15 = vrot.slane %v1863_v1, %v12018_v42  ;;  %v1890_v16 = vrot.slane %v8905_v4, %v12018_v42  ;;  %v1904_v18 = vrot.slane %v8906_v5, %v12018_v42  ;;  %v1938_v19 = vsel %vm12163_vm14, %v1876_v6, %v1937_v3  ;;  %10065 = vmatprep.subr.bf16.mxu1 %v11731_v0  ;;  %v2491_v4 = vld [vmem:[#allocation3 + $0x44] sm:$0x1] }
 0x495   :  { %v1869_v23 = vpack.i.b16 %v1861_v8, %v1861_v8  ;;  %v1897_v24 = vrot.slane %v1865_v9, %v12018_v42  ;;  %v1911_v25 = vrot.slane %v1867_v10, %v12018_v42  ;;  %v1918_v26 = vrot.slane %v8907_v11, %v12018_v42  ;;  %1939 = vst [vmem:[#allocation16] sm:$0x2] %v1938_v19  ;;  %v2492_v11 = vld [vmem:[#allocation3 + $0x54] sm:$0x1] }
 0x496   :  { %v1941_v27 = vsel %vm12163_vm14, %v1883_v15, %v1940_v7  ;;  %v1944_v28 = vsel %vm12163_vm14, %v1890_v16, %v1943_v12  ;;  %v1950_v29 = vsel %vm12163_vm14, %v1904_v18, %v1949_v13  ;;  %10002 = vmatmul.mubr.bf16.vlgmr.msra.gmra.mrb[16].mxu1 %v1828_v49  ;;  %v10957_v49 = vld [vmem:[#allocation13 + $0x38] sm:$0xff]   ;;  %10040 = vmatpush3.bf16.msra.mxu0 %v10956_v17  ;;  %v2493_v12 = vld [vmem:[#allocation3 + $0x64] sm:$0x1] }
 0x497   :  { %v1925_v31 = vrot.slane %v1869_v23, %v12018_v42  ;;  %1942 = vst [vmem:[#allocation16 + $0x8] sm:$0x2] %v1941_v27  ;;  %1945 = vst [vmem:[#allocation16 + $0x10] sm:$0x2] %v1944_v28  ;;  %v1947_v32 = vsel %vm12163_vm14, %v1897_v24, %v1946_v20  ;;  %v1953_v34 = vsel %vm12163_vm14, %v1911_v25, %v1952_v21  ;;  %10066 = vmatpush3.bf16.msra.mxu1 %v10943_v14  ;;  %v2494_v14 = vld [vmem:[#allocation3 + $0x74] sm:$0x1] }
 0x498   :  { %1951 = vst [vmem:[#allocation16 + $0x20] sm:$0x2] %v1950_v29  ;;  %v1956_v35 = vsel %vm12163_vm14, %v1918_v26, %v1955_v22  ;;  %1948 = vst [vmem:[#allocation16 + $0x18] sm:$0x2] %v1947_v32  ;;  %10067 = vmatprep.subr.bf16.mxu1 %v11731_v0  ;;  %10081 = vmatprep.mubr.msk.bf16.mxu1 %vm11732_vm0, %v11731_v0  ;;  %v10960_v17 = vld [vmem:[#allocation13 + $0x50] sm:$0xff]  }
 0x499   :  { %1954 = vst [vmem:[#allocation16 + $0x28] sm:$0x2] %v1953_v34  ;;  %1957 = vst [vmem:[#allocation16 + $0x30] sm:$0x2] %v1956_v35  ;;  %v1959_v36 = vsel %vm12163_vm14, %v1925_v31, %v1958_v30  ;;  %10045 = vmatprep.subr.bf16.mxu0 %v11731_v0 }
 0x49a   :  { %1960 = vst [vmem:[#allocation16 + $0x38] sm:$0x2] %v1959_v36 }
 0x49b   :  { %10068 = vmatpush3.bf16.msra.mxu1 %v10945_v37 }
 0x49c   :  { %10069 = vmatprep.subr.bf16.mxu1 %v11731_v0 }
 0x49f   :  { %10070 = vmatpush3.bf16.msra.mxu1 %v10947_v39 }
 0x4a0   :  { %10071 = vmatprep.subr.bf16.mxu1 %v11731_v0 }
 0x4a3   :  { %10072 = vmatpush3.bf16.msra.mxu1 %v10949_v41  ;;  %v10958_v41 = vld [vmem:[#allocation13 + $0x40] sm:$0xff]  }
 0x4a4   :  { %10073 = vmatprep.subr.bf16.mxu1 %v11731_v0 }
 0x4a7   :  { %10074 = vmatpush3.bf16.msra.mxu1 %v10951_v44  ;;  %v10966_v44 = vld [vmem:[#allocation12] sm:$0xff]  }
 0x4a8   :  { %10075 = vmatprep.subr.bf16.mxu1 %v11731_v0 }
 0x4ab   :  { %10076 = vmatpush3.bf16.msra.mxu1 %v10953_v46  ;;  %v10968_v46 = vld [vmem:[#allocation12 + $0x8] sm:$0xff]  }
 0x4ac   :  { %10077 = vmatprep.subr.bf16.mxu1 %v11731_v0 }
 0x4af   :  { %10078 = vmatpush3.bf16.msra.mxu1 %v10955_v48 }
 0x4b0   :  { %10079 = vmatprep.subr.bf16.mxu1 %v11731_v0 }
 0x4b3   :  { %10080 = vmatpush3.bf16.msra.mxu1 %v10957_v49 }
 0x4b4   :  { %10085 = vmatprep.subr.bf16.mxu1 %v11731_v0 }
 0x549   :  { %v2593_v54 = vpop.f32.mrb[28].mxu0 }
 0x54a   :  { %v2600_v55 = vrot.slane %v2593_v54, 1  ;;  %v2601_v56 = vrot.slane %v2593_v54, 2  ;;  %v2602_v57 = vrot.slane %v2593_v54, 3  ;;  %v2603_v59 = vrot.slane %v2593_v54, 4  ;;  %v10023_v60 = vpop.f32.mrb[29].mxu0 }
 0x54b   :  { %v2604_v62 = vrot.slane %v2593_v54, 5  ;;  %v2615_v63 = vadd.f32 %v2593_v54, %v2487_v50  ;;  %v2596_v1 = vpop.f32.mrb[30].mxu0  ;;  %v2605_v3 = vrot.slane %v2593_v54, 6  ;;  %v2606_v9 = vrot.slane %v2593_v54, 7  ;;  %v10961_v54 = vld [vmem:[#allocation13 + $0x58] sm:$0xff]  }
 0x54c   :  { %v2616_v5 = vadd.f32 %v2600_v55, %v2488_v51  ;;  %v2617_v6 = vadd.f32 %v2601_v56, %v2489_v53  ;;  %v2618_v7 = vadd.f32 %v2602_v57, %v2490_v61  ;;  %v10024_v8 = vpop.f32.mrb[31].mxu0  ;;  %v2619_v10 = vadd.f32 %v2603_v59, %v2491_v4  ;;  %v10962_v55 = vld [vmem:[#allocation13 + $0x60] sm:$0xff]   ;;  %v10963_v56 = vld [vmem:[#allocation13 + $0x68] sm:$0xff]   ;;  %v10964_v61 = vld [vmem:[#allocation13 + $0x70] sm:$0xff]  }
 0x54d   :  { %11292 = vtanh.f32 %v2615_v63  ;;  %v2620_v13 = vadd.f32 %v2604_v62, %v2492_v11  ;;  %v2621_v15 = vadd.f32 %v2605_v3, %v2493_v12  ;;  %v2622_v16 = vadd.f32 %v2606_v9, %v2494_v14  ;;  %v11167_v11 = vld [vmem:[#allocation13 + $0x20] sm:$0xff]  }
 0x54e   :  { %11294 = vtanh.f32 %v2616_v5 }
 0x54f   :  { %11296 = vtanh.f32 %v2617_v6  ;;  %v10965_v6 = vld [vmem:[#allocation13 + $0x78] sm:$0xff]  }
 0x550   :  { %11298 = vtanh.f32 %v2618_v7 }
 0x551   :  { %11300 = vtanh.f32 %v2619_v10 }
 0x552   :  { %11302 = vtanh.f32 %v2620_v13 }
 0x553   :  { %11304 = vtanh.f32 %v2621_v15 }
 0x554   :  { %11306 = vtanh.f32 %v2622_v16 }
 0x557   :  { %v11293_v18 = vpop.eup %11292 }
 0x558   :  { %v11295_v19 = vpop.eup %11294 }
 0x559   :  { %v11297_v20 = vpop.eup %11296  ;;  %v2639_v21 = vrot.slane %v11295_v19, 7 }
 0x55a   :  { %v11299_v22 = vpop.eup %11298  ;;  %v2641_v23 = vrot.slane %v11297_v20, 6  ;;  %v2461_v20 = vld [vmem:[#allocation16] sm:$0x2] }
 0x55b   :  { %v11301_v24 = vpop.eup %11300  ;;  %v2640_v25 = vsel %vm533_vm1, %v2639_v21, %v11293_v18  ;;  %v2643_v26 = vrot.slane %v11299_v22, 5  ;;  %v10967_v21 = vld [vmem:[#allocation13] sm:$0xff]  }
 0x55c   :  { %v11303_v27 = vpop.eup %11302  ;;  %v2642_v28 = vsel %vm536_vm2, %v2641_v23, %v2640_v25  ;;  %v2645_v29 = vrot.slane %v11301_v24, 4 }
 0x55d   :  { %v11305_v30 = vpop.eup %11304  ;;  %v2644_v31 = vsel %vm539_vm3, %v2643_v26, %v2642_v28  ;;  %v2647_v32 = vrot.slane %v11303_v27, 3 }
 0x55e   :  { %v11307_v34 = vpop.eup %11306  ;;  %v2646_v35 = vsel %vm542_vm4, %v2645_v29, %v2644_v31  ;;  %v2649_v36 = vrot.slane %v11305_v30, 2  ;;  %v2464_v30 = vld [vmem:[#allocation16 + $0x8] sm:$0x2]  ;;  %v2467_v31 = vld [vmem:[#allocation16 + $0x10] sm:$0x2] }
 0x55f   :  { %v2648_v37 = vsel %vm545_vm5, %v2647_v32, %v2646_v35  ;;  %v2651_v38 = vrot.slane %v11307_v34, 1  ;;  %v2473_v32 = vld [vmem:[#allocation16 + $0x20] sm:$0x2] }
 0x560   :  { %v2650_v39 = vsel %vm548_vm6, %v2649_v36, %v2648_v37  ;;  %v2470_v36 = vld [vmem:[#allocation16 + $0x18] sm:$0x2] }
 0x561   :  { %v2652_v40 = vsel %vm13055_vm7, %v2651_v38, %v2650_v39  ;;  %v2476_v38 = vld [vmem:[#allocation16 + $0x28] sm:$0x2]  ;;  %v2479_v39 = vld [vmem:[#allocation16 + $0x30] sm:$0x2] }
 0x562   :  { %v2658_v43 = vpack.c.bf16 %v2652_v40, %v2652_v40 }
 0x564   :  { %10042 = vmatmul.mubr.bf16.vlgmr.msra.gmra.mrb[32].mxu0 %v2658_v43  ;;  %10082 = vmatmul.mubr.bf16.vlgmr.msra.gmra.mrb[20].mxu1 %v2658_v43 }
 0x565   :  { %10046 = vmatpush3.bf16.msra.mxu0 %v10958_v41  ;;  %10061 = vmatprep.mubr.msk.bf16.mxu0 %vm11732_vm0, %v11731_v0 }
 0x566   :  { %10047 = vmatprep.subr.bf16.mxu0 %v11731_v0  ;;  %10086 = vmatpush3.bf16.msra.mxu1 %v10966_v44 }
 0x567   :  { %10087 = vmatprep.subr.bf16.mxu1 %v11731_v0  ;;  %10101 = vmatprep.mubr.msk.bf16.mxu1 %vm11732_vm0, %v11731_v0 }
 0x569   :  { %v2344_v48 = vpop.f32.mrb[16].mxu1  ;;  %10048 = vmatpush3.bf16.msra.mxu0 %v10959_v45  ;;  %v2482_v45 = vld [vmem:[#allocation16 + $0x38] sm:$0x2] }
 0x56a   :  { %v10728_v49 = vadd.f32 %v12218_v47, %v2344_v48  ;;  %v10003_v50 = vpop.f32.mrb[17].mxu1  ;;  %10049 = vmatprep.subr.bf16.mxu0 %v11731_v0  ;;  %10088 = vmatpush3.bf16.msra.mxu1 %v10968_v46  ;;  %v10969_v48 = vld [vmem:[#allocation13 + $0x8] sm:$0xff]  }
 0x56b   :  { %v2347_v51 = vpop.f32.mrb[18].mxu1  ;;  %10089 = vmatprep.subr.bf16.mxu1 %v11731_v0  ;;  %v10972_v50 = vld [vmem:[#allocation12 + $0x18] sm:$0xff]  }
 0x56c   :  { %11308 = vtanh.f32 %v10728_v49  ;;  %v10004_v53 = vpop.f32.mrb[19].mxu1  ;;  %v10971_v49 = vld [vmem:[#allocation13 + $0x10] sm:$0xff]   ;;  %v10973_v51 = vld [vmem:[#allocation13 + $0x18] sm:$0xff]  }
 0x56d   :  { %10050 = vmatpush3.bf16.msra.mxu0 %v10960_v17  ;;  %v10970_v17 = vld [vmem:[#allocation12 + $0x10] sm:$0xff]   ;;  %v10974_v53 = vld [vmem:[#allocation12 + $0x20] sm:$0xff]  }
 0x56e   :  { %10051 = vmatprep.subr.bf16.mxu0 %v11731_v0  ;;  %10090 = vmatpush3.bf16.msra.mxu1 %v10970_v17 }
 0x56f   :  { %10091 = vmatprep.subr.bf16.mxu1 %v11731_v0 }
 0x571   :  { %10052 = vmatpush3.bf16.msra.mxu0 %v10961_v54  ;;  %v10975_v54 = vld [vmem:[#allocation13 + $0x20] sm:$0xff]  }
 0x572   :  { %10053 = vmatprep.subr.bf16.mxu0 %v11731_v0  ;;  %10092 = vmatpush3.bf16.msra.mxu1 %v10972_v50 }
 0x573   :  { %10093 = vmatprep.subr.bf16.mxu1 %v11731_v0 }
 0x575   :  { %10054 = vmatpush3.bf16.msra.mxu0 %v10962_v55  ;;  %v10976_v55 = vld [vmem:[#allocation12 + $0x28] sm:$0xff]  }
 0x576   :  { %v11309_v57 = vpop.eup %11308  ;;  %10055 = vmatprep.subr.bf16.mxu0 %v11731_v0  ;;  %10094 = vmatpush3.bf16.msra.mxu1 %v10974_v53 }
 0x577   :  { %v2353_v59 = vpack.c.bf16 %v11309_v57, %v11309_v57  ;;  %10095 = vmatprep.subr.bf16.mxu1 %v11731_v0  ;;  %v10978_v57 = vld [vmem:[#allocation12 + $0x30] sm:$0xff]  }
 0x579   :  { %v2361_v60 = vrot.slane %v2353_v59, %v12012_v33  ;;  %10056 = vmatpush3.bf16.msra.mxu0 %v10963_v56  ;;  %v10977_v56 = vld [vmem:[#allocation13 + $0x28] sm:$0xff]  }
 0x57a   :  { %10057 = vmatprep.subr.bf16.mxu0 %v11731_v0  ;;  %10096 = vmatpush3.bf16.msra.mxu1 %v10976_v55 }
 0x57b   :  { %v2362_v62 = vcombine.high %v2361_v60, %v2361_v60  ;;  %v2369_v63 = vrot.slane %v2361_v60, %v12012_v33  ;;  %10097 = vmatprep.subr.bf16.mxu1 %v11731_v0  ;;  %v10980_v60 = vld [vmem:[#allocation12 + $0x38] sm:$0xff]  }
 0x57d   :  { %v2376_v1 = vrot.slane %v2362_v62, %v12012_v33  ;;  %v2377_v3 = vcombine.high %v2369_v63, %v2369_v63  ;;  %v2380_v4 = vunpack.i.h.s16 %v2369_v63  ;;  %v8933_v5 = vpack.i.b16 %v2369_v63, %v2369_v63  ;;  %10058 = vmatpush3.bf16.msra.mxu0 %v10964_v61  ;;  %v10981_v61 = vld [vmem:[#allocation13 + $0x38] sm:$0xff]   ;;  %v3012_v62 = vld [vmem:[#allocation3 + $0x5] sm:$0x1]  ;;  %v3013_v63 = vld [vmem:[#allocation3 + $0x15] sm:$0x1] }
 0x57e   :  { %10059 = vmatprep.subr.bf16.mxu0 %v11731_v0  ;;  %10098 = vmatpush3.bf16.msra.mxu1 %v10978_v57  ;;  %v10983_v57 = vld [vmem:[#allocation13 + $0x48] sm:$0xff]  }
 0x57f   :  { %v2378_v7 = vcombine.high %v2376_v1, %v2376_v1  ;;  %v2382_v8 = vunpack.i.h.s16 %v2376_v1  ;;  %v2384_v9 = vunpack.i.h.s16 %v2377_v3  ;;  %v2388_v10 = vpack.i.b16 %v2380_v4, %v2380_v4  ;;  %10099 = vmatprep.subr.bf16.mxu1 %v11731_v0 }
 0x580   :  { %v8934_v12 = vpack.i.b16 %v2376_v1, %v2376_v1  ;;  %v8935_v13 = vpack.i.b16 %v2377_v3, %v2377_v3  ;;  %v2401_v14 = vrot.slane %v8933_v5, %v12018_v42  ;;  %v3014_v1 = vld [vmem:[#allocation3 + $0x25] sm:$0x1] }
 0x581   :  { %v2386_v15 = vunpack.i.h.s16 %v2378_v7  ;;  %v2390_v16 = vpack.i.b16 %v2382_v8, %v2382_v8  ;;  %v2392_v18 = vpack.i.b16 %v2384_v9, %v2384_v9  ;;  %v8936_v19 = vpack.i.b16 %v2378_v7, %v2378_v7  ;;  %10060 = vmatpush3.bf16.msra.mxu0 %v10965_v6  ;;  %v3015_v9 = vld [vmem:[#allocation3 + $0x35] sm:$0x1] }
 0x582   :  { %v2408_v22 = vrot.slane %v2388_v10, %v12018_v42  ;;  %v2415_v23 = vrot.slane %v8934_v12, %v12018_v42  ;;  %v2429_v24 = vrot.slane %v8935_v13, %v12018_v42  ;;  %v2462_v25 = vsel %vm12235_vm8, %v2401_v14, %v2461_v20  ;;  %10125 = vmatprep.subr.bf16.mxu0 %v11731_v0 }
 0x583   :  { %v2394_v26 = vpack.i.b16 %v2386_v15, %v2386_v15  ;;  %v2422_v27 = vrot.slane %v2390_v16, %v12018_v42  ;;  %v2436_v28 = vrot.slane %v2392_v18, %v12018_v42  ;;  %v2443_v29 = vrot.slane %v8936_v19, %v12018_v42  ;;  %2463 = vst [vmem:[#allocation16] sm:$0x2] %v2462_v25  ;;  %v3016_v15 = vld [vmem:[#allocation3 + $0x45] sm:$0x1] }
 0x584   :  { %v2465_v34 = vsel %vm12235_vm8, %v2408_v22, %v2464_v30  ;;  %v2468_v35 = vsel %vm12235_vm8, %v2415_v23, %v2467_v31  ;;  %v2474_v37 = vsel %vm12235_vm8, %v2429_v24, %v2473_v32  ;;  %10062 = vmatmul.mubr.bf16.vlgmr.msra.gmra.mrb[32].mxu0 %v2353_v59  ;;  %v10979_v59 = vld [vmem:[#allocation13 + $0x30] sm:$0xff]   ;;  %10100 = vmatpush3.bf16.msra.mxu1 %v10980_v60  ;;  %v3017_v23 = vld [vmem:[#allocation3 + $0x55] sm:$0x1] }
 0x585   :  { %v2450_v40 = vrot.slane %v2394_v26, %v12018_v42  ;;  %2466 = vst [vmem:[#allocation16 + $0x8] sm:$0x2] %v2465_v34  ;;  %2469 = vst [vmem:[#allocation16 + $0x10] sm:$0x2] %v2468_v35  ;;  %v2471_v41 = vsel %vm12235_vm8, %v2422_v27, %v2470_v36  ;;  %v2477_v43 = vsel %vm12235_vm8, %v2436_v28, %v2476_v38  ;;  %10126 = vmatpush3.bf16.msra.mxu0 %v10967_v21  ;;  %v3018_v24 = vld [vmem:[#allocation3 + $0x65] sm:$0x1] }
 0x586   :  { %2475 = vst [vmem:[#allocation16 + $0x20] sm:$0x2] %v2474_v37  ;;  %v2480_v44 = vsel %vm12235_vm8, %v2443_v29, %v2479_v39  ;;  %2472 = vst [vmem:[#allocation16 + $0x18] sm:$0x2] %v2471_v41  ;;  %10127 = vmatprep.subr.bf16.mxu0 %v11731_v0  ;;  %10141 = vmatprep.mubr.msk.bf16.mxu0 %vm11732_vm0, %v11731_v0  ;;  %v3019_v26 = vld [vmem:[#allocation3 + $0x75] sm:$0x1] }
 0x587   :  { %2478 = vst [vmem:[#allocation16 + $0x28] sm:$0x2] %v2477_v43  ;;  %2481 = vst [vmem:[#allocation16 + $0x30] sm:$0x2] %v2480_v44  ;;  %v2483_v46 = vsel %vm12235_vm8, %v2450_v40, %v2482_v45  ;;  %10105 = vmatprep.subr.bf16.mxu1 %v11731_v0 }
 0x588   :  { %2484 = vst [vmem:[#allocation16 + $0x38] sm:$0x2] %v2483_v46 }
 0x589   :  { %10128 = vmatpush3.bf16.msra.mxu0 %v10969_v48 }
 0x58a   :  { %10129 = vmatprep.subr.bf16.mxu0 %v11731_v0 }
 0x58d   :  { %10130 = vmatpush3.bf16.msra.mxu0 %v10971_v49 }
 0x58e   :  { %10131 = vmatprep.subr.bf16.mxu0 %v11731_v0 }
 0x591   :  { %10132 = vmatpush3.bf16.msra.mxu0 %v10973_v51 }
 0x592   :  { %10133 = vmatprep.subr.bf16.mxu0 %v11731_v0 }
 0x595   :  { %10134 = vmatpush3.bf16.msra.mxu0 %v10975_v54  ;;  %v10982_v54 = vld [vmem:[#allocation13 + $0x40] sm:$0xff]  }
 0x596   :  { %10135 = vmatprep.subr.bf16.mxu0 %v11731_v0 }
 0x599   :  { %10136 = vmatpush3.bf16.msra.mxu0 %v10977_v56  ;;  %v10990_v56 = vld [vmem:[#allocation12] sm:$0xff]  }
 0x59a   :  { %10137 = vmatprep.subr.bf16.mxu0 %v11731_v0 }
 0x59d   :  { %10138 = vmatpush3.bf16.msra.mxu0 %v10979_v59  ;;  %v10992_v59 = vld [vmem:[#allocation12 + $0x8] sm:$0xff]  }
 0x59e   :  { %10139 = vmatprep.subr.bf16.mxu0 %v11731_v0 }
 0x5a1   :  { %10140 = vmatpush3.bf16.msra.mxu0 %v10981_v61  ;;  %v10984_v61 = vld [vmem:[#allocation13 + $0x50] sm:$0xff]  }
 0x5a2   :  { %10145 = vmatprep.subr.bf16.mxu0 %v11731_v0 }
 0x637   :  { %v3118_v3 = vpop.f32.mrb[20].mxu1 }
 0x638   :  { %v3125_v4 = vrot.slane %v3118_v3, 1  ;;  %v3126_v5 = vrot.slane %v3118_v3, 2  ;;  %v3127_v6 = vrot.slane %v3118_v3, 3  ;;  %v3128_v7 = vrot.slane %v3118_v3, 4  ;;  %v10083_v8 = vpop.f32.mrb[21].mxu1 }
 0x639   :  { %v3129_v10 = vrot.slane %v3118_v3, 5  ;;  %v3140_v12 = vadd.f32 %v3118_v3, %v3012_v62  ;;  %v3121_v13 = vpop.f32.mrb[22].mxu1  ;;  %v3130_v14 = vrot.slane %v3118_v3, 6  ;;  %v3131_v21 = vrot.slane %v3118_v3, 7 }
 0x63a   :  { %v3141_v16 = vadd.f32 %v3125_v4, %v3013_v63  ;;  %v3142_v18 = vadd.f32 %v3126_v5, %v3014_v1  ;;  %v3143_v19 = vadd.f32 %v3127_v6, %v3015_v9  ;;  %v10084_v20 = vpop.f32.mrb[23].mxu1  ;;  %v3144_v22 = vadd.f32 %v3128_v7, %v3016_v15  ;;  %v10985_v4 = vld [vmem:[#allocation13 + $0x58] sm:$0xff]   ;;  %v10986_v5 = vld [vmem:[#allocation13 + $0x60] sm:$0xff]   ;;  %v10987_v6 = vld [vmem:[#allocation13 + $0x68] sm:$0xff]  }
 0x63b   :  { %11310 = vtanh.f32 %v3140_v12  ;;  %v3145_v25 = vadd.f32 %v3129_v10, %v3017_v23  ;;  %v3146_v27 = vadd.f32 %v3130_v14, %v3018_v24  ;;  %v3147_v28 = vadd.f32 %v3131_v21, %v3019_v26  ;;  %v10988_v10 = vld [vmem:[#allocation13 + $0x70] sm:$0xff]   ;;  %v11191_v24 = vld [vmem:[#allocation13 + $0x20] sm:$0xff]  }
 0x63c   :  { %11312 = vtanh.f32 %v3141_v16 }
 0x63d   :  { %11314 = vtanh.f32 %v3142_v18 }
 0x63e   :  { %11316 = vtanh.f32 %v3143_v19  ;;  %v10989_v19 = vld [vmem:[#allocation13 + $0x78] sm:$0xff]  }
 0x63f   :  { %11318 = vtanh.f32 %v3144_v22 }
 0x640   :  { %11320 = vtanh.f32 %v3145_v25  ;;  %v2986_v25 = vld [vmem:[#allocation16] sm:$0x4] }
 0x641   :  { %11322 = vtanh.f32 %v3146_v27 }
 0x642   :  { %11324 = vtanh.f32 %v3147_v28 }
 0x645   :  { %v11311_v29 = vpop.eup %11310 }
 0x646   :  { %v11313_v30 = vpop.eup %11312 }
 0x647   :  { %v11315_v31 = vpop.eup %11314  ;;  %v3164_v32 = vrot.slane %v11313_v30, 7 }
 0x648   :  { %v11317_v34 = vpop.eup %11316  ;;  %v3166_v35 = vrot.slane %v11315_v31, 6 }
 0x649   :  { %v11319_v36 = vpop.eup %11318  ;;  %v3165_v37 = vsel %vm533_vm1, %v3164_v32, %v11311_v29  ;;  %v3168_v38 = vrot.slane %v11317_v34, 5  ;;  %v2989_v29 = vld [vmem:[#allocation16 + $0x8] sm:$0x4] }
 0x64a   :  { %v11321_v39 = vpop.eup %11320  ;;  %v3167_v40 = vsel %vm536_vm2, %v3166_v35, %v3165_v37  ;;  %v3170_v41 = vrot.slane %v11319_v36, 4  ;;  %v2992_v35 = vld [vmem:[#allocation16 + $0x10] sm:$0x4]  ;;  %v2998_v36 = vld [vmem:[#allocation16 + $0x20] sm:$0x4] }
 0x64b   :  { %v11323_v43 = vpop.eup %11322  ;;  %v3169_v44 = vsel %vm539_vm3, %v3168_v38, %v3167_v40  ;;  %v3172_v45 = vrot.slane %v11321_v39, 3  ;;  %v10991_v37 = vld [vmem:[#allocation13] sm:$0xff]  }
 0x64c   :  { %v11325_v46 = vpop.eup %11324  ;;  %v3171_v48 = vsel %vm542_vm4, %v3170_v41, %v3169_v44  ;;  %v3174_v17 = vrot.slane %v11323_v43, 2  ;;  %v2995_v43 = vld [vmem:[#allocation16 + $0x18] sm:$0x4]  ;;  %v3001_v44 = vld [vmem:[#allocation16 + $0x28] sm:$0x4] }
 0x64d   :  { %v3173_v49 = vsel %vm545_vm5, %v3172_v45, %v3171_v48  ;;  %v3176_v50 = vrot.slane %v11325_v46, 1  ;;  %v3004_v45 = vld [vmem:[#allocation16 + $0x30] sm:$0x4] }
 0x64e   :  { %v3175_v51 = vsel %vm548_vm6, %v3174_v17, %v3173_v49 }
 0x64f   :  { %v3177_v53 = vsel %vm13055_vm7, %v3176_v50, %v3175_v51 }
 0x650   :  { %v3183_v55 = vpack.c.bf16 %v3177_v53, %v3177_v53 }
 0x652   :  { %10102 = vmatmul.mubr.bf16.vlgmr.msra.gmra.mrb[24].mxu1 %v3183_v55  ;;  %10142 = vmatmul.mubr.bf16.vlgmr.msra.gmra.mrb[36].mxu0 %v3183_v55 }
 0x653   :  { %10106 = vmatpush3.bf16.msra.mxu1 %v10982_v54  ;;  %10121 = vmatprep.mubr.msk.bf16.mxu1 %vm11732_vm0, %v11731_v0  ;;  %v3007_v54 = vld [vmem:[#allocation16 + $0x38] sm:$0x4] }
 0x654   :  { %10107 = vmatprep.subr.bf16.mxu1 %v11731_v0  ;;  %10146 = vmatpush3.bf16.msra.mxu0 %v10990_v56 }
 0x655   :  { %10147 = vmatprep.subr.bf16.mxu0 %v11731_v0  ;;  %10161 = vmatprep.mubr.msk.bf16.mxu0 %vm11732_vm0, %v11731_v0 }
 0x657   :  { %v2868_v60 = vpop.f32.mrb[32].mxu0  ;;  %10108 = vmatpush3.bf16.msra.mxu1 %v10983_v57 }
 0x658   :  { %v10729_v62 = vadd.f32 %v12218_v47, %v2868_v60  ;;  %v10063_v63 = vpop.f32.mrb[33].mxu0  ;;  %10109 = vmatprep.subr.bf16.mxu1 %v11731_v0  ;;  %10148 = vmatpush3.bf16.msra.mxu0 %v10992_v59 }
 0x659   :  { %v2871_v1 = vpop.f32.mrb[34].mxu0  ;;  %10149 = vmatprep.subr.bf16.mxu0 %v11731_v0  ;;  %v10995_v63 = vld [vmem:[#allocation13 + $0x10] sm:$0xff]  }
 0x65a   :  { %11326 = vtanh.f32 %v10729_v62  ;;  %v10064_v3 = vpop.f32.mrb[35].mxu0  ;;  %v10994_v62 = vld [vmem:[#allocation12 + $0x10] sm:$0xff]   ;;  %v10996_v1 = vld [vmem:[#allocation12 + $0x18] sm:$0xff]  }
 0x65b   :  { %10110 = vmatpush3.bf16.msra.mxu1 %v10984_v61  ;;  %v10993_v61 = vld [vmem:[#allocation13 + $0x8] sm:$0xff]   ;;  %v10997_v3 = vld [vmem:[#allocation13 + $0x18] sm:$0xff]  }
 0x65c   :  { %10111 = vmatprep.subr.bf16.mxu1 %v11731_v0  ;;  %10150 = vmatpush3.bf16.msra.mxu0 %v10994_v62 }
 0x65d   :  { %10151 = vmatprep.subr.bf16.mxu0 %v11731_v0 }
 0x65f   :  { %10112 = vmatpush3.bf16.msra.mxu1 %v10985_v4  ;;  %v10998_v4 = vld [vmem:[#allocation12 + $0x20] sm:$0xff]  }
 0x660   :  { %10113 = vmatprep.subr.bf16.mxu1 %v11731_v0  ;;  %10152 = vmatpush3.bf16.msra.mxu0 %v10996_v1 }
 0x661   :  { %10153 = vmatprep.subr.bf16.mxu0 %v11731_v0 }
 0x663   :  { %10114 = vmatpush3.bf16.msra.mxu1 %v10986_v5  ;;  %v10999_v5 = vld [vmem:[#allocation13 + $0x20] sm:$0xff]  }
 0x664   :  { %v11327_v7 = vpop.eup %11326  ;;  %10115 = vmatprep.subr.bf16.mxu1 %v11731_v0  ;;  %10154 = vmatpush3.bf16.msra.mxu0 %v10998_v4 }
 0x665   :  { %v2877_v8 = vpack.c.bf16 %v11327_v7, %v11327_v7  ;;  %10155 = vmatprep.subr.bf16.mxu0 %v11731_v0  ;;  %v11001_v7 = vld [vmem:[#allocation13 + $0x28] sm:$0xff]  }
 0x667   :  { %v2885_v9 = vrot.slane %v2877_v8, %v12012_v33  ;;  %10116 = vmatpush3.bf16.msra.mxu1 %v10987_v6  ;;  %v11000_v6 = vld [vmem:[#allocation12 + $0x28] sm:$0xff]  }
 0x668   :  { %10117 = vmatprep.subr.bf16.mxu1 %v11731_v0  ;;  %10156 = vmatpush3.bf16.msra.mxu0 %v11000_v6  ;;  %v11006_v6 = vld [vmem:[#allocation13 + $0x40] sm:$0xff]  }
 0x669   :  { %v2886_v12 = vcombine.high %v2885_v9, %v2885_v9  ;;  %v2893_v13 = vrot.slane %v2885_v9, %v12012_v33  ;;  %10157 = vmatprep.subr.bf16.mxu0 %v11731_v0  ;;  %v11003_v9 = vld [vmem:[#allocation13 + $0x30] sm:$0xff]  }
 0x66b   :  { %v2900_v14 = vrot.slane %v2886_v12, %v12012_v33  ;;  %v2901_v15 = vcombine.high %v2893_v13, %v2893_v13  ;;  %v2904_v16 = vunpack.i.h.s16 %v2893_v13  ;;  %v8962_v18 = vpack.i.b16 %v2893_v13, %v2893_v13  ;;  %10118 = vmatpush3.bf16.msra.mxu1 %v10988_v10  ;;  %v11004_v10 = vld [vmem:[#allocation12 + $0x38] sm:$0xff]   ;;  %v3536_v13 = vld [vmem:[#allocation3 + $0x6] sm:$0x1] }
 0x66c   :  { %10119 = vmatprep.subr.bf16.mxu1 %v11731_v0  ;;  %v11005_v12 = vld [vmem:[#allocation13 + $0x38] sm:$0xff]  }
 0x66d   :  { %v2902_v20 = vcombine.high %v2900_v14, %v2900_v14  ;;  %v2906_v21 = vunpack.i.h.s16 %v2900_v14  ;;  %v2908_v22 = vunpack.i.h.s16 %v2901_v15  ;;  %v2912_v23 = vpack.i.b16 %v2904_v16, %v2904_v16 }
 0x66e   :  { %v8963_v26 = vpack.i.b16 %v2900_v14, %v2900_v14  ;;  %v8964_v27 = vpack.i.b16 %v2901_v15, %v2901_v15  ;;  %v2925_v28 = vrot.slane %v8962_v18, %v12018_v42  ;;  %v3537_v14 = vld [vmem:[#allocation3 + $0x16] sm:$0x1]  ;;  %v3538_v15 = vld [vmem:[#allocation3 + $0x26] sm:$0x1] }
 0x66f   :  { %v2910_v30 = vunpack.i.h.s16 %v2902_v20  ;;  %v2914_v31 = vpack.i.b16 %v2906_v21, %v2906_v21  ;;  %v2916_v32 = vpack.i.b16 %v2908_v22, %v2908_v22  ;;  %v8965_v34 = vpack.i.b16 %v2902_v20, %v2902_v20  ;;  %10120 = vmatpush3.bf16.msra.mxu1 %v10989_v19 }
 0x670   :  { %v2932_v38 = vrot.slane %v2912_v23, %v12018_v42  ;;  %v2939_v39 = vrot.slane %v8963_v26, %v12018_v42  ;;  %v2953_v40 = vrot.slane %v8964_v27, %v12018_v42  ;;  %v2987_v41 = vsel %vm12305_vm11, %v2925_v28, %v2986_v25  ;;  %10185 = vmatprep.subr.bf16.mxu1 %v11731_v0  ;;  %v3539_v23 = vld [vmem:[#allocation3 + $0x36] sm:$0x1] }
 0x671   :  { %v2918_v46 = vpack.i.b16 %v2910_v30, %v2910_v30  ;;  %v2946_v48 = vrot.slane %v2914_v31, %v12018_v42  ;;  %v2960_v17 = vrot.slane %v2916_v32, %v12018_v42  ;;  %v2967_v49 = vrot.slane %v8965_v34, %v12018_v42  ;;  %2988 = vst [vmem:[#allocation16] sm:$0x4] %v2987_v41 }
 0x672   :  { %v2990_v50 = vsel %vm12305_vm11, %v2932_v38, %v2989_v29  ;;  %v2993_v51 = vsel %vm12305_vm11, %v2939_v39, %v2992_v35  ;;  %v2999_v53 = vsel %vm12305_vm11, %v2953_v40, %v2998_v36  ;;  %10122 = vmatmul.mubr.bf16.vlgmr.msra.gmra.mrb[24].mxu1 %v2877_v8  ;;  %v11002_v8 = vld [vmem:[#allocation12 + $0x30] sm:$0xff]   ;;  %v3543_v40 = vld [vmem:[#allocation3 + $0x76] sm:$0x1] }
 0x673   :  { %v2974_v55 = vrot.slane %v2918_v46, %v12018_v42  ;;  %2991 = vst [vmem:[#allocation16 + $0x8] sm:$0x4] %v2990_v50  ;;  %2994 = vst [vmem:[#allocation16 + $0x10] sm:$0x4] %v2993_v51  ;;  %v2996_v56 = vsel %vm12305_vm11, %v2946_v48, %v2995_v43  ;;  %v3002_v57 = vsel %vm12305_vm11, %v2960_v17, %v3001_v44  ;;  %10186 = vmatpush3.bf16.msra.mxu1 %v10991_v37  ;;  %v3540_v29 = vld [vmem:[#allocation3 + $0x46] sm:$0x1] }
 0x674   :  { %3000 = vst [vmem:[#allocation16 + $0x20] sm:$0x4] %v2999_v53  ;;  %v3005_v59 = vsel %vm12305_vm11, %v2967_v49, %v3004_v45  ;;  %2997 = vst [vmem:[#allocation16 + $0x18] sm:$0x4] %v2996_v56  ;;  %10187 = vmatprep.subr.bf16.mxu1 %v11731_v0  ;;  %10201 = vmatprep.mubr.msk.bf16.mxu1 %vm11732_vm0, %v11731_v0  ;;  %v3541_v37 = vld [vmem:[#allocation3 + $0x56] sm:$0x1] }
 0x675   :  { %3003 = vst [vmem:[#allocation16 + $0x28] sm:$0x4] %v3002_v57  ;;  %3006 = vst [vmem:[#allocation16 + $0x30] sm:$0x4] %v3005_v59  ;;  %v3008_v60 = vsel %vm12305_vm11, %v2974_v55, %v3007_v54  ;;  %10158 = vmatpush3.bf16.msra.mxu0 %v11002_v8  ;;  %v3542_v38 = vld [vmem:[#allocation3 + $0x66] sm:$0x1] }
 0x676   :  { %3009 = vst [vmem:[#allocation16 + $0x38] sm:$0x4] %v3008_v60  ;;  %10159 = vmatprep.subr.bf16.mxu0 %v11731_v0  ;;  %v11014_v8 = vld [vmem:[#allocation12] sm:$0xff]  }
 0x677   :  { %10188 = vmatpush3.bf16.msra.mxu1 %v10993_v61 }
 0x678   :  { %10189 = vmatprep.subr.bf16.mxu1 %v11731_v0 }
 0x679   :  { %10160 = vmatpush3.bf16.msra.mxu0 %v11004_v10  ;;  %v11016_v10 = vld [vmem:[#allocation12 + $0x8] sm:$0xff]  }
 0x67a   :  { %10165 = vmatprep.subr.bf16.mxu0 %v11731_v0 }
 0x67b   :  { %10190 = vmatpush3.bf16.msra.mxu1 %v10995_v63 }
 0x67c   :  { %10191 = vmatprep.subr.bf16.mxu1 %v11731_v0 }
 0x67f   :  { %10192 = vmatpush3.bf16.msra.mxu1 %v10997_v3 }
 0x680   :  { %10193 = vmatprep.subr.bf16.mxu1 %v11731_v0 }
 0x683   :  { %10194 = vmatpush3.bf16.msra.mxu1 %v10999_v5 }
 0x684   :  { %10195 = vmatprep.subr.bf16.mxu1 %v11731_v0 }
 0x687   :  { %10196 = vmatpush3.bf16.msra.mxu1 %v11001_v7 }
 0x688   :  { %10197 = vmatprep.subr.bf16.mxu1 %v11731_v0 }
 0x68b   :  { %10198 = vmatpush3.bf16.msra.mxu1 %v11003_v9  ;;  %v11007_v9 = vld [vmem:[#allocation13 + $0x48] sm:$0xff]  }
 0x68c   :  { %10199 = vmatprep.subr.bf16.mxu1 %v11731_v0 }
 0x68f   :  { %10200 = vmatpush3.bf16.msra.mxu1 %v11005_v12 }
 0x690   :  { %10205 = vmatprep.subr.bf16.mxu1 %v11731_v0 }
 0x725   :  { %v3642_v16 = vpop.f32.mrb[36].mxu0 }
 0x726   :  { %v3649_v18 = vrot.slane %v3642_v16, 1  ;;  %v3650_v19 = vrot.slane %v3642_v16, 2  ;;  %v3651_v20 = vrot.slane %v3642_v16, 3  ;;  %v3652_v21 = vrot.slane %v3642_v16, 4  ;;  %v10143_v22 = vpop.f32.mrb[37].mxu0 }
 0x727   :  { %v3653_v25 = vrot.slane %v3642_v16, 5  ;;  %v3664_v26 = vadd.f32 %v3642_v16, %v3536_v13  ;;  %v3645_v27 = vpop.f32.mrb[38].mxu0  ;;  %v3654_v28 = vrot.slane %v3642_v16, 6  ;;  %v3655_v35 = vrot.slane %v3642_v16, 7  ;;  %v11008_v13 = vld [vmem:[#allocation13 + $0x50] sm:$0xff]  }
 0x728   :  { %v3665_v30 = vadd.f32 %v3649_v18, %v3537_v14  ;;  %v3666_v31 = vadd.f32 %v3650_v19, %v3538_v15  ;;  %v3667_v32 = vadd.f32 %v3651_v20, %v3539_v23  ;;  %v10144_v34 = vpop.f32.mrb[39].mxu0  ;;  %v3668_v36 = vadd.f32 %v3652_v21, %v3540_v29  ;;  %v11009_v19 = vld [vmem:[#allocation13 + $0x58] sm:$0xff]   ;;  %v11010_v20 = vld [vmem:[#allocation13 + $0x60] sm:$0xff]   ;;  %v11011_v21 = vld [vmem:[#allocation13 + $0x68] sm:$0xff]  }
 0x729   :  { %11328 = vtanh.f32 %v3664_v26  ;;  %v3669_v39 = vadd.f32 %v3653_v25, %v3541_v37  ;;  %v3670_v41 = vadd.f32 %v3654_v28, %v3542_v38  ;;  %v3671_v43 = vadd.f32 %v3655_v35, %v3543_v40  ;;  %v11012_v25 = vld [vmem:[#allocation13 + $0x70] sm:$0xff]   ;;  %v11213_v38 = vld [vmem:[#allocation12 + $0x38] sm:$0xff]  }
 0x72a   :  { %11330 = vtanh.f32 %v3665_v30 }
 0x72b   :  { %11332 = vtanh.f32 %v3666_v31 }
 0x72c   :  { %11334 = vtanh.f32 %v3667_v32  ;;  %v11013_v32 = vld [vmem:[#allocation13 + $0x78] sm:$0xff]  }
 0x72d   :  { %11336 = vtanh.f32 %v3668_v36 }
 0x72e   :  { %11338 = vtanh.f32 %v3669_v39 }
 0x72f   :  { %11340 = vtanh.f32 %v3670_v41 }
 0x730   :  { %11342 = vtanh.f32 %v3671_v43 }
 0x733   :  { %v11329_v44 = vpop.eup %11328 }
 0x734   :  { %v11331_v45 = vpop.eup %11330 }
 0x735   :  { %v11333_v46 = vpop.eup %11332  ;;  %v3688_v48 = vrot.slane %v11331_v45, 7 }
 0x736   :  { %v11335_v17 = vpop.eup %11334  ;;  %v3690_v49 = vrot.slane %v11333_v46, 6 }
 0x737   :  { %v11337_v50 = vpop.eup %11336  ;;  %v3689_v51 = vsel %vm533_vm1, %v3688_v48, %v11329_v44  ;;  %v3692_v53 = vrot.slane %v11335_v17, 5  ;;  %v3510_v48 = vld [vmem:[#allocation16] sm:$0x4] }
 0x738   :  { %v11339_v54 = vpop.eup %11338  ;;  %v3691_v55 = vsel %vm536_vm2, %v3690_v49, %v3689_v51  ;;  %v3694_v56 = vrot.slane %v11337_v50, 4  ;;  %v11015_v17 = vld [vmem:[#allocation13] sm:$0xff]  }
 0x739   :  { %v11341_v57 = vpop.eup %11340  ;;  %v3693_v59 = vsel %vm539_vm3, %v3692_v53, %v3691_v55  ;;  %v3696_v60 = vrot.slane %v11339_v54, 3 }
 0x73a   :  { %v11343_v61 = vpop.eup %11342  ;;  %v3695_v62 = vsel %vm542_vm4, %v3694_v56, %v3693_v59  ;;  %v3698_v63 = vrot.slane %v11341_v57, 2  ;;  %v3513_v59 = vld [vmem:[#allocation16 + $0x8] sm:$0x4] }
 0x73b   :  { %v3697_v1 = vsel %vm545_vm5, %v3696_v60, %v3695_v62  ;;  %v3700_v3 = vrot.slane %v11343_v61, 1  ;;  %v3516_v60 = vld [vmem:[#allocation16 + $0x10] sm:$0x4]  ;;  %v3522_v61 = vld [vmem:[#allocation16 + $0x20] sm:$0x4] }
 0x73c   :  { %v3699_v4 = vsel %vm548_vm6, %v3698_v63, %v3697_v1  ;;  %v3519_v1 = vld [vmem:[#allocation16 + $0x18] sm:$0x4] }
 0x73d   :  { %v3701_v5 = vsel %vm13055_vm7, %v3700_v3, %v3699_v4  ;;  %v3525_v4 = vld [vmem:[#allocation16 + $0x28] sm:$0x4] }
 0x73e   :  { %v3707_v7 = vpack.c.bf16 %v3701_v5, %v3701_v5  ;;  %v3528_v5 = vld [vmem:[#allocation16 + $0x30] sm:$0x4] }
 0x740   :  { %10162 = vmatmul.mubr.bf16.vlgmr.msra.gmra.mrb[40].mxu0 %v3707_v7  ;;  %10202 = vmatmul.mubr.bf16.vlgmr.msra.gmra.mrb[28].mxu1 %v3707_v7 }
 0x741   :  { %10166 = vmatpush3.bf16.msra.mxu0 %v11006_v6  ;;  %10181 = vmatprep.mubr.msk.bf16.mxu0 %vm11732_vm0, %v11731_v0 }
 0x742   :  { %10167 = vmatprep.subr.bf16.mxu0 %v11731_v0  ;;  %10206 = vmatpush3.bf16.msra.mxu1 %v11014_v8 }
 0x743   :  { %10207 = vmatprep.subr.bf16.mxu1 %v11731_v0  ;;  %10221 = vmatprep.mubr.msk.bf16.mxu1 %vm11732_vm0, %v11731_v0 }
 0x745   :  { %v3393_v12 = vpop.f32.mrb[24].mxu1  ;;  %10168 = vmatpush3.bf16.msra.mxu0 %v11007_v9 }
 0x746   :  { %v10730_v14 = vadd.f32 %v12218_v47, %v3393_v12  ;;  %v10123_v15 = vpop.f32.mrb[25].mxu1  ;;  %10169 = vmatprep.subr.bf16.mxu0 %v11731_v0  ;;  %10208 = vmatpush3.bf16.msra.mxu1 %v11016_v10  ;;  %v3531_v10 = vld [vmem:[#allocation16 + $0x38] sm:$0x4] }
 0x747   :  { %v3396_v16 = vpop.f32.mrb[26].mxu1  ;;  %10209 = vmatprep.subr.bf16.mxu1 %v11731_v0  ;;  %v11019_v15 = vld [vmem:[#allocation13 + $0x10] sm:$0xff]  }
 0x748   :  { %11344 = vtanh.f32 %v10730_v14  ;;  %v10124_v18 = vpop.f32.mrb[27].mxu1  ;;  %v11018_v14 = vld [vmem:[#allocation12 + $0x10] sm:$0xff]   ;;  %v11020_v16 = vld [vmem:[#allocation12 + $0x18] sm:$0xff]  }
 0x749   :  { %10170 = vmatpush3.bf16.msra.mxu0 %v11008_v13  ;;  %v11017_v13 = vld [vmem:[#allocation13 + $0x8] sm:$0xff]   ;;  %v11021_v18 = vld [vmem:[#allocation13 + $0x18] sm:$0xff]  }
 0x74a   :  { %10171 = vmatprep.subr.bf16.mxu0 %v11731_v0  ;;  %10210 = vmatpush3.bf16.msra.mxu1 %v11018_v14 }
 0x74b   :  { %10211 = vmatprep.subr.bf16.mxu1 %v11731_v0 }
 0x74d   :  { %10172 = vmatpush3.bf16.msra.mxu0 %v11009_v19  ;;  %v11022_v19 = vld [vmem:[#allocation12 + $0x20] sm:$0xff]  }
 0x74e   :  { %10173 = vmatprep.subr.bf16.mxu0 %v11731_v0  ;;  %10212 = vmatpush3.bf16.msra.mxu1 %v11020_v16 }
 0x74f   :  { %10213 = vmatprep.subr.bf16.mxu1 %v11731_v0 }
 0x751   :  { %10174 = vmatpush3.bf16.msra.mxu0 %v11010_v20  ;;  %v11023_v20 = vld [vmem:[#allocation13 + $0x20] sm:$0xff]  }
 0x752   :  { %v11345_v47 = vpop.eup %11344  ;;  %10175 = vmatprep.subr.bf16.mxu0 %v11731_v0  ;;  %10214 = vmatpush3.bf16.msra.mxu1 %v11022_v19 }
 0x753   :  { %v3402_v22 = vpack.c.bf16 %v11345_v47, %v11345_v47  ;;  %10215 = vmatprep.subr.bf16.mxu1 %v11731_v0  ;;  %v11025_v47 = vld [vmem:[#allocation13 + $0x28] sm:$0xff]  }
 0x755   :  { %v3410_v23 = vrot.slane %v3402_v22, %v12012_v33  ;;  %10176 = vmatpush3.bf16.msra.mxu0 %v11011_v21  ;;  %v11024_v21 = vld [vmem:[#allocation12 + $0x28] sm:$0xff]  }
 0x756   :  { %10177 = vmatprep.subr.bf16.mxu0 %v11731_v0  ;;  %10216 = vmatpush3.bf16.msra.mxu1 %v11024_v21  ;;  %v11030_v21 = vld [vmem:[#allocation13 + $0x40] sm:$0xff]  }
 0x757   :  { %v3411_v26 = vcombine.high %v3410_v23, %v3410_v23  ;;  %v3418_v27 = vrot.slane %v3410_v23, %v12012_v33  ;;  %10217 = vmatprep.subr.bf16.mxu1 %v11731_v0  ;;  %v11027_v23 = vld [vmem:[#allocation13 + $0x30] sm:$0xff]  }
 0x759   :  { %v3425_v28 = vrot.slane %v3411_v26, %v12012_v33  ;;  %v3426_v29 = vcombine.high %v3418_v27, %v3418_v27  ;;  %v3429_v30 = vunpack.i.h.s16 %v3418_v27  ;;  %v8991_v31 = vpack.i.b16 %v3418_v27, %v3418_v27  ;;  %10178 = vmatpush3.bf16.msra.mxu0 %v11012_v25  ;;  %v11028_v25 = vld [vmem:[#allocation12 + $0x38] sm:$0xff]   ;;  %v4061_v27 = vld [vmem:[#allocation3 + $0x7] sm:$0x1] }
 0x75a   :  { %10179 = vmatprep.subr.bf16.mxu0 %v11731_v0  ;;  %v11029_v26 = vld [vmem:[#allocation13 + $0x38] sm:$0xff]  }
 0x75b   :  { %v3427_v34 = vcombine.high %v3425_v28, %v3425_v28  ;;  %v3431_v35 = vunpack.i.h.s16 %v3425_v28  ;;  %v3433_v36 = vunpack.i.h.s16 %v3426_v29  ;;  %v3437_v37 = vpack.i.b16 %v3429_v30, %v3429_v30 }
 0x75c   :  { %v8992_v39 = vpack.i.b16 %v3425_v28, %v3425_v28  ;;  %v8993_v40 = vpack.i.b16 %v3426_v29, %v3426_v29  ;;  %v3450_v41 = vrot.slane %v8991_v31, %v12018_v42  ;;  %v4062_v28 = vld [vmem:[#allocation3 + $0x17] sm:$0x1]  ;;  %v4063_v29 = vld [vmem:[#allocation3 + $0x27] sm:$0x1] }
 0x75d   :  { %v3435_v43 = vunpack.i.h.s16 %v3427_v34  ;;  %v3439_v44 = vpack.i.b16 %v3431_v35, %v3431_v35  ;;  %v3441_v45 = vpack.i.b16 %v3433_v36, %v3433_v36  ;;  %v8994_v46 = vpack.i.b16 %v3427_v34, %v3427_v34  ;;  %10180 = vmatpush3.bf16.msra.mxu0 %v11013_v32 }
 0x75e   :  { %v3457_v49 = vrot.slane %v3437_v37, %v12018_v42  ;;  %v3464_v50 = vrot.slane %v8992_v39, %v12018_v42  ;;  %v3478_v51 = vrot.slane %v8993_v40, %v12018_v42  ;;  %v3511_v53 = vsel %vm12375_vm15, %v3450_v41, %v3510_v48  ;;  %10245 = vmatprep.subr.bf16.mxu0 %v11731_v0  ;;  %v4064_v37 = vld [vmem:[#allocation3 + $0x37] sm:$0x1] }
 0x75f   :  { %v3443_v54 = vpack.i.b16 %v3435_v43, %v3435_v43  ;;  %v3471_v55 = vrot.slane %v3439_v44, %v12018_v42  ;;  %v3485_v56 = vrot.slane %v3441_v45, %v12018_v42  ;;  %v3492_v57 = vrot.slane %v8994_v46, %v12018_v42  ;;  %3512 = vst [vmem:[#allocation16] sm:$0x4] %v3511_v53  ;;  %v4065_v44 = vld [vmem:[#allocation3 + $0x47] sm:$0x1] }
 0x760   :  { %v3514_v62 = vsel %vm12375_vm15, %v3457_v49, %v3513_v59  ;;  %v3517_v63 = vsel %vm12375_vm15, %v3464_v50, %v3516_v60  ;;  %v3523_v3 = vsel %vm12375_vm15, %v3478_v51, %v3522_v61  ;;  %10182 = vmatmul.mubr.bf16.vlgmr.msra.gmra.mrb[40].mxu0 %v3402_v22  ;;  %v11026_v22 = vld [vmem:[#allocation12 + $0x30] sm:$0xff]   ;;  %v4066_v51 = vld [vmem:[#allocation3 + $0x57] sm:$0x1] }
 0x761   :  { %v3499_v6 = vrot.slane %v3443_v54, %v12018_v42  ;;  %3515 = vst [vmem:[#allocation16 + $0x8] sm:$0x4] %v3514_v62  ;;  %3518 = vst [vmem:[#allocation16 + $0x10] sm:$0x4] %v3517_v63  ;;  %v3520_v7 = vsel %vm12375_vm15, %v3471_v55, %v3519_v1  ;;  %v3526_v8 = vsel %vm12375_vm15, %v3485_v56, %v3525_v4  ;;  %10246 = vmatpush3.bf16.msra.mxu0 %v11015_v17  ;;  %v4067_v53 = vld [vmem:[#allocation3 + $0x67] sm:$0x1] }
 0x762   :  { %3524 = vst [vmem:[#allocation16 + $0x20] sm:$0x4] %v3523_v3  ;;  %v3529_v9 = vsel %vm12375_vm15, %v3492_v57, %v3528_v5  ;;  %3521 = vst [vmem:[#allocation16 + $0x18] sm:$0x4] %v3520_v7  ;;  %10247 = vmatprep.subr.bf16.mxu0 %v11731_v0  ;;  %10261 = vmatprep.mubr.msk.bf16.mxu0 %vm11732_vm0, %v11731_v0  ;;  %v4068_v55 = vld [vmem:[#allocation3 + $0x77] sm:$0x1] }
 0x763   :  { %3527 = vst [vmem:[#allocation16 + $0x28] sm:$0x4] %v3526_v8  ;;  %3530 = vst [vmem:[#allocation16 + $0x30] sm:$0x4] %v3529_v9  ;;  %v3532_v12 = vsel %vm12375_vm15, %v3499_v6, %v3531_v10  ;;  %10218 = vmatpush3.bf16.msra.mxu1 %v11026_v22  ;;  %v11038_v22 = vld [vmem:[#allocation12] sm:$0xff]  }
 0x764   :  { %3533 = vst [vmem:[#allocation16 + $0x38] sm:$0x4] %v3532_v12  ;;  %10219 = vmatprep.subr.bf16.mxu1 %v11731_v0 }
 0x765   :  { %10248 = vmatpush3.bf16.msra.mxu0 %v11017_v13 }
 0x766   :  { %10249 = vmatprep.subr.bf16.mxu0 %v11731_v0 }
 0x767   :  { %10220 = vmatpush3.bf16.msra.mxu1 %v11028_v25  ;;  %v11040_v25 = vld [vmem:[#allocation12 + $0x8] sm:$0xff]  }
 0x768   :  { %10225 = vmatprep.subr.bf16.mxu1 %v11731_v0 }
 0x769   :  { %10250 = vmatpush3.bf16.msra.mxu0 %v11019_v15 }
 0x76a   :  { %10251 = vmatprep.subr.bf16.mxu0 %v11731_v0 }
 0x76d   :  { %10252 = vmatpush3.bf16.msra.mxu0 %v11021_v18 }
 0x76e   :  { %10253 = vmatprep.subr.bf16.mxu0 %v11731_v0 }
 0x771   :  { %10254 = vmatpush3.bf16.msra.mxu0 %v11023_v20 }
 0x772   :  { %10255 = vmatprep.subr.bf16.mxu0 %v11731_v0 }
 0x775   :  { %10256 = vmatpush3.bf16.msra.mxu0 %v11025_v47 }
 0x776   :  { %10257 = vmatprep.subr.bf16.mxu0 %v11731_v0 }
 0x779   :  { %10258 = vmatpush3.bf16.msra.mxu0 %v11027_v23  ;;  %v11031_v23 = vld [vmem:[#allocation13 + $0x48] sm:$0xff]  }
 0x77a   :  { %10259 = vmatprep.subr.bf16.mxu0 %v11731_v0 }
 0x77d   :  { %10260 = vmatpush3.bf16.msra.mxu0 %v11029_v26  ;;  %v12430_v26 = vld [vmem:[#allocation15] ss:$0 sm:$0xff] }
 0x77e   :  { %10265 = vmatprep.subr.bf16.mxu0 %v11731_v0 }
 0x813   :  { %v4167_v30 = vpop.f32.mrb[28].mxu1 }
 0x814   :  { %v4174_v31 = vrot.slane %v4167_v30, 1  ;;  %v4175_v32 = vrot.slane %v4167_v30, 2  ;;  %v4176_v34 = vrot.slane %v4167_v30, 3  ;;  %v4177_v35 = vrot.slane %v4167_v30, 4  ;;  %v10203_v36 = vpop.f32.mrb[29].mxu1 }
 0x815   :  { %v4178_v39 = vrot.slane %v4167_v30, 5  ;;  %v4179_v40 = vrot.slane %v4167_v30, 6  ;;  %v4189_v41 = vadd.f32 %v4167_v30, %v4061_v27  ;;  %v4170_v43 = vpop.f32.mrb[30].mxu1  ;;  %v4180_v49 = vrot.slane %v4167_v30, 7  ;;  %v11035_v36 = vld [vmem:[#allocation13 + $0x68] sm:$0xff]  }
 0x816   :  { %v4190_v45 = vadd.f32 %v4174_v31, %v4062_v28  ;;  %v4191_v46 = vadd.f32 %v4175_v32, %v4063_v29  ;;  %v4192_v48 = vadd.f32 %v4176_v34, %v4064_v37  ;;  %v10204_v17 = vpop.f32.mrb[31].mxu1  ;;  %v4193_v50 = vadd.f32 %v4177_v35, %v4065_v44  ;;  %v11032_v28 = vld [vmem:[#allocation13 + $0x50] sm:$0xff]   ;;  %v11033_v34 = vld [vmem:[#allocation13 + $0x58] sm:$0xff]   ;;  %v11034_v35 = vld [vmem:[#allocation13 + $0x60] sm:$0xff]  }
 0x817   :  { %11346 = vtanh.f32 %v4189_v41  ;;  %v4194_v54 = vadd.f32 %v4178_v39, %v4066_v51  ;;  %v4195_v56 = vadd.f32 %v4179_v40, %v4067_v53  ;;  %v4196_v57 = vadd.f32 %v4180_v49, %v4068_v55  ;;  %v11036_v41 = vld [vmem:[#allocation13 + $0x70] sm:$0xff]   ;;  %v11037_v49 = vld [vmem:[#allocation13 + $0x78] sm:$0xff]  }
 0x818   :  { %11348 = vtanh.f32 %v4190_v45 }
 0x819   :  { %11350 = vtanh.f32 %v4191_v46 }
 0x81a   :  { %11352 = vtanh.f32 %v4192_v48 }
 0x81b   :  { %11354 = vtanh.f32 %v4193_v50 }
 0x81c   :  { %11356 = vtanh.f32 %v4194_v54 }
 0x81d   :  { %11358 = vtanh.f32 %v4195_v56  ;;  %v4035_v56 = vld [vmem:[#allocation16] sm:$0x8] }
 0x81e   :  { %11360 = vtanh.f32 %v4196_v57 }
 0x821   :  { %v11347_v59 = vpop.eup %11346 }
 0x822   :  { %v11349_v60 = vpop.eup %11348 }
 0x823   :  { %v11351_v61 = vpop.eup %11350  ;;  %v4213_v62 = vrot.slane %v11349_v60, 7 }
 0x824   :  { %v11353_v63 = vpop.eup %11352  ;;  %v4215_v1 = vrot.slane %v11351_v61, 6  ;;  %v4038_v61 = vld [vmem:[#allocation16 + $0x8] sm:$0x8] }
 0x825   :  { %v11355_v3 = vpop.eup %11354  ;;  %v4214_v4 = vsel %vm533_vm1, %v4213_v62, %v11347_v59  ;;  %v4217_v5 = vrot.slane %v11353_v63, 5 }
 0x826   :  { %v11357_v6 = vpop.eup %11356  ;;  %v4216_v7 = vsel %vm536_vm2, %v4215_v1, %v4214_v4  ;;  %v4219_v8 = vrot.slane %v11355_v3, 4  ;;  %v4041_v4 = vld [vmem:[#allocation16 + $0x10] sm:$0x8] }
 0x827   :  { %v11359_v9 = vpop.eup %11358  ;;  %v4218_v10 = vsel %vm539_vm3, %v4217_v5, %v4216_v7  ;;  %v4221_v12 = vrot.slane %v11357_v6, 3  ;;  %v4047_v5 = vld [vmem:[#allocation16 + $0x20] sm:$0x8] }
 0x828   :  { %v11361_v13 = vpop.eup %11360  ;;  %v4220_v14 = vsel %vm542_vm4, %v4219_v8, %v4218_v10  ;;  %v4223_v15 = vrot.slane %v11359_v9, 2  ;;  %v11039_v6 = vld [vmem:[#allocation13] sm:$0xff]  }
 0x829   :  { %v4222_v16 = vsel %vm545_vm5, %v4221_v12, %v4220_v14  ;;  %v4225_v18 = vrot.slane %v11361_v13, 1  ;;  %v4044_v12 = vld [vmem:[#allocation16 + $0x18] sm:$0x8]  ;;  %v4050_v13 = vld [vmem:[#allocation16 + $0x28] sm:$0x8] }
 0x82a   :  { %v4224_v19 = vsel %vm548_vm6, %v4223_v15, %v4222_v16  ;;  %v4053_v14 = vld [vmem:[#allocation16 + $0x30] sm:$0x8] }
 0x82b   :  { %v4226_v20 = vsel %vm13055_vm7, %v4225_v18, %v4224_v19 }
 0x82c   :  { %v4236_v47 = vpack.c.bf16 %v4226_v20, %v4226_v20  ;;  %4232 = vst [vmem:[#allocation17] sm:$0xff] %v4226_v20 }
 0x82e   :  { %10222 = vmatmul.mubr.bf16.vlgmr.msra.gmra.mrb[32].mxu1 %v4236_v47  ;;  %10262 = vmatmul.mubr.bf16.vlgmr.msra.gmra.mrb[44].mxu0 %v4236_v47 }
 0x82f   :  { %10226 = vmatpush3.bf16.msra.mxu1 %v11030_v21  ;;  %10241 = vmatprep.mubr.msk.bf16.mxu1 %vm11732_vm0, %v11731_v0 }
 0x830   :  { %10227 = vmatprep.subr.bf16.mxu1 %v11731_v0  ;;  %10266 = vmatpush3.bf16.msra.mxu0 %v11038_v22  ;;  %v4056_v22 = vld [vmem:[#allocation16 + $0x38] sm:$0x8] }
 0x831   :  { %10267 = vmatprep.subr.bf16.mxu0 %v11731_v0  ;;  %10281 = vmatprep.mubr.msk.bf16.mxu0 %vm11732_vm0, %v11731_v0 }
 0x833   :  { %v3917_v27 = vpop.f32.mrb[40].mxu0  ;;  %10228 = vmatpush3.bf16.msra.mxu1 %v11031_v23 }
 0x834   :  { %v10731_v29 = vadd.f32 %v12430_v26, %v3917_v27  ;;  %v10183_v30 = vpop.f32.mrb[41].mxu0  ;;  %10229 = vmatprep.subr.bf16.mxu1 %v11731_v0  ;;  %10268 = vmatpush3.bf16.msra.mxu0 %v11040_v25 }
 0x835   :  { %v3920_v31 = vpop.f32.mrb[42].mxu0  ;;  %10269 = vmatprep.subr.bf16.mxu0 %v11731_v0  ;;  %v11041_v30 = vld [vmem:[#allocation13 + $0x8] sm:$0xff]  }
 0x836   :  { %11362 = vtanh.f32 %v10731_v29  ;;  %v10184_v32 = vpop.f32.mrb[43].mxu0  ;;  %v11042_v31 = vld [vmem:[#allocation12 + $0x10] sm:$0xff]  }
 0x837   :  { %10230 = vmatpush3.bf16.msra.mxu1 %v11032_v28  ;;  %v11043_v32 = vld [vmem:[#allocation13 + $0x10] sm:$0xff]  }
 0x838   :  { %10231 = vmatprep.subr.bf16.mxu1 %v11731_v0  ;;  %10270 = vmatpush3.bf16.msra.mxu0 %v11042_v31 }
 0x839   :  { %10271 = vmatprep.subr.bf16.mxu0 %v11731_v0 }
 0x83b   :  { %10232 = vmatpush3.bf16.msra.mxu1 %v11033_v34  ;;  %v11044_v34 = vld [vmem:[#allocation12 + $0x18] sm:$0xff]  }
 0x83c   :  { %10233 = vmatprep.subr.bf16.mxu1 %v11731_v0  ;;  %10272 = vmatpush3.bf16.msra.mxu0 %v11044_v34 }
 0x83d   :  { %10273 = vmatprep.subr.bf16.mxu0 %v11731_v0 }
 0x83f   :  { %10234 = vmatpush3.bf16.msra.mxu1 %v11034_v35  ;;  %v11045_v35 = vld [vmem:[#allocation13 + $0x18] sm:$0xff]  }
 0x840   :  { %v11363_v37 = vpop.eup %11362  ;;  %10235 = vmatprep.subr.bf16.mxu1 %v11731_v0 }
 0x841   :  { %v3926_v39 = vpack.c.bf16 %v11363_v37, %v11363_v37  ;;  %v11047_v37 = vld [vmem:[#allocation13 + $0x20] sm:$0xff]  }
 0x843   :  { %v3934_v40 = vrot.slane %v3926_v39, %v12012_v33  ;;  %10236 = vmatpush3.bf16.msra.mxu1 %v11035_v36  ;;  %v11046_v36 = vld [vmem:[#allocation12 + $0x20] sm:$0xff]  }
 0x844   :  { %10237 = vmatprep.subr.bf16.mxu1 %v11731_v0  ;;  %10274 = vmatpush3.bf16.msra.mxu0 %v11046_v36 }
 0x845   :  { %v3935_v43 = vcombine.high %v3934_v40, %v3934_v40  ;;  %v3942_v44 = vrot.slane %v3934_v40, %v12012_v33  ;;  %10275 = vmatprep.subr.bf16.mxu0 %v11731_v0  ;;  %v11049_v40 = vld [vmem:[#allocation13 + $0x28] sm:$0xff]  }
 0x847   :  { %v3949_v45 = vrot.slane %v3935_v43, %v12012_v33  ;;  %v3950_v46 = vcombine.high %v3942_v44, %v3942_v44  ;;  %v3953_v48 = vunpack.i.h.s16 %v3942_v44  ;;  %v9020_v17 = vpack.i.b16 %v3942_v44, %v3942_v44  ;;  %10238 = vmatpush3.bf16.msra.mxu1 %v11036_v41  ;;  %v11050_v41 = vld [vmem:[#allocation12 + $0x30] sm:$0xff]   ;;  %v11052_v44 = vld [vmem:[#allocation12 + $0x38] sm:$0xff]  }
 0x848   :  { %10239 = vmatprep.subr.bf16.mxu1 %v11731_v0  ;;  %v11051_v43 = vld [vmem:[#allocation13 + $0x30] sm:$0xff]  }
 0x849   :  { %v3951_v50 = vcombine.high %v3949_v45, %v3949_v45  ;;  %v3955_v51 = vunpack.i.h.s16 %v3949_v45  ;;  %v3957_v53 = vunpack.i.h.s16 %v3950_v46  ;;  %v3961_v54 = vpack.i.b16 %v3953_v48, %v3953_v48  ;;  %v4595_v48 = vld [vmem:[#allocation3 + $0x18] sm:$0x1] }
 0x84a   :  { %v9021_v57 = vpack.i.b16 %v3949_v45, %v3949_v45  ;;  %v9022_v59 = vpack.i.b16 %v3950_v46, %v3950_v46  ;;  %v3974_v60 = vrot.slane %v9020_v17, %v12018_v42  ;;  %v11053_v45 = vld [vmem:[#allocation13 + $0x38] sm:$0xff]   ;;  %v4594_v46 = vld [vmem:[#allocation3 + $0x8] sm:$0x1] }
 0x84b   :  { %v3959_v62 = vunpack.i.h.s16 %v3951_v50  ;;  %v3963_v63 = vpack.i.b16 %v3955_v51, %v3955_v51  ;;  %v3965_v1 = vpack.i.b16 %v3957_v53, %v3957_v53  ;;  %v9023_v3 = vpack.i.b16 %v3951_v50, %v3951_v50  ;;  %10240 = vmatpush3.bf16.msra.mxu1 %v11037_v49  ;;  %v4596_v17 = vld [vmem:[#allocation3 + $0x28] sm:$0x1] }
 0x84c   :  { %v3981_v7 = vrot.slane %v3961_v54, %v12018_v42  ;;  %v3988_v8 = vrot.slane %v9021_v57, %v12018_v42  ;;  %v4002_v9 = vrot.slane %v9022_v59, %v12018_v42  ;;  %v4036_v10 = vsel %vm12447_vm13, %v3974_v60, %v4035_v56  ;;  %10305 = vmatprep.subr.bf16.mxu1 %v11731_v0  ;;  %v4597_v57 = vld [vmem:[#allocation3 + $0x38] sm:$0x1] }
 0x84d   :  { %v3967_v15 = vpack.i.b16 %v3959_v62, %v3959_v62  ;;  %v3995_v16 = vrot.slane %v3963_v63, %v12018_v42  ;;  %v4009_v18 = vrot.slane %v3965_v1, %v12018_v42  ;;  %v4016_v19 = vrot.slane %v9023_v3, %v12018_v42  ;;  %4037 = vst [vmem:[#allocation16] sm:$0x8] %v4036_v10  ;;  %v4598_v63 = vld [vmem:[#allocation3 + $0x48] sm:$0x1] }
 0x84e   :  { %v4039_v20 = vsel %vm12447_vm13, %v3981_v7, %v4038_v61  ;;  %v4042_v21 = vsel %vm12447_vm13, %v3988_v8, %v4041_v4  ;;  %v4048_v47 = vsel %vm12447_vm13, %v4002_v9, %v4047_v5  ;;  %10242 = vmatmul.mubr.bf16.vlgmr.msra.gmra.mrb[32].mxu1 %v3926_v39  ;;  %v11048_v39 = vld [vmem:[#allocation12 + $0x28] sm:$0xff]   ;;  %v4599_v8 = vld [vmem:[#allocation3 + $0x58] sm:$0x1]  ;;  %v4600_v9 = vld [vmem:[#allocation3 + $0x68] sm:$0x1] }
 0x84f   :  { %v4023_v23 = vrot.slane %v3967_v15, %v12018_v42  ;;  %4040 = vst [vmem:[#allocation16 + $0x8] sm:$0x8] %v4039_v20  ;;  %4043 = vst [vmem:[#allocation16 + $0x10] sm:$0x8] %v4042_v21  ;;  %v4045_v25 = vsel %vm12447_vm13, %v3995_v16, %v4044_v12  ;;  %v4051_v27 = vsel %vm12447_vm13, %v4009_v18, %v4050_v13  ;;  %10306 = vmatpush3.bf16.msra.mxu1 %v11039_v6  ;;  %v4601_v12 = vld [vmem:[#allocation3 + $0x78] sm:$0x1] }
 0x850   :  { %4049 = vst [vmem:[#allocation16 + $0x20] sm:$0x8] %v4048_v47  ;;  %v4054_v28 = vsel %vm12447_vm13, %v4016_v19, %v4053_v14  ;;  %4046 = vst [vmem:[#allocation16 + $0x18] sm:$0x8] %v4045_v25  ;;  %10307 = vmatprep.subr.bf16.mxu1 %v11731_v0  ;;  %10321 = vmatprep.mubr.msk.bf16.mxu1 %vm11732_vm0, %v11731_v0 }
 0x851   :  { %4052 = vst [vmem:[#allocation16 + $0x28] sm:$0x8] %v4051_v27  ;;  %4055 = vst [vmem:[#allocation16 + $0x30] sm:$0x8] %v4054_v28  ;;  %v4057_v29 = vsel %vm12447_vm13, %v4023_v23, %v4056_v22  ;;  %10276 = vmatpush3.bf16.msra.mxu0 %v11048_v39 }
 0x852   :  { %4058 = vst [vmem:[#allocation16 + $0x38] sm:$0x8] %v4057_v29  ;;  %10277 = vmatprep.subr.bf16.mxu0 %v11731_v0 }
 0x853   :  { %10308 = vmatpush3.bf16.msra.mxu1 %v11041_v30 }
 0x854   :  { %10309 = vmatprep.subr.bf16.mxu1 %v11731_v0 }
 0x855   :  { %10278 = vmatpush3.bf16.msra.mxu0 %v11050_v41  ;;  %v11054_v41 = vld [vmem:[#allocation13 + $0x40] sm:$0xff]  }
 0x856   :  { %10279 = vmatprep.subr.bf16.mxu0 %v11731_v0 }
 0x857   :  { %10310 = vmatpush3.bf16.msra.mxu1 %v11043_v32 }
 0x858   :  { %10311 = vmatprep.subr.bf16.mxu1 %v11731_v0 }
 0x859   :  { %10280 = vmatpush3.bf16.msra.mxu0 %v11052_v44  ;;  %v11062_v44 = vld [vmem:[#allocation12] sm:$0xff]  }
 0x85a   :  { %10285 = vmatprep.subr.bf16.mxu0 %v11731_v0 }
 0x85b   :  { %10312 = vmatpush3.bf16.msra.mxu1 %v11045_v35 }
 0x85c   :  { %10313 = vmatprep.subr.bf16.mxu1 %v11731_v0 }
 0x85f   :  { %10314 = vmatpush3.bf16.msra.mxu1 %v11047_v37 }
 0x860   :  { %10315 = vmatprep.subr.bf16.mxu1 %v11731_v0 }
 0x863   :  { %10316 = vmatpush3.bf16.msra.mxu1 %v11049_v40 }
 0x864   :  { %10317 = vmatprep.subr.bf16.mxu1 %v11731_v0 }
 0x867   :  { %10318 = vmatpush3.bf16.msra.mxu1 %v11051_v43 }
 0x868   :  { %10319 = vmatprep.subr.bf16.mxu1 %v11731_v0 }
 0x86b   :  { %10320 = vmatpush3.bf16.msra.mxu1 %v11053_v45  ;;  %v11055_v45 = vld [vmem:[#allocation13 + $0x48] sm:$0xff]  }
 0x86c   :  { %10325 = vmatprep.subr.bf16.mxu1 %v11731_v0 }
 0x901   :  { %v4700_v49 = vpop.f32.mrb[44].mxu0 }
 0x902   :  { %v4707_v50 = vrot.slane %v4700_v49, 1  ;;  %v4708_v51 = vrot.slane %v4700_v49, 2  ;;  %v4709_v53 = vrot.slane %v4700_v49, 3  ;;  %v4710_v54 = vrot.slane %v4700_v49, 4  ;;  %v10263_v56 = vpop.f32.mrb[45].mxu0 }
 0x903   :  { %v4711_v59 = vrot.slane %v4700_v49, 5  ;;  %v4722_v60 = vadd.f32 %v4700_v49, %v4594_v46  ;;  %v4703_v61 = vpop.f32.mrb[46].mxu0  ;;  %v4712_v62 = vrot.slane %v4700_v49, 6  ;;  %v4713_v6 = vrot.slane %v4700_v49, 7  ;;  %v11064_v46 = vld [vmem:[#allocation12 + $0x8] sm:$0xff]   ;;  %v11058_v56 = vld [vmem:[#allocation13 + $0x60] sm:$0xff]  }
 0x904   :  { %v4723_v1 = vadd.f32 %v4707_v50, %v4595_v48  ;;  %v4724_v3 = vadd.f32 %v4708_v51, %v4596_v17  ;;  %v4725_v4 = vadd.f32 %v4709_v53, %v4597_v57  ;;  %v10264_v5 = vpop.f32.mrb[47].mxu0  ;;  %v4726_v7 = vadd.f32 %v4710_v54, %v4598_v63  ;;  %v11056_v17 = vld [vmem:[#allocation13 + $0x50] sm:$0xff]   ;;  %v11057_v54 = vld [vmem:[#allocation13 + $0x58] sm:$0xff]   ;;  %v11059_v57 = vld [vmem:[#allocation13 + $0x68] sm:$0xff]  }
 0x905   :  { %11364 = vtanh.f32 %v4722_v60  ;;  %v4727_v10 = vadd.f32 %v4711_v59, %v4599_v8  ;;  %v4728_v13 = vadd.f32 %v4712_v62, %v4600_v9  ;;  %v4729_v14 = vadd.f32 %v4713_v6, %v4601_v12  ;;  %v11060_v61 = vld [vmem:[#allocation13 + $0x70] sm:$0xff]  }
 0x906   :  { %11366 = vtanh.f32 %v4723_v1 }
 0x907   :  { %11368 = vtanh.f32 %v4724_v3  ;;  %v11061_v3 = vld [vmem:[#allocation13 + $0x78] sm:$0xff]  }
 0x908   :  { %11370 = vtanh.f32 %v4725_v4 }
 0x909   :  { %11372 = vtanh.f32 %v4726_v7 }
 0x90a   :  { %11374 = vtanh.f32 %v4727_v10 }
 0x90b   :  { %11376 = vtanh.f32 %v4728_v13 }
 0x90c   :  { %11378 = vtanh.f32 %v4729_v14 }
 0x90f   :  { %v11365_v15 = vpop.eup %11364 }
 0x910   :  { %v11367_v16 = vpop.eup %11366 }
 0x911   :  { %v11369_v18 = vpop.eup %11368  ;;  %v4746_v19 = vrot.slane %v11367_v16, 7 }
 0x912   :  { %v11371_v20 = vpop.eup %11370  ;;  %v4748_v21 = vrot.slane %v11369_v18, 6 }
 0x913   :  { %v11373_v47 = vpop.eup %11372  ;;  %v4747_v22 = vsel %vm533_vm1, %v4746_v19, %v11365_v15  ;;  %v4750_v23 = vrot.slane %v11371_v20, 5 }
 0x914   :  { %v11375_v25 = vpop.eup %11374  ;;  %v4749_v27 = vsel %vm536_vm2, %v4748_v21, %v4747_v22  ;;  %v4752_v28 = vrot.slane %v11373_v47, 4  ;;  %v4563_v47 = vld [vmem:[#allocation16] sm:$0x8] }
 0x915   :  { %v11377_v29 = vpop.eup %11376  ;;  %v4751_v30 = vsel %vm539_vm3, %v4750_v23, %v4749_v27  ;;  %v4754_v31 = vrot.slane %v11375_v25, 3  ;;  %v11063_v22 = vld [vmem:[#allocation13] sm:$0xff]  }
 0x916   :  { %v11379_v32 = vpop.eup %11378  ;;  %v4753_v34 = vsel %vm542_vm4, %v4752_v28, %v4751_v30  ;;  %v4756_v35 = vrot.slane %v11377_v29, 2 }
 0x917   :  { %v4755_v36 = vsel %vm545_vm5, %v4754_v31, %v4753_v34  ;;  %v4758_v37 = vrot.slane %v11379_v32, 1  ;;  %v4566_v34 = vld [vmem:[#allocation16 + $0x8] sm:$0x8] }
 0x918   :  { %v4757_v39 = vsel %vm548_vm6, %v4756_v35, %v4755_v36  ;;  %v4569_v35 = vld [vmem:[#allocation16 + $0x10] sm:$0x8]  ;;  %v4575_v36 = vld [vmem:[#allocation16 + $0x20] sm:$0x8] }
 0x919   :  { %v4759_v40 = vsel %vm13055_vm7, %v4758_v37, %v4757_v39  ;;  %vm12517_vm7 = vmand %vm539_vm3, %vm4561_vm9  ;;  %vm13072_vm9 = vcmask 1047559  }
 0x91a   :  { %v4765_v43 = vpack.c.bf16 %v4759_v40, %v4759_v40  ;;  %v4572_v40 = vld [vmem:[#allocation16 + $0x18] sm:$0x8] }
 0x91c   :  { %10282 = vmatmul.mubr.bf16.vlgmr.msra.gmra.mrb[48].mxu0 %v4765_v43  ;;  %10322 = vmatmul.mubr.bf16.vlgmr.msra.gmra.mrb[36].mxu1 %v4765_v43  ;;  %v4578_v43 = vld [vmem:[#allocation16 + $0x28] sm:$0x8] }
 0x91d   :  { %10286 = vmatpush3.bf16.msra.mxu0 %v11054_v41  ;;  %10301 = vmatprep.mubr.msk.bf16.mxu0 %vm11732_vm0, %v11731_v0 }
 0x91e   :  { %10287 = vmatprep.subr.bf16.mxu0 %v11731_v0  ;;  %10326 = vmatpush3.bf16.msra.mxu1 %v11062_v44  ;;  %v4581_v44 = vld [vmem:[#allocation16 + $0x30] sm:$0x8] }
 0x91f   :  { %10327 = vmatprep.subr.bf16.mxu1 %v11731_v0  ;;  %10341 = vmatprep.mubr.msk.bf16.mxu1 %vm11732_vm0, %v11731_v0 }
 0x921   :  { %v4446_v48 = vpop.f32.mrb[32].mxu1  ;;  %10288 = vmatpush3.bf16.msra.mxu0 %v11055_v45 }
 0x922   :  { %v10732_v49 = vadd.f32 %v12430_v26, %v4446_v48  ;;  %v10243_v50 = vpop.f32.mrb[33].mxu1  ;;  %10289 = vmatprep.subr.bf16.mxu0 %v11731_v0  ;;  %10328 = vmatpush3.bf16.msra.mxu1 %v11064_v46 }
 0x923   :  { %v4449_v51 = vpop.f32.mrb[34].mxu1  ;;  %10329 = vmatprep.subr.bf16.mxu1 %v11731_v0 }
 0x924   :  { %11380 = vtanh.f32 %v10732_v49  ;;  %v10244_v53 = vpop.f32.mrb[35].mxu1  ;;  %v4584_v49 = vld [vmem:[#allocation16 + $0x38] sm:$0x8]  ;;  %v11065_v51 = vld [vmem:[#allocation13 + $0x8] sm:$0xff]  }
 0x925   :  { %10290 = vmatpush3.bf16.msra.mxu0 %v11056_v17  ;;  %v11066_v53 = vld [vmem:[#allocation12 + $0x10] sm:$0xff]  }
 0x926   :  { %10291 = vmatprep.subr.bf16.mxu0 %v11731_v0  ;;  %10330 = vmatpush3.bf16.msra.mxu1 %v11066_v53 }
 0x927   :  { %10331 = vmatprep.subr.bf16.mxu1 %v11731_v0 }
 0x929   :  { %10292 = vmatpush3.bf16.msra.mxu0 %v11057_v54  ;;  %v11067_v54 = vld [vmem:[#allocation13 + $0x10] sm:$0xff]  }
 0x92a   :  { %10293 = vmatprep.subr.bf16.mxu0 %v11731_v0 }
 0x92d   :  { %10294 = vmatpush3.bf16.msra.mxu0 %v11058_v56  ;;  %v11068_v56 = vld [vmem:[#allocation12 + $0x18] sm:$0xff]  }
 0x92e   :  { %v11381_v59 = vpop.eup %11380  ;;  %10295 = vmatprep.subr.bf16.mxu0 %v11731_v0  ;;  %10332 = vmatpush3.bf16.msra.mxu1 %v11068_v56 }
 0x92f   :  { %4591 = vst [vmem:[#allocation17 + $0x8] sm:$0xff] %v11381_v59  ;;  %v4455_v60 = vpack.c.bf16 %v11381_v59, %v11381_v59  ;;  %10333 = vmatprep.subr.bf16.mxu1 %v11731_v0  ;;  %v11070_v59 = vld [vmem:[#allocation12 + $0x20] sm:$0xff]  }
 0x931   :  { %10296 = vmatpush3.bf16.msra.mxu0 %v11059_v57  ;;  %v4463_v62 = vrot.slane %v4455_v60, %v12012_v33  ;;  %v11069_v57 = vld [vmem:[#allocation13 + $0x18] sm:$0xff]  }
 0x932   :  { %10297 = vmatprep.subr.bf16.mxu0 %v11731_v0  ;;  %10334 = vmatpush3.bf16.msra.mxu1 %v11070_v59 }
 0x933   :  { %v4464_v63 = vcombine.high %v4463_v62, %v4463_v62  ;;  %v4471_v1 = vrot.slane %v4463_v62, %v12012_v33  ;;  %10335 = vmatprep.subr.bf16.mxu1 %v11731_v0  ;;  %v11073_v62 = vld [vmem:[#allocation13 + $0x28] sm:$0xff]  }
 0x935   :  { %10298 = vmatpush3.bf16.msra.mxu0 %v11060_v61  ;;  %v4478_v4 = vrot.slane %v4464_v63, %v12012_v33  ;;  %v4479_v5 = vcombine.high %v4471_v1, %v4471_v1  ;;  %v4482_v6 = vunpack.i.h.s16 %v4471_v1  ;;  %v9049_v7 = vpack.i.b16 %v4471_v1, %v4471_v1  ;;  %v11072_v61 = vld [vmem:[#allocation12 + $0x28] sm:$0xff]   ;;  %v11074_v63 = vld [vmem:[#allocation12 + $0x30] sm:$0xff]  }
 0x936   :  { %10299 = vmatprep.subr.bf16.mxu0 %v11731_v0  ;;  %10336 = vmatpush3.bf16.msra.mxu1 %v11072_v61  ;;  %v11075_v1 = vld [vmem:[#allocation13 + $0x30] sm:$0xff]  }
 0x937   :  { %v4480_v8 = vcombine.high %v4478_v4, %v4478_v4  ;;  %v4484_v9 = vunpack.i.h.s16 %v4478_v4  ;;  %v4486_v10 = vunpack.i.h.s16 %v4479_v5  ;;  %v4490_v12 = vpack.i.b16 %v4482_v6, %v4482_v6  ;;  %10337 = vmatprep.subr.bf16.mxu1 %v11731_v0  ;;  %v5117_v6 = vld [vmem:[#allocation3 + $0x19] sm:$0x1] }
 0x938   :  { %v9050_v14 = vpack.i.b16 %v4478_v4, %v4478_v4  ;;  %v9051_v15 = vpack.i.b16 %v4479_v5, %v4479_v5  ;;  %v4503_v16 = vrot.slane %v9049_v7, %v12018_v42  ;;  %v11077_v4 = vld [vmem:[#allocation13 + $0x38] sm:$0xff]   ;;  %v5116_v5 = vld [vmem:[#allocation3 + $0x9] sm:$0x1] }
 0x939   :  { %10300 = vmatpush3.bf16.msra.mxu0 %v11061_v3  ;;  %v4488_v18 = vunpack.i.h.s16 %v4480_v8  ;;  %v4492_v19 = vpack.i.b16 %v4484_v9, %v4484_v9  ;;  %v4494_v20 = vpack.i.b16 %v4486_v10, %v4486_v10  ;;  %v9052_v21 = vpack.i.b16 %v4480_v8, %v4480_v8  ;;  %v11076_v3 = vld [vmem:[#allocation12 + $0x38] sm:$0xff]   ;;  %v5118_v7 = vld [vmem:[#allocation3 + $0x29] sm:$0x1] }
 0x93a   :  { %v4510_v23 = vrot.slane %v4490_v12, %v12018_v42  ;;  %v4517_v25 = vrot.slane %v9050_v14, %v12018_v42  ;;  %v4531_v27 = vrot.slane %v9051_v15, %v12018_v42  ;;  %v4564_v28 = vsel %vm12517_vm7, %v4503_v16, %v4563_v47  ;;  %10365 = vmatprep.subr.bf16.mxu0 %v11731_v0  ;;  %v5119_v16 = vld [vmem:[#allocation3 + $0x39] sm:$0x1]  ;;  %v5120_v47 = vld [vmem:[#allocation3 + $0x49] sm:$0x1] }
 0x93b   :  { %v4496_v29 = vpack.i.b16 %v4488_v18, %v4488_v18  ;;  %v4524_v30 = vrot.slane %v4492_v19, %v12018_v42  ;;  %v4538_v31 = vrot.slane %v4494_v20, %v12018_v42  ;;  %v4545_v32 = vrot.slane %v9052_v21, %v12018_v42  ;;  %4565 = vst [vmem:[#allocation16] sm:$0x8] %v4564_v28 }
 0x93c   :  { %v4567_v37 = vsel %vm12517_vm7, %v4510_v23, %v4566_v34  ;;  %v4570_v39 = vsel %vm12517_vm7, %v4517_v25, %v4569_v35  ;;  %v4576_v41 = vsel %vm12517_vm7, %v4531_v27, %v4575_v36  ;;  %10302 = vmatmul.mubr.bf16.vlgmr.msra.gmra.mrb[48].mxu0 %v4455_v60  ;;  %v11071_v60 = vld [vmem:[#allocation13 + $0x20] sm:$0xff]   ;;  %10338 = vmatpush3.bf16.msra.mxu1 %v11074_v63 }
 0x93d   :  { %v4552_v45 = vrot.slane %v4496_v29, %v12018_v42  ;;  %4568 = vst [vmem:[#allocation16 + $0x8] sm:$0x8] %v4567_v37  ;;  %4571 = vst [vmem:[#allocation16 + $0x10] sm:$0x8] %v4570_v39  ;;  %v4573_v46 = vsel %vm12517_vm7, %v4524_v30, %v4572_v40  ;;  %v4579_v48 = vsel %vm12517_vm7, %v4538_v31, %v4578_v43  ;;  %10366 = vmatpush3.bf16.msra.mxu0 %v11063_v22  ;;  %v5121_v30 = vld [vmem:[#allocation3 + $0x59] sm:$0x1] }
 0x93e   :  { %4577 = vst [vmem:[#allocation16 + $0x20] sm:$0x8] %v4576_v41  ;;  %v4582_v17 = vsel %vm12517_vm7, %v4545_v32, %v4581_v44  ;;  %4574 = vst [vmem:[#allocation16 + $0x18] sm:$0x8] %v4573_v46  ;;  %10367 = vmatprep.subr.bf16.mxu0 %v11731_v0  ;;  %10381 = vmatprep.mubr.msk.bf16.mxu0 %vm11732_vm0, %v11731_v0  ;;  %v5122_v31 = vld [vmem:[#allocation3 + $0x69] sm:$0x1] }
 0x93f   :  { %4580 = vst [vmem:[#allocation16 + $0x28] sm:$0x8] %v4579_v48  ;;  %4583 = vst [vmem:[#allocation16 + $0x30] sm:$0x8] %v4582_v17  ;;  %v4585_v50 = vsel %vm12517_vm7, %v4552_v45, %v4584_v49  ;;  %10339 = vmatprep.subr.bf16.mxu1 %v11731_v0  ;;  %v5123_v34 = vld [vmem:[#allocation3 + $0x79] sm:$0x1] }
 0x940   :  { %4586 = vst [vmem:[#allocation16 + $0x38] sm:$0x8] %v4585_v50  ;;  %10340 = vmatpush3.bf16.msra.mxu1 %v11076_v3 }
 0x941   :  { %10368 = vmatpush3.bf16.msra.mxu0 %v11065_v51  ;;  %10345 = vmatprep.subr.bf16.mxu1 %v11731_v0 }
 0x942   :  { %10369 = vmatprep.subr.bf16.mxu0 %v11731_v0 }
 0x945   :  { %10370 = vmatpush3.bf16.msra.mxu0 %v11067_v54 }
 0x946   :  { %10371 = vmatprep.subr.bf16.mxu0 %v11731_v0 }
 0x949   :  { %10372 = vmatpush3.bf16.msra.mxu0 %v11069_v57 }
 0x94a   :  { %10373 = vmatprep.subr.bf16.mxu0 %v11731_v0 }
 0x94d   :  { %10374 = vmatpush3.bf16.msra.mxu0 %v11071_v60 }
 0x94e   :  { %10375 = vmatprep.subr.bf16.mxu0 %v11731_v0 }
 0x951   :  { %10376 = vmatpush3.bf16.msra.mxu0 %v11073_v62 }
 0x952   :  { %10377 = vmatprep.subr.bf16.mxu0 %v11731_v0 }
 0x955   :  { %10378 = vmatpush3.bf16.msra.mxu0 %v11075_v1  ;;  %v11078_v1 = vld [vmem:[#allocation13 + $0x40] sm:$0xff]  }
 0x956   :  { %10379 = vmatprep.subr.bf16.mxu0 %v11731_v0 }
 0x959   :  { %10380 = vmatpush3.bf16.msra.mxu0 %v11077_v4  ;;  %v11086_v4 = vld [vmem:[#allocation12] sm:$0xff]  }
 0x95a   :  { %10385 = vmatprep.subr.bf16.mxu0 %v11731_v0 }
 0x9ef   :  { %v5222_v8 = vpop.f32.mrb[36].mxu1 }
 0x9f0   :  { %v5229_v9 = vrot.slane %v5222_v8, 1  ;;  %v5230_v10 = vrot.slane %v5222_v8, 2  ;;  %v5231_v12 = vrot.slane %v5222_v8, 3  ;;  %v5232_v14 = vrot.slane %v5222_v8, 4  ;;  %v10323_v15 = vpop.f32.mrb[37].mxu1 }
 0x9f1   :  { %v5233_v18 = vrot.slane %v5222_v8, 5  ;;  %v5244_v19 = vadd.f32 %v5222_v8, %v5116_v5  ;;  %v5225_v20 = vpop.f32.mrb[38].mxu1  ;;  %v5234_v21 = vrot.slane %v5222_v8, 6  ;;  %v5235_v28 = vrot.slane %v5222_v8, 7  ;;  %v11079_v5 = vld [vmem:[#allocation13 + $0x48] sm:$0xff]   ;;  %v11080_v8 = vld [vmem:[#allocation13 + $0x50] sm:$0xff]  }
 0x9f2   :  { %v5245_v22 = vadd.f32 %v5229_v9, %v5117_v6  ;;  %v5246_v23 = vadd.f32 %v5230_v10, %v5118_v7  ;;  %v5247_v25 = vadd.f32 %v5231_v12, %v5119_v16  ;;  %v10324_v27 = vpop.f32.mrb[39].mxu1  ;;  %v5248_v29 = vadd.f32 %v5232_v14, %v5120_v47  ;;  %v11088_v6 = vld [vmem:[#allocation12 + $0x8] sm:$0xff]   ;;  %v11081_v15 = vld [vmem:[#allocation13 + $0x58] sm:$0xff]   ;;  %v11082_v16 = vld [vmem:[#allocation13 + $0x60] sm:$0xff]  }
 0x9f3   :  { %11382 = vtanh.f32 %v5244_v19  ;;  %v5249_v32 = vadd.f32 %v5233_v18, %v5121_v30  ;;  %v5250_v35 = vadd.f32 %v5234_v21, %v5122_v31  ;;  %v5251_v36 = vadd.f32 %v5235_v28, %v5123_v34  ;;  %v11083_v18 = vld [vmem:[#allocation13 + $0x68] sm:$0xff]   ;;  %v11084_v21 = vld [vmem:[#allocation13 + $0x70] sm:$0xff]  }
 0x9f4   :  { %11384 = vtanh.f32 %v5245_v22 }
 0x9f5   :  { %11386 = vtanh.f32 %v5246_v23 }
 0x9f6   :  { %11388 = vtanh.f32 %v5247_v25 }
 0x9f7   :  { %11390 = vtanh.f32 %v5248_v29  ;;  %v11085_v29 = vld [vmem:[#allocation13 + $0x78] sm:$0xff]  }
 0x9f8   :  { %11392 = vtanh.f32 %v5249_v32 }
 0x9f9   :  { %11394 = vtanh.f32 %v5250_v35  ;;  %v5090_v35 = vld [vmem:[#allocation16 + $0x4] sm:$0x1] }
 0x9fa   :  { %11396 = vtanh.f32 %v5251_v36 }
 0x9fd   :  { %v11383_v37 = vpop.eup %11382 }
 0x9fe   :  { %v11385_v39 = vpop.eup %11384 }
 0x9ff   :  { %v11387_v40 = vpop.eup %11386  ;;  %v5268_v41 = vrot.slane %v11385_v39, 7 }
 0xa00   :  { %v11389_v43 = vpop.eup %11388  ;;  %v5270_v44 = vrot.slane %v11387_v40, 6  ;;  %v5093_v40 = vld [vmem:[#allocation16 + $0xc] sm:$0x1] }
 0xa01   :  { %v11391_v45 = vpop.eup %11390  ;;  %v5269_v46 = vsel %vm533_vm1, %v5268_v41, %v11383_v37  ;;  %v5272_v48 = vrot.slane %v11389_v43, 5 }
 0xa02   :  { %v11393_v17 = vpop.eup %11392  ;;  %v5271_v49 = vsel %vm536_vm2, %v5270_v44, %v5269_v46  ;;  %v5274_v50 = vrot.slane %v11391_v45, 4  ;;  %v5096_v46 = vld [vmem:[#allocation16 + $0x14] sm:$0x1] }
 0xa03   :  { %v11395_v51 = vpop.eup %11394  ;;  %v5273_v53 = vsel %vm539_vm3, %v5272_v48, %v5271_v49  ;;  %v5276_v54 = vrot.slane %v11393_v17, 3  ;;  %v5102_v48 = vld [vmem:[#allocation16 + $0x24] sm:$0x1] }
 0xa04   :  { %v11397_v56 = vpop.eup %11396  ;;  %v5275_v57 = vsel %vm542_vm4, %v5274_v50, %v5273_v53  ;;  %v5278_v59 = vrot.slane %v11395_v51, 2  ;;  %v11087_v17 = vld [vmem:[#allocation13] sm:$0xff]  }
 0xa05   :  { %v5277_v60 = vsel %vm545_vm5, %v5276_v54, %v5275_v57  ;;  %v5280_v61 = vrot.slane %v11397_v56, 1  ;;  %v5099_v54 = vld [vmem:[#allocation16 + $0x1c] sm:$0x1]  ;;  %v5105_v56 = vld [vmem:[#allocation16 + $0x2c] sm:$0x1] }
 0xa06   :  { %v5279_v62 = vsel %vm548_vm6, %v5278_v59, %v5277_v60  ;;  %v5108_v57 = vld [vmem:[#allocation16 + $0x34] sm:$0x1] }
 0xa07   :  { %v5281_v63 = vsel %vm13072_vm9, %v5280_v61, %v5279_v62 }
 0xa08   :  { %v5287_v3 = vpack.c.bf16 %v5281_v63, %v5281_v63 }
 0xa0a   :  { %10342 = vmatmul.mubr.bf16.vlgmr.msra.gmra.mrb[40].mxu1 %v5287_v3  ;;  %10382 = vmatmul.mubr.bf16.vlgmr.msra.gmra.mrb[52].mxu0 %v5287_v3 }
 0xa0b   :  { %10346 = vmatpush3.bf16.msra.mxu1 %v11078_v1  ;;  %10361 = vmatprep.mubr.msk.bf16.mxu1 %vm11732_vm0, %v11731_v0 }
 0xa0c   :  { %10347 = vmatprep.subr.bf16.mxu1 %v11731_v0  ;;  %10386 = vmatpush3.bf16.msra.mxu0 %v11086_v4  ;;  %v5111_v4 = vld [vmem:[#allocation16 + $0x3c] sm:$0x1] }
 0xa0d   :  { %10387 = vmatprep.subr.bf16.mxu0 %v11731_v0  ;;  %10401 = vmatprep.mubr.msk.bf16.mxu0 %vm11732_vm0, %v11731_v0 }
 0xa0f   :  { %v4975_v7 = vpop.f32.mrb[48].mxu0  ;;  %10348 = vmatpush3.bf16.msra.mxu1 %v11079_v5 }
 0xa10   :  { %v10733_v9 = vadd.f32 %v12430_v26, %v4975_v7  ;;  %v10303_v10 = vpop.f32.mrb[49].mxu0  ;;  %10349 = vmatprep.subr.bf16.mxu1 %v11731_v0  ;;  %10388 = vmatpush3.bf16.msra.mxu0 %v11088_v6 }
 0xa11   :  { %v4978_v12 = vpop.f32.mrb[50].mxu0  ;;  %10389 = vmatprep.subr.bf16.mxu0 %v11731_v0  ;;  %v11089_v10 = vld [vmem:[#allocation13 + $0x8] sm:$0xff]  }
 0xa12   :  { %11398 = vtanh.f32 %v10733_v9  ;;  %v10304_v14 = vpop.f32.mrb[51].mxu0  ;;  %v11090_v12 = vld [vmem:[#allocation12 + $0x10] sm:$0xff]  }
 0xa13   :  { %10350 = vmatpush3.bf16.msra.mxu1 %v11080_v8  ;;  %v11091_v14 = vld [vmem:[#allocation13 + $0x10] sm:$0xff]  }
 0xa14   :  { %10351 = vmatprep.subr.bf16.mxu1 %v11731_v0  ;;  %10390 = vmatpush3.bf16.msra.mxu0 %v11090_v12 }
 0xa15   :  { %10391 = vmatprep.subr.bf16.mxu0 %v11731_v0 }
 0xa17   :  { %10352 = vmatpush3.bf16.msra.mxu1 %v11081_v15  ;;  %v11092_v15 = vld [vmem:[#allocation12 + $0x18] sm:$0xff]  }
 0xa18   :  { %10353 = vmatprep.subr.bf16.mxu1 %v11731_v0  ;;  %10392 = vmatpush3.bf16.msra.mxu0 %v11092_v15 }
 0xa19   :  { %10393 = vmatprep.subr.bf16.mxu0 %v11731_v0 }
 0xa1b   :  { %10354 = vmatpush3.bf16.msra.mxu1 %v11082_v16  ;;  %v11093_v16 = vld [vmem:[#allocation13 + $0x18] sm:$0xff]  }
 0xa1c   :  { %v11399_v26 = vpop.eup %11398  ;;  %10355 = vmatprep.subr.bf16.mxu1 %v11731_v0 }
 0xa1d   :  { %v4984_v19 = vpack.c.bf16 %v11399_v26, %v11399_v26  ;;  %v11096_v26 = vld [vmem:[#allocation12 + $0x28] sm:$0xff]  }
 0xa1f   :  { %v4992_v20 = vrot.slane %v4984_v19, %v12012_v33  ;;  %10356 = vmatpush3.bf16.msra.mxu1 %v11083_v18  ;;  %v11094_v18 = vld [vmem:[#allocation12 + $0x20] sm:$0xff]  }
 0xa20   :  { %10357 = vmatprep.subr.bf16.mxu1 %v11731_v0  ;;  %10394 = vmatpush3.bf16.msra.mxu0 %v11094_v18 }
 0xa21   :  { %v4993_v47 = vcombine.high %v4992_v20, %v4992_v20  ;;  %v5000_v22 = vrot.slane %v4992_v20, %v12012_v33  ;;  %10395 = vmatprep.subr.bf16.mxu0 %v11731_v0  ;;  %v11098_v20 = vld [vmem:[#allocation12 + $0x30] sm:$0xff]  }
 0xa23   :  { %v5007_v23 = vrot.slane %v4993_v47, %v12012_v33  ;;  %v5008_v25 = vcombine.high %v5000_v22, %v5000_v22  ;;  %v5011_v27 = vunpack.i.h.s16 %v5000_v22  ;;  %v9078_v28 = vpack.i.b16 %v5000_v22, %v5000_v22  ;;  %10358 = vmatpush3.bf16.msra.mxu1 %v11084_v21  ;;  %v11099_v21 = vld [vmem:[#allocation13 + $0x30] sm:$0xff]   ;;  %v11100_v47 = vld [vmem:[#allocation12 + $0x38] sm:$0xff]  }
 0xa24   :  { %10359 = vmatprep.subr.bf16.mxu1 %v11731_v0  ;;  %10396 = vmatpush3.bf16.msra.mxu0 %v11096_v26  ;;  %v11101_v22 = vld [vmem:[#allocation13 + $0x38] sm:$0xff]  }
 0xa25   :  { %v5009_v30 = vcombine.high %v5007_v23, %v5007_v23  ;;  %v5013_v31 = vunpack.i.h.s16 %v5007_v23  ;;  %v5015_v32 = vunpack.i.h.s16 %v5008_v25  ;;  %v5019_v34 = vpack.i.b16 %v5011_v27, %v5011_v27  ;;  %10397 = vmatprep.subr.bf16.mxu0 %v11731_v0  ;;  %v5640_v27 = vld [vmem:[#allocation3 + $0x2a] sm:$0x1] }
 0xa26   :  { %v9079_v36 = vpack.i.b16 %v5007_v23, %v5007_v23  ;;  %v9080_v37 = vpack.i.b16 %v5008_v25, %v5008_v25  ;;  %v5032_v39 = vrot.slane %v9078_v28, %v12018_v42  ;;  %v5638_v23 = vld [vmem:[#allocation3 + $0xa] sm:$0x1]  ;;  %v5639_v25 = vld [vmem:[#allocation3 + $0x1a] sm:$0x1] }
 0xa27   :  { %v5017_v41 = vunpack.i.h.s16 %v5009_v30  ;;  %v5021_v43 = vpack.i.b16 %v5013_v31, %v5013_v31  ;;  %v5023_v44 = vpack.i.b16 %v5015_v32, %v5015_v32  ;;  %v9081_v45 = vpack.i.b16 %v5009_v30, %v5009_v30  ;;  %10360 = vmatpush3.bf16.msra.mxu1 %v11085_v29 }
 0xa28   :  { %v5039_v49 = vrot.slane %v5019_v34, %v12018_v42  ;;  %v5046_v50 = vrot.slane %v9079_v36, %v12018_v42  ;;  %v5060_v51 = vrot.slane %v9080_v37, %v12018_v42  ;;  %v5091_v53 = vsel %vm12023_vm10, %v5032_v39, %v5090_v35  ;;  %10425 = vmatprep.subr.bf16.mxu1 %v11731_v0  ;;  %v5641_v35 = vld [vmem:[#allocation3 + $0x3a] sm:$0x1] }
 0xa29   :  { %v5025_v59 = vpack.i.b16 %v5017_v41, %v5017_v41  ;;  %v5053_v60 = vrot.slane %v5021_v43, %v12018_v42  ;;  %v5067_v61 = vrot.slane %v5023_v44, %v12018_v42  ;;  %v5074_v62 = vrot.slane %v9081_v45, %v12018_v42  ;;  %5092 = vst [vmem:[#allocation16 + $0x4] sm:$0x1] %v5091_v53  ;;  %v5642_v41 = vld [vmem:[#allocation3 + $0x4a] sm:$0x1]  ;;  %v5645_v53 = vld [vmem:[#allocation3 + $0x7a] sm:$0x1] }
 0xa2a   :  { %v5094_v63 = vsel %vm12023_vm10, %v5039_v49, %v5093_v40  ;;  %v5097_v1 = vsel %vm12023_vm10, %v5046_v50, %v5096_v46  ;;  %v5103_v3 = vsel %vm12023_vm10, %v5060_v51, %v5102_v48  ;;  %10362 = vmatmul.mubr.bf16.vlgmr.msra.gmra.mrb[40].mxu1 %v4984_v19  ;;  %v11097_v19 = vld [vmem:[#allocation13 + $0x28] sm:$0xff]   ;;  %10398 = vmatpush3.bf16.msra.mxu0 %v11098_v20  ;;  %v5644_v50 = vld [vmem:[#allocation3 + $0x6a] sm:$0x1] }
 0xa2b   :  { %v5081_v5 = vrot.slane %v5025_v59, %v12018_v42  ;;  %5095 = vst [vmem:[#allocation16 + $0xc] sm:$0x1] %v5094_v63  ;;  %5098 = vst [vmem:[#allocation16 + $0x14] sm:$0x1] %v5097_v1  ;;  %v5100_v6 = vsel %vm12023_vm10, %v5053_v60, %v5099_v54  ;;  %v5106_v7 = vsel %vm12023_vm10, %v5067_v61, %v5105_v56  ;;  %10426 = vmatpush3.bf16.msra.mxu1 %v11087_v17  ;;  %v5643_v49 = vld [vmem:[#allocation3 + $0x5a] sm:$0x1] }
 0xa2c   :  { %5104 = vst [vmem:[#allocation16 + $0x24] sm:$0x1] %v5103_v3  ;;  %v5109_v8 = vsel %vm12023_vm10, %v5074_v62, %v5108_v57  ;;  %5101 = vst [vmem:[#allocation16 + $0x1c] sm:$0x1] %v5100_v6  ;;  %10427 = vmatprep.subr.bf16.mxu1 %v11731_v0  ;;  %10441 = vmatprep.mubr.msk.bf16.mxu1 %vm11732_vm0, %v11731_v0 }
 0xa2d   :  { %5107 = vst [vmem:[#allocation16 + $0x2c] sm:$0x1] %v5106_v7  ;;  %5110 = vst [vmem:[#allocation16 + $0x34] sm:$0x1] %v5109_v8  ;;  %v5112_v9 = vsel %vm12023_vm10, %v5081_v5, %v5111_v4  ;;  %10399 = vmatprep.subr.bf16.mxu0 %v11731_v0 }
 0xa2e   :  { %5113 = vst [vmem:[#allocation16 + $0x3c] sm:$0x1] %v5112_v9  ;;  %10400 = vmatpush3.bf16.msra.mxu0 %v11100_v47  ;;  %vm13073_vm10 = vmmov %vm13072_vm9  ;;  %v11103_v47 = vld [vmem:[#allocation13 + $0x48] sm:$0xff]  }
 0xa2f   :  { %10428 = vmatpush3.bf16.msra.mxu1 %v11089_v10  ;;  %10405 = vmatprep.subr.bf16.mxu0 %v11731_v0 }
 0xa30   :  { %10429 = vmatprep.subr.bf16.mxu1 %v11731_v0 }
 0xa33   :  { %10430 = vmatpush3.bf16.msra.mxu1 %v11091_v14 }
 0xa34   :  { %10431 = vmatprep.subr.bf16.mxu1 %v11731_v0 }
 0xa37   :  { %10432 = vmatpush3.bf16.msra.mxu1 %v11093_v16 }
 0xa38   :  { %10433 = vmatprep.subr.bf16.mxu1 %v11731_v0 }
 0xa3b   :  { %10434 = vmatpush3.bf16.msra.mxu1 %v11095_v52 }
 0xa3c   :  { %10435 = vmatprep.subr.bf16.mxu1 %v11731_v0 }
 0xa3f   :  { %10436 = vmatpush3.bf16.msra.mxu1 %v11097_v19  ;;  %v11102_v19 = vld [vmem:[#allocation13 + $0x40] sm:$0xff]  }
 0xa40   :  { %10437 = vmatprep.subr.bf16.mxu1 %v11731_v0 }
 0xa43   :  { %10438 = vmatpush3.bf16.msra.mxu1 %v11099_v21  ;;  %v11110_v21 = vld [vmem:[#allocation12] sm:$0xff]  }
 0xa44   :  { %10439 = vmatprep.subr.bf16.mxu1 %v11731_v0 }
 0xa47   :  { %10440 = vmatpush3.bf16.msra.mxu1 %v11101_v22  ;;  %v11112_v22 = vld [vmem:[#allocation12 + $0x8] sm:$0xff]  }
 0xa48   :  { %10445 = vmatprep.subr.bf16.mxu1 %v11731_v0 }
 0xadd   :  { %v5744_v28 = vpop.f32.mrb[52].mxu0 }
 0xade   :  { %v5751_v29 = vrot.slane %v5744_v28, 1  ;;  %v5752_v30 = vrot.slane %v5744_v28, 2  ;;  %v5753_v31 = vrot.slane %v5744_v28, 3  ;;  %v5754_v32 = vrot.slane %v5744_v28, 4  ;;  %v10383_v34 = vpop.f32.mrb[53].mxu0 }
 0xadf   :  { %v5755_v36 = vrot.slane %v5744_v28, 5  ;;  %v5766_v37 = vadd.f32 %v5744_v28, %v5638_v23  ;;  %v5747_v39 = vpop.f32.mrb[54].mxu0  ;;  %v5756_v40 = vrot.slane %v5744_v28, 6  ;;  %v5757_v48 = vrot.slane %v5744_v28, 7  ;;  %v12637_v23 = vld [vmem:[#allocation15] ss:$0 sm:$0xff] }
 0xae0   :  { %v5767_v43 = vadd.f32 %v5751_v29, %v5639_v25  ;;  %v5768_v44 = vadd.f32 %v5752_v30, %v5640_v27  ;;  %v5769_v45 = vadd.f32 %v5753_v31, %v5641_v35  ;;  %v10384_v46 = vpop.f32.mrb[55].mxu0  ;;  %v5770_v17 = vadd.f32 %v5754_v32, %v5642_v41  ;;  %v11104_v27 = vld [vmem:[#allocation13 + $0x50] sm:$0xff]   ;;  %v11105_v32 = vld [vmem:[#allocation13 + $0x58] sm:$0xff]   ;;  %v11106_v34 = vld [vmem:[#allocation13 + $0x60] sm:$0xff]  }
 0xae1   :  { %11400 = vtanh.f32 %v5766_v37  ;;  %v5771_v51 = vadd.f32 %v5755_v36, %v5643_v49  ;;  %v5772_v54 = vadd.f32 %v5756_v40, %v5644_v50  ;;  %v5773_v56 = vadd.f32 %v5757_v48, %v5645_v53  ;;  %v11107_v35 = vld [vmem:[#allocation13 + $0x68] sm:$0xff]   ;;  %v11108_v40 = vld [vmem:[#allocation13 + $0x70] sm:$0xff]  }
 0xae2   :  { %11402 = vtanh.f32 %v5767_v43 }
 0xae3   :  { %11404 = vtanh.f32 %v5768_v44 }
 0xae4   :  { %11406 = vtanh.f32 %v5769_v45 }
 0xae5   :  { %11408 = vtanh.f32 %v5770_v17  ;;  %v11109_v17 = vld [vmem:[#allocation13 + $0x78] sm:$0xff]  }
 0xae6   :  { %11410 = vtanh.f32 %v5771_v51 }
 0xae7   :  { %11412 = vtanh.f32 %v5772_v54 }
 0xae8   :  { %11414 = vtanh.f32 %v5773_v56 }
 0xaeb   :  { %v11401_v57 = vpop.eup %11400 }
 0xaec   :  { %v11403_v59 = vpop.eup %11402 }
 0xaed   :  { %v11405_v60 = vpop.eup %11404  ;;  %v5790_v61 = vrot.slane %v11403_v59, 7 }
 0xaee   :  { %v11407_v62 = vpop.eup %11406  ;;  %v5792_v63 = vrot.slane %v11405_v60, 6 }
 0xaef   :  { %v11409_v1 = vpop.eup %11408  ;;  %v5791_v3 = vsel %vm533_vm1, %v5790_v61, %v11401_v57  ;;  %v5794_v4 = vrot.slane %v11407_v62, 5 }
 0xaf0   :  { %v11411_v5 = vpop.eup %11410  ;;  %v5793_v6 = vsel %vm536_vm2, %v5792_v63, %v5791_v3  ;;  %v5796_v7 = vrot.slane %v11409_v1, 4  ;;  %v5612_v63 = vld [vmem:[#allocation16 + $0x4] sm:$0x1] }
 0xaf1   :  { %v11413_v8 = vpop.eup %11412  ;;  %v5795_v9 = vsel %vm539_vm3, %v5794_v4, %v5793_v6  ;;  %v5798_v10 = vrot.slane %v11411_v5, 3  ;;  %v11111_v1 = vld [vmem:[#allocation13] sm:$0xff]  }
 0xaf2   :  { %v11415_v12 = vpop.eup %11414  ;;  %v5797_v14 = vsel %vm542_vm4, %v5796_v7, %v5795_v9  ;;  %v5800_v15 = vrot.slane %v11413_v8, 2 }
 0xaf3   :  { %v5799_v16 = vsel %vm545_vm5, %v5798_v10, %v5797_v14  ;;  %v5802_v18 = vrot.slane %v11415_v12, 1  ;;  %v5615_v12 = vld [vmem:[#allocation16 + $0xc] sm:$0x1]  ;;  %v5618_v14 = vld [vmem:[#allocation16 + $0x14] sm:$0x1] }
 0xaf4   :  { %v5801_v52 = vsel %vm548_vm6, %v5800_v15, %v5799_v16  ;;  %v5624_v15 = vld [vmem:[#allocation16 + $0x24] sm:$0x1] }
 0xaf5   :  { %v5803_v26 = vsel %vm13073_vm10, %v5802_v18, %v5801_v52  ;;  %v5621_v52 = vld [vmem:[#allocation16 + $0x1c] sm:$0x1] }
 0xaf6   :  { %v5809_v20 = vpack.c.bf16 %v5803_v26, %v5803_v26 }
 0xaf8   :  { %10402 = vmatmul.mubr.bf16.vlgmr.msra.gmra.mrb[56].mxu0 %v5809_v20  ;;  %10442 = vmatmul.mubr.bf16.vlgmr.msra.gmra.mrb[44].mxu1 %v5809_v20  ;;  %v5630_v20 = vld [vmem:[#allocation16 + $0x34] sm:$0x1] }
 0xaf9   :  { %10406 = vmatpush3.bf16.msra.mxu0 %v11102_v19  ;;  %10421 = vmatprep.mubr.msk.bf16.mxu0 %vm11732_vm0, %v11731_v0  ;;  %v5627_v19 = vld [vmem:[#allocation16 + $0x2c] sm:$0x1] }
 0xafa   :  { %10407 = vmatprep.subr.bf16.mxu0 %v11731_v0  ;;  %10446 = vmatpush3.bf16.msra.mxu1 %v11110_v21 }
 0xafb   :  { %10447 = vmatprep.subr.bf16.mxu1 %v11731_v0  ;;  %10461 = vmatprep.mubr.msk.bf16.mxu1 %vm11732_vm0, %v11731_v0 }
 0xafd   :  { %v5497_v25 = vpop.f32.mrb[40].mxu1  ;;  %10408 = vmatpush3.bf16.msra.mxu0 %v11103_v47 }
 0xafe   :  { %v10734_v28 = vadd.f32 %v12637_v23, %v5497_v25  ;;  %v10363_v29 = vpop.f32.mrb[41].mxu1  ;;  %10409 = vmatprep.subr.bf16.mxu0 %v11731_v0  ;;  %10448 = vmatpush3.bf16.msra.mxu1 %v11112_v22 }
 0xaff   :  { %v5500_v30 = vpop.f32.mrb[42].mxu1  ;;  %10449 = vmatprep.subr.bf16.mxu1 %v11731_v0  ;;  %v11113_v29 = vld [vmem:[#allocation13 + $0x8] sm:$0xff]  }
 0xb00   :  { %11416 = vtanh.f32 %v10734_v28  ;;  %v10364_v31 = vpop.f32.mrb[43].mxu1  ;;  %v11114_v30 = vld [vmem:[#allocation12 + $0x10] sm:$0xff]  }
 0xb01   :  { %10410 = vmatpush3.bf16.msra.mxu0 %v11104_v27  ;;  %v5633_v27 = vld [vmem:[#allocation16 + $0x3c] sm:$0x1]  ;;  %v11115_v31 = vld [vmem:[#allocation13 + $0x10] sm:$0xff]  }
 0xb02   :  { %10411 = vmatprep.subr.bf16.mxu0 %v11731_v0  ;;  %10450 = vmatpush3.bf16.msra.mxu1 %v11114_v30 }
 0xb03   :  { %10451 = vmatprep.subr.bf16.mxu1 %v11731_v0 }
 0xb05   :  { %10412 = vmatpush3.bf16.msra.mxu0 %v11105_v32  ;;  %v11116_v32 = vld [vmem:[#allocation12 + $0x18] sm:$0xff]  }
 0xb06   :  { %10413 = vmatprep.subr.bf16.mxu0 %v11731_v0  ;;  %10452 = vmatpush3.bf16.msra.mxu1 %v11116_v32 }
 0xb07   :  { %10453 = vmatprep.subr.bf16.mxu1 %v11731_v0 }
 0xb09   :  { %10414 = vmatpush3.bf16.msra.mxu0 %v11106_v34  ;;  %v11117_v34 = vld [vmem:[#allocation13 + $0x18] sm:$0xff]  }
 0xb0a   :  { %v11417_v36 = vpop.eup %11416  ;;  %10415 = vmatprep.subr.bf16.mxu0 %v11731_v0 }
 0xb0b   :  { %v5506_v37 = vpack.c.bf16 %v11417_v36, %v11417_v36  ;;  %v11120_v36 = vld [vmem:[#allocation12 + $0x28] sm:$0xff]  }
 0xb0d   :  { %v5514_v39 = vrot.slane %v5506_v37, %v12012_v33  ;;  %10416 = vmatpush3.bf16.msra.mxu0 %v11107_v35  ;;  %v11118_v35 = vld [vmem:[#allocation12 + $0x20] sm:$0xff]  }
 0xb0e   :  { %10417 = vmatprep.subr.bf16.mxu0 %v11731_v0  ;;  %10454 = vmatpush3.bf16.msra.mxu1 %v11118_v35 }
 0xb0f   :  { %v5515_v41 = vcombine.high %v5514_v39, %v5514_v39  ;;  %v5522_v43 = vrot.slane %v5514_v39, %v12012_v33  ;;  %10455 = vmatprep.subr.bf16.mxu1 %v11731_v0  ;;  %v11122_v39 = vld [vmem:[#allocation12 + $0x30] sm:$0xff]  }
 0xb11   :  { %v5529_v44 = vrot.slane %v5515_v41, %v12012_v33  ;;  %v5530_v45 = vcombine.high %v5522_v43, %v5522_v43  ;;  %v5533_v46 = vunpack.i.h.s16 %v5522_v43  ;;  %v9107_v48 = vpack.i.b16 %v5522_v43, %v5522_v43  ;;  %10418 = vmatpush3.bf16.msra.mxu0 %v11108_v40  ;;  %v11123_v40 = vld [vmem:[#allocation13 + $0x30] sm:$0xff]   ;;  %v11124_v41 = vld [vmem:[#allocation12 + $0x38] sm:$0xff]  }
 0xb12   :  { %10419 = vmatprep.subr.bf16.mxu0 %v11731_v0  ;;  %10456 = vmatpush3.bf16.msra.mxu1 %v11120_v36  ;;  %v11125_v43 = vld [vmem:[#allocation13 + $0x38] sm:$0xff]  }
 0xb13   :  { %v5531_v49 = vcombine.high %v5529_v44, %v5529_v44  ;;  %v5535_v50 = vunpack.i.h.s16 %v5529_v44  ;;  %v5537_v51 = vunpack.i.h.s16 %v5530_v45  ;;  %v5541_v53 = vpack.i.b16 %v5533_v46, %v5533_v46  ;;  %10457 = vmatprep.subr.bf16.mxu1 %v11731_v0  ;;  %v6162_v46 = vld [vmem:[#allocation3 + $0x2b] sm:$0x1] }
 0xb14   :  { %v9108_v54 = vpack.i.b16 %v5529_v44, %v5529_v44  ;;  %v9109_v56 = vpack.i.b16 %v5530_v45, %v5530_v45  ;;  %v5554_v57 = vrot.slane %v9107_v48, %v12018_v42  ;;  %v6160_v44 = vld [vmem:[#allocation3 + $0xb] sm:$0x1]  ;;  %v6161_v45 = vld [vmem:[#allocation3 + $0x1b] sm:$0x1] }
 0xb15   :  { %v5539_v59 = vunpack.i.h.s16 %v5531_v49  ;;  %v5543_v60 = vpack.i.b16 %v5535_v50, %v5535_v50  ;;  %v5545_v61 = vpack.i.b16 %v5537_v51, %v5537_v51  ;;  %v9110_v62 = vpack.i.b16 %v5531_v49, %v5531_v49  ;;  %10420 = vmatpush3.bf16.msra.mxu0 %v11109_v17 }
 0xb16   :  { %v5561_v3 = vrot.slane %v5541_v53, %v12018_v42  ;;  %v5568_v4 = vrot.slane %v9108_v54, %v12018_v42  ;;  %v5582_v5 = vrot.slane %v9109_v56, %v12018_v42  ;;  %v5613_v6 = vsel %vm12093_vm12, %v5554_v57, %v5612_v63  ;;  %10485 = vmatprep.subr.bf16.mxu0 %v11731_v0  ;;  %v6163_v54 = vld [vmem:[#allocation3 + $0x3b] sm:$0x1] }
 0xb17   :  { %v5547_v7 = vpack.i.b16 %v5539_v59, %v5539_v59  ;;  %v5575_v8 = vrot.slane %v5543_v60, %v12018_v42  ;;  %v5589_v9 = vrot.slane %v5545_v61, %v12018_v42  ;;  %v5596_v10 = vrot.slane %v9110_v62, %v12018_v42  ;;  %5614 = vst [vmem:[#allocation16 + $0x4] sm:$0x1] %v5613_v6  ;;  %v6164_v61 = vld [vmem:[#allocation3 + $0x4b] sm:$0x1]  ;;  %v6165_v6 = vld [vmem:[#allocation3 + $0x5b] sm:$0x1] }
 0xb18   :  { %v5616_v16 = vsel %vm12093_vm12, %v5561_v3, %v5615_v12  ;;  %v5619_v18 = vsel %vm12093_vm12, %v5568_v4, %v5618_v14  ;;  %v5625_v26 = vsel %vm12093_vm12, %v5582_v5, %v5624_v15  ;;  %10422 = vmatmul.mubr.bf16.vlgmr.msra.gmra.mrb[56].mxu0 %v5506_v37  ;;  %v11121_v37 = vld [vmem:[#allocation13 + $0x28] sm:$0xff]   ;;  %10458 = vmatpush3.bf16.msra.mxu1 %v11122_v39 }
 0xb19   :  { %v5603_v21 = vrot.slane %v5547_v7, %v12018_v42  ;;  %5617 = vst [vmem:[#allocation16 + $0xc] sm:$0x1] %v5616_v16  ;;  %5620 = vst [vmem:[#allocation16 + $0x14] sm:$0x1] %v5619_v18  ;;  %v5622_v47 = vsel %vm12093_vm12, %v5575_v8, %v5621_v52  ;;  %v5628_v22 = vsel %vm12093_vm12, %v5589_v9, %v5627_v19  ;;  %10486 = vmatpush3.bf16.msra.mxu0 %v11111_v1  ;;  %v6166_v7 = vld [vmem:[#allocation3 + $0x6b] sm:$0x1] }
 0xb1a   :  { %5626 = vst [vmem:[#allocation16 + $0x24] sm:$0x1] %v5625_v26  ;;  %v5631_v25 = vsel %vm12093_vm12, %v5596_v10, %v5630_v20  ;;  %5623 = vst [vmem:[#allocation16 + $0x1c] sm:$0x1] %v5622_v47  ;;  %10487 = vmatprep.subr.bf16.mxu0 %v11731_v0  ;;  %10501 = vmatprep.mubr.msk.bf16.mxu0 %vm11732_vm0, %v11731_v0  ;;  %v6167_v9 = vld [vmem:[#allocation3 + $0x7b] sm:$0x1] }
 0xb1b   :  { %5629 = vst [vmem:[#allocation16 + $0x2c] sm:$0x1] %v5628_v22  ;;  %5632 = vst [vmem:[#allocation16 + $0x34] sm:$0x1] %v5631_v25  ;;  %v5634_v28 = vsel %vm12093_vm12, %v5603_v21, %v5633_v27  ;;  %10459 = vmatprep.subr.bf16.mxu1 %v11731_v0 }
 0xb1c   :  { %5635 = vst [vmem:[#allocation16 + $0x3c] sm:$0x1] %v5634_v28  ;;  %10460 = vmatpush3.bf16.msra.mxu1 %v11124_v41  ;;  %vm13074_vm12 = vmmov %vm13072_vm9  ;;  %v11127_v41 = vld [vmem:[#allocation13 + $0x48] sm:$0xff]  }
 0xb1d   :  { %10488 = vmatpush3.bf16.msra.mxu0 %v11113_v29  ;;  %10465 = vmatprep.subr.bf16.mxu1 %v11731_v0 }
 0xb1e   :  { %10489 = vmatprep.subr.bf16.mxu0 %v11731_v0 }
 0xb21   :  { %10490 = vmatpush3.bf16.msra.mxu0 %v11115_v31 }
 0xb22   :  { %10491 = vmatprep.subr.bf16.mxu0 %v11731_v0 }
 0xb25   :  { %10492 = vmatpush3.bf16.msra.mxu0 %v11117_v34 }
 0xb26   :  { %10493 = vmatprep.subr.bf16.mxu0 %v11731_v0 }
 0xb29   :  { %10494 = vmatpush3.bf16.msra.mxu0 %v11119_v58 }
 0xb2a   :  { %10495 = vmatprep.subr.bf16.mxu0 %v11731_v0 }
 0xb2d   :  { %10496 = vmatpush3.bf16.msra.mxu0 %v11121_v37  ;;  %v11126_v37 = vld [vmem:[#allocation13 + $0x40] sm:$0xff]  }
 0xb2e   :  { %10497 = vmatprep.subr.bf16.mxu0 %v11731_v0 }
 0xb31   :  { %10498 = vmatpush3.bf16.msra.mxu0 %v11123_v40  ;;  %v11134_v40 = vld [vmem:[#allocation12] sm:$0xff]  }
 0xb32   :  { %10499 = vmatprep.subr.bf16.mxu0 %v11731_v0 }
 0xb35   :  { %10500 = vmatpush3.bf16.msra.mxu0 %v11125_v43  ;;  %v11136_v43 = vld [vmem:[#allocation12 + $0x8] sm:$0xff]  }
 0xb36   :  { %10505 = vmatprep.subr.bf16.mxu0 %v11731_v0 }
 0xbcb   :  { %v6266_v48 = vpop.f32.mrb[44].mxu1 }
 0xbcc   :  { %v6273_v17 = vrot.slane %v6266_v48, 1  ;;  %v6274_v49 = vrot.slane %v6266_v48, 2  ;;  %v6275_v50 = vrot.slane %v6266_v48, 3  ;;  %v6276_v51 = vrot.slane %v6266_v48, 4  ;;  %v10443_v53 = vpop.f32.mrb[45].mxu1 }
 0xbcd   :  { %v6277_v56 = vrot.slane %v6266_v48, 5  ;;  %v6288_v57 = vadd.f32 %v6266_v48, %v6160_v44  ;;  %v6269_v59 = vpop.f32.mrb[46].mxu1  ;;  %v6278_v60 = vrot.slane %v6266_v48, 6  ;;  %v6279_v4 = vrot.slane %v6266_v48, 7  ;;  %v11131_v53 = vld [vmem:[#allocation13 + $0x68] sm:$0xff]  }
 0xbce   :  { %v6289_v62 = vadd.f32 %v6273_v17, %v6161_v45  ;;  %v6290_v63 = vadd.f32 %v6274_v49, %v6162_v46  ;;  %v6291_v1 = vadd.f32 %v6275_v50, %v6163_v54  ;;  %v10444_v3 = vpop.f32.mrb[47].mxu1  ;;  %v6292_v5 = vadd.f32 %v6276_v51, %v6164_v61  ;;  %v11128_v45 = vld [vmem:[#allocation13 + $0x50] sm:$0xff]   ;;  %v11129_v50 = vld [vmem:[#allocation13 + $0x58] sm:$0xff]   ;;  %v11130_v51 = vld [vmem:[#allocation13 + $0x60] sm:$0xff]  }
 0xbcf   :  { %11418 = vtanh.f32 %v6288_v57  ;;  %v6293_v8 = vadd.f32 %v6277_v56, %v6165_v6  ;;  %v6294_v10 = vadd.f32 %v6278_v60, %v6166_v7  ;;  %v6295_v12 = vadd.f32 %v6279_v4, %v6167_v9  ;;  %v11132_v59 = vld [vmem:[#allocation13 + $0x70] sm:$0xff]   ;;  %v11133_v4 = vld [vmem:[#allocation13 + $0x78] sm:$0xff]   ;;  %v6134_v9 = vld [vmem:[#allocation16 + $0x4] sm:$0x2] }
 0xbd0   :  { %11420 = vtanh.f32 %v6289_v62 }
 0xbd1   :  { %11422 = vtanh.f32 %v6290_v63 }
 0xbd2   :  { %11424 = vtanh.f32 %v6291_v1 }
 0xbd3   :  { %11426 = vtanh.f32 %v6292_v5 }
 0xbd4   :  { %11428 = vtanh.f32 %v6293_v8 }
 0xbd5   :  { %11430 = vtanh.f32 %v6294_v10 }
 0xbd6   :  { %11432 = vtanh.f32 %v6295_v12 }
 0xbd9   :  { %v11419_v14 = vpop.eup %11418 }
 0xbda   :  { %v11421_v15 = vpop.eup %11420 }
 0xbdb   :  { %v11423_v16 = vpop.eup %11422  ;;  %v6312_v18 = vrot.slane %v11421_v15, 7  ;;  %v6137_v15 = vld [vmem:[#allocation16 + $0xc] sm:$0x2] }
 0xbdc   :  { %v11425_v52 = vpop.eup %11424  ;;  %v6314_v26 = vrot.slane %v11423_v16, 6 }
 0xbdd   :  { %v11427_v19 = vpop.eup %11426  ;;  %v6313_v20 = vsel %vm533_vm1, %v6312_v18, %v11419_v14  ;;  %v6316_v21 = vrot.slane %v11425_v52, 5 }
 0xbde   :  { %v11429_v47 = vpop.eup %11428  ;;  %v6315_v22 = vsel %vm536_vm2, %v6314_v26, %v6313_v20  ;;  %v6318_v25 = vrot.slane %v11427_v19, 4  ;;  %v6140_v19 = vld [vmem:[#allocation16 + $0x14] sm:$0x2]  ;;  %v6146_v20 = vld [vmem:[#allocation16 + $0x24] sm:$0x2] }
 0xbdf   :  { %v11431_v27 = vpop.eup %11430  ;;  %v6317_v28 = vsel %vm539_vm3, %v6316_v21, %v6315_v22  ;;  %v6320_v29 = vrot.slane %v11429_v47, 3  ;;  %v11135_v21 = vld [vmem:[#allocation13] sm:$0xff]  }
 0xbe0   :  { %v11433_v30 = vpop.eup %11432  ;;  %v6319_v31 = vsel %vm542_vm4, %v6318_v25, %v6317_v28  ;;  %v6322_v32 = vrot.slane %v11431_v27, 2  ;;  %v6143_v28 = vld [vmem:[#allocation16 + $0x1c] sm:$0x2] }
 0xbe1   :  { %v6321_v34 = vsel %vm545_vm5, %v6320_v29, %v6319_v31  ;;  %v6324_v35 = vrot.slane %v11433_v30, 1  ;;  %v6149_v29 = vld [vmem:[#allocation16 + $0x2c] sm:$0x2]  ;;  %v6152_v30 = vld [vmem:[#allocation16 + $0x34] sm:$0x2] }
 0xbe2   :  { %v6323_v58 = vsel %vm548_vm6, %v6322_v32, %v6321_v34 }
 0xbe3   :  { %v6325_v36 = vsel %vm13074_vm12, %v6324_v35, %v6323_v58 }
 0xbe4   :  { %v6331_v39 = vpack.c.bf16 %v6325_v36, %v6325_v36 }
 0xbe6   :  { %10462 = vmatmul.mubr.bf16.vlgmr.msra.gmra.mrb[48].mxu1 %v6331_v39  ;;  %10502 = vmatmul.mubr.bf16.vlgmr.msra.gmra.mrb[60].mxu0 %v6331_v39  ;;  %v6155_v39 = vld [vmem:[#allocation16 + $0x3c] sm:$0x2] }
 0xbe7   :  { %10466 = vmatpush3.bf16.msra.mxu1 %v11126_v37  ;;  %10481 = vmatprep.mubr.msk.bf16.mxu1 %vm11732_vm0, %v11731_v0 }
 0xbe8   :  { %10467 = vmatprep.subr.bf16.mxu1 %v11731_v0  ;;  %10506 = vmatpush3.bf16.msra.mxu0 %v11134_v40 }
 0xbe9   :  { %10507 = vmatprep.subr.bf16.mxu0 %v11731_v0  ;;  %10521 = vmatprep.mubr.msk.bf16.mxu0 %vm11732_vm0, %v11731_v0 }
 0xbeb   :  { %v6019_v44 = vpop.f32.mrb[56].mxu0  ;;  %10468 = vmatpush3.bf16.msra.mxu1 %v11127_v41 }
 0xbec   :  { %v10735_v46 = vadd.f32 %v12637_v23, %v6019_v44  ;;  %v10423_v48 = vpop.f32.mrb[57].mxu0  ;;  %10469 = vmatprep.subr.bf16.mxu1 %v11731_v0  ;;  %10508 = vmatpush3.bf16.msra.mxu0 %v11136_v43 }
 0xbed   :  { %v6022_v17 = vpop.f32.mrb[58].mxu0  ;;  %10509 = vmatprep.subr.bf16.mxu0 %v11731_v0  ;;  %v11138_v48 = vld [vmem:[#allocation12 + $0x10] sm:$0xff]  }
 0xbee   :  { %11434 = vtanh.f32 %v10735_v46  ;;  %v10424_v49 = vpop.f32.mrb[59].mxu0  ;;  %v11137_v46 = vld [vmem:[#allocation13 + $0x8] sm:$0xff]   ;;  %v11139_v17 = vld [vmem:[#allocation13 + $0x10] sm:$0xff]  }
 0xbef   :  { %10470 = vmatpush3.bf16.msra.mxu1 %v11128_v45  ;;  %v11140_v49 = vld [vmem:[#allocation12 + $0x18] sm:$0xff]  }
 0xbf0   :  { %10471 = vmatprep.subr.bf16.mxu1 %v11731_v0  ;;  %10510 = vmatpush3.bf16.msra.mxu0 %v11138_v48 }
 0xbf1   :  { %10511 = vmatprep.subr.bf16.mxu0 %v11731_v0 }
 0xbf3   :  { %10472 = vmatpush3.bf16.msra.mxu1 %v11129_v50  ;;  %v11141_v50 = vld [vmem:[#allocation13 + $0x18] sm:$0xff]  }
 0xbf4   :  { %10473 = vmatprep.subr.bf16.mxu1 %v11731_v0  ;;  %10512 = vmatpush3.bf16.msra.mxu0 %v11140_v49 }
 0xbf5   :  { %10513 = vmatprep.subr.bf16.mxu0 %v11731_v0 }
 0xbf7   :  { %10474 = vmatpush3.bf16.msra.mxu1 %v11130_v51  ;;  %v11142_v51 = vld [vmem:[#allocation12 + $0x20] sm:$0xff]  }
 0xbf8   :  { %v11435_v54 = vpop.eup %11434  ;;  %10475 = vmatprep.subr.bf16.mxu1 %v11731_v0  ;;  %10514 = vmatpush3.bf16.msra.mxu0 %v11142_v51 }
 0xbf9   :  { %v6028_v56 = vpack.c.bf16 %v11435_v54, %v11435_v54  ;;  %10515 = vmatprep.subr.bf16.mxu0 %v11731_v0  ;;  %v11145_v54 = vld [vmem:[#allocation13 + $0x28] sm:$0xff]  }
 0xbfb   :  { %v6036_v57 = vrot.slane %v6028_v56, %v12012_v33  ;;  %10476 = vmatpush3.bf16.msra.mxu1 %v11131_v53  ;;  %v11144_v53 = vld [vmem:[#allocation12 + $0x28] sm:$0xff]  }
 0xbfc   :  { %10477 = vmatprep.subr.bf16.mxu1 %v11731_v0  ;;  %10516 = vmatpush3.bf16.msra.mxu0 %v11144_v53  ;;  %v11150_v53 = vld [vmem:[#allocation13 + $0x40] sm:$0xff]  }
 0xbfd   :  { %v6037_v60 = vcombine.high %v6036_v57, %v6036_v57  ;;  %v6044_v61 = vrot.slane %v6036_v57, %v12012_v33  ;;  %10517 = vmatprep.subr.bf16.mxu0 %v11731_v0  ;;  %v11147_v57 = vld [vmem:[#allocation13 + $0x30] sm:$0xff]  }
 0xbff   :  { %v6051_v62 = vrot.slane %v6037_v60, %v12012_v33  ;;  %v6052_v63 = vcombine.high %v6044_v61, %v6044_v61  ;;  %v6055_v1 = vunpack.i.h.s16 %v6044_v61  ;;  %v9136_v3 = vpack.i.b16 %v6044_v61, %v6044_v61  ;;  %10478 = vmatpush3.bf16.msra.mxu1 %v11132_v59  ;;  %v11148_v59 = vld [vmem:[#allocation12 + $0x38] sm:$0xff]  }
 0xc00   :  { %10479 = vmatprep.subr.bf16.mxu1 %v11731_v0  ;;  %v11149_v60 = vld [vmem:[#allocation13 + $0x38] sm:$0xff]  }
 0xc01   :  { %v6053_v5 = vcombine.high %v6051_v62, %v6051_v62  ;;  %v6057_v6 = vunpack.i.h.s16 %v6051_v62  ;;  %v6059_v7 = vunpack.i.h.s16 %v6052_v63  ;;  %v6063_v8 = vpack.i.b16 %v6055_v1, %v6055_v1  ;;  %v6682_v61 = vld [vmem:[#allocation3 + $0xc] sm:$0x1] }
 0xc02   :  { %v9137_v10 = vpack.i.b16 %v6051_v62, %v6051_v62  ;;  %v9138_v12 = vpack.i.b16 %v6052_v63, %v6052_v63  ;;  %v6076_v14 = vrot.slane %v9136_v3, %v12018_v42  ;;  %v6683_v62 = vld [vmem:[#allocation3 + $0x1c] sm:$0x1]  ;;  %v6684_v63 = vld [vmem:[#allocation3 + $0x2c] sm:$0x1] }
 0xc03   :  { %v6061_v16 = vunpack.i.h.s16 %v6053_v5  ;;  %v6065_v18 = vpack.i.b16 %v6057_v6, %v6057_v6  ;;  %v6067_v52 = vpack.i.b16 %v6059_v7, %v6059_v7  ;;  %v9139_v26 = vpack.i.b16 %v6053_v5, %v6053_v5  ;;  %10480 = vmatpush3.bf16.msra.mxu1 %v11133_v4 }
 0xc04   :  { %v6083_v47 = vrot.slane %v6063_v8, %v12018_v42  ;;  %v6090_v22 = vrot.slane %v9137_v10, %v12018_v42  ;;  %v6104_v25 = vrot.slane %v9138_v12, %v12018_v42  ;;  %v6135_v27 = vsel %vm12163_vm14, %v6076_v14, %v6134_v9  ;;  %10545 = vmatprep.subr.bf16.mxu1 %v11731_v0  ;;  %v6685_v8 = vld [vmem:[#allocation3 + $0x3c] sm:$0x1] }
 0xc05   :  { %v6069_v31 = vpack.i.b16 %v6061_v16, %v6061_v16  ;;  %v6097_v32 = vrot.slane %v6065_v18, %v12018_v42  ;;  %v6111_v34 = vrot.slane %v6067_v52, %v12018_v42  ;;  %v6118_v35 = vrot.slane %v9139_v26, %v12018_v42  ;;  %6136 = vst [vmem:[#allocation16 + $0x4] sm:$0x2] %v6135_v27 }
 0xc06   :  { %v6138_v58 = vsel %vm12163_vm14, %v6083_v47, %v6137_v15  ;;  %v6141_v36 = vsel %vm12163_vm14, %v6090_v22, %v6140_v19  ;;  %v6147_v37 = vsel %vm12163_vm14, %v6104_v25, %v6146_v20  ;;  %10482 = vmatmul.mubr.bf16.vlgmr.msra.gmra.mrb[48].mxu1 %v6028_v56  ;;  %v11146_v56 = vld [vmem:[#allocation12 + $0x30] sm:$0xff]   ;;  %v6686_v15 = vld [vmem:[#allocation3 + $0x4c] sm:$0x1]  ;;  %v6689_v25 = vld [vmem:[#allocation3 + $0x7c] sm:$0x1] }
 0xc07   :  { %v6125_v40 = vrot.slane %v6069_v31, %v12018_v42  ;;  %6139 = vst [vmem:[#allocation16 + $0xc] sm:$0x2] %v6138_v58  ;;  %6142 = vst [vmem:[#allocation16 + $0x14] sm:$0x2] %v6141_v36  ;;  %v6144_v41 = vsel %vm12163_vm14, %v6097_v32, %v6143_v28  ;;  %v6150_v43 = vsel %vm12163_vm14, %v6111_v34, %v6149_v29  ;;  %10546 = vmatpush3.bf16.msra.mxu1 %v11135_v21  ;;  %v6687_v21 = vld [vmem:[#allocation3 + $0x5c] sm:$0x1] }
 0xc08   :  { %6148 = vst [vmem:[#allocation16 + $0x24] sm:$0x2] %v6147_v37  ;;  %v6153_v44 = vsel %vm12163_vm14, %v6118_v35, %v6152_v30  ;;  %6145 = vst [vmem:[#allocation16 + $0x1c] sm:$0x2] %v6144_v41  ;;  %10547 = vmatprep.subr.bf16.mxu1 %v11731_v0  ;;  %10561 = vmatprep.mubr.msk.bf16.mxu1 %vm11732_vm0, %v11731_v0  ;;  %v6688_v47 = vld [vmem:[#allocation3 + $0x6c] sm:$0x1] }
 0xc09   :  { %6151 = vst [vmem:[#allocation16 + $0x2c] sm:$0x2] %v6150_v43  ;;  %6154 = vst [vmem:[#allocation16 + $0x34] sm:$0x2] %v6153_v44  ;;  %v6156_v45 = vsel %vm12163_vm14, %v6125_v40, %v6155_v39  ;;  %10518 = vmatpush3.bf16.msra.mxu0 %v11146_v56  ;;  %v11158_v56 = vld [vmem:[#allocation12] sm:$0xff]  }
 0xc0a   :  { %6157 = vst [vmem:[#allocation16 + $0x3c] sm:$0x2] %v6156_v45  ;;  %10519 = vmatprep.subr.bf16.mxu0 %v11731_v0  ;;  %vm13075_vm14 = vmmov %vm13072_vm9 }
 0xc0b   :  { %10548 = vmatpush3.bf16.msra.mxu1 %v11137_v46 }
 0xc0c   :  { %10549 = vmatprep.subr.bf16.mxu1 %v11731_v0 }
 0xc0d   :  { %10520 = vmatpush3.bf16.msra.mxu0 %v11148_v59  ;;  %v11160_v59 = vld [vmem:[#allocation12 + $0x8] sm:$0xff]  }
 0xc0e   :  { %10525 = vmatprep.subr.bf16.mxu0 %v11731_v0 }
 0xc0f   :  { %10550 = vmatpush3.bf16.msra.mxu1 %v11139_v17 }
 0xc10   :  { %10551 = vmatprep.subr.bf16.mxu1 %v11731_v0 }
 0xc13   :  { %10552 = vmatpush3.bf16.msra.mxu1 %v11141_v50 }
 0xc14   :  { %10553 = vmatprep.subr.bf16.mxu1 %v11731_v0 }
 0xc17   :  { %10554 = vmatpush3.bf16.msra.mxu1 %v11143_v2 }
 0xc18   :  { %10555 = vmatprep.subr.bf16.mxu1 %v11731_v0 }
 0xc1b   :  { %10556 = vmatpush3.bf16.msra.mxu1 %v11145_v54 }
 0xc1c   :  { %10557 = vmatprep.subr.bf16.mxu1 %v11731_v0 }
 0xc1f   :  { %10558 = vmatpush3.bf16.msra.mxu1 %v11147_v57  ;;  %v11151_v57 = vld [vmem:[#allocation13 + $0x48] sm:$0xff]  }
 0xc20   :  { %10559 = vmatprep.subr.bf16.mxu1 %v11731_v0 }
 0xc23   :  { %10560 = vmatpush3.bf16.msra.mxu1 %v11149_v60 }
 0xc24   :  { %10565 = vmatprep.subr.bf16.mxu1 %v11731_v0 }
 0xcb9   :  { %v6788_v1 = vpop.f32.mrb[60].mxu0 }
 0xcba   :  { %v6795_v3 = vrot.slane %v6788_v1, 1  ;;  %v6796_v4 = vrot.slane %v6788_v1, 2  ;;  %v6797_v5 = vrot.slane %v6788_v1, 3  ;;  %v6798_v6 = vrot.slane %v6788_v1, 4  ;;  %v10503_v7 = vpop.f32.mrb[61].mxu0 }
 0xcbb   :  { %v6799_v9 = vrot.slane %v6788_v1, 5  ;;  %v6810_v10 = vadd.f32 %v6788_v1, %v6682_v61  ;;  %v6791_v12 = vpop.f32.mrb[62].mxu0  ;;  %v6800_v14 = vrot.slane %v6788_v1, 6  ;;  %v6801_v19 = vrot.slane %v6788_v1, 7  ;;  %v11152_v61 = vld [vmem:[#allocation13 + $0x50] sm:$0xff]  }
 0xcbc   :  { %v6811_v16 = vadd.f32 %v6795_v3, %v6683_v62  ;;  %v6812_v18 = vadd.f32 %v6796_v4, %v6684_v63  ;;  %v6813_v52 = vadd.f32 %v6797_v5, %v6685_v8  ;;  %v10504_v26 = vpop.f32.mrb[63].mxu0  ;;  %v6814_v20 = vadd.f32 %v6798_v6, %v6686_v15  ;;  %v11153_v4 = vld [vmem:[#allocation13 + $0x58] sm:$0xff]   ;;  %v11154_v5 = vld [vmem:[#allocation13 + $0x60] sm:$0xff]   ;;  %v11155_v6 = vld [vmem:[#allocation13 + $0x68] sm:$0xff]  }
 0xcbd   :  { %11436 = vtanh.f32 %v6810_v10  ;;  %v6815_v22 = vadd.f32 %v6799_v9, %v6687_v21  ;;  %v6816_v27 = vadd.f32 %v6800_v14, %v6688_v47  ;;  %v6817_v28 = vadd.f32 %v6801_v19, %v6689_v25  ;;  %v11156_v9 = vld [vmem:[#allocation13 + $0x70] sm:$0xff]  }
 0xcbe   :  { %11438 = vtanh.f32 %v6811_v16 }
 0xcbf   :  { %11440 = vtanh.f32 %v6812_v18 }
 0xcc0   :  { %11442 = vtanh.f32 %v6813_v52  ;;  %v11157_v52 = vld [vmem:[#allocation13 + $0x78] sm:$0xff]  }
 0xcc1   :  { %11444 = vtanh.f32 %v6814_v20 }
 0xcc2   :  { %11446 = vtanh.f32 %v6815_v22 }
 0xcc3   :  { %11448 = vtanh.f32 %v6816_v27 }
 0xcc4   :  { %11450 = vtanh.f32 %v6817_v28 }
 0xcc7   :  { %v11437_v29 = vpop.eup %11436 }
 0xcc8   :  { %v11439_v30 = vpop.eup %11438 }
 0xcc9   :  { %v11441_v31 = vpop.eup %11440  ;;  %v6834_v32 = vrot.slane %v11439_v30, 7 }
 0xcca   :  { %v11443_v34 = vpop.eup %11442  ;;  %v6836_v35 = vrot.slane %v11441_v31, 6  ;;  %v6656_v31 = vld [vmem:[#allocation16 + $0x4] sm:$0x2] }
 0xccb   :  { %v11445_v58 = vpop.eup %11444  ;;  %v6835_v36 = vsel %vm533_vm1, %v6834_v32, %v11437_v29  ;;  %v6838_v37 = vrot.slane %v11443_v34, 5  ;;  %v11159_v32 = vld [vmem:[#allocation13] sm:$0xff]  }
 0xccc   :  { %v11447_v39 = vpop.eup %11446  ;;  %v6837_v40 = vsel %vm536_vm2, %v6836_v35, %v6835_v36  ;;  %v6840_v41 = vrot.slane %v11445_v58, 4 }
 0xccd   :  { %v11449_v43 = vpop.eup %11448  ;;  %v6839_v44 = vsel %vm539_vm3, %v6838_v37, %v6837_v40  ;;  %v6842_v45 = vrot.slane %v11447_v39, 3 }
 0xcce   :  { %v11451_v46 = vpop.eup %11450  ;;  %v6841_v48 = vsel %vm542_vm4, %v6840_v41, %v6839_v44  ;;  %v6844_v17 = vrot.slane %v11449_v43, 2  ;;  %v6659_v43 = vld [vmem:[#allocation16 + $0xc] sm:$0x2]  ;;  %v6662_v44 = vld [vmem:[#allocation16 + $0x14] sm:$0x2] }
 0xccf   :  { %v6843_v49 = vsel %vm545_vm5, %v6842_v45, %v6841_v48  ;;  %v6846_v50 = vrot.slane %v11451_v46, 1  ;;  %v6668_v45 = vld [vmem:[#allocation16 + $0x24] sm:$0x2] }
 0xcd0   :  { %v6845_v51 = vsel %vm548_vm6, %v6844_v17, %v6843_v49  ;;  %v6665_v17 = vld [vmem:[#allocation16 + $0x1c] sm:$0x2] }
 0xcd1   :  { %v6847_v2 = vsel %vm13075_vm14, %v6846_v50, %v6845_v51  ;;  %v6671_v50 = vld [vmem:[#allocation16 + $0x2c] sm:$0x2]  ;;  %v6674_v51 = vld [vmem:[#allocation16 + $0x34] sm:$0x2] }
 0xcd2   :  { %v6853_v54 = vpack.c.bf16 %v6847_v2, %v6847_v2 }
 0xcd4   :  { %10522 = vmatmul.mubr.bf16.vlgmr.msra.gmra.mrb[64].mxu0 %v6853_v54  ;;  %10562 = vmatmul.mubr.bf16.vlgmr.msra.gmra.mrb[52].mxu1 %v6853_v54 }
 0xcd5   :  { %10526 = vmatpush3.bf16.msra.mxu0 %v11150_v53  ;;  %10541 = vmatprep.mubr.msk.bf16.mxu0 %vm11732_vm0, %v11731_v0 }
 0xcd6   :  { %10527 = vmatprep.subr.bf16.mxu0 %v11731_v0  ;;  %10566 = vmatpush3.bf16.msra.mxu1 %v11158_v56 }
 0xcd7   :  { %10567 = vmatprep.subr.bf16.mxu1 %v11731_v0  ;;  %10581 = vmatprep.mubr.msk.bf16.mxu1 %vm11732_vm0, %v11731_v0 }
 0xcd9   :  { %v6541_v60 = vpop.f32.mrb[48].mxu1  ;;  %10528 = vmatpush3.bf16.msra.mxu0 %v11151_v57  ;;  %v6677_v57 = vld [vmem:[#allocation16 + $0x3c] sm:$0x2] }
 0xcda   :  { %v10736_v62 = vadd.f32 %v12637_v23, %v6541_v60  ;;  %v10483_v63 = vpop.f32.mrb[49].mxu1  ;;  %10529 = vmatprep.subr.bf16.mxu0 %v11731_v0  ;;  %10568 = vmatpush3.bf16.msra.mxu1 %v11160_v59  ;;  %v11161_v60 = vld [vmem:[#allocation13 + $0x8] sm:$0xff]  }
 0xcdb   :  { %v6544_v1 = vpop.f32.mrb[50].mxu1  ;;  %10569 = vmatprep.subr.bf16.mxu1 %v11731_v0  ;;  %v11164_v63 = vld [vmem:[#allocation12 + $0x18] sm:$0xff]  }
 0xcdc   :  { %11452 = vtanh.f32 %v10736_v62  ;;  %v10484_v3 = vpop.f32.mrb[51].mxu1  ;;  %v11163_v62 = vld [vmem:[#allocation13 + $0x10] sm:$0xff]   ;;  %v11165_v1 = vld [vmem:[#allocation13 + $0x18] sm:$0xff]  }
 0xcdd   :  { %10530 = vmatpush3.bf16.msra.mxu0 %v11152_v61  ;;  %v11162_v61 = vld [vmem:[#allocation12 + $0x10] sm:$0xff]   ;;  %v11166_v3 = vld [vmem:[#allocation12 + $0x20] sm:$0xff]  }
 0xcde   :  { %10531 = vmatprep.subr.bf16.mxu0 %v11731_v0  ;;  %10570 = vmatpush3.bf16.msra.mxu1 %v11162_v61 }
 0xcdf   :  { %10571 = vmatprep.subr.bf16.mxu1 %v11731_v0 }
 0xce1   :  { %10532 = vmatpush3.bf16.msra.mxu0 %v11153_v4  ;;  %v11168_v4 = vld [vmem:[#allocation12 + $0x28] sm:$0xff]  }
 0xce2   :  { %10533 = vmatprep.subr.bf16.mxu0 %v11731_v0  ;;  %10572 = vmatpush3.bf16.msra.mxu1 %v11164_v63 }
 0xce3   :  { %10573 = vmatprep.subr.bf16.mxu1 %v11731_v0 }
 0xce5   :  { %10534 = vmatpush3.bf16.msra.mxu0 %v11154_v5  ;;  %v11169_v5 = vld [vmem:[#allocation13 + $0x28] sm:$0xff]  }
 0xce6   :  { %v11453_v23 = vpop.eup %11452  ;;  %10535 = vmatprep.subr.bf16.mxu0 %v11731_v0  ;;  %10574 = vmatpush3.bf16.msra.mxu1 %v11166_v3  ;;  %v11174_v3 = vld [vmem:[#allocation13 + $0x40] sm:$0xff]  }
 0xce7   :  { %v6550_v7 = vpack.c.bf16 %v11453_v23, %v11453_v23  ;;  %10575 = vmatprep.subr.bf16.mxu1 %v11731_v0  ;;  %v11171_v23 = vld [vmem:[#allocation13 + $0x30] sm:$0xff]  }
 0xce9   :  { %v6558_v8 = vrot.slane %v6550_v7, %v12012_v33  ;;  %10536 = vmatpush3.bf16.msra.mxu0 %v11155_v6  ;;  %v11170_v6 = vld [vmem:[#allocation12 + $0x30] sm:$0xff]  }
 0xcea   :  { %10537 = vmatprep.subr.bf16.mxu0 %v11731_v0  ;;  %10576 = vmatpush3.bf16.msra.mxu1 %v11168_v4  ;;  %v11182_v4 = vld [vmem:[#allocation12] sm:$0xff]  }
 0xceb   :  { %v6559_v10 = vcombine.high %v6558_v8, %v6558_v8  ;;  %v6566_v12 = vrot.slane %v6558_v8, %v12012_v33  ;;  %10577 = vmatprep.subr.bf16.mxu1 %v11731_v0  ;;  %v11173_v8 = vld [vmem:[#allocation13 + $0x38] sm:$0xff]  }
 0xced   :  { %v6573_v14 = vrot.slane %v6559_v10, %v12012_v33  ;;  %v6574_v15 = vcombine.high %v6566_v12, %v6566_v12  ;;  %v6577_v16 = vunpack.i.h.s16 %v6566_v12  ;;  %v9165_v18 = vpack.i.b16 %v6566_v12, %v6566_v12  ;;  %10538 = vmatpush3.bf16.msra.mxu0 %v11156_v9  ;;  %v7204_v9 = vld [vmem:[#allocation3 + $0xd] sm:$0x1]  ;;  %v7205_v10 = vld [vmem:[#allocation3 + $0x1d] sm:$0x1] }
 0xcee   :  { %10539 = vmatprep.subr.bf16.mxu0 %v11731_v0  ;;  %10578 = vmatpush3.bf16.msra.mxu1 %v11170_v6  ;;  %v7206_v12 = vld [vmem:[#allocation3 + $0x2d] sm:$0x1]  ;;  %v11184_v6 = vld [vmem:[#allocation12 + $0x8] sm:$0xff]  }
 0xcef   :  { %v6575_v26 = vcombine.high %v6573_v14, %v6573_v14  ;;  %v6579_v19 = vunpack.i.h.s16 %v6573_v14  ;;  %v6581_v20 = vunpack.i.h.s16 %v6574_v15  ;;  %v6585_v21 = vpack.i.b16 %v6577_v16, %v6577_v16  ;;  %10579 = vmatprep.subr.bf16.mxu1 %v11731_v0 }
 0xcf0   :  { %v9166_v47 = vpack.i.b16 %v6573_v14, %v6573_v14  ;;  %v9167_v22 = vpack.i.b16 %v6574_v15, %v6574_v15  ;;  %v6598_v25 = vrot.slane %v9165_v18, %v12018_v42 }
 0xcf1   :  { %v6583_v27 = vunpack.i.h.s16 %v6575_v26  ;;  %v6587_v28 = vpack.i.b16 %v6579_v19, %v6579_v19  ;;  %v6589_v29 = vpack.i.b16 %v6581_v20, %v6581_v20  ;;  %v9168_v30 = vpack.i.b16 %v6575_v26, %v6575_v26  ;;  %10540 = vmatpush3.bf16.msra.mxu0 %v11157_v52  ;;  %v7207_v19 = vld [vmem:[#allocation3 + $0x3d] sm:$0x1] }
 0xcf2   :  { %v6605_v34 = vrot.slane %v6585_v21, %v12018_v42  ;;  %v6612_v35 = vrot.slane %v9166_v47, %v12018_v42  ;;  %v6626_v58 = vrot.slane %v9167_v22, %v12018_v42  ;;  %v6657_v36 = vsel %vm12235_vm8, %v6598_v25, %v6656_v31  ;;  %10605 = vmatprep.subr.bf16.mxu0 %v11731_v0  ;;  %v7208_v25 = vld [vmem:[#allocation3 + $0x4d] sm:$0x1] }
 0xcf3   :  { %v6591_v37 = vpack.i.b16 %v6583_v27, %v6583_v27  ;;  %v6619_v39 = vrot.slane %v6587_v28, %v12018_v42  ;;  %v6633_v40 = vrot.slane %v6589_v29, %v12018_v42  ;;  %v6640_v41 = vrot.slane %v9168_v30, %v12018_v42  ;;  %6658 = vst [vmem:[#allocation16 + $0x4] sm:$0x2] %v6657_v36  ;;  %v7211_v36 = vld [vmem:[#allocation3 + $0x7d] sm:$0x1] }
 0xcf4   :  { %v6660_v46 = vsel %vm12235_vm8, %v6605_v34, %v6659_v43  ;;  %v6663_v48 = vsel %vm12235_vm8, %v6612_v35, %v6662_v44  ;;  %v6669_v49 = vsel %vm12235_vm8, %v6626_v58, %v6668_v45  ;;  %10542 = vmatmul.mubr.bf16.vlgmr.msra.gmra.mrb[64].mxu0 %v6550_v7  ;;  %v11172_v7 = vld [vmem:[#allocation12 + $0x38] sm:$0xff]   ;;  %v7209_v34 = vld [vmem:[#allocation3 + $0x5d] sm:$0x1] }
 0xcf5   :  { %v6647_v2 = vrot.slane %v6591_v37, %v12018_v42  ;;  %6661 = vst [vmem:[#allocation16 + $0xc] sm:$0x2] %v6660_v46  ;;  %6664 = vst [vmem:[#allocation16 + $0x14] sm:$0x2] %v6663_v48  ;;  %v6666_v53 = vsel %vm12235_vm8, %v6619_v39, %v6665_v17  ;;  %v6672_v54 = vsel %vm12235_vm8, %v6633_v40, %v6671_v50  ;;  %10606 = vmatpush3.bf16.msra.mxu0 %v11159_v32  ;;  %v7210_v35 = vld [vmem:[#allocation3 + $0x6d] sm:$0x1] }
 0xcf6   :  { %6670 = vst [vmem:[#allocation16 + $0x24] sm:$0x2] %v6669_v49  ;;  %v6675_v56 = vsel %vm12235_vm8, %v6640_v41, %v6674_v51  ;;  %6667 = vst [vmem:[#allocation16 + $0x1c] sm:$0x2] %v6666_v53  ;;  %10607 = vmatprep.subr.bf16.mxu0 %v11731_v0  ;;  %10621 = vmatprep.mubr.msk.bf16.mxu0 %vm11732_vm0, %v11731_v0 }
 0xcf7   :  { %6673 = vst [vmem:[#allocation16 + $0x2c] sm:$0x2] %v6672_v54  ;;  %6676 = vst [vmem:[#allocation16 + $0x34] sm:$0x2] %v6675_v56  ;;  %v6678_v59 = vsel %vm12235_vm8, %v6647_v2, %v6677_v57  ;;  %10580 = vmatpush3.bf16.msra.mxu1 %v11172_v7 }
 0xcf8   :  { %6679 = vst [vmem:[#allocation16 + $0x3c] sm:$0x2] %v6678_v59  ;;  %10585 = vmatprep.subr.bf16.mxu1 %v11731_v0  ;;  %vm13076_vm8 = vmmov %vm13072_vm9 }
 0xcf9   :  { %10608 = vmatpush3.bf16.msra.mxu0 %v11161_v60 }
 0xcfa   :  { %10609 = vmatprep.subr.bf16.mxu0 %v11731_v0 }
 0xcfd   :  { %10610 = vmatpush3.bf16.msra.mxu0 %v11163_v62 }
 0xcfe   :  { %10611 = vmatprep.subr.bf16.mxu0 %v11731_v0 }
 0xd01   :  { %10612 = vmatpush3.bf16.msra.mxu0 %v11165_v1 }
 0xd02   :  { %10613 = vmatprep.subr.bf16.mxu0 %v11731_v0 }
 0xd05   :  { %10614 = vmatpush3.bf16.msra.mxu0 %v11167_v11 }
 0xd06   :  { %10615 = vmatprep.subr.bf16.mxu0 %v11731_v0 }
 0xd09   :  { %10616 = vmatpush3.bf16.msra.mxu0 %v11169_v5  ;;  %v11175_v5 = vld [vmem:[#allocation13 + $0x48] sm:$0xff]  }
 0xd0a   :  { %10617 = vmatprep.subr.bf16.mxu0 %v11731_v0 }
 0xd0d   :  { %10618 = vmatpush3.bf16.msra.mxu0 %v11171_v23  ;;  %v12834_v23 = vld [vmem:[#allocation15] ss:$0 sm:$0xff] }
 0xd0e   :  { %10619 = vmatprep.subr.bf16.mxu0 %v11731_v0 }
 0xd11   :  { %10620 = vmatpush3.bf16.msra.mxu0 %v11173_v8  ;;  %v11176_v8 = vld [vmem:[#allocation13 + $0x50] sm:$0xff]  }
 0xd12   :  { %10625 = vmatprep.subr.bf16.mxu0 %v11731_v0 }
 0xda7   :  { %v7310_v14 = vpop.f32.mrb[52].mxu1 }
 0xda8   :  { %v7317_v15 = vrot.slane %v7310_v14, 1  ;;  %v7318_v16 = vrot.slane %v7310_v14, 2  ;;  %v7319_v18 = vrot.slane %v7310_v14, 3  ;;  %v7320_v52 = vrot.slane %v7310_v14, 4  ;;  %v10563_v26 = vpop.f32.mrb[53].mxu1 }
 0xda9   :  { %v7321_v20 = vrot.slane %v7310_v14, 5  ;;  %v7332_v21 = vadd.f32 %v7310_v14, %v7204_v9  ;;  %v7313_v47 = vpop.f32.mrb[54].mxu1  ;;  %v7322_v22 = vrot.slane %v7310_v14, 6  ;;  %v7323_v31 = vrot.slane %v7310_v14, 7 }
 0xdaa   :  { %v7333_v27 = vadd.f32 %v7317_v15, %v7205_v10  ;;  %v7334_v28 = vadd.f32 %v7318_v16, %v7206_v12  ;;  %v7335_v29 = vadd.f32 %v7319_v18, %v7207_v19  ;;  %v10564_v30 = vpop.f32.mrb[55].mxu1  ;;  %v7336_v32 = vadd.f32 %v7320_v52, %v7208_v25  ;;  %v11177_v15 = vld [vmem:[#allocation13 + $0x58] sm:$0xff]   ;;  %v11178_v16 = vld [vmem:[#allocation13 + $0x60] sm:$0xff]   ;;  %v11179_v18 = vld [vmem:[#allocation13 + $0x68] sm:$0xff]  }
 0xdab   :  { %11454 = vtanh.f32 %v7332_v21  ;;  %v7337_v58 = vadd.f32 %v7321_v20, %v7209_v34  ;;  %v7338_v37 = vadd.f32 %v7322_v22, %v7210_v35  ;;  %v7339_v39 = vadd.f32 %v7323_v31, %v7211_v36  ;;  %v11180_v20 = vld [vmem:[#allocation13 + $0x70] sm:$0xff]   ;;  %v7178_v35 = vld [vmem:[#allocation16 + $0x4] sm:$0x4] }
 0xdac   :  { %11456 = vtanh.f32 %v7333_v27 }
 0xdad   :  { %11458 = vtanh.f32 %v7334_v28 }
 0xdae   :  { %11460 = vtanh.f32 %v7335_v29  ;;  %v11181_v29 = vld [vmem:[#allocation13 + $0x78] sm:$0xff]  }
 0xdaf   :  { %11462 = vtanh.f32 %v7336_v32 }
 0xdb0   :  { %11464 = vtanh.f32 %v7337_v58 }
 0xdb1   :  { %11466 = vtanh.f32 %v7338_v37 }
 0xdb2   :  { %11468 = vtanh.f32 %v7339_v39  ;;  %v7181_v39 = vld [vmem:[#allocation16 + $0xc] sm:$0x4] }
 0xdb5   :  { %v11455_v40 = vpop.eup %11454 }
 0xdb6   :  { %v11457_v41 = vpop.eup %11456 }
 0xdb7   :  { %v11459_v43 = vpop.eup %11458  ;;  %v7356_v44 = vrot.slane %v11457_v41, 7 }
 0xdb8   :  { %v11461_v45 = vpop.eup %11460  ;;  %v7358_v46 = vrot.slane %v11459_v43, 6 }
 0xdb9   :  { %v11463_v48 = vpop.eup %11462  ;;  %v7357_v17 = vsel %vm533_vm1, %v7356_v44, %v11455_v40  ;;  %v7360_v49 = vrot.slane %v11461_v45, 5  ;;  %v7184_v45 = vld [vmem:[#allocation16 + $0x14] sm:$0x4] }
 0xdba   :  { %v11465_v50 = vpop.eup %11464  ;;  %v7359_v51 = vsel %vm536_vm2, %v7358_v46, %v7357_v17  ;;  %v7362_v2 = vrot.slane %v11463_v48, 4  ;;  %v7190_v46 = vld [vmem:[#allocation16 + $0x24] sm:$0x4]  ;;  %v11183_v48 = vld [vmem:[#allocation13] sm:$0xff]  }
 0xdbb   :  { %v11467_v53 = vpop.eup %11466  ;;  %v7361_v54 = vsel %vm539_vm3, %v7360_v49, %v7359_v51  ;;  %v7364_v56 = vrot.slane %v11465_v50, 3 }
 0xdbc   :  { %v11469_v57 = vpop.eup %11468  ;;  %v7363_v59 = vsel %vm542_vm4, %v7362_v2, %v7361_v54  ;;  %v7366_v60 = vrot.slane %v11467_v53, 2  ;;  %v7187_v2 = vld [vmem:[#allocation16 + $0x1c] sm:$0x4]  ;;  %v7193_v53 = vld [vmem:[#allocation16 + $0x2c] sm:$0x4] }
 0xdbd   :  { %v7365_v61 = vsel %vm545_vm5, %v7364_v56, %v7363_v59  ;;  %v7368_v62 = vrot.slane %v11469_v57, 1  ;;  %v7196_v54 = vld [vmem:[#allocation16 + $0x34] sm:$0x4] }
 0xdbe   :  { %v7367_v63 = vsel %vm548_vm6, %v7366_v60, %v7365_v61 }
 0xdbf   :  { %v7369_v1 = vsel %vm13076_vm8, %v7368_v62, %v7367_v63 }
 0xdc0   :  { %v7375_v11 = vpack.c.bf16 %v7369_v1, %v7369_v1  ;;  %v7199_v1 = vld [vmem:[#allocation16 + $0x3c] sm:$0x4] }
 0xdc2   :  { %10582 = vmatmul.mubr.bf16.vlgmr.msra.gmra.mrb[56].mxu1 %v7375_v11  ;;  %10622 = vmatmul.mubr.bf16.vlgmr.msra.gmra.mrb[68].mxu0 %v7375_v11 }
 0xdc3   :  { %10586 = vmatpush3.bf16.msra.mxu1 %v11174_v3  ;;  %10601 = vmatprep.mubr.msk.bf16.mxu1 %vm11732_vm0, %v11731_v0 }
 0xdc4   :  { %10587 = vmatprep.subr.bf16.mxu1 %v11731_v0  ;;  %10626 = vmatpush3.bf16.msra.mxu0 %v11182_v4 }
 0xdc5   :  { %10627 = vmatprep.subr.bf16.mxu0 %v11731_v0  ;;  %10641 = vmatprep.mubr.msk.bf16.mxu0 %vm11732_vm0, %v11731_v0 }
 0xdc7   :  { %v7063_v7 = vpop.f32.mrb[64].mxu0  ;;  %10588 = vmatpush3.bf16.msra.mxu1 %v11175_v5 }
 0xdc8   :  { %v10737_v9 = vadd.f32 %v12834_v23, %v7063_v7  ;;  %v10543_v10 = vpop.f32.mrb[65].mxu0  ;;  %10589 = vmatprep.subr.bf16.mxu1 %v11731_v0  ;;  %10628 = vmatpush3.bf16.msra.mxu0 %v11184_v6  ;;  %v11185_v7 = vld [vmem:[#allocation13 + $0x8] sm:$0xff]  }
 0xdc9   :  { %v7066_v12 = vpop.f32.mrb[66].mxu0  ;;  %10629 = vmatprep.subr.bf16.mxu0 %v11731_v0  ;;  %v11188_v10 = vld [vmem:[#allocation12 + $0x18] sm:$0xff]  }
 0xdca   :  { %11470 = vtanh.f32 %v10737_v9  ;;  %v10544_v14 = vpop.f32.mrb[67].mxu0  ;;  %v11187_v9 = vld [vmem:[#allocation13 + $0x10] sm:$0xff]   ;;  %v11189_v12 = vld [vmem:[#allocation13 + $0x18] sm:$0xff]  }
 0xdcb   :  { %10590 = vmatpush3.bf16.msra.mxu1 %v11176_v8  ;;  %v11186_v8 = vld [vmem:[#allocation12 + $0x10] sm:$0xff]   ;;  %v11190_v14 = vld [vmem:[#allocation12 + $0x20] sm:$0xff]  }
 0xdcc   :  { %10591 = vmatprep.subr.bf16.mxu1 %v11731_v0  ;;  %10630 = vmatpush3.bf16.msra.mxu0 %v11186_v8 }
 0xdcd   :  { %10631 = vmatprep.subr.bf16.mxu0 %v11731_v0 }
 0xdcf   :  { %10592 = vmatpush3.bf16.msra.mxu1 %v11177_v15  ;;  %v11192_v15 = vld [vmem:[#allocation12 + $0x28] sm:$0xff]  }
 0xdd0   :  { %10593 = vmatprep.subr.bf16.mxu1 %v11731_v0  ;;  %10632 = vmatpush3.bf16.msra.mxu0 %v11188_v10 }
 0xdd1   :  { %10633 = vmatprep.subr.bf16.mxu0 %v11731_v0 }
 0xdd3   :  { %10594 = vmatpush3.bf16.msra.mxu1 %v11178_v16  ;;  %v11193_v16 = vld [vmem:[#allocation13 + $0x28] sm:$0xff]  }
 0xdd4   :  { %v11471_v52 = vpop.eup %11470  ;;  %10595 = vmatprep.subr.bf16.mxu1 %v11731_v0  ;;  %10634 = vmatpush3.bf16.msra.mxu0 %v11190_v14  ;;  %v11198_v14 = vld [vmem:[#allocation13 + $0x40] sm:$0xff]  }
 0xdd5   :  { %v7072_v26 = vpack.c.bf16 %v11471_v52, %v11471_v52  ;;  %10635 = vmatprep.subr.bf16.mxu0 %v11731_v0  ;;  %v11195_v52 = vld [vmem:[#allocation13 + $0x30] sm:$0xff]  }
 0xdd7   :  { %v7080_v19 = vrot.slane %v7072_v26, %v12012_v33  ;;  %10596 = vmatpush3.bf16.msra.mxu1 %v11179_v18  ;;  %v11194_v18 = vld [vmem:[#allocation12 + $0x30] sm:$0xff]  }
 0xdd8   :  { %10597 = vmatprep.subr.bf16.mxu1 %v11731_v0  ;;  %10636 = vmatpush3.bf16.msra.mxu0 %v11192_v15  ;;  %v11206_v15 = vld [vmem:[#allocation12] sm:$0xff]  }
 0xdd9   :  { %v7081_v21 = vcombine.high %v7080_v19, %v7080_v19  ;;  %v7088_v47 = vrot.slane %v7080_v19, %v12012_v33  ;;  %10637 = vmatprep.subr.bf16.mxu0 %v11731_v0  ;;  %v11197_v19 = vld [vmem:[#allocation13 + $0x38] sm:$0xff]  }
 0xddb   :  { %v7095_v22 = vrot.slane %v7081_v21, %v12012_v33  ;;  %v7096_v25 = vcombine.high %v7088_v47, %v7088_v47  ;;  %v7099_v27 = vunpack.i.h.s16 %v7088_v47  ;;  %v9194_v28 = vpack.i.b16 %v7088_v47, %v7088_v47  ;;  %10598 = vmatpush3.bf16.msra.mxu1 %v11180_v20  ;;  %v7726_v20 = vld [vmem:[#allocation3 + $0xe] sm:$0x1]  ;;  %v7727_v21 = vld [vmem:[#allocation3 + $0x1e] sm:$0x1] }
 0xddc   :  { %10599 = vmatprep.subr.bf16.mxu1 %v11731_v0  ;;  %10638 = vmatpush3.bf16.msra.mxu0 %v11194_v18  ;;  %v7728_v47 = vld [vmem:[#allocation3 + $0x2e] sm:$0x1]  ;;  %v11207_v18 = vld [vmem:[#allocation12 + $0x8] sm:$0xff]  }
 0xddd   :  { %v7097_v30 = vcombine.high %v7095_v22, %v7095_v22  ;;  %v7101_v31 = vunpack.i.h.s16 %v7095_v22  ;;  %v7103_v32 = vunpack.i.h.s16 %v7096_v25  ;;  %v7107_v34 = vpack.i.b16 %v7099_v27, %v7099_v27  ;;  %10639 = vmatprep.subr.bf16.mxu0 %v11731_v0 }
 0xdde   :  { %v9195_v58 = vpack.i.b16 %v7095_v22, %v7095_v22  ;;  %v9196_v36 = vpack.i.b16 %v7096_v25, %v7096_v25  ;;  %v7120_v37 = vrot.slane %v9194_v28, %v12018_v42 }
 0xddf   :  { %v7105_v40 = vunpack.i.h.s16 %v7097_v30  ;;  %v7109_v41 = vpack.i.b16 %v7101_v31, %v7101_v31  ;;  %v7111_v43 = vpack.i.b16 %v7103_v32, %v7103_v32  ;;  %v9197_v44 = vpack.i.b16 %v7097_v30, %v7097_v30  ;;  %10600 = vmatpush3.bf16.msra.mxu1 %v11181_v29  ;;  %v7729_v31 = vld [vmem:[#allocation3 + $0x3e] sm:$0x1] }
 0xde0   :  { %v7127_v17 = vrot.slane %v7107_v34, %v12018_v42  ;;  %v7134_v49 = vrot.slane %v9195_v58, %v12018_v42  ;;  %v7148_v50 = vrot.slane %v9196_v36, %v12018_v42  ;;  %v7179_v51 = vsel %vm12305_vm11, %v7120_v37, %v7178_v35  ;;  %10665 = vmatprep.subr.bf16.mxu1 %v11731_v0  ;;  %v7730_v36 = vld [vmem:[#allocation3 + $0x4e] sm:$0x1] }
 0xde1   :  { %v7113_v56 = vpack.i.b16 %v7105_v40, %v7105_v40  ;;  %v7141_v57 = vrot.slane %v7109_v41, %v12018_v42  ;;  %v7155_v59 = vrot.slane %v7111_v43, %v12018_v42  ;;  %v7162_v60 = vrot.slane %v9197_v44, %v12018_v42  ;;  %7180 = vst [vmem:[#allocation16 + $0x4] sm:$0x4] %v7179_v51 }
 0xde2   :  { %v7182_v61 = vsel %vm12305_vm11, %v7127_v17, %v7181_v39  ;;  %v7185_v62 = vsel %vm12305_vm11, %v7134_v49, %v7184_v45  ;;  %v7191_v63 = vsel %vm12305_vm11, %v7148_v50, %v7190_v46  ;;  %10602 = vmatmul.mubr.bf16.vlgmr.msra.gmra.mrb[56].mxu1 %v7072_v26  ;;  %v11196_v26 = vld [vmem:[#allocation12 + $0x38] sm:$0xff]   ;;  %v7731_v45 = vld [vmem:[#allocation3 + $0x5e] sm:$0x1] }
 0xde3   :  { %v7169_v3 = vrot.slane %v7113_v56, %v12018_v42  ;;  %7183 = vst [vmem:[#allocation16 + $0xc] sm:$0x4] %v7182_v61  ;;  %7186 = vst [vmem:[#allocation16 + $0x14] sm:$0x4] %v7185_v62  ;;  %v7188_v11 = vsel %vm12305_vm11, %v7141_v57, %v7187_v2  ;;  %v7194_v4 = vsel %vm12305_vm11, %v7155_v59, %v7193_v53  ;;  %10666 = vmatpush3.bf16.msra.mxu1 %v11183_v48  ;;  %v7732_v46 = vld [vmem:[#allocation3 + $0x6e] sm:$0x1] }
 0xde4   :  { %7192 = vst [vmem:[#allocation16 + $0x24] sm:$0x4] %v7191_v63  ;;  %v7197_v5 = vsel %vm12305_vm11, %v7162_v60, %v7196_v54  ;;  %7189 = vst [vmem:[#allocation16 + $0x1c] sm:$0x4] %v7188_v11  ;;  %10667 = vmatprep.subr.bf16.mxu1 %v11731_v0  ;;  %10681 = vmatprep.mubr.msk.bf16.mxu1 %vm11732_vm0, %v11731_v0  ;;  %v7733_v17 = vld [vmem:[#allocation3 + $0x7e] sm:$0x1] }
 0xde5   :  { %7195 = vst [vmem:[#allocation16 + $0x2c] sm:$0x4] %v7194_v4  ;;  %7198 = vst [vmem:[#allocation16 + $0x34] sm:$0x4] %v7197_v5  ;;  %v7200_v6 = vsel %vm12305_vm11, %v7169_v3, %v7199_v1  ;;  %10640 = vmatpush3.bf16.msra.mxu0 %v11196_v26  ;;  %v11200_v26 = vld [vmem:[#allocation13 + $0x50] sm:$0xff]  }
 0xde6   :  { %7201 = vst [vmem:[#allocation16 + $0x3c] sm:$0x4] %v7200_v6  ;;  %10645 = vmatprep.subr.bf16.mxu0 %v11731_v0  ;;  %vm13077_vm11 = vmmov %vm13076_vm8 }
 0xde7   :  { %10668 = vmatpush3.bf16.msra.mxu1 %v11185_v7 }
 0xde8   :  { %10669 = vmatprep.subr.bf16.mxu1 %v11731_v0 }
 0xdeb   :  { %10670 = vmatpush3.bf16.msra.mxu1 %v11187_v9 }
 0xdec   :  { %10671 = vmatprep.subr.bf16.mxu1 %v11731_v0 }
 0xdef   :  { %10672 = vmatpush3.bf16.msra.mxu1 %v11189_v12 }
 0xdf0   :  { %10673 = vmatprep.subr.bf16.mxu1 %v11731_v0 }
 0xdf3   :  { %10674 = vmatpush3.bf16.msra.mxu1 %v11191_v24 }
 0xdf4   :  { %10675 = vmatprep.subr.bf16.mxu1 %v11731_v0 }
 0xdf7   :  { %10676 = vmatpush3.bf16.msra.mxu1 %v11193_v16  ;;  %v11199_v16 = vld [vmem:[#allocation13 + $0x48] sm:$0xff]  }
 0xdf8   :  { %10677 = vmatprep.subr.bf16.mxu1 %v11731_v0 }
 0xdfb   :  { %10678 = vmatpush3.bf16.msra.mxu1 %v11195_v52 }
 0xdfc   :  { %10679 = vmatprep.subr.bf16.mxu1 %v11731_v0 }
 0xdff   :  { %10680 = vmatpush3.bf16.msra.mxu1 %v11197_v19 }
 0xe00   :  { %10685 = vmatprep.subr.bf16.mxu1 %v11731_v0 }
 0xe95   :  { %v7832_v22 = vpop.f32.mrb[68].mxu0 }
 0xe96   :  { %v7839_v25 = vrot.slane %v7832_v22, 1  ;;  %v7840_v27 = vrot.slane %v7832_v22, 2  ;;  %v7841_v28 = vrot.slane %v7832_v22, 3  ;;  %v7842_v29 = vrot.slane %v7832_v22, 4  ;;  %v10623_v30 = vpop.f32.mrb[69].mxu0 }
 0xe97   :  { %v7843_v32 = vrot.slane %v7832_v22, 5  ;;  %v7854_v34 = vadd.f32 %v7832_v22, %v7726_v20  ;;  %v7835_v35 = vpop.f32.mrb[70].mxu0  ;;  %v7844_v58 = vrot.slane %v7832_v22, 6  ;;  %v7845_v43 = vrot.slane %v7832_v22, 7  ;;  %v11201_v22 = vld [vmem:[#allocation13 + $0x58] sm:$0xff]  }
 0xe98   :  { %v7855_v37 = vadd.f32 %v7839_v25, %v7727_v21  ;;  %v7856_v39 = vadd.f32 %v7840_v27, %v7728_v47  ;;  %v7857_v40 = vadd.f32 %v7841_v28, %v7729_v31  ;;  %v10624_v41 = vpop.f32.mrb[71].mxu0  ;;  %v7858_v44 = vadd.f32 %v7842_v29, %v7730_v36  ;;  %v11202_v25 = vld [vmem:[#allocation13 + $0x60] sm:$0xff]   ;;  %v11203_v27 = vld [vmem:[#allocation13 + $0x68] sm:$0xff]   ;;  %v11204_v31 = vld [vmem:[#allocation13 + $0x70] sm:$0xff]  }
 0xe99   :  { %11472 = vtanh.f32 %v7854_v34  ;;  %v7859_v48 = vadd.f32 %v7843_v32, %v7731_v45  ;;  %v7860_v49 = vadd.f32 %v7844_v58, %v7732_v46  ;;  %v7861_v50 = vadd.f32 %v7845_v43, %v7733_v17 }
 0xe9a   :  { %11474 = vtanh.f32 %v7855_v37 }
 0xe9b   :  { %11476 = vtanh.f32 %v7856_v39  ;;  %v11205_v39 = vld [vmem:[#allocation13 + $0x78] sm:$0xff]  }
 0xe9c   :  { %11478 = vtanh.f32 %v7857_v40 }
 0xe9d   :  { %11480 = vtanh.f32 %v7858_v44 }
 0xe9e   :  { %11482 = vtanh.f32 %v7859_v48 }
 0xe9f   :  { %11484 = vtanh.f32 %v7860_v49 }
 0xea0   :  { %11486 = vtanh.f32 %v7861_v50 }
 0xea3   :  { %v11473_v51 = vpop.eup %11472 }
 0xea4   :  { %v11475_v2 = vpop.eup %11474 }
 0xea5   :  { %v11477_v53 = vpop.eup %11476  ;;  %v7878_v54 = vrot.slane %v11475_v2, 7  ;;  %v7700_v2 = vld [vmem:[#allocation16 + $0x4] sm:$0x4] }
 0xea6   :  { %v11479_v56 = vpop.eup %11478  ;;  %v7880_v57 = vrot.slane %v11477_v53, 6 }
 0xea7   :  { %v11481_v59 = vpop.eup %11480  ;;  %v7879_v60 = vsel %vm533_vm1, %v7878_v54, %v11473_v51  ;;  %v7882_v61 = vrot.slane %v11479_v56, 5 }
 0xea8   :  { %v11483_v62 = vpop.eup %11482  ;;  %v7881_v63 = vsel %vm536_vm2, %v7880_v57, %v7879_v60  ;;  %v7884_v1 = vrot.slane %v11481_v59, 4 }
 0xea9   :  { %v11485_v3 = vpop.eup %11484  ;;  %v7883_v11 = vsel %vm539_vm3, %v7882_v61, %v7881_v63  ;;  %v7886_v4 = vrot.slane %v11483_v62, 3  ;;  %v7703_v63 = vld [vmem:[#allocation16 + $0xc] sm:$0x4] }
 0xeaa   :  { %v11487_v5 = vpop.eup %11486  ;;  %v7885_v6 = vsel %vm542_vm4, %v7884_v1, %v7883_v11  ;;  %v7888_v7 = vrot.slane %v11485_v3, 2  ;;  %v7706_v1 = vld [vmem:[#allocation16 + $0x14] sm:$0x4]  ;;  %v7712_v3 = vld [vmem:[#allocation16 + $0x24] sm:$0x4] }
 0xeab   :  { %v7887_v8 = vsel %vm545_vm5, %v7886_v4, %v7885_v6  ;;  %v7890_v9 = vrot.slane %v11487_v5, 1  ;;  %v7709_v5 = vld [vmem:[#allocation16 + $0x1c] sm:$0x4] }
 0xeac   :  { %v7889_v10 = vsel %vm548_vm6, %v7888_v7, %v7887_v8  ;;  %v7715_v7 = vld [vmem:[#allocation16 + $0x2c] sm:$0x4]  ;;  %v7718_v8 = vld [vmem:[#allocation16 + $0x34] sm:$0x4] }
 0xead   :  { %v7891_v12 = vsel %vm13077_vm11, %v7890_v9, %v7889_v10 }
 0xeae   :  { %v7897_v24 = vpack.c.bf16 %v7891_v12, %v7891_v12 }
 0xeb0   :  { %10642 = vmatmul.mubr.bf16.vlgmr.msra.gmra.mrb[72].mxu0 %v7897_v24  ;;  %10682 = vmatmul.mubr.bf16.vlgmr.msra.gmra.mrb[60].mxu1 %v7897_v24  ;;  %v7721_v24 = vld [vmem:[#allocation16 + $0x3c] sm:$0x4] }
 0xeb1   :  { %10646 = vmatpush3.bf16.msra.mxu0 %v11198_v14  ;;  %10661 = vmatprep.mubr.msk.bf16.mxu0 %vm11732_vm0, %v11731_v0 }
 0xeb2   :  { %10647 = vmatprep.subr.bf16.mxu0 %v11731_v0  ;;  %10686 = vmatpush3.bf16.msra.mxu1 %v11206_v15 }
 0xeb3   :  { %10687 = vmatprep.subr.bf16.mxu1 %v11731_v0  ;;  %10701 = vmatprep.mubr.msk.bf16.mxu1 %vm11732_vm0, %v11731_v0 }
 0xeb5   :  { %v7585_v52 = vpop.f32.mrb[56].mxu1  ;;  %10648 = vmatpush3.bf16.msra.mxu0 %v11199_v16  ;;  %v11208_v16 = vld [vmem:[#allocation12 + $0x10] sm:$0xff]  }
 0xeb6   :  { %v10738_v19 = vadd.f32 %v12834_v23, %v7585_v52  ;;  %v10603_v20 = vpop.f32.mrb[57].mxu1  ;;  %10649 = vmatprep.subr.bf16.mxu0 %v11731_v0  ;;  %10688 = vmatpush3.bf16.msra.mxu1 %v11207_v18  ;;  %v11209_v18 = vld [vmem:[#allocation12 + $0x18] sm:$0xff]   ;;  %v11210_v52 = vld [vmem:[#allocation12 + $0x20] sm:$0xff]  }
 0xeb7   :  { %v7588_v21 = vpop.f32.mrb[58].mxu1  ;;  %10689 = vmatprep.subr.bf16.mxu1 %v11731_v0  ;;  %v8248_v20 = vld [vmem:[#allocation3 + $0xf] sm:$0x1] }
 0xeb8   :  { %11488 = vtanh.f32 %v10738_v19  ;;  %v10604_v47 = vpop.f32.mrb[59].mxu1  ;;  %v11212_v19 = vld [vmem:[#allocation12 + $0x30] sm:$0xff]   ;;  %v8249_v21 = vld [vmem:[#allocation3 + $0x1f] sm:$0x1] }
 0xeb9   :  { %10650 = vmatpush3.bf16.msra.mxu0 %v11200_v26  ;;  %v11211_v26 = vld [vmem:[#allocation12 + $0x28] sm:$0xff]   ;;  %v8250_v47 = vld [vmem:[#allocation3 + $0x2f] sm:$0x1] }
 0xeba   :  { %10651 = vmatprep.subr.bf16.mxu0 %v11731_v0  ;;  %10690 = vmatpush3.bf16.msra.mxu1 %v11208_v16 }
 0xebb   :  { %10691 = vmatprep.subr.bf16.mxu1 %v11731_v0 }
 0xebd   :  { %10652 = vmatpush3.bf16.msra.mxu0 %v11201_v22 }
 0xebe   :  { %10653 = vmatprep.subr.bf16.mxu0 %v11731_v0  ;;  %10692 = vmatpush3.bf16.msra.mxu1 %v11209_v18  ;;  %v11216_v18 = vld [vmem:[#allocation13 + $0x50] sm:$0xff]  }
 0xebf   :  { %10693 = vmatprep.subr.bf16.mxu1 %v11731_v0 }
 0xec1   :  { %10654 = vmatpush3.bf16.msra.mxu0 %v11202_v25 }
 0xec2   :  { %v11489_v28 = vpop.eup %11488  ;;  %10655 = vmatprep.subr.bf16.mxu0 %v11731_v0  ;;  %10694 = vmatpush3.bf16.msra.mxu1 %v11210_v52 }
 0xec3   :  { %v7594_v29 = vpack.c.bf16 %v11489_v28, %v11489_v28  ;;  %10695 = vmatprep.subr.bf16.mxu1 %v11731_v0 }
 0xec5   :  { %v7602_v30 = vrot.slane %v7594_v29, %v12012_v33  ;;  %10656 = vmatpush3.bf16.msra.mxu0 %v11203_v27 }
 0xec6   :  { %10657 = vmatprep.subr.bf16.mxu0 %v11731_v0  ;;  %10696 = vmatpush3.bf16.msra.mxu1 %v11211_v26 }
 0xec7   :  { %v7603_v32 = vcombine.high %v7602_v30, %v7602_v30  ;;  %v7610_v34 = vrot.slane %v7602_v30, %v12012_v33  ;;  %10697 = vmatprep.subr.bf16.mxu1 %v11731_v0 }
 0xec9   :  { %v7617_v35 = vrot.slane %v7603_v32, %v12012_v33  ;;  %v7618_v58 = vcombine.high %v7610_v34, %v7610_v34  ;;  %v7621_v36 = vunpack.i.h.s16 %v7610_v34  ;;  %v9223_v37 = vpack.i.b16 %v7610_v34, %v7610_v34  ;;  %10658 = vmatpush3.bf16.msra.mxu0 %v11204_v31  ;;  %v8251_v31 = vld [vmem:[#allocation3 + $0x3f] sm:$0x1] }
 0xeca   :  { %10659 = vmatprep.subr.bf16.mxu0 %v11731_v0  ;;  %10698 = vmatpush3.bf16.msra.mxu1 %v11212_v19 }
 0xecb   :  { %v7619_v40 = vcombine.high %v7617_v35, %v7617_v35  ;;  %v7623_v41 = vunpack.i.h.s16 %v7617_v35  ;;  %v7625_v43 = vunpack.i.h.s16 %v7618_v58  ;;  %v7629_v44 = vpack.i.b16 %v7621_v36, %v7621_v36  ;;  %10699 = vmatprep.subr.bf16.mxu1 %v11731_v0  ;;  %v8252_v36 = vld [vmem:[#allocation3 + $0x4f] sm:$0x1] }
 0xecc   :  { %v9224_v45 = vpack.i.b16 %v7617_v35, %v7617_v35  ;;  %v9225_v46 = vpack.i.b16 %v7618_v58, %v7618_v58  ;;  %v7642_v48 = vrot.slane %v9223_v37, %v12018_v42 }
 0xecd   :  { %v7627_v17 = vunpack.i.h.s16 %v7619_v40  ;;  %v7631_v49 = vpack.i.b16 %v7623_v41, %v7623_v41  ;;  %v7633_v50 = vpack.i.b16 %v7625_v43, %v7625_v43  ;;  %v9226_v51 = vpack.i.b16 %v7619_v40, %v7619_v40  ;;  %10660 = vmatpush3.bf16.msra.mxu0 %v11205_v39 }
 0xece   :  { %v7649_v53 = vrot.slane %v7629_v44, %v12018_v42  ;;  %v7656_v54 = vrot.slane %v9224_v45, %v12018_v42  ;;  %v7670_v56 = vrot.slane %v9225_v46, %v12018_v42  ;;  %v7701_v57 = vsel %vm12375_vm15, %v7642_v48, %v7700_v2  ;;  %10700 = vmatpush3.bf16.msra.mxu1 %v11213_v38  ;;  %v8253_v45 = vld [vmem:[#allocation3 + $0x5f] sm:$0x1]  ;;  %v8254_v46 = vld [vmem:[#allocation3 + $0x6f] sm:$0x1] }
 0xecf   :  { %v7635_v59 = vpack.i.b16 %v7627_v17, %v7627_v17  ;;  %v7663_v60 = vrot.slane %v7631_v49, %v12018_v42  ;;  %v7677_v61 = vrot.slane %v7633_v50, %v12018_v42  ;;  %v7684_v62 = vrot.slane %v9226_v51, %v12018_v42  ;;  %7702 = vst [vmem:[#allocation16 + $0x4] sm:$0x4] %v7701_v57  ;;  %v8255_v17 = vld [vmem:[#allocation3 + $0x7f] sm:$0x1] }
 0xed0   :  { %v7704_v11 = vsel %vm12375_vm15, %v7649_v53, %v7703_v63  ;;  %v7707_v4 = vsel %vm12375_vm15, %v7656_v54, %v7706_v1  ;;  %v7713_v6 = vsel %vm12375_vm15, %v7670_v56, %v7712_v3  ;;  %10662 = vmatmul.mubr.bf16.vlgmr.msra.gmra.mrb[72].mxu0 %v7594_v29  ;;  %10705 = vmatprep.subr.bf16.mxu1 %v11731_v0 }
 0xed1   :  { %v7691_v9 = vrot.slane %v7635_v59, %v12018_v42  ;;  %7705 = vst [vmem:[#allocation16 + $0xc] sm:$0x4] %v7704_v11  ;;  %7708 = vst [vmem:[#allocation16 + $0x14] sm:$0x4] %v7707_v4  ;;  %v7710_v10 = vsel %vm12375_vm15, %v7663_v60, %v7709_v5  ;;  %v7716_v12 = vsel %vm12375_vm15, %v7677_v61, %v7715_v7 }
 0xed2   :  { %7714 = vst [vmem:[#allocation16 + $0x24] sm:$0x4] %v7713_v6  ;;  %v7719_v14 = vsel %vm12375_vm15, %v7684_v62, %v7718_v8  ;;  %7711 = vst [vmem:[#allocation16 + $0x1c] sm:$0x4] %v7710_v10 }
 0xed3   :  { %7717 = vst [vmem:[#allocation16 + $0x2c] sm:$0x4] %v7716_v12  ;;  %7720 = vst [vmem:[#allocation16 + $0x34] sm:$0x4] %v7719_v14  ;;  %v7722_v15 = vsel %vm12375_vm15, %v7691_v9, %v7721_v24  ;;  %v11214_v14 = vld [vmem:[#allocation13 + $0x40] sm:$0xff]  }
 0xed4   :  { %7723 = vst [vmem:[#allocation16 + $0x3c] sm:$0x4] %v7722_v15  ;;  %vm13078_vm15 = vmmov %vm13076_vm8  ;;  %v11215_v15 = vld [vmem:[#allocation13 + $0x48] sm:$0xff]  }
 0xf83   :  { %v8354_v22 = vpop.f32.mrb[60].mxu1 }
 0xf84   :  { %v8361_v25 = vrot.slane %v8354_v22, 1  ;;  %v8362_v27 = vrot.slane %v8354_v22, 2  ;;  %v8363_v28 = vrot.slane %v8354_v22, 3  ;;  %v8364_v29 = vrot.slane %v8354_v22, 4  ;;  %v10683_v30 = vpop.f32.mrb[61].mxu1 }
 0xf85   :  { %v8365_v32 = vrot.slane %v8354_v22, 5  ;;  %v8376_v34 = vadd.f32 %v8354_v22, %v8248_v20  ;;  %v8357_v35 = vpop.f32.mrb[62].mxu1  ;;  %v8366_v58 = vrot.slane %v8354_v22, 6  ;;  %v8367_v43 = vrot.slane %v8354_v22, 7  ;;  %v11217_v20 = vld [vmem:[#allocation13 + $0x58] sm:$0xff]  }
 0xf86   :  { %v8377_v37 = vadd.f32 %v8361_v25, %v8249_v21  ;;  %v8378_v39 = vadd.f32 %v8362_v27, %v8250_v47  ;;  %v8379_v40 = vadd.f32 %v8363_v28, %v8251_v31  ;;  %v10684_v41 = vpop.f32.mrb[63].mxu1  ;;  %v8380_v44 = vadd.f32 %v8364_v29, %v8252_v36  ;;  %v11218_v21 = vld [vmem:[#allocation13 + $0x60] sm:$0xff]   ;;  %v11219_v47 = vld [vmem:[#allocation13 + $0x68] sm:$0xff]   ;;  %v11220_v27 = vld [vmem:[#allocation13 + $0x70] sm:$0xff]  }
 0xf87   :  { %11490 = vtanh.f32 %v8376_v34  ;;  %v8381_v48 = vadd.f32 %v8365_v32, %v8253_v45  ;;  %v8382_v49 = vadd.f32 %v8366_v58, %v8254_v46  ;;  %v8383_v50 = vadd.f32 %v8367_v43, %v8255_v17  ;;  %v11221_v35 = vld [vmem:[#allocation13 + $0x78] sm:$0xff]  }
 0xf88   :  { %11492 = vtanh.f32 %v8377_v37 }
 0xf89   :  { %11494 = vtanh.f32 %v8378_v39 }
 0xf8a   :  { %11496 = vtanh.f32 %v8379_v40  ;;  %v8222_v40 = vld [vmem:[#allocation16 + $0x4] sm:$0x8] }
 0xf8b   :  { %11498 = vtanh.f32 %v8380_v44 }
 0xf8c   :  { %11500 = vtanh.f32 %v8381_v48 }
 0xf8d   :  { %11502 = vtanh.f32 %v8382_v49  ;;  %v8225_v49 = vld [vmem:[#allocation16 + $0xc] sm:$0x8] }
 0xf8e   :  { %11504 = vtanh.f32 %v8383_v50  ;;  %v8228_v50 = vld [vmem:[#allocation16 + $0x14] sm:$0x8] }
 0xf91   :  { %v11491_v51 = vpop.eup %11490 }
 0xf92   :  { %v11493_v2 = vpop.eup %11492 }
 0xf93   :  { %v11495_v53 = vpop.eup %11494  ;;  %v8400_v54 = vrot.slane %v11493_v2, 7 }
 0xf94   :  { %v11497_v56 = vpop.eup %11496  ;;  %v8402_v57 = vrot.slane %v11495_v53, 6 }
 0xf95   :  { %v11499_v59 = vpop.eup %11498  ;;  %v8401_v60 = vsel %vm533_vm1, %v8400_v54, %v11491_v51  ;;  %v8404_v61 = vrot.slane %v11497_v56, 5  ;;  %v8234_v51 = vld [vmem:[#allocation16 + $0x24] sm:$0x8]  ;;  %v8231_v56 = vld [vmem:[#allocation16 + $0x1c] sm:$0x8] }
 0xf96   :  { %v11501_v62 = vpop.eup %11500  ;;  %v8403_v63 = vsel %vm536_vm2, %v8402_v57, %v8401_v60  ;;  %v8406_v1 = vrot.slane %v11499_v59, 4  ;;  %v8237_v57 = vld [vmem:[#allocation16 + $0x2c] sm:$0x8]  ;;  %v8240_v59 = vld [vmem:[#allocation16 + $0x34] sm:$0x8] }
 0xf97   :  { %v11503_v3 = vpop.eup %11502  ;;  %v8405_v11 = vsel %vm539_vm3, %v8404_v61, %v8403_v63  ;;  %v8408_v4 = vrot.slane %v11501_v62, 3 }
 0xf98   :  { %v11505_v5 = vpop.eup %11504  ;;  %v8407_v6 = vsel %vm542_vm4, %v8406_v1, %v8405_v11  ;;  %v8410_v7 = vrot.slane %v11503_v3, 2 }
 0xf99   :  { %v8409_v8 = vsel %vm545_vm5, %v8408_v4, %v8407_v6  ;;  %v8412_v9 = vrot.slane %v11505_v5, 1  ;;  %v8243_v4 = vld [vmem:[#allocation16 + $0x3c] sm:$0x8] }
 0xf9a   :  { %v8411_v10 = vsel %vm548_vm6, %v8410_v7, %v8409_v8 }
 0xf9b   :  { %v8413_v12 = vsel %vm13078_vm15, %v8412_v9, %v8411_v10 }
 0xf9c   :  { %v8419_v24 = vpack.c.bf16 %v8413_v12, %v8413_v12 }
 0xf9e   :  { %10702 = vmatmul.mubr.bf16.vlgmr.msra.gmra.mrb[64].mxu1 %v8419_v24 }
 0xf9f   :  { %10706 = vmatpush3.bf16.msra.mxu1 %v11214_v14  ;;  %10721 = vmatprep.mubr.msk.bf16.mxu1 %vm11732_vm0, %v11731_v0 }
 0xfa0   :  { %10707 = vmatprep.subr.bf16.mxu1 %v11731_v0 }
 0xfa3   :  { %v8107_v16 = vpop.f32.mrb[72].mxu0  ;;  %10708 = vmatpush3.bf16.msra.mxu1 %v11215_v15 }
 0xfa4   :  { %v10739_v52 = vadd.f32 %v12834_v23, %v8107_v16  ;;  %v10663_v26 = vpop.f32.mrb[73].mxu0  ;;  %10709 = vmatprep.subr.bf16.mxu1 %v11731_v0 }
 0xfa5   :  { %v8110_v19 = vpop.f32.mrb[74].mxu0 }
 0xfa6   :  { %11506 = vtanh.f32 %v10739_v52  ;;  %v10664_v38 = vpop.f32.mrb[75].mxu0 }
 0xfa7   :  { %10710 = vmatpush3.bf16.msra.mxu1 %v11216_v18 }
 0xfa8   :  { %10711 = vmatprep.subr.bf16.mxu1 %v11731_v0 }
 0xfab   :  { %10712 = vmatpush3.bf16.msra.mxu1 %v11217_v20 }
 0xfac   :  { %10713 = vmatprep.subr.bf16.mxu1 %v11731_v0 }
 0xfaf   :  { %10714 = vmatpush3.bf16.msra.mxu1 %v11218_v21 }
 0xfb0   :  { %v11507_v22 = vpop.eup %11506  ;;  %10715 = vmatprep.subr.bf16.mxu1 %v11731_v0 }
 0xfb1   :  { %v8116_v23 = vpack.c.bf16 %v11507_v22, %v11507_v22 }
 0xfb3   :  { %v8124_v25 = vrot.slane %v8116_v23, %v12012_v33  ;;  %10716 = vmatpush3.bf16.msra.mxu1 %v11219_v47 }
 0xfb4   :  { %10717 = vmatprep.subr.bf16.mxu1 %v11731_v0 }
 0xfb5   :  { %v8125_v28 = vcombine.high %v8124_v25, %v8124_v25  ;;  %v8132_v29 = vrot.slane %v8124_v25, %v12012_v33 }
 0xfb7   :  { %v8139_v30 = vrot.slane %v8125_v28, %v12012_v33  ;;  %v8140_v31 = vcombine.high %v8132_v29, %v8132_v29  ;;  %v8143_v32 = vunpack.i.h.s16 %v8132_v29  ;;  %v9252_v34 = vpack.i.b16 %v8132_v29, %v8132_v29  ;;  %10718 = vmatpush3.bf16.msra.mxu1 %v11220_v27 }
 0xfb8   :  { %10719 = vmatprep.subr.bf16.mxu1 %v11731_v0 }
 0xfb9   :  { %v8141_v58 = vcombine.high %v8139_v30, %v8139_v30  ;;  %v8145_v36 = vunpack.i.h.s16 %v8139_v30  ;;  %v8147_v37 = vunpack.i.h.s16 %v8140_v31  ;;  %v8151_v39 = vpack.i.b16 %v8143_v32, %v8143_v32 }
 0xfba   :  { %v9253_v41 = vpack.i.b16 %v8139_v30, %v8139_v30  ;;  %v9254_v43 = vpack.i.b16 %v8140_v31, %v8140_v31  ;;  %v8164_v44 = vrot.slane %v9252_v34, %v12018_v42 }
 0xfbb   :  { %v8149_v45 = vunpack.i.h.s16 %v8141_v58  ;;  %v8153_v46 = vpack.i.b16 %v8145_v36, %v8145_v36  ;;  %v8155_v48 = vpack.i.b16 %v8147_v37, %v8147_v37  ;;  %v9255_v17 = vpack.i.b16 %v8141_v58, %v8141_v58  ;;  %10720 = vmatpush3.bf16.msra.mxu1 %v11221_v35 }
 0xfbc   :  { %v8171_v2 = vrot.slane %v8151_v39, %v12018_v42  ;;  %v8178_v0 = vrot.slane %v9253_v41, %v12018_v42  ;;  %v8192_v53 = vrot.slane %v9254_v43, %v12018_v42  ;;  %v8223_v54 = vsel %vm12447_vm13, %v8164_v44, %v8222_v40 }
 0xfbd   :  { %v8157_v60 = vpack.i.b16 %v8149_v45, %v8149_v45  ;;  %v8185_v61 = vrot.slane %v8153_v46, %v12018_v42  ;;  %v8199_v62 = vrot.slane %v8155_v48, %v12018_v42  ;;  %v8206_v63 = vrot.slane %v9255_v17, %v12018_v42  ;;  %8224 = vst [vmem:[#allocation16 + $0x4] sm:$0x8] %v8223_v54 }
 0xfbe   :  { %v8226_v1 = vsel %vm12447_vm13, %v8171_v2, %v8225_v49  ;;  %v8229_v3 = vsel %vm12447_vm13, %v8178_v0, %v8228_v50  ;;  %v8235_v11 = vsel %vm12447_vm13, %v8192_v53, %v8234_v51  ;;  %10722 = vmatmul.mubr.bf16.vlgmr.msra.gmra.mrb[64].mxu1 %v8116_v23 }
 0xfbf   :  { %v8213_v5 = vrot.slane %v8157_v60, %v12018_v42  ;;  %8227 = vst [vmem:[#allocation16 + $0xc] sm:$0x8] %v8226_v1  ;;  %8230 = vst [vmem:[#allocation16 + $0x14] sm:$0x8] %v8229_v3  ;;  %v8232_v6 = vsel %vm12447_vm13, %v8185_v61, %v8231_v56  ;;  %v8238_v7 = vsel %vm12447_vm13, %v8199_v62, %v8237_v57 }
 0xfc0   :  { %8236 = vst [vmem:[#allocation16 + $0x24] sm:$0x8] %v8235_v11  ;;  %v8241_v8 = vsel %vm12447_vm13, %v8206_v63, %v8240_v59  ;;  %8233 = vst [vmem:[#allocation16 + $0x1c] sm:$0x8] %v8232_v6 }
 0xfc1   :  { %8239 = vst [vmem:[#allocation16 + $0x2c] sm:$0x8] %v8238_v7  ;;  %8242 = vst [vmem:[#allocation16 + $0x34] sm:$0x8] %v8241_v8  ;;  %v8244_v9 = vsel %vm12447_vm13, %v8213_v5, %v8243_v4 }
 0xfc2   :  { %8245 = vst [vmem:[#allocation16 + $0x3c] sm:$0x8] %v8244_v9 }
 0xfc3   :  { %11675 = shalt.err (!%p11672_p4)
}
 0xfc4   :  { %s11676_s30 = scalar_lea.hbm %s13054_s8, 256 }
 0xfc5   :  { %p11677_p5 = scmp.ne.s32.totalorder %s13054_s8, %s11676_s30  ;;  %p11680_p6 = scmp.lt.u32.totalorder %s11676_s30, %s13054_s8 }
 0xfc7   :  { %p11682_p7 = pnand %p11680_p6, %p11677_p5 }
 0xfc9   :  { %11685 = shalt.err (!%p11682_p7)
}
 0xfca   :  { %8791 = dma.vmem_to_hbm [thread:$0]  %s8786_s27, 256, %s13054_s8, [#allocation18], %s11721_s15, %s11721_s15, %s11722_s16   ;;  %v9264_v55 = vld [vmem:[#allocation15] ss:$0 sm:$0xff]  ;;  %v8744_v58 = vld [vmem:[#allocation16 + $0x4] sm:$0x8] }
 0xfcb   :  { %v8747_v40 = vld [vmem:[#allocation16 + $0xc] sm:$0x8]  ;;  %v8750_v46 = vld [vmem:[#allocation16 + $0x14] sm:$0x8]  ;;  %v8756_v48 = vld [vmem:[#allocation16 + $0x24] sm:$0x8] }
 0xfcc   :  { %s11736_s8 = smov [#allocation16]   ;;  %v8753_v50 = vld [vmem:[#allocation16 + $0x1c] sm:$0x8]  ;;  %v8759_v2 = vld [vmem:[#allocation16 + $0x2c] sm:$0x8] }
 0xfcd   :  { %s8773_s15 = sshll.u32 %s11736_s8, 4  ;;  %v8762_v0 = vld [vmem:[#allocation16 + $0x34] sm:$0x8]  ;;  %v8765_v59 = vld [vmem:[#allocation16 + $0x3c] sm:$0x8]  ;;  %s8774_s15 = int_to_ptr.vmem [resolvable:$true] %s8773_s15 }
 0xfce   :  { %s11686_s16 = scalar_lea.vmem %s8774_s15, 1024  ;;  %p11691_p9 = scmp.lt.s32.totalorder %s8774_s15, %s8774_s15 }
 0xfcf   :  { %p11687_p8 = scmp.ne.s32.totalorder %s8774_s15, %s11686_s16  ;;  %p11692_p10 = scmp.lt.s32.totalorder %s11686_s16, %s11686_s16 }
 0xfd1   :  { %p11693_p11 = por %p11692_p10, %p11691_p9 }
 0xfd3   :  { %p11694_p12 = pnand %p11693_p11, %p11687_p8 }
0x1091   :  { %v8629_v10 = vpop.f32.mrb[64].mxu1 }
0x1092   :  { %v10740_v12 = vadd.f32 %v9264_v55, %v8629_v10  ;;  %v10723_v14 = vpop.f32.mrb[65].mxu1 }
0x1093   :  { %v8632_v24 = vpop.f32.mrb[66].mxu1 }
0x1094   :  { %11508 = vtanh.f32 %v10740_v12  ;;  %v10724_v15 = vpop.f32.mrb[67].mxu1 }
0x109e   :  { %v11509_v16 = vpop.eup %11508 }
0x109f   :  { %v8638_v18 = vpack.c.bf16 %v11509_v16, %v11509_v16 }
0x10a1   :  { %v8646_v52 = vrot.slane %v8638_v18, %v12012_v33 }
0x10a3   :  { %v8647_v26 = vcombine.high %v8646_v52, %v8646_v52  ;;  %v8654_v19 = vrot.slane %v8646_v52, %v12012_v33 }
0x10a5   :  { %v8661_v38 = vrot.slane %v8647_v26, %v12012_v33  ;;  %v8662_v20 = vcombine.high %v8654_v19, %v8654_v19  ;;  %v8665_v21 = vunpack.i.h.s16 %v8654_v19  ;;  %v9281_v47 = vpack.i.b16 %v8654_v19, %v8654_v19 }
0x10a7   :  { %v8663_v22 = vcombine.high %v8661_v38, %v8661_v38  ;;  %v8667_v23 = vunpack.i.h.s16 %v8661_v38  ;;  %v8669_v25 = vunpack.i.h.s16 %v8662_v20  ;;  %v8673_v27 = vpack.i.b16 %v8665_v21, %v8665_v21 }
0x10a8   :  { %v9282_v28 = vpack.i.b16 %v8661_v38, %v8661_v38  ;;  %v9283_v29 = vpack.i.b16 %v8662_v20, %v8662_v20  ;;  %v8686_v30 = vrot.slane %v9281_v47, %v12018_v42 }
0x10a9   :  { %v8671_v31 = vunpack.i.h.s16 %v8663_v22  ;;  %v8675_v32 = vpack.i.b16 %v8667_v23, %v8667_v23  ;;  %v8677_v34 = vpack.i.b16 %v8669_v25, %v8669_v25  ;;  %v9284_v35 = vpack.i.b16 %v8663_v22, %v8663_v22 }
0x10aa   :  { %v8693_v36 = vrot.slane %v8673_v27, %v12018_v42  ;;  %v8700_v33 = vrot.slane %v9282_v28, %v12018_v42  ;;  %v8714_v37 = vrot.slane %v9283_v29, %v12018_v42  ;;  %v8745_v39 = vsel %vm12517_vm7, %v8686_v30, %v8744_v58 }
0x10ab   :  { %v8679_v41 = vpack.i.b16 %v8671_v31, %v8671_v31  ;;  %v8707_v43 = vrot.slane %v8675_v32, %v12018_v42  ;;  %v8721_v44 = vrot.slane %v8677_v34, %v12018_v42  ;;  %v8728_v45 = vrot.slane %v9284_v35, %v12018_v42  ;;  %8746 = vst [vmem:[#allocation16 + $0x4] sm:$0x8] %v8745_v39 }
0x10ac   :  { %v8748_v17 = vsel %vm12517_vm7, %v8693_v36, %v8747_v40  ;;  %v8751_v49 = vsel %vm12517_vm7, %v8700_v33, %v8750_v46  ;;  %v8757_v51 = vsel %vm12517_vm7, %v8714_v37, %v8756_v48 }
0x10ad   :  { %v8735_v53 = vrot.slane %v8679_v41, %v12018_v42  ;;  %8749 = vst [vmem:[#allocation16 + $0xc] sm:$0x8] %v8748_v17  ;;  %8752 = vst [vmem:[#allocation16 + $0x14] sm:$0x8] %v8751_v49  ;;  %v8754_v54 = vsel %vm12517_vm7, %v8707_v43, %v8753_v50  ;;  %v8760_v56 = vsel %vm12517_vm7, %v8721_v44, %v8759_v2 }
0x10ae   :  { %8758 = vst [vmem:[#allocation16 + $0x24] sm:$0x8] %v8757_v51  ;;  %v8763_v57 = vsel %vm12517_vm7, %v8728_v45, %v8762_v0  ;;  %8755 = vst [vmem:[#allocation16 + $0x1c] sm:$0x8] %v8754_v54 }
0x10af   :  { %8761 = vst [vmem:[#allocation16 + $0x2c] sm:$0x8] %v8760_v56  ;;  %8764 = vst [vmem:[#allocation16 + $0x34] sm:$0x8] %v8763_v57  ;;  %v8766_v42 = vsel %vm12517_vm7, %v8735_v53, %v8765_v59 }
0x10b0   :  { %8767 = vst [vmem:[#allocation16 + $0x3c] sm:$0x8] %v8766_v42 }
0x10b1   :  { %11697 = shalt.err (!%p11694_p12)
}
0x10b2   :  { %s11698_s19 = scalar_lea.hbm %s13053_s7, 1024 }
0x10b3   :  { %p11699_p13 = scmp.ne.s32.totalorder %s13053_s7, %s11698_s19  ;;  %p11702_p0 = scmp.lt.u32.totalorder %s11698_s19, %s13053_s7 }
0x10b5   :  { %p11704_p1 = pnand %p11702_p0, %p11699_p13 }
0x10b7   :  { %11707 = shalt.err (!%p11704_p1)
}
0x10b8   :  { %8779 = dma.vmem_to_hbm [thread:$0]  %s8774_s15, 1024, %s13053_s7, [#allocation6], %s11726_s20, %s11726_s20, %s11727_s23  }
0x10b9   :  { %11716 = dma.done.wait [#allocation6], 1024  }
0x10ba   :  { %11717 = vsyncadd [#allocation6], 4294966272 }
0x10bb   :  { %11718 = dma.done.wait [#allocation18], 256  }
0x10bc   :  { %11719 = vsyncadd [#allocation18], 4294967040 }
0x10bd   :  { %8798 = vsyncpa [#allocation5], 1 }
0x10be   :  { %8799 = vsyncpa [#allocation8], 1 }
0x10bf   :  { %8800 = vsyncpa [#allocation11], 1 }
0x10c0   :  { %8801 = vsyncpa [#allocation14], 1 }
0x10c1   :  { %8802 = vsyncpa [#allocation6], 1 }
0x10c2   :  { %8803 = vsyncpa [#allocation18], 1 }

</bundles_post_ra>
